<compile_context>
chip_gen: v7x
topology: tpu7x:2x2x1
jax: 0.10.0
libtpu: 0.0.40
codegen_flags: <defaults>
</compile_context>

<pallas_src>
import jax
import jax.numpy as jnp
from jax.experimental import pallas as pl
from jax.experimental.pallas import tpu as pltpu

D = 8
WIDTH = 256
INPUT_CH = 3
INPUT_CH_VIEWS = 3
OUTPUT_CH = 6
OUT_PAD = 128          # lane-dense padded output width
SKIPS = (4,)           # skip-concat of input_pts happens after pts_linears[4]
N_SUB = 2              # in-kernel M sub-blocks (layer-epilogue / MXU overlap)


def nerf_kernel(x_ref, w_small_ref, w_stack_ref, b_stack_ref, wo_ref, bo_ref,
                o_ref):
    """One row-tile (split into N_SUB sub-blocks) through the 8-layer MLP."""
    f32 = jnp.float32
    bf16 = jnp.bfloat16

    rows = x_ref.shape[0]
    sub = rows // N_SUB

    w0 = w_small_ref[0]            # (3, 256) f32 : pts_linears[0]   (VPU path)
    w5p = w_small_ref[1]           # (3, 256) f32 : pts part of layer 5 (VPU)
    b = b_stack_ref[...]           # (8, 256) f32 : biases for layers 0..7
    wo = wo_ref[...]               # (256, 128) bf16 : padded output head
    bo = bo_ref[...]               # (1, 128) f32

    x = x_ref[...]                 # (rows, 6)

    def mxu(h_f32, w_bf16, bias_f32):
        # bf16 MXU matmul, f32 accumulation; bias add on the VPU in f32.
        return jnp.dot(h_f32.astype(bf16), w_bf16,
                       preferred_element_type=f32) + bias_f32

    # ---- layer 0 + skip term: fused K=3 VPU pass. A K=3 matmul would waste a
    # full MXU pass for 3/256 of the work; fusing the two accumulators reuses
    # each broadcast pts column (halves XLU broadcast work, fewer temporaries).
    hs, skip_terms = [], []
    for s in range(N_SUB):
        pts = x[s * sub:(s + 1) * sub, :INPUT_CH].astype(f32)
        a0 = jnp.broadcast_to(b[0:1, :], (sub, WIDTH))          # layer-0 acc
        a5 = jnp.broadcast_to(b[5:6, :], (sub, WIDTH))          # skip-term acc
        for k in range(INPUT_CH):
            colb = jnp.broadcast_to(pts[:, k:k + 1], (sub, WIDTH))
            a0 = a0 + colb * w0[k:k + 1, :]
            a5 = a5 + colb * w5p[k:k + 1, :]
        hs.append(jnp.maximum(a0, 0.0))                          # pts_linears[0]
        skip_terms.append(a5)                                    # pts @ W5[:3] + b5

    # ---- layers 1..4 (each sub-block chain is independent -> interleavable)
    for layer in range(1, 5):
        wl = w_stack_ref[layer - 1]                              # (256,256) bf16
        bl = b[layer:layer + 1, :]
        hs = [jnp.maximum(mxu(h, wl, bl), 0.0) for h in hs]

    # ---- layer 5 (skip): cat([pts, h]) @ W5 + b5 == pts@W5[:3] + h@W5[3:] + b5
    w5h = w_stack_ref[4]
    hs = [jnp.maximum(mxu(hs[s], w5h, skip_terms[s]), 0.0)
          for s in range(N_SUB)]

    # ---- layers 6, 7
    for layer in range(6, 8):
        wl = w_stack_ref[layer - 1]
        bl = b[layer:layer + 1, :]
        hs = [jnp.maximum(mxu(h, wl, bl), 0.0) for h in hs]

    # ---- output head, padded to 128 lanes (padded cols exact zero), bf16 store
    for s in range(N_SUB):
        out = mxu(hs[s], wo, bo)
        o_ref[s * sub:(s + 1) * sub, :] = out.astype(o_ref.dtype)


def _pick_tm(n, tm_max=2048, min_blocks=4):
    """Multiple of 256, <= tm_max, and small enough that the grid has >=
    min_blocks steps (keeps both v7x TCs fed and the pipeline warm)."""
    tm = -(-n // min_blocks)              # cdiv(n, min_blocks)
    tm = -(-tm // 256) * 256              # round up to multiple of 256
    return max(256, min(tm_max, tm))


def nerf_forward(x, flat_params, *, tm=None):
    N, C = x.shape
    assert C == INPUT_CH + INPUT_CH_VIEWS

    if tm is None:
        tm = _pick_tm(N)
    n_blocks = pl.cdiv(N, tm)
    n_pad = n_blocks * tm
    if n_pad != N:
        x = jnp.pad(x, ((0, n_pad - N), (0, 0)))

    in_specs = [pl.BlockSpec((tm, C), lambda i: (i, 0))]
    # Parameters are passed whole (full-array blocks), resident in VMEM.
    # Packed into 5 arrays (~1 MB total) -> short DMA prologue; even
    # double-buffered they are tiny relative to the scoped-VMEM budget.
    for p in flat_params:
        in_specs.append(pl.BlockSpec(p.shape, lambda i, nd=p.ndim: (0,) * nd))

    out = pl.pallas_call(
        nerf_kernel,
        out_shape=jax.ShapeDtypeStruct((n_pad, OUT_PAD), jnp.bfloat16),
        grid_spec=pltpu.PrefetchScalarGridSpec(
            num_scalar_prefetch=0,
            grid=(n_blocks,),
            in_specs=in_specs,
            out_specs=pl.BlockSpec((tm, OUT_PAD), lambda i: (i, 0)),
        ),
        compiler_params=pltpu.CompilerParams(
            dimension_semantics=("parallel",),
            vmem_limit_bytes=32 * 1024 * 1024,   # v5e default (16 MiB) is too
                                                 # tight at tm=2048; 32 MiB is
                                                 # safe on every generation.
        ),
    )(x, *flat_params)
    return out[:N, :OUTPUT_CH].astype(jnp.float32)


def init_params(key):
    """Deterministic synthetic params; shapes match NeRF.__init__ (D=8, W=256)."""
    in_dims = [INPUT_CH] + [WIDTH + INPUT_CH if (i in SKIPS) else WIDTH
                            for i in range(D - 1)]
    keys = jax.random.split(key, 2 * D + 2)
    ws, bs = [], []
    for i, din in enumerate(in_dims):
        scale = 1.0 / jnp.sqrt(jnp.float32(din))
        ws.append(jax.random.uniform(keys[2 * i], (din, WIDTH), jnp.float32,
                                     -scale, scale))
        bs.append(jax.random.uniform(keys[2 * i + 1], (1, WIDTH), jnp.float32,
                                     -scale, scale))
    scale = 1.0 / jnp.sqrt(jnp.float32(WIDTH))
    wo = jax.random.uniform(keys[-2], (WIDTH, OUTPUT_CH), jnp.float32, -scale, scale)
    bo = jax.random.uniform(keys[-1], (1, OUTPUT_CH), jnp.float32, -scale, scale)
    # TODO(synk): views_linears params exist in __init__ but are never used in
    # forward(); they are intentionally not materialized here.
    return ws, bs, wo, bo


def flatten_for_kernel(ws, bs, wo, bo):
    """Pack params for the kernel: one bf16 (7,256,256) MXU weight stack,
    one (8,256) f32 bias stack, (2,3,256) f32 VPU weights, padded output head."""
    bf16 = jnp.bfloat16
    # Split the skip layer's (W+3, W) weight into pts / h parts so the concat
    # becomes VPU MAC + matmul (mathematically identical).
    w_small = jnp.stack([ws[0], ws[5][:INPUT_CH, :]])              # (2,3,256) f32
    w_stack = jnp.stack([ws[1], ws[2], ws[3], ws[4],
                         ws[5][INPUT_CH:, :], ws[6], ws[7]]).astype(bf16)
    b_stack = jnp.concatenate(bs, axis=0)                          # (8,256) f32
    wo_pad = jnp.zeros((WIDTH, OUT_PAD), jnp.float32).at[:, :OUTPUT_CH].set(wo)
    wo_pad = wo_pad.astype(bf16)                                   # zeros exact
    bo_pad = jnp.zeros((1, OUT_PAD), jnp.float32).at[:, :OUTPUT_CH].set(bo)
    return [w_small, w_stack, b_stack, wo_pad, bo_pad]


def nerf_reference(x, ws, bs, wo, bo):
    """Pure-JAX f32 reference mirroring the PyTorch forward exactly."""
    pts = x[:, :INPUT_CH]
    h = pts
    for i in range(D):
        h = jnp.maximum(h @ ws[i] + bs[i], 0.0)
        if i in SKIPS:
            h = jnp.concatenate([pts, h], axis=-1)
    return h @ wo + bo


if __name__ == "__main__":
    key = jax.random.PRNGKey(0)
    k_x, k_p = jax.random.split(key)

    # N=1000: not a multiple of 256 -> exercises padding; adaptive tm=256 gives
    # a 4-step grid (2 steps per v7x TensorCore).
    N = 1000
    x = jax.random.normal(k_x, (N, INPUT_CH + INPUT_CH_VIEWS), jnp.float32)

    ws, bs, wo, bo = init_params(k_p)
    flat = flatten_for_kernel(ws, bs, wo, bo)

    out = nerf_forward(x, flat)
    out = jax.block_until_ready(out)

    ref = nerf_reference(x, ws, bs, wo, bo)
    assert out.shape == (N, OUTPUT_CH)
    # bf16 matmuls (f32 accumulation) + bf16 output store: relaxed, scale-aware bound.
    rel_err = jnp.max(jnp.abs(out - ref)) / (jnp.max(jnp.abs(ref)) + 1e-6)
    assert rel_err < 5e-2, f"relative error too large: {rel_err}"
    print("KERNEL_OK")
</pallas_src>

<mosaic_0001>
module attributes {stable_mosaic.version = 11 : i64} {
  func.func @nerf_kernel(%arg0: i32, %arg1: memref<256x6xf32, #tpu.memory_space<vmem>>, %arg2: memref<2x3x256xf32, #tpu.memory_space<vmem>>, %arg3: memref<7x256x256xbf16, #tpu.memory_space<vmem>>, %arg4: memref<8x256xf32, #tpu.memory_space<vmem>>, %arg5: memref<256x128xbf16, #tpu.memory_space<vmem>>, %arg6: memref<1x128xf32, #tpu.memory_space<vmem>>, %arg7: memref<256x128xbf16, #tpu.memory_space<vmem>>) attributes {dimension_semantics = [#tpu.dimension_semantics<parallel>], iteration_bounds = array<i64: 4>, scalar_prefetch = 0 : i64, scratch_operands = 0 : i64, tpu.core_type = #tpu.core_type<tc>, window_params = [{transform_indices = @transform_0, window_bounds = array<i64: 256, 6>}, {pipeline_mode = #tpu.pipeline_mode<synchronous>, transform_indices = @transform_1, window_bounds = array<i64: 2, 3, 256>}, {pipeline_mode = #tpu.pipeline_mode<synchronous>, transform_indices = @transform_2, window_bounds = array<i64: 7, 256, 256>}, {pipeline_mode = #tpu.pipeline_mode<synchronous>, transform_indices = @transform_3, window_bounds = array<i64: 8, 256>}, {pipeline_mode = #tpu.pipeline_mode<synchronous>, transform_indices = @transform_4, window_bounds = array<i64: 256, 128>}, {pipeline_mode = #tpu.pipeline_mode<synchronous>, transform_indices = @transform_5, window_bounds = array<i64: 1, 128>}, {transform_indices = @transform_6, window_bounds = array<i64: 256, 128>}]} {
    %c0 = arith.constant 0 : index
    %c0_0 = arith.constant 0 : index
    %c0_1 = arith.constant 0 : index
    %0 = vector.load %arg2[%c0, %c0_0, %c0_1] : memref<2x3x256xf32, #tpu.memory_space<vmem>>, vector<1x3x256xf32>
    %1 = vector.shape_cast %0 : vector<1x3x256xf32> to vector<3x256xf32>
    %c1 = arith.constant 1 : index
    %c0_2 = arith.constant 0 : index
    %c0_3 = arith.constant 0 : index
    %2 = vector.load %arg2[%c1, %c0_2, %c0_3] : memref<2x3x256xf32, #tpu.memory_space<vmem>>, vector<1x3x256xf32>
    %3 = vector.shape_cast %2 : vector<1x3x256xf32> to vector<3x256xf32>
    %c0_4 = arith.constant 0 : index
    %c0_5 = arith.constant 0 : index
    %4 = vector.load %arg4[%c0_4, %c0_5] : memref<8x256xf32, #tpu.memory_space<vmem>>, vector<8x256xf32>
    %c0_6 = arith.constant 0 : index
    %c0_7 = arith.constant 0 : index
    %5 = vector.load %arg5[%c0_6, %c0_7] : memref<256x128xbf16, #tpu.memory_space<vmem>>, vector<256x128xbf16>
    %c0_8 = arith.constant 0 : index
    %c0_9 = arith.constant 0 : index
    %6 = vector.load %arg6[%c0_8, %c0_9] : memref<1x128xf32, #tpu.memory_space<vmem>>, vector<1x128xf32>
    %c0_10 = arith.constant 0 : index
    %c0_11 = arith.constant 0 : index
    %7 = vector.load %arg1[%c0_10, %c0_11] : memref<256x6xf32, #tpu.memory_space<vmem>>, vector<256x6xf32>
    %8 = vector.extract_strided_slice %7 {offsets = [0, 0], sizes = [128, 3], strides = [1, 1]} : vector<256x6xf32> to vector<128x3xf32>
    %9 = vector.extract_strided_slice %4 {offsets = [0, 0], sizes = [1, 256], strides = [1, 1]} : vector<8x256xf32> to vector<1x256xf32>
    %10 = vector.shape_cast %9 : vector<1x256xf32> to vector<1x256xf32>
    %11 = vector.broadcast %10 : vector<1x256xf32> to vector<128x256xf32>
    %12 = vector.extract_strided_slice %4 {offsets = [5, 0], sizes = [1, 256], strides = [1, 1]} : vector<8x256xf32> to vector<1x256xf32>
    %13 = vector.shape_cast %12 : vector<1x256xf32> to vector<1x256xf32>
    %14 = vector.broadcast %13 : vector<1x256xf32> to vector<128x256xf32>
    %15 = vector.extract_strided_slice %8 {offsets = [0, 0], sizes = [128, 1], strides = [1, 1]} : vector<128x3xf32> to vector<128x1xf32>
    %16 = vector.shape_cast %15 : vector<128x1xf32> to vector<128x1xf32>
    %17 = vector.broadcast %16 : vector<128x1xf32> to vector<128x256xf32>
    %18 = vector.extract_strided_slice %1 {offsets = [0, 0], sizes = [1, 256], strides = [1, 1]} : vector<3x256xf32> to vector<1x256xf32>
    %19 = vector.broadcast %18 : vector<1x256xf32> to vector<128x256xf32>
    %20 = arith.mulf %17, %19 : vector<128x256xf32>
    %21 = arith.addf %11, %20 : vector<128x256xf32>
    %22 = vector.extract_strided_slice %3 {offsets = [0, 0], sizes = [1, 256], strides = [1, 1]} : vector<3x256xf32> to vector<1x256xf32>
    %23 = vector.broadcast %22 : vector<1x256xf32> to vector<128x256xf32>
    %24 = arith.mulf %17, %23 : vector<128x256xf32>
    %25 = arith.addf %14, %24 : vector<128x256xf32>
    %26 = vector.extract_strided_slice %8 {offsets = [0, 1], sizes = [128, 1], strides = [1, 1]} : vector<128x3xf32> to vector<128x1xf32>
    %27 = vector.shape_cast %26 : vector<128x1xf32> to vector<128x1xf32>
    %28 = vector.broadcast %27 : vector<128x1xf32> to vector<128x256xf32>
    %29 = vector.extract_strided_slice %1 {offsets = [1, 0], sizes = [1, 256], strides = [1, 1]} : vector<3x256xf32> to vector<1x256xf32>
    %30 = vector.broadcast %29 : vector<1x256xf32> to vector<128x256xf32>
    %31 = arith.mulf %28, %30 : vector<128x256xf32>
    %32 = arith.addf %21, %31 : vector<128x256xf32>
    %33 = vector.extract_strided_slice %3 {offsets = [1, 0], sizes = [1, 256], strides = [1, 1]} : vector<3x256xf32> to vector<1x256xf32>
    %34 = vector.broadcast %33 : vector<1x256xf32> to vector<128x256xf32>
    %35 = arith.mulf %28, %34 : vector<128x256xf32>
    %36 = arith.addf %25, %35 : vector<128x256xf32>
    %37 = vector.extract_strided_slice %8 {offsets = [0, 2], sizes = [128, 1], strides = [1, 1]} : vector<128x3xf32> to vector<128x1xf32>
    %38 = vector.shape_cast %37 : vector<128x1xf32> to vector<128x1xf32>
    %39 = vector.broadcast %38 : vector<128x1xf32> to vector<128x256xf32>
    %40 = vector.extract_strided_slice %1 {offsets = [2, 0], sizes = [1, 256], strides = [1, 1]} : vector<3x256xf32> to vector<1x256xf32>
    %41 = vector.broadcast %40 : vector<1x256xf32> to vector<128x256xf32>
    %42 = arith.mulf %39, %41 : vector<128x256xf32>
    %43 = arith.addf %32, %42 : vector<128x256xf32>
    %44 = vector.extract_strided_slice %3 {offsets = [2, 0], sizes = [1, 256], strides = [1, 1]} : vector<3x256xf32> to vector<1x256xf32>
    %45 = vector.broadcast %44 : vector<1x256xf32> to vector<128x256xf32>
    %46 = arith.mulf %39, %45 : vector<128x256xf32>
    %47 = arith.addf %36, %46 : vector<128x256xf32>
    %cst = arith.constant 0.000000e+00 : f32
    %48 = vector.broadcast %cst : f32 to vector<128x256xf32>
    %49 = arith.maximumf %43, %48 : vector<128x256xf32>
    %50 = vector.extract_strided_slice %7 {offsets = [128, 0], sizes = [128, 3], strides = [1, 1]} : vector<256x6xf32> to vector<128x3xf32>
    %51 = vector.extract_strided_slice %4 {offsets = [0, 0], sizes = [1, 256], strides = [1, 1]} : vector<8x256xf32> to vector<1x256xf32>
    %52 = vector.shape_cast %51 : vector<1x256xf32> to vector<1x256xf32>
    %53 = vector.broadcast %52 : vector<1x256xf32> to vector<128x256xf32>
    %54 = vector.extract_strided_slice %4 {offsets = [5, 0], sizes = [1, 256], strides = [1, 1]} : vector<8x256xf32> to vector<1x256xf32>
    %55 = vector.shape_cast %54 : vector<1x256xf32> to vector<1x256xf32>
    %56 = vector.broadcast %55 : vector<1x256xf32> to vector<128x256xf32>
    %57 = vector.extract_strided_slice %50 {offsets = [0, 0], sizes = [128, 1], strides = [1, 1]} : vector<128x3xf32> to vector<128x1xf32>
    %58 = vector.shape_cast %57 : vector<128x1xf32> to vector<128x1xf32>
    %59 = vector.broadcast %58 : vector<128x1xf32> to vector<128x256xf32>
    %60 = vector.extract_strided_slice %1 {offsets = [0, 0], sizes = [1, 256], strides = [1, 1]} : vector<3x256xf32> to vector<1x256xf32>
    %61 = vector.broadcast %60 : vector<1x256xf32> to vector<128x256xf32>
    %62 = arith.mulf %59, %61 : vector<128x256xf32>
    %63 = arith.addf %53, %62 : vector<128x256xf32>
    %64 = vector.extract_strided_slice %3 {offsets = [0, 0], sizes = [1, 256], strides = [1, 1]} : vector<3x256xf32> to vector<1x256xf32>
    %65 = vector.broadcast %64 : vector<1x256xf32> to vector<128x256xf32>
    %66 = arith.mulf %59, %65 : vector<128x256xf32>
    %67 = arith.addf %56, %66 : vector<128x256xf32>
    %68 = vector.extract_strided_slice %50 {offsets = [0, 1], sizes = [128, 1], strides = [1, 1]} : vector<128x3xf32> to vector<128x1xf32>
    %69 = vector.shape_cast %68 : vector<128x1xf32> to vector<128x1xf32>
    %70 = vector.broadcast %69 : vector<128x1xf32> to vector<128x256xf32>
    %71 = vector.extract_strided_slice %1 {offsets = [1, 0], sizes = [1, 256], strides = [1, 1]} : vector<3x256xf32> to vector<1x256xf32>
    %72 = vector.broadcast %71 : vector<1x256xf32> to vector<128x256xf32>
    %73 = arith.mulf %70, %72 : vector<128x256xf32>
    %74 = arith.addf %63, %73 : vector<128x256xf32>
    %75 = vector.extract_strided_slice %3 {offsets = [1, 0], sizes = [1, 256], strides = [1, 1]} : vector<3x256xf32> to vector<1x256xf32>
    %76 = vector.broadcast %75 : vector<1x256xf32> to vector<128x256xf32>
    %77 = arith.mulf %70, %76 : vector<128x256xf32>
    %78 = arith.addf %67, %77 : vector<128x256xf32>
    %79 = vector.extract_strided_slice %50 {offsets = [0, 2], sizes = [128, 1], strides = [1, 1]} : vector<128x3xf32> to vector<128x1xf32>
    %80 = vector.shape_cast %79 : vector<128x1xf32> to vector<128x1xf32>
    %81 = vector.broadcast %80 : vector<128x1xf32> to vector<128x256xf32>
    %82 = vector.extract_strided_slice %1 {offsets = [2, 0], sizes = [1, 256], strides = [1, 1]} : vector<3x256xf32> to vector<1x256xf32>
    %83 = vector.broadcast %82 : vector<1x256xf32> to vector<128x256xf32>
    %84 = arith.mulf %81, %83 : vector<128x256xf32>
    %85 = arith.addf %74, %84 : vector<128x256xf32>
    %86 = vector.extract_strided_slice %3 {offsets = [2, 0], sizes = [1, 256], strides = [1, 1]} : vector<3x256xf32> to vector<1x256xf32>
    %87 = vector.broadcast %86 : vector<1x256xf32> to vector<128x256xf32>
    %88 = arith.mulf %81, %87 : vector<128x256xf32>
    %89 = arith.addf %78, %88 : vector<128x256xf32>
    %cst_12 = arith.constant 0.000000e+00 : f32
    %90 = vector.broadcast %cst_12 : f32 to vector<128x256xf32>
    %91 = arith.maximumf %85, %90 : vector<128x256xf32>
    %c0_13 = arith.constant 0 : index
    %c0_14 = arith.constant 0 : index
    %c0_15 = arith.constant 0 : index
    %92 = vector.load %arg3[%c0_13, %c0_14, %c0_15] : memref<7x256x256xbf16, #tpu.memory_space<vmem>>, vector<1x256x256xbf16>
    %93 = vector.shape_cast %92 : vector<1x256x256xbf16> to vector<256x256xbf16>
    %94 = vector.extract_strided_slice %4 {offsets = [1, 0], sizes = [1, 256], strides = [1, 1]} : vector<8x256xf32> to vector<1x256xf32>
    %95 = arith.truncf %49 : vector<128x256xf32> to vector<128x256xbf16>
    %cst_16 = arith.constant dense<0.000000e+00> : vector<128x256xf32>
    %96 = tpu.matmul %95, %93, %cst_16 {dimension_numbers = #tpu.dot_dimension_numbers<[1], [0], [0], [1], [0, 0, 1, 1], [], []>} : vector<128x256xbf16>, vector<256x256xbf16>, vector<128x256xf32> -> vector<128x256xf32>
    %97 = vector.broadcast %94 : vector<1x256xf32> to vector<128x256xf32>
    %98 = arith.addf %96, %97 : vector<128x256xf32>
    %cst_17 = arith.constant 0.000000e+00 : f32
    %99 = vector.broadcast %cst_17 : f32 to vector<128x256xf32>
    %100 = arith.maximumf %98, %99 : vector<128x256xf32>
    %101 = arith.truncf %91 : vector<128x256xf32> to vector<128x256xbf16>
    %cst_18 = arith.constant dense<0.000000e+00> : vector<128x256xf32>
    %102 = tpu.matmul %101, %93, %cst_18 {dimension_numbers = #tpu.dot_dimension_numbers<[1], [0], [0], [1], [0, 0, 1, 1], [], []>} : vector<128x256xbf16>, vector<256x256xbf16>, vector<128x256xf32> -> vector<128x256xf32>
    %103 = vector.broadcast %94 : vector<1x256xf32> to vector<128x256xf32>
    %104 = arith.addf %102, %103 : vector<128x256xf32>
    %cst_19 = arith.constant 0.000000e+00 : f32
    %105 = vector.broadcast %cst_19 : f32 to vector<128x256xf32>
    %106 = arith.maximumf %104, %105 : vector<128x256xf32>
    %c1_20 = arith.constant 1 : index
    %c0_21 = arith.constant 0 : index
    %c0_22 = arith.constant 0 : index
    %107 = vector.load %arg3[%c1_20, %c0_21, %c0_22] : memref<7x256x256xbf16, #tpu.memory_space<vmem>>, vector<1x256x256xbf16>
    %108 = vector.shape_cast %107 : vector<1x256x256xbf16> to vector<256x256xbf16>
    %109 = vector.extract_strided_slice %4 {offsets = [2, 0], sizes = [1, 256], strides = [1, 1]} : vector<8x256xf32> to vector<1x256xf32>
    %110 = arith.truncf %100 : vector<128x256xf32> to vector<128x256xbf16>
    %cst_23 = arith.constant dense<0.000000e+00> : vector<128x256xf32>
    %111 = tpu.matmul %110, %108, %cst_23 {dimension_numbers = #tpu.dot_dimension_numbers<[1], [0], [0], [1], [0, 0, 1, 1], [], []>} : vector<128x256xbf16>, vector<256x256xbf16>, vector<128x256xf32> -> vector<128x256xf32>
    %112 = vector.broadcast %109 : vector<1x256xf32> to vector<128x256xf32>
    %113 = arith.addf %111, %112 : vector<128x256xf32>
    %cst_24 = arith.constant 0.000000e+00 : f32
    %114 = vector.broadcast %cst_24 : f32 to vector<128x256xf32>
    %115 = arith.maximumf %113, %114 : vector<128x256xf32>
    %116 = arith.truncf %106 : vector<128x256xf32> to vector<128x256xbf16>
    %cst_25 = arith.constant dense<0.000000e+00> : vector<128x256xf32>
    %117 = tpu.matmul %116, %108, %cst_25 {dimension_numbers = #tpu.dot_dimension_numbers<[1], [0], [0], [1], [0, 0, 1, 1], [], []>} : vector<128x256xbf16>, vector<256x256xbf16>, vector<128x256xf32> -> vector<128x256xf32>
    %118 = vector.broadcast %109 : vector<1x256xf32> to vector<128x256xf32>
    %119 = arith.addf %117, %118 : vector<128x256xf32>
    %cst_26 = arith.constant 0.000000e+00 : f32
    %120 = vector.broadcast %cst_26 : f32 to vector<128x256xf32>
    %121 = arith.maximumf %119, %120 : vector<128x256xf32>
    %c2 = arith.constant 2 : index
    %c0_27 = arith.constant 0 : index
    %c0_28 = arith.constant 0 : index
    %122 = vector.load %arg3[%c2, %c0_27, %c0_28] : memref<7x256x256xbf16, #tpu.memory_space<vmem>>, vector<1x256x256xbf16>
    %123 = vector.shape_cast %122 : vector<1x256x256xbf16> to vector<256x256xbf16>
    %124 = vector.extract_strided_slice %4 {offsets = [3, 0], sizes = [1, 256], strides = [1, 1]} : vector<8x256xf32> to vector<1x256xf32>
    %125 = arith.truncf %115 : vector<128x256xf32> to vector<128x256xbf16>
    %cst_29 = arith.constant dense<0.000000e+00> : vector<128x256xf32>
    %126 = tpu.matmul %125, %123, %cst_29 {dimension_numbers = #tpu.dot_dimension_numbers<[1], [0], [0], [1], [0, 0, 1, 1], [], []>} : vector<128x256xbf16>, vector<256x256xbf16>, vector<128x256xf32> -> vector<128x256xf32>
    %127 = vector.broadcast %124 : vector<1x256xf32> to vector<128x256xf32>
    %128 = arith.addf %126, %127 : vector<128x256xf32>
    %cst_30 = arith.constant 0.000000e+00 : f32
    %129 = vector.broadcast %cst_30 : f32 to vector<128x256xf32>
    %130 = arith.maximumf %128, %129 : vector<128x256xf32>
    %131 = arith.truncf %121 : vector<128x256xf32> to vector<128x256xbf16>
    %cst_31 = arith.constant dense<0.000000e+00> : vector<128x256xf32>
    %132 = tpu.matmul %131, %123, %cst_31 {dimension_numbers = #tpu.dot_dimension_numbers<[1], [0], [0], [1], [0, 0, 1, 1], [], []>} : vector<128x256xbf16>, vector<256x256xbf16>, vector<128x256xf32> -> vector<128x256xf32>
    %133 = vector.broadcast %124 : vector<1x256xf32> to vector<128x256xf32>
    %134 = arith.addf %132, %133 : vector<128x256xf32>
    %cst_32 = arith.constant 0.000000e+00 : f32
    %135 = vector.broadcast %cst_32 : f32 to vector<128x256xf32>
    %136 = arith.maximumf %134, %135 : vector<128x256xf32>
    %c3 = arith.constant 3 : index
    %c0_33 = arith.constant 0 : index
    %c0_34 = arith.constant 0 : index
    %137 = vector.load %arg3[%c3, %c0_33, %c0_34] : memref<7x256x256xbf16, #tpu.memory_space<vmem>>, vector<1x256x256xbf16>
    %138 = vector.shape_cast %137 : vector<1x256x256xbf16> to vector<256x256xbf16>
    %139 = vector.extract_strided_slice %4 {offsets = [4, 0], sizes = [1, 256], strides = [1, 1]} : vector<8x256xf32> to vector<1x256xf32>
    %140 = arith.truncf %130 : vector<128x256xf32> to vector<128x256xbf16>
    %cst_35 = arith.constant dense<0.000000e+00> : vector<128x256xf32>
    %141 = tpu.matmul %140, %138, %cst_35 {dimension_numbers = #tpu.dot_dimension_numbers<[1], [0], [0], [1], [0, 0, 1, 1], [], []>} : vector<128x256xbf16>, vector<256x256xbf16>, vector<128x256xf32> -> vector<128x256xf32>
    %142 = vector.broadcast %139 : vector<1x256xf32> to vector<128x256xf32>
    %143 = arith.addf %141, %142 : vector<128x256xf32>
    %cst_36 = arith.constant 0.000000e+00 : f32
    %144 = vector.broadcast %cst_36 : f32 to vector<128x256xf32>
    %145 = arith.maximumf %143, %144 : vector<128x256xf32>
    %146 = arith.truncf %136 : vector<128x256xf32> to vector<128x256xbf16>
    %cst_37 = arith.constant dense<0.000000e+00> : vector<128x256xf32>
    %147 = tpu.matmul %146, %138, %cst_37 {dimension_numbers = #tpu.dot_dimension_numbers<[1], [0], [0], [1], [0, 0, 1, 1], [], []>} : vector<128x256xbf16>, vector<256x256xbf16>, vector<128x256xf32> -> vector<128x256xf32>
    %148 = vector.broadcast %139 : vector<1x256xf32> to vector<128x256xf32>
    %149 = arith.addf %147, %148 : vector<128x256xf32>
    %cst_38 = arith.constant 0.000000e+00 : f32
    %150 = vector.broadcast %cst_38 : f32 to vector<128x256xf32>
    %151 = arith.maximumf %149, %150 : vector<128x256xf32>
    %c4 = arith.constant 4 : index
    %c0_39 = arith.constant 0 : index
    %c0_40 = arith.constant 0 : index
    %152 = vector.load %arg3[%c4, %c0_39, %c0_40] : memref<7x256x256xbf16, #tpu.memory_space<vmem>>, vector<1x256x256xbf16>
    %153 = vector.shape_cast %152 : vector<1x256x256xbf16> to vector<256x256xbf16>
    %154 = arith.truncf %145 : vector<128x256xf32> to vector<128x256xbf16>
    %cst_41 = arith.constant dense<0.000000e+00> : vector<128x256xf32>
    %155 = tpu.matmul %154, %153, %cst_41 {dimension_numbers = #tpu.dot_dimension_numbers<[1], [0], [0], [1], [0, 0, 1, 1], [], []>} : vector<128x256xbf16>, vector<256x256xbf16>, vector<128x256xf32> -> vector<128x256xf32>
    %156 = arith.addf %155, %47 : vector<128x256xf32>
    %cst_42 = arith.constant 0.000000e+00 : f32
    %157 = vector.broadcast %cst_42 : f32 to vector<128x256xf32>
    %158 = arith.maximumf %156, %157 : vector<128x256xf32>
    %159 = arith.truncf %151 : vector<128x256xf32> to vector<128x256xbf16>
    %cst_43 = arith.constant dense<0.000000e+00> : vector<128x256xf32>
    %160 = tpu.matmul %159, %153, %cst_43 {dimension_numbers = #tpu.dot_dimension_numbers<[1], [0], [0], [1], [0, 0, 1, 1], [], []>} : vector<128x256xbf16>, vector<256x256xbf16>, vector<128x256xf32> -> vector<128x256xf32>
    %161 = arith.addf %160, %89 : vector<128x256xf32>
    %cst_44 = arith.constant 0.000000e+00 : f32
    %162 = vector.broadcast %cst_44 : f32 to vector<128x256xf32>
    %163 = arith.maximumf %161, %162 : vector<128x256xf32>
    %c5 = arith.constant 5 : index
    %c0_45 = arith.constant 0 : index
    %c0_46 = arith.constant 0 : index
    %164 = vector.load %arg3[%c5, %c0_45, %c0_46] : memref<7x256x256xbf16, #tpu.memory_space<vmem>>, vector<1x256x256xbf16>
    %165 = vector.shape_cast %164 : vector<1x256x256xbf16> to vector<256x256xbf16>
    %166 = vector.extract_strided_slice %4 {offsets = [6, 0], sizes = [1, 256], strides = [1, 1]} : vector<8x256xf32> to vector<1x256xf32>
    %167 = arith.truncf %158 : vector<128x256xf32> to vector<128x256xbf16>
    %cst_47 = arith.constant dense<0.000000e+00> : vector<128x256xf32>
    %168 = tpu.matmul %167, %165, %cst_47 {dimension_numbers = #tpu.dot_dimension_numbers<[1], [0], [0], [1], [0, 0, 1, 1], [], []>} : vector<128x256xbf16>, vector<256x256xbf16>, vector<128x256xf32> -> vector<128x256xf32>
    %169 = vector.broadcast %166 : vector<1x256xf32> to vector<128x256xf32>
    %170 = arith.addf %168, %169 : vector<128x256xf32>
    %cst_48 = arith.constant 0.000000e+00 : f32
    %171 = vector.broadcast %cst_48 : f32 to vector<128x256xf32>
    %172 = arith.maximumf %170, %171 : vector<128x256xf32>
    %173 = arith.truncf %163 : vector<128x256xf32> to vector<128x256xbf16>
    %cst_49 = arith.constant dense<0.000000e+00> : vector<128x256xf32>
    %174 = tpu.matmul %173, %165, %cst_49 {dimension_numbers = #tpu.dot_dimension_numbers<[1], [0], [0], [1], [0, 0, 1, 1], [], []>} : vector<128x256xbf16>, vector<256x256xbf16>, vector<128x256xf32> -> vector<128x256xf32>
    %175 = vector.broadcast %166 : vector<1x256xf32> to vector<128x256xf32>
    %176 = arith.addf %174, %175 : vector<128x256xf32>
    %cst_50 = arith.constant 0.000000e+00 : f32
    %177 = vector.broadcast %cst_50 : f32 to vector<128x256xf32>
    %178 = arith.maximumf %176, %177 : vector<128x256xf32>
    %c6 = arith.constant 6 : index
    %c0_51 = arith.constant 0 : index
    %c0_52 = arith.constant 0 : index
    %179 = vector.load %arg3[%c6, %c0_51, %c0_52] : memref<7x256x256xbf16, #tpu.memory_space<vmem>>, vector<1x256x256xbf16>
    %180 = vector.shape_cast %179 : vector<1x256x256xbf16> to vector<256x256xbf16>
    %181 = vector.extract_strided_slice %4 {offsets = [7, 0], sizes = [1, 256], strides = [1, 1]} : vector<8x256xf32> to vector<1x256xf32>
    %182 = arith.truncf %172 : vector<128x256xf32> to vector<128x256xbf16>
    %cst_53 = arith.constant dense<0.000000e+00> : vector<128x256xf32>
    %183 = tpu.matmul %182, %180, %cst_53 {dimension_numbers = #tpu.dot_dimension_numbers<[1], [0], [0], [1], [0, 0, 1, 1], [], []>} : vector<128x256xbf16>, vector<256x256xbf16>, vector<128x256xf32> -> vector<128x256xf32>
    %184 = vector.broadcast %181 : vector<1x256xf32> to vector<128x256xf32>
    %185 = arith.addf %183, %184 : vector<128x256xf32>
    %cst_54 = arith.constant 0.000000e+00 : f32
    %186 = vector.broadcast %cst_54 : f32 to vector<128x256xf32>
    %187 = arith.maximumf %185, %186 : vector<128x256xf32>
    %188 = arith.truncf %178 : vector<128x256xf32> to vector<128x256xbf16>
    %cst_55 = arith.constant dense<0.000000e+00> : vector<128x256xf32>
    %189 = tpu.matmul %188, %180, %cst_55 {dimension_numbers = #tpu.dot_dimension_numbers<[1], [0], [0], [1], [0, 0, 1, 1], [], []>} : vector<128x256xbf16>, vector<256x256xbf16>, vector<128x256xf32> -> vector<128x256xf32>
    %190 = vector.broadcast %181 : vector<1x256xf32> to vector<128x256xf32>
    %191 = arith.addf %189, %190 : vector<128x256xf32>
    %cst_56 = arith.constant 0.000000e+00 : f32
    %192 = vector.broadcast %cst_56 : f32 to vector<128x256xf32>
    %193 = arith.maximumf %191, %192 : vector<128x256xf32>
    %194 = arith.truncf %187 : vector<128x256xf32> to vector<128x256xbf16>
    %cst_57 = arith.constant dense<0.000000e+00> : vector<128x128xf32>
    %195 = tpu.matmul %194, %5, %cst_57 {dimension_numbers = #tpu.dot_dimension_numbers<[1], [0], [0], [1], [0, 0, 1, 1], [], []>} : vector<128x256xbf16>, vector<256x128xbf16>, vector<128x128xf32> -> vector<128x128xf32>
    %196 = vector.broadcast %6 : vector<1x128xf32> to vector<128x128xf32>
    %197 = arith.addf %195, %196 : vector<128x128xf32>
    %198 = arith.truncf %197 : vector<128x128xf32> to vector<128x128xbf16>
    %c0_58 = arith.constant 0 : index
    %c0_59 = arith.constant 0 : index
    %199 = vector.load %arg7[%c0_58, %c0_59] : memref<256x128xbf16, #tpu.memory_space<vmem>>, vector<128x128xbf16>
    tpu.vector_store %arg7[%c0_58, %c0_59], %198 {strides = array<i32>} : memref<256x128xbf16, #tpu.memory_space<vmem>>, vector<128x128xbf16>,
    %200 = arith.truncf %193 : vector<128x256xf32> to vector<128x256xbf16>
    %cst_60 = arith.constant dense<0.000000e+00> : vector<128x128xf32>
    %201 = tpu.matmul %200, %5, %cst_60 {dimension_numbers = #tpu.dot_dimension_numbers<[1], [0], [0], [1], [0, 0, 1, 1], [], []>} : vector<128x256xbf16>, vector<256x128xbf16>, vector<128x128xf32> -> vector<128x128xf32>
    %202 = vector.broadcast %6 : vector<1x128xf32> to vector<128x128xf32>
    %203 = arith.addf %201, %202 : vector<128x128xf32>
    %204 = arith.truncf %203 : vector<128x128xf32> to vector<128x128xbf16>
    %c128 = arith.constant 128 : index
    %c0_61 = arith.constant 0 : index
    %205 = vector.load %arg7[%c128, %c0_61] : memref<256x128xbf16, #tpu.memory_space<vmem>>, vector<128x128xbf16>
    tpu.vector_store %arg7[%c128, %c0_61], %204 {strides = array<i32>} : memref<256x128xbf16, #tpu.memory_space<vmem>>, vector<128x128xbf16>,
    return
  }
  func.func @transform_0(%arg0: i32) -> (i32, i32) {
    %c0_i32 = arith.constant 0 : i32
    %c0_i32_0 = arith.constant 0 : i32
    return %arg0, %c0_i32 : i32, i32
  }
  func.func @transform_1(%arg0: i32) -> (i32, i32, i32) {
    %c0_i32 = arith.constant 0 : i32
    %c0_i32_0 = arith.constant 0 : i32
    %c0_i32_1 = arith.constant 0 : i32
    %c0_i32_2 = arith.constant 0 : i32
    return %c0_i32, %c0_i32_0, %c0_i32_1 : i32, i32, i32
  }
  func.func @transform_2(%arg0: i32) -> (i32, i32, i32) {
    %c0_i32 = arith.constant 0 : i32
    %c0_i32_0 = arith.constant 0 : i32
    %c0_i32_1 = arith.constant 0 : i32
    %c0_i32_2 = arith.constant 0 : i32
    return %c0_i32, %c0_i32_0, %c0_i32_1 : i32, i32, i32
  }
  func.func @transform_3(%arg0: i32) -> (i32, i32) {
    %c0_i32 = arith.constant 0 : i32
    %c0_i32_0 = arith.constant 0 : i32
    %c0_i32_1 = arith.constant 0 : i32
    return %c0_i32, %c0_i32_0 : i32, i32
  }
  func.func @transform_4(%arg0: i32) -> (i32, i32) {
    %c0_i32 = arith.constant 0 : i32
    %c0_i32_0 = arith.constant 0 : i32
    %c0_i32_1 = arith.constant 0 : i32
    return %c0_i32, %c0_i32_0 : i32, i32
  }
  func.func @transform_5(%arg0: i32) -> (i32, i32) {
    %c0_i32 = arith.constant 0 : i32
    %c0_i32_0 = arith.constant 0 : i32
    %c0_i32_1 = arith.constant 0 : i32
    return %c0_i32, %c0_i32_0 : i32, i32
  }
  func.func @transform_6(%arg0: i32) -> (i32, i32) {
    %c0_i32 = arith.constant 0 : i32
    %c0_i32_0 = arith.constant 0 : i32
    return %arg0, %c0_i32 : i32, i32
  }
}

</mosaic_0001>

<bundles_post_ra>
// kernel: tpu_custom_call.1
= control target key start
LH: loop header
LB: loop body
LE: loop exit
PB: predicated region body
PF: predicated region fallthrough
CT: control target
= control target key end

     0   :  { %11 = vsyncpa [#allocation3], 0  ;;  %s9553_s0 = inlined_call_operand.vmem [shape: f32[1024,6], index: 0, kind: input, shape index: {}]   ;;  %s9554_s1 = inlined_call_operand.vmem [shape: f32[2,3,256], index: 1, kind: input, shape index: {}]   ;;  %s9555_s2 = inlined_call_operand.hbm [shape: bf16[7,256,256], index: 2, kind: input, shape index: {}]   ;;  %s9556_s3 = inlined_call_operand.vmem [shape: f32[8,256], index: 3, kind: input, shape index: {}]   ;;  %s9557_s4 = inlined_call_operand.vmem [shape: bf16[256,128], index: 4, kind: input, shape index: {}]   ;;  %s9558_s5 = inlined_call_operand.vmem [shape: f32[1,128], index: 5, kind: input, shape index: {}]   ;;  %s9559_s6 = inlined_call_operand.hbm [shape: bf16[1024,128], index: 6, kind: output, shape index: {}]  }
   0x1   :  { %12 = vsyncpa [#allocation4], 0 }
   0x2   :  { %14 = vsyncpa [#allocation4 + $0x1], 0  ;;  %s7072_s21 = smov 0   ;;  %s7074_s22 = smov 0  }
   0x3   :  { %s7076_s23 = smov 0   ;;  %s7078_s24 = smov 0  }
   0x4 LB: > { %s7093_s25 = sadd.s32 4294967295, %s7026_s24   ;;  %s5941_s26 = sadd.s32 4294967294, %s7026_s24   ;;  %s7026_s24 = sphi %s7078_s24, %s9921_s24   ;;  %s7022_s23 = sphi %s7076_s23, %s9920_s23   ;;  %s7018_s22 = sphi %s7074_s22, %s9919_s22   ;;  %s7014_s21 = sphi %s7072_s21, %s9918_s21  }
   0x5   : > { %s7097_s27 = sadd.s32 1, %s7026_s24   ;;  %s158_s28 = sadd.s32 1, %s7022_s23 }
   0x6   : > { %s155_s29 = ssub.s32 %s7026_s24, %s7097_s27  ;;  %p168_p0 = scmp.ne.s32.totalorder %s7022_s23, %s7018_s22 }
   0x7   : > { %p156_p1 = scmp.eq.s32.totalorder %s155_s29, 0  ;;  %p169_p2 = scmp.eq.s32.totalorder %s7093_s25, 3 }
   0x8   : > { %p174_p3 = scmp.ne.s32.totalorder %s7018_s22, %s7014_s21  ;;  %p175_p4 = scmp.eq.s32.totalorder %s5941_s26, 3 }
   0x9   : > { %s7108_s30 = scalar_select %p156_p1, %s7022_s23, %s158_s28  }
   0xa   : > { %p7110_p5 = por %p169_p2, %p168_p0  ;;  %p7114_p6 = por %p175_p4, %p174_p3 }
   0xb   : > { %p5942_p7 = scmp.ge.s32.totalorder %s7026_s24, 1  ;;  %p182_p8 = scmp.lt.s32.totalorder %s7026_s24, 5 }
   0xc   : > { %s9632_s7 = scalar_select %p7110_p5, 1, 0 }
   0xd   : > { %s9633_s8 = scalar_select %p7114_p6, 1, 0 }
   0xe   : > { %p9560_p9 = scmp.eq.s32.totalorder %s7093_s25, 0  ;;  %p7121_p10 = pnand %p5942_p7, %p182_p8 }
   0xf   : > { %s7028_s10 = smov [#allocation2]   ;;  %s6932_s15 = scalar_lea.hbm %s9555_s2, 28672 }
  0x10   : > { %s9634_s9 = scalar_select %p7121_p10, 1, 0 }
  0x11   : > { %s197_s11 = sshll.u32 %s7028_s10, 4  ;;  %p6491_p11 = pneg %p7121_p10  ;;  %s198_s11 = int_to_ptr.vmem [resolvable:$true] %s197_s11 }
  0x12   : > { %p6933_p13 = scmp.ne.s32.totalorder %s9555_s2, %s6932_s15  ;;  %p6939_p3 = scmp.lt.u32.totalorder %s6932_s15, %s9555_s2 }
  0x13   : > { %p7129_p12 = pnand %p9560_p9, %p6491_p11 }
  0x15   : > { %p6934_p0 = pneg %p7129_p12 }
  0x17   : > { %p6935_p1 = pnand %p6934_p0, %p6933_p13 }
  0x19   : > { %p6936_p2 = pneg %p6935_p1 }
  0x1b   : > { %p6941_p4 = pnand %p6939_p3, %p6936_p2 }
  0x1d   : > { %6944 = shalt.err (!%p6941_p4)
}
  0x1e   : > { %s6945_s20 = scalar_lea.vmem %s198_s11, 28672  ;;  %p6953_p9 = scmp.lt.s32.totalorder %s198_s11, %s198_s11 }
  0x1f   : > { %p6946_p7 = scmp.ne.s32.totalorder %s198_s11, %s6945_s20  ;;  %p6954_p6 = scmp.lt.s32.totalorder %s6945_s20, %s6945_s20 }
  0x21   : > { %p6948_p8 = pnand %p6946_p7, %p6934_p0  ;;  %p6955_p5 = por %p6954_p6, %p6953_p9 }
  0x23   : > { %p6949_p11 = pneg %p6948_p8 }
  0x25   : > { %p6956_p10 = pnand %p6955_p5, %p6949_p11 }
  0x27   : > { %6959 = shalt.err (!%p6956_p10)
}
  0x28   : > { %s7029_s26 = smov 128   ;;  %s7030_s28 = smov 8  }
  0x29   : > { %6494 = dma.hbm_to_vmem [thread:$0]  (!%p7129_p12), %s9555_s2, 28672, %s198_s11, [#allocation3], %s7029_s26, %s7029_s26, %s7030_s28  }
  0x2a   : > { %p9636_p13 = scmp.ne.s32.totalorder %s9634_s9, 0 }
  0x2c   : > { %231 = sbr.rel (%p9636_p13) target bundleno = 2249 (0x8c9), region = 44 }
  0x33   : > { %p9637_p1 = scmp.eq.s32.totalorder %s7093_s25, 0 }
  0x35   : > { %7005 = dma.done.wait (%p9637_p1), [#allocation3], 28672   ;;  %p9638_p0 = pmov %p9637_p1 }
  0x36   : > { %s5948_s13 = sshll.u32 %s7093_s25, 5  ;;  %v9563_v0 = vmov 1   ;;  %v9565_v1 = vmov 0   ;;  %v6571_v6 = vld [vmem:[#allocation2 + $0x4] ss:$8 sps:$4 sm:$0xff]   ;;  %v9567_v8 = vmov 2   ;;  %v339_v60 = vlaneseq }
  0x37   : > { %7007 = vsyncadd (%p9638_p0), [#allocation3], 4294938624  ;;  %6543 = vset.pattern.permute.xlu0 %v9563_v0  ;;  %6542 = vset.pattern.permute.xlu1 %v9565_v1  ;;  %p262_p5 = scmp.lt.s32.totalorder %s5948_s13, 127  ;;  %v6573_v7 = vld [vmem:[#allocation2] ss:$8 sps:$4 sm:$0xff]   ;;  %s258_s28 = sand.u32 1, %s7018_s22  }
  0x38   : > { %v6574_v9 = vld [vmem:[#allocation2 + $0x14] ss:$8 sps:$4 sm:$0xff]   ;;  %2090 = vmatprep.subr.bf16.mxu1 %v6571_v6  ;;  %1929 = vmatprep.subr.bf16.mxu0 %v6571_v6  ;;  %v6576_v11 = vld [vmem:[#allocation2 + $0x10] ss:$8 sps:$4 sm:$0xff]   ;;  %v6577_v12 = vld [vmem:[#allocation2 + $0x24] ss:$8 sps:$4 sm:$0xff]  }
  0x39   : > { %s9923_s13 = smov (!%p262_p5, %s5948_s13), 127  ;;  %2091 = vmatpush1.bf16.msra.mxu1 %v6573_v7  ;;  %1930 = vmatpush1.bf16.msra.mxu0 %v6573_v7  ;;  %v6579_v14 = vld [vmem:[#allocation2 + $0x20] ss:$8 sps:$4 sm:$0xff]   ;;  %v6580_v15 = vld [vmem:[#allocation2 + $0x34] ss:$8 sps:$4 sm:$0xff]   ;;  %s6261_s12 = sshll.u32 %s7093_s25, 11 }
  0x3a   : > { %s5949_s11 = sshll.u32 %s9923_s13, 3  ;;  %2092 = vmatprep.subr.bf16.mxu1 %v6574_v9  ;;  %1931 = vmatprep.subr.bf16.mxu0 %v6574_v9  ;;  %v6582_v17 = vld [vmem:[#allocation2 + $0x30] ss:$8 sps:$4 sm:$0xff]   ;;  %v6583_v18 = vld [vmem:[#allocation2 + $0x44] ss:$8 sps:$4 sm:$0xff]   ;;  %s5947_s13 = sshll.u32 %s258_s28, 7 }
  0x3b   : > { %s7161_s14 = scalar_lea.vmem %s9553_s0, %s5949_s11  ;;  %v6585_v20 = vld [vmem:[#allocation2 + $0x40] ss:$8 sps:$4 sm:$0xff]   ;;  %v6586_v21 = vld [vmem:[#allocation2 + $0x54] ss:$8 sps:$4 sm:$0xff]   ;;  %v6588_v24 = vld [vmem:[#allocation2 + $0x50] ss:$8 sps:$4 sm:$0xff]   ;;  %s9505_s16 = scalar_lea.hbm %s9559_s6, %s6261_s12 }
  0x3c   : > { %v323_v2 = vld [vmem:[%s7161_s14 + $0x80] sm:$0xff]  ;;  %v324_v4 = vld [vmem:[%s7161_s14 + $0x88] sm:$0xff]  ;;  %v7177_v10 = vld [vmem:[%s7161_s14 + $0x10] sm:$0xff]  ;;  %s9453_s11 = scalar_lea.vmem [#allocation5], %s5947_s13  ;;  %s9512_s25 = scalar_lea.sflag [#allocation4], %s258_s28 }
  0x3d   : > { %v7165_v3 = vld [vmem:[%s7161_s14] sm:$0xff]  ;;  %1091 = vperm.xlu1 %6542, %v323_v2   ;;  %v7170_v5 = vld [vmem:[%s7161_s14 + $0x8] sm:$0xff]  ;;  %v7181_v13 = vld [vmem:[%s7161_s14 + $0x98] sm:$0xff]  ;;  %2093 = vmatpush1.bf16.msra.mxu1 %v6576_v11  ;;  %s5867_s9 = sshll.u32 %s9453_s11, 4  ;;  %p9916_p9 = scmp.ne.s32.totalorder %s9632_s7, 0  ;;  %s9507_s9 = int_to_ptr.vmem [resolvable:$true] %s5867_s9 }
  0x3e   : > { %602 = vperm.xlu0 %6543, %v7165_v3   ;;  %1932 = vmatpush1.bf16.msra.mxu0 %v6576_v11  ;;  %v7187_v16 = vld [vmem:[%s7161_s14 + $0x28] sm:$0xff]  ;;  %v7191_v19 = vld [vmem:[%s7161_s14 + $0x30] sm:$0xff]  ;;  %v7195_v22 = vld [vmem:[%s7161_s14 + $0xb8] sm:$0xff]  ;;  %s6960_s17 = scalar_lea.vmem %s9507_s9, 2048  ;;  %s7034_s18 = smov [#allocation5]  }
  0x3f   : > { %2094 = vmatprep.subr.bf16.mxu1 %v6577_v12  ;;  %1933 = vmatprep.subr.bf16.mxu0 %v6577_v12  ;;  %v7198_v23 = vld [vmem:[%s7161_s14 + $0x18] sm:$0xff]  ;;  %v6589_v25 = vld [vmem:[#allocation2 + $0x64] ss:$8 sps:$4 sm:$0xff]   ;;  %v6591_v27 = vld [vmem:[#allocation2 + $0x60] ss:$8 sps:$4 sm:$0xff]   ;;  %p6961_p6 = scmp.ne.s32.totalorder %s9507_s9, %s6960_s17  ;;  %s6964_s19 = sshll.u32 %s7034_s18, 4  ;;  %s6965_s19 = int_to_ptr.vmem [resolvable:$false] %s6964_s19 }
  0x40   : > { %v7202_v26 = vld [vmem:[%s7161_s14 + $0x48] sm:$0xff]  ;;  %v325_v28 = vld [vmem:[%s7161_s14 + $0x90] sm:$0xff]  ;;  %v7212_v33 = vld [vmem:[%s7161_s14 + $0xd8] sm:$0xff]  ;;  %s6966_s20 = scalar_lea.vmem %s6965_s19, 4096  ;;  %p6967_p2 = scmp.lt.s32.totalorder %s9507_s9, %s6965_s19 }
  0x41   : > { %1096 = vperm.xlu1 %6542, %v324_v4   ;;  %2095 = vmatpush1.bf16.msra.mxu1 %v6579_v14  ;;  %v6592_v29 = vld [vmem:[#allocation2 + $0x74] ss:$8 sps:$4 sm:$0xff]   ;;  %v6594_v31 = vld [vmem:[#allocation2 + $0x70] ss:$8 sps:$4 sm:$0xff]   ;;  %v6595_v32 = vld [vmem:[#allocation2 + $0x84] ss:$8 sps:$4 sm:$0xff]   ;;  %p6962_p10 = pnand %p6961_p6, %p9916_p9  ;;  %p6968_p3 = scmp.lt.s32.totalorder %s6966_s20, %s6960_s17 }
  0x42   : > { %1302 = vperm.xlu0 %6543, %v324_v4   ;;  %1934 = vmatpush1.bf16.msra.mxu0 %v6579_v14  ;;  %v7208_v30 = vld [vmem:[%s7161_s14 + $0x50] sm:$0xff]  ;;  %v6597_v34 = vld [vmem:[#allocation2 + $0x80] ss:$8 sps:$4 sm:$0xff]   ;;  %v6601_v37 = vld [vmem:[#allocation2 + $0xa4] ss:$8 sps:$4 sm:$0xff]  }
  0x43   : > { %2096 = vmatprep.subr.bf16.mxu1 %v6580_v15  ;;  %1935 = vmatprep.subr.bf16.mxu0 %v6580_v15  ;;  %v6598_v35 = vld [vmem:[#allocation2 + $0x94] ss:$8 sps:$4 sm:$0xff]   ;;  %v6600_v36 = vld [vmem:[#allocation2 + $0x90] ss:$8 sps:$4 sm:$0xff]   ;;  %v6603_v38 = vld [vmem:[#allocation2 + $0xa0] ss:$8 sps:$4 sm:$0xff]   ;;  %p6963_p12 = pneg %p6962_p10  ;;  %p6969_p4 = por %p6968_p3, %p6967_p2 }
  0x44   : > { %v6604_v39 = vld [vmem:[#allocation2 + $0xb4] ss:$8 sps:$4 sm:$0xff]   ;;  %v6606_v40 = vld [vmem:[#allocation2 + $0xb0] ss:$8 sps:$4 sm:$0xff]   ;;  %v6607_v41 = vld [vmem:[#allocation2 + $0xc4] ss:$8 sps:$4 sm:$0xff]  }
  0x45   : > { %6544 = vset.pattern.permute.xlu1 %v9563_v0  ;;  %2097 = vmatpush1.bf16.msra.mxu1 %v6582_v17  ;;  %v6609_v42 = vld [vmem:[#allocation2 + $0xc0] ss:$8 sps:$4 sm:$0xff]   ;;  %v6610_v43 = vld [vmem:[#allocation2 + $0xd4] ss:$8 sps:$4 sm:$0xff]   ;;  %v6612_v45 = vld [vmem:[#allocation2 + $0xd0] ss:$8 sps:$4 sm:$0xff]   ;;  %p6970_p7 = pnand %p6969_p4, %p6963_p12 }
  0x46   : > { %6546 = vset.pattern.permute.xlu0 %v9567_v8  ;;  %606 = vperm.xlu1 %6544, %v7170_v5   ;;  %v311_v44 = vld [vmem:[%s7161_s14 + $0x20] sm:$0xff]  ;;  %v6616_v49 = vld [vmem:[#allocation2 + $0xf4] ss:$8 sps:$4 sm:$0xff]   ;;  %v328_v50 = vld [vmem:[%s7161_s14 + $0xa8] sm:$0xff] }
  0x47   : > { %834 = vperm.xlu0 %6546, %v7170_v5   ;;  %1936 = vmatpush1.bf16.msra.mxu0 %v6582_v17  ;;  %v6613_v46 = vld [vmem:[#allocation2 + $0xe4] ss:$8 sps:$4 sm:$0xff]   ;;  %v6615_v48 = vld [vmem:[#allocation2 + $0xe0] ss:$8 sps:$4 sm:$0xff]   ;;  %v6618_v51 = vld [vmem:[#allocation2 + $0xf0] ss:$8 sps:$4 sm:$0xff]  }
  0x48   : > { %2098 = vmatprep.subr.bf16.mxu1 %v6583_v18  ;;  %1937 = vmatprep.subr.bf16.mxu0 %v6583_v18  ;;  %v327_v47 = vld [vmem:[%s7161_s14 + $0xa0] sm:$0xff]  ;;  %v7238_v52 = vld [vmem:[%s7161_s14 + $0x68] sm:$0xff]  ;;  %v7243_v53 = vld [vmem:[%s7161_s14 + $0x70] sm:$0xff] }
  0x49   : > { %2099 = vmatpush1.bf16.msra.mxu1 %v6585_v20  ;;  %v7247_v54 = vld [vmem:[%s7161_s14 + $0xf8] sm:$0xff]  ;;  %v329_v56 = vld [vmem:[%s7161_s14 + $0xb0] sm:$0xff]  ;;  %v7260_v57 = vld [vmem:[%s7161_s14 + $0x40] sm:$0xff] }
  0x4a   : > { %1298 = vperm.xlu1 %6544, %v323_v2   ;;  %2100 = vmatprep.subr.bf16.mxu1 %v6586_v21  ;;  %v314_v55 = vld [vmem:[%s7161_s14 + $0x38] sm:$0xff]  ;;  %v7265_v58 = vld [vmem:[%s7161_s14 + $0xc8] sm:$0xff]  ;;  %v7273_v61 = vld [vmem:[%s7161_s14 + $0x60] sm:$0xff] }
  0x4b   : > { %838 = vperm.xlu0 %6546, %v7177_v10   ;;  %1938 = vmatpush1.bf16.msra.mxu0 %v6585_v20  ;;  %v7269_v59 = vld [vmem:[%s7161_s14 + $0x58] sm:$0xff]  ;;  %9639 = vst [vmem:[#allocation8_spill] sm:$0xff] %v7273_v61  ;;  %v269_v11 = vld [vmem:[%s9554_s1] sm:$0x77] }
  0x4c   : > { %1939 = vmatprep.subr.bf16.mxu0 %v6586_v21  ;;  %v7297_v7 = vld [vmem:[%s7161_s14 + $0x78] sm:$0xff] }
  0x4d   : > { %2101 = vmatpush1.bf16.msra.mxu1 %v6588_v24  ;;  %9644 = vst [vmem:[#allocation13_spill] sm:$0xff] %v7297_v7 }
  0x4e   : > { %6545 = vset.pattern.permute.xlu1 %v9567_v8  ;;  %2102 = vmatprep.subr.bf16.mxu1 %v6589_v25 }
  0x4f   : > { %1502 = vperm.xlu0 %6546, %v7181_v13   ;;  %830 = vperm.xlu1 %6545, %v7165_v3  }
  0x50   : > { %1940 = vmatpush1.bf16.msra.mxu0 %v6588_v24 }
  0x51   : > { %1941 = vmatprep.subr.bf16.mxu0 %v6589_v25  ;;  %2103 = vmatpush1.bf16.msra.mxu1 %v6591_v27 }
  0x52   : > { %2104 = vmatprep.subr.bf16.mxu1 %v6592_v29 }
  0x53   : > { %850 = vperm.xlu0 %6546, %v7187_v16   ;;  %1490 = vperm.xlu1 %6545, %v323_v2   ;;  %v7283_v2 = vld [vmem:[%s7161_s14 + $0xe8] sm:$0xff] }
  0x54   : > { %1942 = vmatpush1.bf16.msra.mxu0 %v6591_v27  ;;  %v7347_v27 = vld [vmem:[%s9556_s3] sm:$0xff] }
  0x55   : > { %1943 = vmatprep.subr.bf16.mxu0 %v6592_v29  ;;  %2105 = vmatpush1.bf16.msra.mxu1 %v6594_v31 }
  0x56   : > { %2106 = vmatprep.subr.bf16.mxu1 %v6595_v32 }
  0x57   : > { %854 = vperm.xlu0 %6546, %v7191_v19   ;;  %1494 = vperm.xlu1 %6545, %v324_v4   ;;  %v7288_v4 = vshrl.u32 %v339_v60, 7 }
  0x58   : > { %1944 = vmatpush1.bf16.msra.mxu0 %v6594_v31 }
  0x59   : > { %1945 = vmatprep.subr.bf16.mxu0 %v6595_v32  ;;  %2107 = vmatpush1.bf16.msra.mxu1 %v6597_v34  ;;  %9641 = vst [vmem:[#allocation10_spill] sm:$0xff] %v7288_v4  ;;  %v7300_v9 = vsub.s32 0, %v7288_v4  ;;  %v7315_v14 = vsub.s32 1, %v7288_v4  ;;  %v7320_v17 = vsub.s32 5, %v7288_v4  ;;  %v7324_v18 = vsub.s32 2, %v7288_v4 }
  0x5a   : > { %2108 = vmatprep.subr.bf16.mxu1 %v6598_v35  ;;  %v7330_v20 = vsub.s32 6, %v7288_v4 }
  0x5b   : > { %1518 = vperm.xlu0 %6546, %v7195_v22   ;;  %6547 = vset.pattern.permute.xlu1 %v9565_v1  ;;  %9646 = vst [vmem:[#allocation15_spill] sm:$0xff] %v7315_v14  ;;  %v439_v15 = vrot.slane %v269_v11, %v7300_v9  ;;  %9647 = vst [vmem:[#allocation16_spill] sm:$0xff] %v7324_v18  ;;  %v896_v29 = vrot.slane %v269_v11, %v7324_v18 }
  0x5c   : > { %372 = vperm.xlu1 %6547, %v7198_v23   ;;  %1946 = vmatpush1.bf16.msra.mxu0 %v6597_v34  ;;  %9649 = vst [vmem:[#allocation18_spill] sm:$0xff] %v7330_v20 }
  0x5d   : > { %1947 = vmatprep.subr.bf16.mxu0 %v6598_v35  ;;  %2109 = vmatpush1.bf16.msra.mxu1 %v6600_v36  ;;  %v7339_v24 = vrot.slane %v439_v15, %v7300_v9 }
  0x5e   : > { %2110 = vmatprep.subr.bf16.mxu1 %v6601_v37 }
  0x5f   : > { %866 = vperm.xlu0 %6546, %v7202_v26  }
  0x60   : > { %1101 = vperm.xlu1 %6547, %v325_v28   ;;  %1948 = vmatpush1.bf16.msra.mxu0 %v6600_v36 }
  0x61   : > { %1949 = vmatprep.subr.bf16.mxu0 %v6601_v37  ;;  %2111 = vmatpush1.bf16.msra.mxu1 %v6603_v38 }
  0x62   : > { %2112 = vmatprep.subr.bf16.mxu1 %v6604_v39 }
  0x63   : > { %870 = vperm.xlu0 %6546, %v7208_v30  }
  0x64   : > { %6548 = vset.pattern.permute.xlu1 %v9563_v0  ;;  %1950 = vmatpush1.bf16.msra.mxu0 %v6603_v38 }
  0x65   : > { %610 = vperm.xlu1 %6548, %v7177_v10   ;;  %1951 = vmatprep.subr.bf16.mxu0 %v6604_v39  ;;  %v7376_v39 = vrot.slane %v7347_v27, %v7300_v9 }
  0x66   : > { %2113 = vmatpush1.bf16.msra.mxu1 %v6606_v40 }
  0x67   : > { %1534 = vperm.xlu0 %6546, %v7212_v33   ;;  %2114 = vmatprep.subr.bf16.mxu1 %v6607_v41 }
  0x68   : > { %1952 = vmatpush1.bf16.msra.mxu0 %v6606_v40 }
  0x69   : > { %1306 = vperm.xlu1 %6548, %v325_v28   ;;  %1953 = vmatprep.subr.bf16.mxu0 %v6607_v41 }
  0x6a   : > { %2115 = vmatpush1.bf16.msra.mxu1 %v6609_v42 }
  0x6b   : > { %6562 = vset.pattern.permute.xlu0 %v9565_v1  ;;  %2116 = vmatprep.subr.bf16.mxu1 %v6610_v43 }
  0x6c   : > { %357 = vperm.xlu0 %6562, %v7165_v3   ;;  %1954 = vmatpush1.bf16.msra.mxu0 %v6609_v42  ;;  %v7286_v3 = vld [vmem:[%s7161_s14 + $0xc0] sm:$0xff]  ;;  %v7385_v42 = vrot.slane %v896_v29, %v7324_v18 }
  0x6d   : > { %1310 = vperm.xlu1 %6548, %v7181_v13   ;;  %1955 = vmatprep.subr.bf16.mxu0 %v6610_v43 }
  0x6e   : > { %2117 = vmatpush1.bf16.msra.mxu1 %v6612_v45 }
  0x6f   : > { %2118 = vmatprep.subr.bf16.mxu1 %v6613_v46 }
  0x70   : > { %362 = vperm.xlu0 %6562, %v7170_v5   ;;  %1956 = vmatpush1.bf16.msra.mxu0 %v6612_v45 }
  0x71   : > { %6549 = vset.pattern.permute.xlu1 %v9567_v8  ;;  %1957 = vmatprep.subr.bf16.mxu0 %v6613_v46 }
  0x72   : > { %842 = vperm.xlu1 %6549, %v7198_v23   ;;  %2119 = vmatpush1.bf16.msra.mxu1 %v6615_v48 }
  0x73   : > { %2120 = vmatprep.subr.bf16.mxu1 %v6616_v49 }
  0x74   : > { %367 = vperm.xlu0 %6562, %v7177_v10   ;;  %1958 = vmatpush1.bf16.msra.mxu0 %v6615_v48  ;;  %v7303_v10 = vsub.s32 4, %v7288_v4 }
  0x75   : > { %1959 = vmatprep.subr.bf16.mxu0 %v6616_v49 }
  0x76   : > { %1498 = vperm.xlu1 %6549, %v325_v28   ;;  %2121 = vmatpush1.bf16.msra.mxu1 %v6618_v51  ;;  %9645 = vst [vmem:[#allocation14_spill] sm:$0xff] %v7303_v10  ;;  %v7352_v28 = vld [vmem:[%s9556_s3 + $0x8] sm:$0xff] }
  0x77   : > { %v7380_v40 = vrot.slane %v7352_v28, %v7300_v9 }
  0x78   : > { %1106 = vperm.xlu0 %6562, %v7181_v13   ;;  %1960 = vmatpush1.bf16.msra.mxu0 %v6618_v51 }
  0x7a   : > { %6550 = vset.pattern.permute.xlu1 %v9565_v1 }
  0x7b   : > { %377 = vperm.xlu1 %6550, %v311_v44  }
  0x7c   : > { %382 = vperm.xlu0 %6562, %v7187_v16  }
  0x7f   : > { %1111 = vperm.xlu1 %6550, %v327_v47  }
  0x80   : > { %387 = vperm.xlu0 %6562, %v7191_v19  }
  0x83   : > { %1116 = vperm.xlu1 %6550, %v328_v50  }
  0x84   : > { %1126 = vperm.xlu0 %6562, %v7195_v22  }
  0x87   : > { %6551 = vset.pattern.permute.xlu1 %v9563_v0 }
  0x88   : > { %402 = vperm.xlu0 %6562, %v7202_v26   ;;  %622 = vperm.xlu1 %6551, %v7187_v16   ;;  %v443_v16 = vrot.slane %v269_v11, %v7303_v10 }
  0x8a   : > { %v7342_v25 = vrot.slane %v443_v16, %v7300_v9 }
  0x8c   : > { %407 = vperm.xlu0 %6562, %v7208_v30   ;;  %1314 = vperm.xlu1 %6551, %v327_v47  }
  0x90   : > { %1146 = vperm.xlu0 %6562, %v7212_v33   ;;  %6552 = vset.pattern.permute.xlu1 %v9567_v8 }
  0x91   : > { %846 = vperm.xlu1 %6552, %v311_v44  }
  0x94   : > { %422 = vperm.xlu0 %6562, %v7238_v52  }
  0x95   : > { %1506 = vperm.xlu1 %6552, %v327_v47  }
  0x98   : > { %427 = vperm.xlu0 %6562, %v7243_v53  }
  0x99   : > { %1510 = vperm.xlu1 %6552, %v328_v50  }
  0x9c   : > { %1166 = vperm.xlu0 %6562, %v7247_v54  }
  0x9d   : > { %6553 = vset.pattern.permute.xlu1 %v9565_v1 }
  0x9e   : > { %392 = vperm.xlu1 %6553, %v314_v55  }
  0xa0   : > { %6567 = vset.pattern.permute.xlu0 %v9563_v0 }
  0xa1   : > { %614 = vperm.xlu0 %6567, %v7198_v23   ;;  %v672_v23 = vrot.slane %v269_v11, %v7320_v17 }
  0xa2   : > { %1121 = vperm.xlu1 %6553, %v329_v56  }
  0xa3   : > { %v7363_v34 = vrot.slane %v672_v23, %v7315_v14 }
  0xa5   : > { %618 = vperm.xlu0 %6567, %v311_v44   ;;  %9650 = vst [vmem:[#allocation19_spill] sm:$0xff] %v7363_v34 }
  0xa6   : > { %6554 = vset.pattern.permute.xlu1 %v9563_v0 }
  0xa7   : > { %626 = vperm.xlu1 %6554, %v7191_v19  }
  0xa9   : > { %1318 = vperm.xlu0 %6567, %v328_v50  }
  0xab   : > { %1322 = vperm.xlu1 %6554, %v329_v56  }
  0xad   : > { %630 = vperm.xlu0 %6567, %v314_v55  }
  0xaf   : > { %1326 = vperm.xlu1 %6554, %v7195_v22   ;;  %v668_v22 = vrot.slane %v269_v11, %v7315_v14 }
  0xb1   : > { %634 = vperm.xlu0 %6567, %v7260_v57   ;;  %v7360_v32 = vrot.slane %v668_v22, %v7315_v14 }
  0xb3   : > { %6555 = vset.pattern.permute.xlu1 %v9567_v8 }
  0xb4   : > { %858 = vperm.xlu1 %6555, %v314_v55  }
  0xb5   : > { %1334 = vperm.xlu0 %6567, %v7265_v58  }
  0xb8   : > { %1514 = vperm.xlu1 %6555, %v329_v56  }
  0xb9   : > { %646 = vperm.xlu0 %6567, %v7269_v59  }
  0xbc   : > { %v7275_v62 = vpop.permute.xlu1 %1091  ;;  %6556 = vset.pattern.permute.xlu1 %v9565_v1 }
  0xbd   : > { %9640 = vst [vmem:[#allocation9_spill] sm:$0xff] %v7275_v62  ;;  %v7278_v63 = vpop.permute.xlu0 %602  ;;  %650 = vperm.xlu0 %6567, %v7273_v61   ;;  %397 = vperm.xlu1 %6556, %v7260_v57   ;;  %v1169_v38 = vmul.f32 %v7275_v62, %v7339_v24  ;;  %v1170_v41 = vmul.f32 %v7275_v62, %v7342_v25 }
  0xbf   : > { %v1201_v55 = vadd.f32 %v1169_v38, %v7376_v39 }
  0xc0   : > { %v7290_v5 = vpop.permute.xlu1 %1096 }
  0xc1   : > { %9642 = vst [vmem:[#allocation11_spill] sm:$0xff] %v7290_v5  ;;  %v7292_v6 = vpop.permute.xlu0 %1302  ;;  %1350 = vperm.xlu0 %6567, %v7283_v2   ;;  %1131 = vperm.xlu1 %6556, %v7286_v3   ;;  %v1171_v35 = vmul.f32 %v7290_v5, %v7339_v24  ;;  %v1172_v37 = vmul.f32 %v7290_v5, %v7342_v25 }
  0xc2   : > { %9643 = vst [vmem:[#allocation12_spill] sm:$0xff] %v7292_v6  ;;  %v1363_v48 = vmul.f32 %v7292_v6, %v7360_v32  ;;  %v1364_v49 = vmul.f32 %v7292_v6, %v7363_v34 }
  0xc3   : > { %v1203_v47 = vadd.f32 %v1171_v35, %v7376_v39  ;;  %v1204_v51 = vadd.f32 %v1172_v37, %v7380_v40 }
  0xc5   : > { %662 = vperm.xlu0 %6567, %v7297_v7   ;;  %v7309_v12 = vpop.permute.xlu1 %606  ;;  %1136 = vperm.xlu1 %6556, %v7265_v58   ;;  %v1395_v16 = vadd.f32 %v1363_v48, %v1203_v47  ;;  %v1396_v23 = vadd.f32 %v1364_v49, %v1204_v51 }
  0xc6   : > { %v7312_v13 = vpop.permute.xlu0 %834 }
  0xc9   : > { %6569 = vset.pattern.permute.xlu0 %v9567_v8  ;;  %v7326_v19 = vpop.permute.xlu1 %1298  ;;  %6557 = vset.pattern.permute.xlu1 %v9563_v0 }
  0xca   : > { %9648 = vst [vmem:[#allocation17_spill] sm:$0xff] %v7326_v19  ;;  %v7332_v21 = vpop.permute.xlu0 %838  ;;  %882 = vperm.xlu0 %6569, %v7238_v52   ;;  %638 = vperm.xlu1 %6557, %v7202_v26   ;;  %v900_v26 = vrot.slane %v269_v11, %v7330_v20  ;;  %v1361_v43 = vmul.f32 %v7326_v19, %v7360_v32 }
  0xcb   : > { %v1362_v46 = vmul.f32 %v7326_v19, %v7363_v34 }
  0xcc   : > { %v7390_v44 = vrot.slane %v900_v26, %v7324_v18  ;;  %v1393_v15 = vadd.f32 %v1361_v43, %v1201_v55 }
  0xce   : > { %v7356_v31 = vpop.permute.xlu0 %1502  ;;  %886 = vperm.xlu0 %6569, %v7243_v53   ;;  %1330 = vperm.xlu1 %6557, %v7286_v3   ;;  %v7368_v36 = vpop.permute.xlu1 %830  ;;  %v1202_v53 = vadd.f32 %v1170_v41, %v7380_v40 }
  0xcf   : > { %9651 = vst [vmem:[#allocation20_spill] sm:$0xff] %v7368_v36 }
  0xd0   : > { %v1394_v11 = vadd.f32 %v1362_v46, %v1202_v53 }
  0xd2   : > { %v7392_v45 = vpop.permute.xlu0 %850  ;;  %1550 = vperm.xlu0 %6569, %v7247_v54   ;;  %6558 = vset.pattern.permute.xlu1 %v9567_v8  ;;  %v7403_v50 = vpop.permute.xlu1 %1490 }
  0xd3   : > { %9652 = vst [vmem:[#allocation21_spill] sm:$0xff] %v7403_v50  ;;  %862 = vperm.xlu1 %6558, %v7260_v57   ;;  %v1554_v54 = vmul.f32 %v7403_v50, %v7390_v44  ;;  %v1553_v56 = vmul.f32 %v7403_v50, %v7385_v42  ;;  %v7588_v7 = vmul.f32 %v7385_v42, %v7392_v45 }
  0xd5   : > { %v1586_v29 = vadd.f32 %v1554_v54, %v1394_v11  ;;  %v1585_v35 = vadd.f32 %v1553_v56, %v1393_v15  ;;  %v5950_v56 = vld [vmem:[%s9554_s1 + $0x8] sm:$0x77]  ;;  %9669 = vst [vmem:[#allocation37_spill] sm:$0xff] %v7588_v7 }
  0xd6   : > { %v7413_v60 = vpop.permute.xlu0 %854  ;;  %v7415_v22 = vpop.permute.xlu1 %1494  ;;  %v750_v15 = vrot.slane %v5950_v56, %v7315_v14  ;;  %v982_v50 = vrot.slane %v5950_v56, %v7330_v20 }
  0xd7   : > { %9653 = vst [vmem:[#allocation22_spill] sm:$0xff] %v7413_v60  ;;  %9654 = vst [vmem:[#allocation23_spill] sm:$0xff] %v7415_v22  ;;  %1522 = vperm.xlu1 %6558, %v7286_v3   ;;  %v1556_v57 = vmul.f32 %v7415_v22, %v7390_v44  ;;  %v1555_v26 = vmul.f32 %v7415_v22, %v7385_v42  ;;  %v1682_v46 = vmax.f32 %v1586_v29, 0.0  ;;  %v1681_v3 = vmax.f32 %v1585_v35, 0.0 }
  0xd8   : > { %v526_v29 = vrot.slane %v5950_v56, %v7303_v10  ;;  %v7454_v35 = vrot.slane %v750_v15, %v7315_v14 }
  0xd9   : > { %v1588_v38 = vadd.f32 %v1556_v57, %v1396_v23  ;;  %v1587_v41 = vadd.f32 %v1555_v26, %v1395_v16  ;;  %v754_v16 = vrot.slane %v5950_v56, %v7320_v17  ;;  %v522_v57 = vrot.slane %v5950_v56, %v7300_v9 }
  0xda   : > { %v7422_v37 = vpop.permute.xlu0 %1518  ;;  %9659 = vst [vmem:[#allocation28_spill] sm:$0xff] %v7454_v35 }
  0xdb   : > { %9655 = vst [vmem:[#allocation24_spill] sm:$0xff] %v7422_v37  ;;  %1526 = vperm.xlu1 %6558, %v7265_v58   ;;  %v7425_v43 = vpop.permute.xlu1 %372  ;;  %v1684_v47 = vmax.f32 %v1588_v38, 0.0  ;;  %v1683_v48 = vmax.f32 %v1587_v41, 0.0  ;;  %v7436_v58 = vld [vmem:[%s7161_s14 + $0xd0] sm:$0xff]  ;;  %v7457_v38 = vrot.slane %v754_v16, %v7315_v14  ;;  %v978_v41 = vrot.slane %v5950_v56, %v7324_v18 }
  0xdd   : > { %v2075_v51 = vpack.c.bf16 %v1684_v47, %v1682_v46  ;;  %v2074_v53 = vpack.c.bf16 %v1683_v48, %v1681_v3  ;;  %9660 = vst [vmem:[#allocation29_spill] sm:$0xff] %v7457_v38  ;;  %v7462_v47 = vrot.slane %v522_v57, %v7300_v9  ;;  %v7465_v3 = vrot.slane %v526_v29, %v7300_v9 }
  0xde   : > { %v7427_v49 = vpop.permute.xlu0 %866  ;;  %v7469_v48 = vrot.slane %v7347_v27, %v7320_v17  ;;  %v765_v9 = vmul.f32 %v7454_v35, %v7278_v63  ;;  %v766_v27 = vmul.f32 %v7457_v38, %v7278_v63 }
  0xdf   : > { %9656 = vst [vmem:[#allocation25_spill] sm:$0xff] %v7427_v49  ;;  %6559 = vset.pattern.permute.xlu1 %v9565_v1  ;;  %v7430_v54 = vpop.permute.xlu1 %1101  ;;  %2122 = vmatprep.mubr.bf16.mxu1 %v2075_v51  ;;  %v7473_v51 = vrot.slane %v7352_v28, %v7320_v17 }
  0xe0   : > { %412 = vperm.xlu1 %6559, %v7269_v59   ;;  %2123 = vmatmul.mubr.bf16.vlgmr.msra.gmra.mrb[0].mxu1 %v2074_v53  ;;  %v684_v53 = vmul.f32 %v7363_v34, %v7278_v63 }
  0xe2   : > { %v7433_v55 = vpop.permute.xlu0 %870 }
  0xe3   : > { %9657 = vst [vmem:[#allocation26_spill] sm:$0xff] %v7433_v55 }
  0xe4   : > { %1141 = vperm.xlu1 %6559, %v7436_v58   ;;  %v7442_v11 = vpop.permute.xlu1 %610 }
  0xe6   : > { %v7446_v23 = vpop.permute.xlu0 %1534 }
  0xe7   : > { %9658 = vst [vmem:[#allocation27_spill] sm:$0xff] %v7446_v23 }
  0xe8   : > { %6560 = vset.pattern.permute.xlu1 %v9563_v0  ;;  %v7451_v26 = vpop.permute.xlu1 %1306 }
  0xe9   : > { %642 = vperm.xlu1 %6560, %v7208_v30   ;;  %v683_v30 = vmul.f32 %v7360_v32, %v7278_v63 }
  0xeb   : > { %v358_v46 = vpop.permute.xlu0 %357 }
  0xec   : > { %v454_v15 = vmul.f32 %v7339_v24, %v358_v46  ;;  %v455_v16 = vmul.f32 %v7342_v25, %v358_v46  ;;  %v537_v57 = vmul.f32 %v7462_v47, %v358_v46  ;;  %v538_v17 = vmul.f32 %v7465_v3, %v358_v46  ;;  %v7487_v28 = vpop.permute.xlu1 %1310 }
  0xed   : > { %1338 = vperm.xlu1 %6560, %v7436_v58   ;;  %v1367_v7 = vmul.f32 %v7487_v28, %v7360_v32 }
  0xee   : > { %v486_v29 = vadd.f32 %v454_v15, %v7376_v39  ;;  %v487_v1 = vadd.f32 %v455_v16, %v7380_v40  ;;  %v569_v8 = vadd.f32 %v537_v57, %v7469_v48  ;;  %v570_v22 = vadd.f32 %v538_v17, %v7473_v51 }
  0xef   : > { %v7491_v0 = vpop.permute.xlu0 %362  ;;  %v7502_v15 = vrot.slane %v978_v41, %v7324_v18  ;;  %v685_v57 = vmul.f32 %v7360_v32, %v7309_v12  ;;  %v913_v17 = vmul.f32 %v7385_v42, %v7312_v13 }
  0xf0   : > { %v456_v63 = vmul.f32 %v7339_v24, %v7491_v0  ;;  %v457_v46 = vmul.f32 %v7342_v25, %v7491_v0  ;;  %v716_v19 = vadd.f32 %v684_v53, %v487_v1  ;;  %v715_v6 = vadd.f32 %v683_v30, %v486_v29 }
  0xf1   : > { %v7504_v5 = vadd.f32 %v765_v9, %v569_v8  ;;  %v7506_v16 = vadd.f32 %v766_v27, %v570_v22  ;;  %1342 = vperm.xlu1 %6560, %v7212_v33   ;;  %v7514_v56 = vpop.permute.xlu1 %842  ;;  %v686_v8 = vmul.f32 %v7363_v34, %v7309_v12  ;;  %v912_v22 = vmul.f32 %v7390_v44, %v7368_v36 }
  0xf2   : > { %v488_v62 = vadd.f32 %v456_v63, %v7376_v39  ;;  %v489_v41 = vadd.f32 %v457_v46, %v7380_v40  ;;  %v914_v30 = vmul.f32 %v7390_v44, %v7312_v13  ;;  %v911_v53 = vmul.f32 %v7385_v42, %v7368_v36 }
  0xf3   : > { %9661 = vst [vmem:[#allocation30_spill] sm:$0xff] %v7504_v5  ;;  %9662 = vst [vmem:[#allocation31_spill] sm:$0xff] %v7506_v16  ;;  %v7517_v1 = vpop.permute.xlu0 %367  ;;  %v7528_v33 = vrot.slane %v982_v50, %v7324_v18  ;;  %v7532_v9 = vmul.f32 %v7454_v35, %v7309_v12  ;;  %v7536_v27 = vmul.f32 %v7502_v15, %v7312_v13  ;;  %v9665_v36 = vmov 2  }
  0xf4   : > { %v7540_v29 = vmul.f32 %v7457_v38, %v7309_v12  ;;  %v718_v63 = vadd.f32 %v686_v8, %v489_v41  ;;  %v944_v46 = vadd.f32 %v912_v22, %v716_v19  ;;  %v717_v20 = vadd.f32 %v685_v57, %v488_v62 }
  0xf5   : > { %9663 = vst [vmem:[#allocation32_spill] sm:$0xff] %v7528_v33  ;;  %v943_v16 = vadd.f32 %v911_v53, %v715_v6  ;;  %v7544_v50 = vmul.f32 %v7385_v42, %v7332_v21  ;;  %v7548_v5 = vmul.f32 %v7390_v44, %v7332_v21  ;;  %6561 = vset.pattern.permute.xlu1 %v9665_v36  ;;  %v7551_v10 = vpop.permute.xlu1 %1498 }
  0xf6   : > { %v7555_v12 = vmul.f32 %v7528_v33, %v7312_v13  ;;  %v7559_v62 = vmul.f32 %v7502_v15, %v7332_v21  ;;  %v1559_v6 = vmul.f32 %v7356_v31, %v7385_v42  ;;  %874 = vperm.xlu1 %6561, %v7269_v59   ;;  %v946_v57 = vadd.f32 %v914_v30, %v718_v63 }
  0xf7   : > { %9664 = vst [vmem:[#allocation33_spill] sm:$0xff] %v7544_v50  ;;  %v7564_v19 = vpop.permute.xlu0 %1106  ;;  %v945_v41 = vadd.f32 %v913_v17, %v717_v20  ;;  %v7568_v8 = vmul.f32 %v7528_v33, %v7332_v21  ;;  %v1173_v13 = vmul.f32 %v7430_v54, %v7339_v24  ;;  %v1174_v22 = vmul.f32 %v7430_v54, %v7342_v25 }
  0xf8   : > { %9666 = vst [vmem:[#allocation34_spill] sm:$0xff] %v7559_v62  ;;  %v1175_v53 = vmul.f32 %v7564_v19, %v7339_v24  ;;  %v1176_v59 = vmul.f32 %v7564_v19, %v7342_v25  ;;  %v1058_v4 = vmax.f32 %v944_v46, 0.0  ;;  %v1060_v18 = vmax.f32 %v946_v57, 0.0 }
  0xf9   : > { %9667 = vst [vmem:[#allocation35_spill] sm:$0xff] %v7568_v8  ;;  %v1057_v30 = vmax.f32 %v943_v16, 0.0  ;;  %v1059_v20 = vmax.f32 %v945_v41, 0.0  ;;  %v1560_v21 = vmul.f32 %v7356_v31, %v7390_v44  ;;  %v7584_v14 = vmul.f32 %v7356_v31, %v7502_v15 }
  0xfa   : > { %v1207_v17 = vadd.f32 %v1175_v53, %v7376_v39  ;;  %v1208_v63 = vadd.f32 %v1176_v59, %v7380_v40  ;;  %1530 = vperm.xlu1 %6561, %v7436_v58   ;;  %v7591_v46 = vpop.permute.xlu1 %377  ;;  %v1746_v57 = vpack.c.bf16 %v1060_v18, %v1058_v4  ;;  %v7597_v53 = vmul.f32 %v7356_v31, %v7528_v33 }
  0xfb   : > { %9668 = vst [vmem:[#allocation36_spill] sm:$0xff] %v7584_v14  ;;  %v7593_v16 = vpop.permute.xlu0 %382  ;;  %v1745_v41 = vpack.c.bf16 %v1059_v20, %v1057_v30  ;;  %v1365_v59 = vmul.f32 %v7451_v26, %v7360_v32  ;;  %v1366_v8 = vmul.f32 %v7451_v26, %v7363_v34  ;;  %v1368_v58 = vmul.f32 %v7487_v28, %v7363_v34 }
  0xfc   : > { %9670 = vst [vmem:[#allocation38_spill] sm:$0xff] %v7597_v53  ;;  %v7609_v4 = vmul.f32 %v7390_v44, %v7392_v45  ;;  %v1205_v18 = vadd.f32 %v1173_v13, %v7376_v39  ;;  %v1206_v31 = vadd.f32 %v1174_v22, %v7380_v40  ;;  %1961 = vmatprep.mubr.bf16.mxu0 %v1746_v57 }
  0xfd   : > { %v7615_v30 = vmul.f32 %v7502_v15, %v7392_v45  ;;  %v1557_v20 = vmul.f32 %v7551_v10, %v7385_v42  ;;  %v1558_v62 = vmul.f32 %v7551_v10, %v7390_v44  ;;  %1962 = vmatmul.mubr.bf16.vlgmr.msra.gmra.mrb[0].mxu0 %v1745_v41  ;;  %v1400_v53 = vadd.f32 %v1368_v58, %v1208_v63 }
  0xfe   : > { %9671 = vst [vmem:[#allocation39_spill] sm:$0xff] %v7609_v4  ;;  %v1399_v14 = vadd.f32 %v1367_v7, %v1207_v17  ;;  %v460_v13 = vmul.f32 %v7339_v24, %v7425_v43  ;;  %v539_v22 = vmul.f32 %v7462_v47, %v7491_v0  ;;  %v540_v57 = vmul.f32 %v7465_v3, %v7491_v0  ;;  %v7628_v4 = vpop.permute.xlu1 %1111 }
  0xff   : > { %9672 = vst [vmem:[#allocation40_spill] sm:$0xff] %v7615_v30  ;;  %v9673_v30 = vmov 0   ;;  %v7630_v50 = vpop.permute.xlu0 %387  ;;  %v7634_v63 = vmul.f32 %v7528_v33, %v7392_v45  ;;  %v461_v7 = vmul.f32 %v7342_v25, %v7425_v43  ;;  %v1397_v17 = vadd.f32 %v1365_v59, %v1205_v18 }
 0x100   : > { %6563 = vset.pattern.permute.xlu1 %v9673_v30  ;;  %9674 = vst [vmem:[#allocation41_spill] sm:$0xff] %v7630_v50  ;;  %v1398_v41 = vadd.f32 %v1366_v8, %v1206_v31  ;;  %v543_v0 = vmul.f32 %v7462_v47, %v7425_v43  ;;  %v7643_v58 = vmul.f32 %v7385_v42, %v7413_v60 }
 0x101   : > { %9675 = vst [vmem:[#allocation42_spill] sm:$0xff] %v7634_v63  ;;  %417 = vperm.xlu1 %6563, %v7273_v61   ;;  %v7647_v30 = vmul.f32 %v7390_v44, %v7413_v60  ;;  %v7651_v45 = vmul.f32 %v7422_v37, %v7385_v42  ;;  %v7654_v63 = vld [vmem:[%s7161_s14 + $0xe0] sm:$0xff]  ;;  %v544_v8 = vmul.f32 %v7465_v3, %v7425_v43 }
 0x102   : > { %9676 = vst [vmem:[#allocation43_spill] sm:$0xff] %v7643_v58  ;;  %v1590_v59 = vadd.f32 %v1558_v62, %v1398_v41  ;;  %v1592_v18 = vadd.f32 %v1560_v21, %v1400_v53  ;;  %v1589_v31 = vadd.f32 %v1557_v20, %v1397_v17  ;;  %v1591_v61 = vadd.f32 %v1559_v6, %v1399_v14 }
 0x103   : > { %9677 = vst [vmem:[#allocation44_spill] sm:$0xff] %v7647_v30  ;;  %9678 = vst [vmem:[#allocation45_spill] sm:$0xff] %v7651_v45  ;;  %v7660_v58 = vmul.f32 %v7422_v37, %v7390_v44  ;;  %v7664_v60 = vmul.f32 %v7385_v42, %v7427_v49  ;;  %v7666_v30 = vpop.permute.xlu1 %1116  ;;  %v7668_v45 = vpop.permute.xlu0 %1126  ;;  %v571_v50 = vadd.f32 %v539_v22, %v7469_v48 }
 0x104   : > { %v572_v43 = vadd.f32 %v540_v57, %v7473_v51  ;;  %v7674_v62 = vmul.f32 %v7390_v44, %v7427_v49  ;;  %v7678_v14 = vadd.f32 %v460_v13, %v7376_v39  ;;  %v7681_v6 = vadd.f32 %v461_v7, %v7380_v40 }
 0x105   : > { %9679 = vst [vmem:[#allocation46_spill] sm:$0xff] %v7660_v58  ;;  %9680 = vst [vmem:[#allocation47_spill] sm:$0xff] %v7664_v60  ;;  %1151 = vperm.xlu1 %6563, %v7654_v63   ;;  %v7684_v21 = vadd.f32 %v543_v0, %v7469_v48  ;;  %v7688_v53 = vmul.f32 %v7385_v42, %v7433_v55  ;;  %v1237_v20 = vmul.f32 %v7430_v54, %v7462_v47 }
 0x106   : > { %9681 = vst [vmem:[#allocation48_spill] sm:$0xff] %v7674_v62  ;;  %v1238_v22 = vmul.f32 %v7430_v54, %v7465_v3  ;;  %v7695_v57 = vadd.f32 %v544_v8, %v7473_v51  ;;  %v1686_v13 = vmax.f32 %v1590_v59, 0.0  ;;  %v1688_v17 = vmax.f32 %v1592_v18, 0.0 }
 0x107   : > { %9682 = vst [vmem:[#allocation49_spill] sm:$0xff] %v7688_v53  ;;  %v1685_v7 = vmax.f32 %v1589_v31, 0.0  ;;  %v1687_v41 = vmax.f32 %v1591_v61, 0.0  ;;  %v1429_v0 = vmul.f32 %v7451_v26, %v7454_v35  ;;  %v1430_v49 = vmul.f32 %v7451_v26, %v7457_v38  ;;  %v7701_v37 = vpop.permute.xlu0 %402  ;;  %v7710_v18 = vpop.permute.xlu1 %622 }
 0x108   : > { %9683 = vst [vmem:[#allocation50_spill] sm:$0xff] %v7695_v57  ;;  %v799_v53 = vadd.f32 %v7532_v9, %v571_v50  ;;  %v800_v60 = vadd.f32 %v7540_v29, %v572_v43  ;;  %v458_v54 = vmul.f32 %v7339_v24, %v7517_v1  ;;  %v459_v8 = vmul.f32 %v7342_v25, %v7517_v1 }
 0x109   : > { %v2077_v59 = vpack.c.bf16 %v1688_v17, %v1686_v13  ;;  %v2076_v61 = vpack.c.bf16 %v1687_v41, %v1685_v7  ;;  %1156 = vperm.xlu1 %6563, %v7283_v2   ;;  %v7714_v26 = vmul.f32 %v7390_v44, %v7433_v55  ;;  %v687_v9 = vmul.f32 %v7360_v32, %v7442_v11 }
 0x10a   : > { %v1269_v29 = vadd.f32 %v1237_v20, %v7469_v48  ;;  %v1270_v50 = vadd.f32 %v1238_v22, %v7473_v51  ;;  %v688_v31 = vmul.f32 %v7363_v34, %v7442_v11  ;;  %v7724_v43 = vmul.f32 %v7446_v23, %v7385_v42 }
 0x10b   : > { %9684 = vst [vmem:[#allocation51_spill] sm:$0xff] %v7714_v26  ;;  %2132 = vmatprep.mubr.bf16.mxu1 %v2077_v59  ;;  %v7728_v13 = vmul.f32 %v7454_v35, %v7442_v11  ;;  %v7732_v17 = vmul.f32 %v7457_v38, %v7442_v11  ;;  %v7734_v20 = vpop.permute.xlu0 %407  ;;  %v7737_v22 = vadd.f32 %v7536_v27, %v799_v53  ;;  %v9689_v23 = vmov 1   ;;  %v7749_v26 = vpop.permute.xlu1 %1314 }
 0x10c   : > { %9685 = vst [vmem:[#allocation52_spill] sm:$0xff] %v7724_v43  ;;  %2133 = vmatmul.mubr.bf16.gmra.mrb[4].mxu1 %v2076_v61  ;;  %9686 = vst [vmem:[#allocation53_spill] sm:$0xff] %v7734_v20  ;;  %v7740_v7 = vadd.f32 %v7555_v12, %v800_v60  ;;  %v1461_v41 = vadd.f32 %v1429_v0, %v1269_v29  ;;  %v1462_v55 = vadd.f32 %v1430_v49, %v1270_v50  ;;  %v6621_v50 = vld [vmem:[#allocation2 + $0x104] ss:$8 sps:$4 sm:$0xff]  }
 0x10d   : > { %9687 = vst [vmem:[#allocation54_spill] sm:$0xff] %v7737_v22  ;;  %v1431_v59 = vmul.f32 %v7487_v28, %v7454_v35  ;;  %v1432_v43 = vmul.f32 %v7487_v28, %v7457_v38  ;;  %v490_v11 = vadd.f32 %v458_v54, %v7376_v39  ;;  %v491_v61 = vadd.f32 %v459_v8, %v7380_v40 }
 0x10e   : > { %9688 = vst [vmem:[#allocation55_spill] sm:$0xff] %v7740_v7  ;;  %6564 = vset.pattern.permute.xlu1 %v9689_v23  ;;  %9690 = vst [vmem:[#allocation56_spill] sm:$0xff] %v7749_v26  ;;  %v7753_v60 = vmul.f32 %v7385_v42, %v7514_v56  ;;  %v7757_v49 = vmul.f32 %v7390_v44, %v7514_v56  ;;  %v541_v27 = vmul.f32 %v7462_v47, %v7517_v1 }
 0x10f   : > { %v542_v28 = vmul.f32 %v7465_v3, %v7517_v1  ;;  %654 = vperm.xlu1 %6564, %v7238_v52   ;;  %v1239_v12 = vmul.f32 %v7564_v19, %v7462_v47  ;;  %v462_v53 = vmul.f32 %v7339_v24, %v7591_v46  ;;  %v463_v0 = vmul.f32 %v7342_v25, %v7591_v46  ;;  %v7776_v29 = vpop.permute.xlu0 %1146  ;;  %v6619_v52 = vld [vmem:[#allocation2 + $0x100] ss:$8 sps:$4 sm:$0xff]  }
 0x110   : > { %v464_v54 = vmul.f32 %v7339_v24, %v7593_v16  ;;  %v1240_v8 = vmul.f32 %v7564_v19, %v7465_v3  ;;  %v465_v1 = vmul.f32 %v7342_v25, %v7593_v16  ;;  %9691 = vst [vmem:[#allocation57_spill] sm:$0xff] %v7776_v29  ;;  %v1621_v7 = vmul.f32 %v7551_v10, %v7502_v15  ;;  %v7795_v57 = vpop.permute.xlu1 %846 }
 0x111   : > { %v1622_v22 = vmul.f32 %v7551_v10, %v7528_v33  ;;  %v7784_v62 = vmul.f32 %v7462_v47, %v7591_v46  ;;  %v7788_v19 = vmul.f32 %v7465_v3, %v7591_v46  ;;  %v720_v20 = vadd.f32 %v688_v31, %v491_v61  ;;  %2613 = vmatprep.subr.bf16.mxu1 %v6621_v50 }
 0x112   : > { %v719_v58 = vadd.f32 %v687_v9, %v490_v11  ;;  %v7792_v29 = vmul.f32 %v7462_v47, %v7593_v16  ;;  %v7797_v10 = vadd.f32 %v1621_v7, %v1461_v41  ;;  %v7805_v46 = vadd.f32 %v463_v0, %v7380_v40  ;;  %2614 = vmatpush1.bf16.msra.mxu1 %v6619_v52 }
 0x113   : > { %9692 = vst [vmem:[#allocation58_spill] sm:$0xff] %v7784_v62  ;;  %9693 = vst [vmem:[#allocation59_spill] sm:$0xff] %v7788_v19  ;;  %1346 = vperm.xlu1 %6564, %v7654_v63   ;;  %v7799_v33 = vadd.f32 %v1622_v22, %v1462_v55  ;;  %v7802_v62 = vadd.f32 %v462_v53, %v7376_v39  ;;  %v7808_v9 = vadd.f32 %v464_v54, %v7376_v39  ;;  %v7817_v7 = vpop.permute.xlu0 %422  ;;  %v6622_v55 = vld [vmem:[#allocation2 + $0x110] ss:$8 sps:$4 sm:$0xff]   ;;  %v6624_v22 = vld [vmem:[#allocation2 + $0x114] ss:$8 sps:$4 sm:$0xff]  }
 0x114   : > { %9694 = vst [vmem:[#allocation60_spill] sm:$0xff] %v7792_v29  ;;  %9695 = vst [vmem:[#allocation61_spill] sm:$0xff] %v7797_v10  ;;  %v7812_v31 = vmul.f32 %v7465_v3, %v7593_v16  ;;  %v7815_v11 = vadd.f32 %v465_v1, %v7380_v40  ;;  %2452 = vmatprep.subr.bf16.mxu0 %v6621_v50  ;;  %v1271_v41 = vadd.f32 %v1239_v12, %v7469_v48  ;;  %v7831_v50 = vpop.permute.xlu1 %1506  ;;  %v9700_v10 = vld [vmem:[#allocation41_spill] sm:$0xff] }
 0x115   : > { %9696 = vst [vmem:[#allocation62_spill] sm:$0xff] %v7799_v33  ;;  %9698 = vst [vmem:[#allocation64_spill] sm:$0xff] %v7817_v7  ;;  %v1272_v61 = vadd.f32 %v1240_v8, %v7473_v51  ;;  %v573_v53 = vadd.f32 %v541_v27, %v7469_v48  ;;  %v1177_v0 = vmul.f32 %v7628_v4, %v7339_v24  ;;  %2453 = vmatpush1.bf16.msra.mxu0 %v6619_v52 }
 0x116   : > { %9697 = vst [vmem:[#allocation63_spill] sm:$0xff] %v7812_v31  ;;  %v1178_v16 = vmul.f32 %v7628_v4, %v7342_v25  ;;  %v7827_v54 = vadd.f32 %v7548_v5, %v720_v20  ;;  %v574_v1 = vadd.f32 %v542_v28, %v7473_v51  ;;  %9699 = vst [vmem:[#allocation65_spill] sm:$0xff] %v7831_v50  ;;  %2615 = vmatprep.subr.bf16.mxu1 %v6624_v22  ;;  %v9701_v20 = vld [vmem:[#allocation8_spill] sm:$0xff]  ;;  %v9702_v28 = vld [vmem:[#allocation33_spill] sm:$0xff] }
 0x117   : > { %6565 = vset.pattern.permute.xlu1 %v9665_v36  ;;  %v1463_v12 = vadd.f32 %v1431_v59, %v1271_v41  ;;  %v1464_v8 = vadd.f32 %v1432_v43, %v1272_v61  ;;  %v801_v27 = vadd.f32 %v7728_v13, %v573_v53  ;;  %v1241_v33 = vmul.f32 %v7628_v4, %v7462_v47  ;;  %v6627_v31 = vld [vmem:[#allocation2 + $0x124] ss:$8 sps:$4 sm:$0xff]   ;;  %v7844_v29 = vpop.permute.xlu0 %427  ;;  %v6625_v43 = vld [vmem:[#allocation2 + $0x120] ss:$8 sps:$4 sm:$0xff]   ;;  %v9706_v41 = vld [vmem:[#allocation38_spill] sm:$0xff] }
 0x118   : > { %v466_v7 = vmul.f32 %v7339_v24, %v9700_v10  ;;  %v467_v5 = vmul.f32 %v7342_v25, %v9700_v10  ;;  %878 = vperm.xlu1 %6565, %v9701_v20   ;;  %v7842_v52 = vadd.f32 %v9702_v28, %v719_v58  ;;  %9703 = vst [vmem:[#allocation41_spill] sm:$0xff] %v7844_v29  ;;  %v9704_v13 = vld [vmem:[#allocation36_spill] sm:$0xff]  ;;  %v9708_v53 = vld [vmem:[#allocation34_spill] sm:$0xff] }
 0x119   : > { %2616 = vmatpush1.bf16.msra.mxu1 %v6622_v55  ;;  %2454 = vmatprep.subr.bf16.mxu0 %v6624_v22  ;;  %v7847_v59 = vadd.f32 %v9704_v13, %v1463_v12  ;;  %v7850_v61 = vadd.f32 %v9706_v41, %v1464_v8  ;;  %v7853_v19 = vadd.f32 %v9708_v53, %v801_v27  ;;  %v6630_v53 = vld [vmem:[#allocation2 + $0x134] ss:$8 sps:$4 sm:$0xff]  }
 0x11a   : > { %v7856_v20 = vadd.f32 %v1177_v0, %v7376_v39  ;;  %v7860_v58 = vmul.f32 %v7628_v4, %v7465_v3  ;;  %v7864_v28 = vmul.f32 %v7462_v47, %v9700_v10  ;;  %v7868_v22 = vmul.f32 %v7465_v3, %v9700_v10  ;;  %2617 = vmatprep.subr.bf16.mxu1 %v6627_v31  ;;  %v7877_v4 = vpop.permute.xlu1 %1510 }
 0x11b   : > { %9705 = vst [vmem:[#allocation8_spill] sm:$0xff] %v7847_v59  ;;  %9707 = vst [vmem:[#allocation33_spill] sm:$0xff] %v7850_v61  ;;  %v7871_v12 = vadd.f32 %v1178_v16, %v7380_v40  ;;  %v1179_v0 = vmul.f32 %v7666_v30, %v7339_v24  ;;  %v1180_v8 = vmul.f32 %v7666_v30, %v7342_v25  ;;  %2455 = vmatpush1.bf16.msra.mxu0 %v6622_v55 }
 0x11c   : > { %9709 = vst [vmem:[#allocation36_spill] sm:$0xff] %v7853_v19  ;;  %9710 = vst [vmem:[#allocation38_spill] sm:$0xff] %v7860_v58  ;;  %v802_v27 = vadd.f32 %v7732_v17, %v574_v1  ;;  %v7881_v13 = vadd.f32 %v466_v7, %v7376_v39  ;;  %v7884_v10 = vadd.f32 %v467_v5, %v7380_v40  ;;  %1538 = vperm.xlu1 %6565, %v7654_v63   ;;  %v7895_v7 = vpop.permute.xlu0 %1166  ;;  %v6628_v1 = vld [vmem:[#allocation2 + $0x130] ss:$8 sps:$4 sm:$0xff]   ;;  %v9727_v58 = vld [vmem:[#allocation13_spill] sm:$0xff] }
 0x11d   : > { %9711 = vst [vmem:[#allocation34_spill] sm:$0xff] %v7864_v28  ;;  %9712 = vst [vmem:[#allocation66_spill] sm:$0xff] %v7868_v22  ;;  %v1183_v16 = vmul.f32 %v7668_v45, %v7339_v24  ;;  %v694_v41 = vmul.f32 %v7363_v34, %v7710_v18  ;;  %v1184_v55 = vmul.f32 %v7668_v45, %v7342_v25  ;;  %2618 = vmatpush1.bf16.msra.mxu1 %v6625_v43  ;;  %v9715_v5 = vld [vmem:[#allocation35_spill] sm:$0xff]  ;;  %v6633_v22 = vld [vmem:[#allocation2 + $0x144] ss:$8 sps:$4 sm:$0xff]  }
 0x11e   : > { %9713 = vst [vmem:[#allocation67_spill] sm:$0xff] %v7877_v4  ;;  %v693_v17 = vmul.f32 %v7360_v32, %v7710_v18  ;;  %9714 = vst [vmem:[#allocation68_spill] sm:$0xff] %v7895_v7  ;;  %2456 = vmatprep.subr.bf16.mxu0 %v6627_v31  ;;  %v7898_v19 = vadd.f32 %v9715_v5, %v802_v27  ;;  %v7902_v61 = vmul.f32 %v7666_v30, %v7462_v47  ;;  %v7928_v29 = vpop.permute.xlu1 %392 }
 0x11f   : > { %v7906_v63 = vmul.f32 %v7666_v30, %v7465_v3  ;;  %v472_v59 = vmul.f32 %v7339_v24, %v7701_v37  ;;  %v1433_v7 = vmul.f32 %v7749_v26, %v7454_v35  ;;  %2619 = vmatprep.subr.bf16.mxu1 %v6630_v53  ;;  %v7913_v31 = vadd.f32 %v1179_v0, %v7376_v39 }
 0x120   : > { %9716 = vst [vmem:[#allocation35_spill] sm:$0xff] %v7898_v19  ;;  %9717 = vst [vmem:[#allocation69_spill] sm:$0xff] %v7902_v61  ;;  %v7916_v27 = vadd.f32 %v1180_v8, %v7380_v40  ;;  %v7920_v5 = vmul.f32 %v7668_v45, %v7462_v47  ;;  %v7924_v30 = vmul.f32 %v7668_v45, %v7465_v3  ;;  %2457 = vmatpush1.bf16.msra.mxu0 %v6625_v43 }
 0x121   : > { %9718 = vst [vmem:[#allocation70_spill] sm:$0xff] %v7906_v63  ;;  %v726_v19 = vadd.f32 %v694_v41, %v7815_v11  ;;  %1542 = vperm.xlu1 %6565, %v7283_v2   ;;  %2458 = vmatprep.subr.bf16.mxu0 %v6630_v53  ;;  %v1273_v8 = vadd.f32 %v1241_v33, %v7469_v48  ;;  %v7954_v41 = vpop.permute.xlu0 %614  ;;  %v6631_v53 = vld [vmem:[#allocation2 + $0x140] ss:$8 sps:$4 sm:$0xff]  }
 0x122   : > { %9719 = vst [vmem:[#allocation71_spill] sm:$0xff] %v7920_v5  ;;  %9720 = vst [vmem:[#allocation72_spill] sm:$0xff] %v7924_v30  ;;  %v1625_v5 = vmul.f32 %v7831_v50, %v7502_v15  ;;  %v7935_v28 = vadd.f32 %v1183_v16, %v7376_v39  ;;  %v7938_v45 = vadd.f32 %v1184_v55, %v7380_v40  ;;  %2620 = vmatpush1.bf16.msra.mxu1 %v6628_v1  ;;  %v9724_v30 = vmov 0  }
 0x123   : > { %v725_v11 = vadd.f32 %v693_v17, %v7808_v9  ;;  %v473_v2 = vmul.f32 %v7342_v25, %v7701_v37  ;;  %v7945_v43 = vmul.f32 %v7454_v35, %v7710_v18  ;;  %v7949_v33 = vmul.f32 %v7457_v38, %v7710_v18  ;;  %2621 = vmatprep.subr.bf16.mxu1 %v6633_v22 }
 0x124   : > { %v7952_v16 = vadd.f32 %v472_v59, %v7376_v39  ;;  %v1465_v9 = vadd.f32 %v1433_v7, %v1273_v8  ;;  %v1369_v55 = vmul.f32 %v7749_v26, %v7360_v32  ;;  %v1370_v17 = vmul.f32 %v7749_v26, %v7363_v34  ;;  %2459 = vmatpush1.bf16.msra.mxu0 %v6628_v1  ;;  %v7967_v7 = vpop.permute.xlu1 %1121 }
 0x125   : > { %9721 = vst [vmem:[#allocation73_spill] sm:$0xff] %v7945_v43  ;;  %9722 = vst [vmem:[#allocation74_spill] sm:$0xff] %v7949_v33  ;;  %v689_v0 = vmul.f32 %v7360_v32, %v7954_v41  ;;  %v690_v18 = vmul.f32 %v7363_v34, %v7954_v41  ;;  %v771_v59 = vmul.f32 %v7454_v35, %v7954_v41  ;;  %6566 = vset.pattern.permute.xlu1 %v9724_v30  ;;  %v9728_v30 = vld [vmem:[#allocation37_spill] sm:$0xff] }
 0x126   : > { %9723 = vst [vmem:[#allocation75_spill] sm:$0xff] %v7952_v16  ;;  %v9725_v16 = vld [vmem:[#allocation39_spill] sm:$0xff]  ;;  %2460 = vmatprep.subr.bf16.mxu0 %v6633_v22  ;;  %v7973_v63 = vadd.f32 %v1625_v5, %v1465_v9  ;;  %v1562_v43 = vmul.f32 %v7831_v50, %v7390_v44  ;;  %432 = vperm.xlu1 %6566, %v9727_v58   ;;  %v7992_v5 = vpop.permute.xlu0 %618 }
 0x127   : > { %v7971_v33 = vadd.f32 %v9725_v16, %v726_v19  ;;  %v721_v1 = vadd.f32 %v689_v0, %v7678_v14  ;;  %v722_v61 = vadd.f32 %v690_v18, %v7681_v6  ;;  %v7981_v26 = vadd.f32 %v9728_v30, %v725_v11  ;;  %v7995_v14 = vld [vmem:[%s7161_s14 + $0xf0] sm:$0xff]  ;;  %2622 = vmatpush1.bf16.msra.mxu1 %v6631_v53 }
 0x128   : > { %9726 = vst [vmem:[#allocation39_spill] sm:$0xff] %v7973_v63  ;;  %v7984_v8 = vadd.f32 %v473_v2, %v7380_v40  ;;  %v7988_v19 = vmul.f32 %v7462_v47, %v7701_v37  ;;  %v1561_v22 = vmul.f32 %v7831_v50, %v7385_v42  ;;  %v803_v6 = vadd.f32 %v771_v59, %v7684_v21  ;;  %v6634_v2 = vld [vmem:[#allocation2 + $0x150] ss:$8 sps:$4 sm:$0xff]   ;;  %v6636_v16 = vld [vmem:[#allocation2 + $0x154] ss:$8 sps:$4 sm:$0xff]  }
 0x129   : > { %v1401_v58 = vadd.f32 %v1369_v55, %v7856_v20  ;;  %v1402_v0 = vadd.f32 %v1370_v17, %v7871_v12  ;;  %v692_v11 = vmul.f32 %v7363_v34, %v7992_v5  ;;  %2461 = vmatpush1.bf16.msra.mxu0 %v6631_v53  ;;  %v999_v9 = vmul.f32 %v7502_v15, %v7514_v56  ;;  %v8011_v55 = vpop.permute.xlu1 %626  ;;  %v8039_v63 = vld [vmem:[#allocation2 + $0x160] ss:$8 sps:$4 sm:$0xff]  }
 0x12a   : > { %9729 = vst [vmem:[#allocation13_spill] sm:$0xff] %v7984_v8  ;;  %9730 = vst [vmem:[#allocation37_spill] sm:$0xff] %v7988_v19  ;;  %v691_v18 = vmul.f32 %v7360_v32, %v7992_v5  ;;  %v950_v30 = vadd.f32 %v7757_v49, %v722_v61  ;;  %v949_v21 = vadd.f32 %v7753_v60, %v721_v1  ;;  %1161 = vperm.xlu1 %6566, %v7995_v14   ;;  %v8024_v61 = vpop.permute.xlu0 %1318 }
 0x12b   : > { %v724_v12 = vadd.f32 %v692_v11, %v7805_v46  ;;  %9731 = vst [vmem:[#allocation76_spill] sm:$0xff] %v8011_v55  ;;  %v8013_v17 = vadd.f32 %v1562_v43, %v1402_v0  ;;  %2623 = vmatprep.subr.bf16.mxu1 %v6636_v16  ;;  %v8016_v59 = vadd.f32 %v999_v9, %v803_v6  ;;  %9733 = vst [vmem:[#allocation78_spill] sm:$0xff] %v8024_v61  ;;  %v6639_v9 = vld [vmem:[#allocation2 + $0x164] ss:$8 sps:$4 sm:$0xff]  }
 0x12c   : > { %v919_v49 = vmul.f32 %v7385_v42, %v7795_v57  ;;  %v920_v60 = vmul.f32 %v7390_v44, %v7795_v57  ;;  %v468_v46 = vmul.f32 %v7339_v24, %v7928_v29  ;;  %v8026_v1 = vadd.f32 %v1561_v22, %v1401_v58  ;;  %2624 = vmatpush1.bf16.msra.mxu1 %v6634_v2 }
 0x12d   : > { %9732 = vst [vmem:[#allocation77_spill] sm:$0xff] %v8016_v59  ;;  %v1563_v43 = vmul.f32 %v7877_v4, %v7385_v42  ;;  %v469_v6 = vmul.f32 %v7342_v25, %v7928_v29  ;;  %v1371_v0 = vmul.f32 %v8024_v61, %v7360_v32  ;;  %v1372_v11 = vmul.f32 %v8024_v61, %v7363_v34  ;;  %v8045_v8 = vpop.permute.xlu1 %1322 }
 0x12e   : > { %2462 = vmatprep.subr.bf16.mxu0 %v6636_v16  ;;  %v1564_v22 = vmul.f32 %v7877_v4, %v7390_v44  ;;  %v723_v58 = vadd.f32 %v691_v18, %v7802_v62  ;;  %v1064_v53 = vmax.f32 %v950_v30, 0.0  ;;  %v1063_v20 = vmax.f32 %v949_v21, 0.0  ;;  %6568 = vset.pattern.permute.xlu1 %v9689_v23  ;;  %v8048_v4 = vld [vmem:[#allocation2 + $0x174] ss:$8 sps:$4 sm:$0xff]   ;;  %v8054_v30 = vpop.permute.xlu0 %630  ;;  %v9734_v23 = vld [vmem:[#allocation32_spill] sm:$0xff] }
 0x12f   : > { %2463 = vmatpush1.bf16.msra.mxu0 %v6634_v2  ;;  %v772_v59 = vmul.f32 %v7457_v38, %v7954_v41  ;;  %v1404_v19 = vadd.f32 %v1372_v11, %v7916_v27  ;;  %v952_v16 = vadd.f32 %v920_v60, %v724_v12  ;;  %v1690_v61 = vmax.f32 %v8013_v17, 0.0  ;;  %v6923_v2 = vld [vmem:[%s7161_s14 + $0x70] sm:$0xff]  ;;  %2625 = vmatprep.subr.bf16.mxu1 %v6639_v9 }
 0x130   : > { %v500_v62 = vadd.f32 %v468_v46, %v7376_v39  ;;  %v696_v18 = vmul.f32 %v7363_v34, %v8011_v55  ;;  %658 = vperm.xlu1 %6568, %v6923_v2   ;;  %v1689_v27 = vmax.f32 %v8026_v1, 0.0  ;;  %v8059_v41 = vmul.f32 %v9734_v23, %v7514_v56  ;;  %2626 = vmatpush1.bf16.msra.mxu1 %v8039_v63 }
 0x131   : > { %v501_v21 = vadd.f32 %v469_v6, %v7380_v40  ;;  %v1181_v12 = vmul.f32 %v7967_v7, %v7339_v24  ;;  %v1403_v17 = vadd.f32 %v1371_v0, %v7913_v31  ;;  %v9735_v60 = vmax.f32 %v7827_v54, 0.0  ;;  %v8074_v6 = vld [vmem:[#allocation2 + $0x170] ss:$8 sps:$4 sm:$0xff]   ;;  %v8078_v31 = vpop.permute.xlu1 %1326  ;;  %2627 = vmatprep.subr.bf16.mxu1 %v8048_v4  ;;  %2464 = vmatprep.subr.bf16.mxu0 %v6639_v9 }
 0x132   : > { %v1182_v11 = vmul.f32 %v7967_v7, %v7342_v25  ;;  %v695_v1 = vmul.f32 %v7360_v32, %v8011_v55  ;;  %v9736_v56 = vmax.f32 %v7842_v52, 0.0  ;;  %v951_v50 = vadd.f32 %v919_v49, %v723_v58  ;;  %v9737_v55 = vld [vmem:[#allocation50_spill] sm:$0xff] }
 0x133   : > { %v1748_v46 = vpack.c.bf16 %v1064_v53, %v9735_v60  ;;  %v697_v54 = vmul.f32 %v7360_v32, %v8054_v30  ;;  %v1066_v53 = vmax.f32 %v952_v16, 0.0  ;;  %v1596_v0 = vadd.f32 %v1564_v22, %v1404_v19  ;;  %v8081_v60 = vld [vmem:[#allocation2 + $0x184] ss:$8 sps:$4 sm:$0xff]   ;;  %2465 = vmatpush1.bf16.msra.mxu0 %v8039_v63  ;;  %v9741_v63 = vld [vmem:[#allocation43_spill] sm:$0xff] }
 0x134   : > { %v1747_v2 = vpack.c.bf16 %v1063_v20, %v9736_v56  ;;  %v804_v52 = vadd.f32 %v772_v59, %v9737_v55  ;;  %v728_v20 = vadd.f32 %v696_v18, %v7884_v10  ;;  %v698_v49 = vmul.f32 %v7363_v34, %v8054_v30  ;;  %1354 = vperm.xlu1 %6568, %v7995_v14  }
 0x135   : > { %1971 = vmatprep.mubr.bf16.mxu0 %v1748_v46  ;;  %v1375_v58 = vmul.f32 %v8078_v31, %v7360_v32  ;;  %v1376_v46 = vmul.f32 %v8078_v31, %v7363_v34  ;;  %v1213_v19 = vadd.f32 %v1181_v12, %v7376_v39  ;;  %v9738_v22 = vmax.f32 %v7971_v33, 0.0  ;;  %2628 = vmatpush1.bf16.msra.mxu1 %v8074_v6  ;;  %v8100_v12 = vld [vmem:[#allocation2 + $0x180] ss:$8 sps:$4 sm:$0xff]  }
 0x136   : > { %1972 = vmatmul.mubr.bf16.gmra.mrb[4].mxu0 %v1747_v2  ;;  %v1692_v55 = vmax.f32 %v1596_v0, 0.0  ;;  %v1595_v59 = vadd.f32 %v1563_v43, %v1403_v17  ;;  %v1214_v10 = vadd.f32 %v1182_v11, %v7380_v40  ;;  %v727_v18 = vadd.f32 %v695_v1, %v7881_v13  ;;  %2629 = vmatprep.subr.bf16.mxu1 %v8081_v60  ;;  %v9739_v1 = vld [vmem:[#allocation44_spill] sm:$0xff] }
 0x137   : > { %v1750_v16 = vpack.c.bf16 %v9738_v22, %v1066_v53  ;;  %v1373_v56 = vmul.f32 %v8045_v8, %v7360_v32  ;;  %v1065_v2 = vmax.f32 %v951_v50, 0.0  ;;  %v1374_v33 = vmul.f32 %v8045_v8, %v7363_v34  ;;  %v8107_v50 = vpop.permute.xlu1 %858  ;;  %v8110_v22 = vld [vmem:[#allocation2 + $0x194] ss:$8 sps:$4 sm:$0xff]   ;;  %2466 = vmatprep.subr.bf16.mxu0 %v8048_v4  ;;  %v8152_v4 = vld [vmem:[#allocation2 + $0x1a0] ss:$8 sps:$4 sm:$0xff]  }
 0x138   : > { %v729_v53 = vadd.f32 %v697_v54, %v500_v62  ;;  %v2079_v43 = vpack.c.bf16 %v1692_v55, %v1690_v61  ;;  %v1691_v9 = vmax.f32 %v1595_v59, 0.0  ;;  %v730_v17 = vadd.f32 %v698_v49, %v501_v21  ;;  %v6924_v62 = vld [vmem:[%s7161_s14 + $0xf8] sm:$0xff]  ;;  %2467 = vmatpush1.bf16.msra.mxu0 %v8074_v6 }
 0x139   : > { %1981 = vmatprep.mubr.bf16.mxu0 %v1750_v16  ;;  %v1407_v13 = vadd.f32 %v1375_v58, %v7935_v28  ;;  %v1408_v11 = vadd.f32 %v1376_v46, %v7938_v45  ;;  %v956_v0 = vadd.f32 %v9739_v1, %v728_v20  ;;  %1358 = vperm.xlu1 %6568, %v6924_v62   ;;  %v9740_v20 = vmax.f32 %v7981_v26, 0.0  ;;  %v9743_v26 = vld [vmem:[#allocation45_spill] sm:$0xff] }
 0x13a   : > { %2142 = vmatprep.mubr.bf16.mxu1 %v2079_v43  ;;  %v925_v61 = vmul.f32 %v7385_v42, %v8107_v50  ;;  %v926_v21 = vmul.f32 %v7390_v44, %v8107_v50  ;;  %v2078_v28 = vpack.c.bf16 %v1691_v9, %v1689_v27  ;;  %v773_v45 = vmul.f32 %v7454_v35, %v7992_v5  ;;  %v8126_v27 = vld [vmem:[#allocation2 + $0x190] ss:$8 sps:$4 sm:$0xff]  }
 0x13b   : > { %v774_v54 = vmul.f32 %v7457_v38, %v7992_v5  ;;  %v1749_v49 = vpack.c.bf16 %v9740_v20, %v1065_v2  ;;  %v955_v58 = vadd.f32 %v9741_v63, %v727_v18  ;;  %2630 = vmatpush1.bf16.msra.mxu1 %v8100_v12  ;;  %v1405_v46 = vadd.f32 %v1373_v56, %v1213_v19  ;;  %v8128_v43 = vpop.permute.xlu1 %1514  ;;  %v9742_v5 = vld [vmem:[#allocation46_spill] sm:$0xff]  ;;  %v8154_v20 = vld [vmem:[#allocation2 + $0x1a4] ss:$8 sps:$4 sm:$0xff]  }
 0x13c   : > { %v1406_v16 = vadd.f32 %v1374_v33, %v1214_v10  ;;  %2143 = vmatmul.mubr.bf16.gmra.mrb[8].mxu1 %v2078_v28  ;;  %v958_v55 = vadd.f32 %v926_v21, %v730_v17  ;;  %v957_v59 = vadd.f32 %v925_v61, %v729_v53  ;;  %v1070_v9 = vmax.f32 %v956_v0, 0.0  ;;  %2631 = vmatprep.subr.bf16.mxu1 %v8110_v22  ;;  %v9745_v53 = vld [vmem:[#allocation53_spill] sm:$0xff] }
 0x13d   : > { %v1600_v1 = vadd.f32 %v9742_v5, %v1408_v11  ;;  %v1599_v2 = vadd.f32 %v9743_v26, %v1407_v13  ;;  %v8134_v18 = vadd.f32 %v8059_v41, %v804_v52  ;;  %6570 = vset.pattern.permute.xlu1 %v9665_v36  ;;  %v1565_v19 = vmul.f32 %v8128_v43, %v7385_v42  ;;  %v6925_v13 = vld [vmem:[%s7161_s14 + $0x78] sm:$0xff]  ;;  %v9746_v41 = vld [vmem:[#allocation58_spill] sm:$0xff] }
 0x13e   : > { %1982 = vmatmul.mubr.bf16.gmra.mrb[8].mxu0 %v1749_v49  ;;  %v1566_v10 = vmul.f32 %v8128_v43, %v7390_v44  ;;  %v1072_v56 = vmax.f32 %v958_v55, 0.0  ;;  %v1071_v33 = vmax.f32 %v957_v59, 0.0  ;;  %v474_v17 = vmul.f32 %v7339_v24, %v9745_v53  ;;  %890 = vperm.xlu1 %6570, %v6925_v13   ;;  %v9747_v36 = vld [vmem:[#allocation59_spill] sm:$0xff] }
 0x13f   : > { %9744 = vst [vmem:[#allocation32_spill] sm:$0xff] %v8134_v18  ;;  %v1069_v11 = vmax.f32 %v955_v58, 0.0  ;;  %v577_v52 = vadd.f32 %v9746_v41, %v7469_v48  ;;  %v578_v0 = vadd.f32 %v9747_v36, %v7473_v51  ;;  %v475_v62 = vmul.f32 %v7342_v25, %v9745_v53  ;;  %2632 = vmatpush1.bf16.msra.mxu1 %v8126_v27  ;;  %v8161_v58 = vld [vmem:[#allocation2 + $0x1b4] ss:$8 sps:$4 sm:$0xff]   ;;  %v9771_v18 = vld [vmem:[#allocation69_spill] sm:$0xff] }
 0x140   : > { %v1752_v61 = vpack.c.bf16 %v1072_v56, %v1070_v9  ;;  %v1598_v21 = vadd.f32 %v1566_v10, %v1406_v16  ;;  %v1597_v28 = vadd.f32 %v1565_v19, %v1405_v46  ;;  %v8158_v49 = vmul.f32 %v7465_v3, %v7701_v37  ;;  %v8163_v9 = vpop.permute.xlu1 %397  ;;  %2633 = vmatprep.subr.bf16.mxu1 %v8154_v20  ;;  %v9749_v19 = vld [vmem:[#allocation56_spill] sm:$0xff] }
 0x141   : > { %v1751_v63 = vpack.c.bf16 %v1071_v33, %v1069_v11  ;;  %v805_v55 = vadd.f32 %v773_v45, %v577_v52  ;;  %v806_v59 = vadd.f32 %v774_v54, %v578_v0  ;;  %v1696_v16 = vmax.f32 %v1600_v1, 0.0  ;;  %v8186_v33 = vld [vmem:[#allocation2 + $0x1b0] ss:$8 sps:$4 sm:$0xff]   ;;  %2468 = vmatprep.subr.bf16.mxu0 %v8081_v60 }
 0x142   : > { %9748 = vst [vmem:[#allocation50_spill] sm:$0xff] %v8158_v49  ;;  %1991 = vmatprep.mubr.bf16.mxu0 %v1752_v61  ;;  %v1694_v46 = vmax.f32 %v1598_v21, 0.0  ;;  %v1693_v5 = vmax.f32 %v1597_v28, 0.0  ;;  %v1695_v26 = vmax.f32 %v1599_v2, 0.0  ;;  %v1434_v37 = vmul.f32 %v9749_v19, %v7457_v38  ;;  %1546 = vperm.xlu1 %6570, %v7995_v14   ;;  %v8225_v28 = vpop.permute.xlu0 %634  ;;  %v9778_v49 = vld [vmem:[#allocation67_spill] sm:$0xff] }
 0x143   : > { %v8170_v10 = vmul.f32 %v7462_v47, %v9745_v53  ;;  %v8174_v6 = vmul.f32 %v7465_v3, %v9745_v53  ;;  %v1001_v45 = vmul.f32 %v7502_v15, %v7795_v57  ;;  %v8180_v54 = vadd.f32 %v474_v17, %v7376_v39  ;;  %2634 = vmatpush1.bf16.msra.mxu1 %v8152_v4  ;;  %v9754_v53 = vld [vmem:[#allocation57_spill] sm:$0xff] }
 0x144   : > { %v8183_v1 = vadd.f32 %v475_v62, %v7380_v40  ;;  %v2081_v2 = vpack.c.bf16 %v1696_v16, %v1694_v46  ;;  %v2080_v56 = vpack.c.bf16 %v1695_v26, %v1693_v5  ;;  %v8190_v13 = vmul.f32 %v9754_v53, %v7339_v24  ;;  %2635 = vmatprep.subr.bf16.mxu1 %v8161_v58  ;;  %v8197_v17 = vld [vmem:[#allocation2 + $0x1c4] ss:$8 sps:$4 sm:$0xff]   ;;  %v8213_v0 = vpop.permute.xlu1 %1131  ;;  %v8241_v26 = vld [vmem:[#allocation2 + $0x1c0] ss:$8 sps:$4 sm:$0xff]  }
 0x145   : > { %9750 = vst [vmem:[#allocation44_spill] sm:$0xff] %v8170_v10  ;;  %9751 = vst [vmem:[#allocation43_spill] sm:$0xff] %v8174_v6  ;;  %v8194_v14 = vmul.f32 %v9754_v53, %v7342_v25  ;;  %v8199_v11 = vadd.f32 %v1001_v45, %v805_v55  ;;  %v8203_v41 = vmul.f32 %v9754_v53, %v7462_v47  ;;  %v9762_v46 = vld [vmem:[#allocation65_spill] sm:$0xff]  ;;  %v9763_v5 = vld [vmem:[#allocation76_spill] sm:$0xff]  ;;  %2469 = vmatpush1.bf16.msra.mxu0 %v8100_v12 }
 0x146   : > { %9752 = vst [vmem:[#allocation46_spill] sm:$0xff] %v8180_v54  ;;  %9753 = vst [vmem:[#allocation45_spill] sm:$0xff] %v8183_v1  ;;  %1992 = vmatmul.mubr.bf16.gmra.mrb[12].mxu0 %v1751_v63  ;;  %v8207_v52 = vmul.f32 %v9754_v53, %v7465_v3  ;;  %v8211_v36 = vmul.f32 %v7462_v47, %v7928_v29  ;;  %2152 = vmatprep.mubr.bf16.mxu1 %v2081_v2  ;;  %v9761_v63 = vld [vmem:[#allocation38_spill] sm:$0xff] }
 0x147   : > { %9755 = vst [vmem:[#allocation53_spill] sm:$0xff] %v8190_v13  ;;  %9756 = vst [vmem:[#allocation58_spill] sm:$0xff] %v8194_v14  ;;  %v1002_v62 = vmul.f32 %v9734_v23, %v7795_v57  ;;  %v8219_v61 = vmul.f32 %v7465_v3, %v7928_v29  ;;  %v8223_v21 = vmul.f32 %v7967_v7, %v7462_v47  ;;  %2153 = vmatmul.mubr.bf16.gmra.mrb[12].mxu1 %v2080_v56  ;;  %v9765_v2 = vld [vmem:[#allocation78_spill] sm:$0xff] }
 0x148   : > { %9757 = vst [vmem:[#allocation59_spill] sm:$0xff] %v8199_v11  ;;  %9758 = vst [vmem:[#allocation56_spill] sm:$0xff] %v8203_v41  ;;  %v1274_v55 = vadd.f32 %v9761_v63, %v7473_v51  ;;  %v1626_v16 = vmul.f32 %v9762_v46, %v9734_v23  ;;  %v8233_v57 = vmul.f32 %v7967_v7, %v7465_v3  ;;  %2636 = vmatpush1.bf16.msra.mxu1 %v8186_v33  ;;  %v8253_v56 = vld [vmem:[#allocation2 + $0x1d4] ss:$8 sps:$4 sm:$0xff]   ;;  %v8269_v12 = vpop.permute.xlu1 %1136 }
 0x149   : > { %9759 = vst [vmem:[#allocation57_spill] sm:$0xff] %v8207_v52  ;;  %9760 = vst [vmem:[#allocation79_spill] sm:$0xff] %v8225_v28  ;;  %v8237_v29 = vmul.f32 %v7454_v35, %v9763_v5  ;;  %v8243_v19 = vadd.f32 %v1002_v62, %v806_v59  ;;  %v8247_v45 = vmul.f32 %v7457_v38, %v9763_v5  ;;  %2637 = vmatprep.subr.bf16.mxu1 %v8197_v17  ;;  %v8284_v5 = vpop.permute.xlu0 %1334 }
 0x14a   : > { %v1435_v7 = vmul.f32 %v9765_v2, %v7454_v35  ;;  %v1466_v60 = vadd.f32 %v1434_v37, %v1274_v55  ;;  %v1436_v53 = vmul.f32 %v9765_v2, %v7457_v38  ;;  %v8259_v59 = vmul.f32 %v8045_v8, %v7454_v35  ;;  %2470 = vmatprep.subr.bf16.mxu0 %v8110_v22 }
 0x14b   : > { %9764 = vst [vmem:[#allocation38_spill] sm:$0xff] %v8243_v19  ;;  %v8263_v62 = vmul.f32 %v8045_v8, %v7457_v38  ;;  %v8267_v63 = vmul.f32 %v7454_v35, %v8054_v30  ;;  %v8274_v37 = vmul.f32 %v7457_v38, %v8054_v30  ;;  %v8278_v55 = vmul.f32 %v8078_v31, %v7454_v35  ;;  %v8291_v30 = vld [vmem:[#allocation2 + $0x1d0] ss:$8 sps:$4 sm:$0xff]   ;;  %v9770_v19 = vld [vmem:[#allocation60_spill] sm:$0xff] }
 0x14c   : > { %v470_v8 = vmul.f32 %v7339_v24, %v8163_v9  ;;  %v471_v46 = vmul.f32 %v7342_v25, %v8163_v9  ;;  %9767 = vst [vmem:[#allocation76_spill] sm:$0xff] %v8284_v5  ;;  %v8288_v2 = vmul.f32 %v8078_v31, %v7457_v38  ;;  %2638 = vmatpush1.bf16.msra.mxu1 %v8241_v26  ;;  %v8305_v31 = vld [vmem:[#allocation2 + $0x1e4] ss:$8 sps:$4 sm:$0xff]   ;;  %v8325_v10 = vpop.permute.xlu1 %638  ;;  %v9783_v38 = vld [vmem:[#allocation74_spill] sm:$0xff] }
 0x14d   : > { %9766 = vst [vmem:[#allocation65_spill] sm:$0xff] %v8278_v55  ;;  %v8293_v22 = vadd.f32 %v1626_v16, %v1466_v60  ;;  %v579_v11 = vadd.f32 %v9770_v19, %v7469_v48  ;;  %v1275_v52 = vadd.f32 %v9771_v18, %v7469_v48  ;;  %v699_v41 = vmul.f32 %v7360_v32, %v8225_v28  ;;  %v9772_v16 = vld [vmem:[#allocation63_spill] sm:$0xff] }
 0x14e   : > { %9768 = vst [vmem:[#allocation78_spill] sm:$0xff] %v8288_v2  ;;  %v700_v1 = vmul.f32 %v7363_v34, %v8225_v28  ;;  %2471 = vmatpush1.bf16.msra.mxu0 %v8126_v27  ;;  %2639 = vmatprep.subr.bf16.mxu1 %v8253_v56  ;;  %v580_v60 = vadd.f32 %v9772_v16, %v7473_v51  ;;  %v9784_v2 = vld [vmem:[#allocation13_spill] sm:$0xff] }
 0x14f   : > { %9769 = vst [vmem:[#allocation80_spill] sm:$0xff] %v8293_v22  ;;  %v8311_v19 = vmul.f32 %v7454_v35, %v8225_v28  ;;  %v8315_v18 = vmul.f32 %v8284_v5, %v7360_v32  ;;  %2472 = vmatprep.subr.bf16.mxu0 %v8154_v20  ;;  %v9775_v22 = vld [vmem:[#allocation73_spill] sm:$0xff]  ;;  %v1467_v27 = vadd.f32 %v1435_v7, %v1275_v52  ;;  %v9779_v7 = vld [vmem:[#allocation70_spill] sm:$0xff] }
 0x150   : > { %v807_v54 = vadd.f32 %v9775_v22, %v579_v11  ;;  %v502_v14 = vadd.f32 %v470_v8, %v7376_v39  ;;  %v503_v6 = vadd.f32 %v471_v46, %v7380_v40  ;;  %v8323_v16 = vmul.f32 %v8284_v5, %v7363_v34  ;;  %9777 = vst [vmem:[#allocation73_spill] sm:$0xff] %v8325_v10  ;;  %v8336_v52 = vld [vmem:[#allocation2 + $0x1e0] ss:$8 sps:$4 sm:$0xff]   ;;  %v8342_v46 = vld [vmem:[#allocation2 + $0x1f4] ss:$8 sps:$4 sm:$0xff]  }
 0x151   : > { %9773 = vst [vmem:[#allocation60_spill] sm:$0xff] %v8311_v19  ;;  %9774 = vst [vmem:[#allocation69_spill] sm:$0xff] %v8315_v18  ;;  %v1627_v35 = vmul.f32 %v9778_v49, %v7502_v15  ;;  %v1185_v13 = vmul.f32 %v8213_v0, %v7339_v24  ;;  %v701_v20 = vmul.f32 %v7360_v32, %v8325_v10  ;;  %2640 = vmatpush1.bf16.msra.mxu1 %v8291_v30  ;;  %v9780_v22 = vld [vmem:[#allocation40_spill] sm:$0xff] }
 0x152   : > { %9776 = vst [vmem:[#allocation63_spill] sm:$0xff] %v8323_v16  ;;  %v702_v11 = vmul.f32 %v7363_v34, %v8325_v10  ;;  %v1276_v8 = vadd.f32 %v9779_v7, %v7473_v51  ;;  %2473 = vmatpush1.bf16.msra.mxu0 %v8152_v4  ;;  %2641 = vmatprep.subr.bf16.mxu1 %v8305_v31  ;;  %v9785_v4 = vld [vmem:[#allocation34_spill] sm:$0xff] }
 0x153   : > { %v8345_v5 = vadd.f32 %v9780_v22, %v807_v54  ;;  %v8347_v19 = vadd.f32 %v1627_v35, %v1467_v27  ;;  %v808_v10 = vadd.f32 %v9783_v38, %v580_v60  ;;  %v1186_v28 = vmul.f32 %v8213_v0, %v7342_v25  ;;  %2474 = vmatprep.subr.bf16.mxu0 %v8161_v58  ;;  %v9786_v54 = vld [vmem:[#allocation75_spill] sm:$0xff]  ;;  %v8359_v35 = vpop.permute.xlu1 %1330  ;;  %v9787_v27 = vld [vmem:[#allocation42_spill] sm:$0xff] }
 0x154   : > { %v734_v55 = vadd.f32 %v702_v11, %v9784_v2  ;;  %v1468_v7 = vadd.f32 %v1436_v53, %v1276_v8  ;;  %v581_v16 = vadd.f32 %v9785_v4, %v7469_v48  ;;  %v1187_v18 = vmul.f32 %v8269_v12, %v7339_v24  ;;  %v9789_v11 = vld [vmem:[#allocation48_spill] sm:$0xff] }
 0x155   : > { %9781 = vst [vmem:[#allocation67_spill] sm:$0xff] %v8345_v5  ;;  %9782 = vst [vmem:[#allocation70_spill] sm:$0xff] %v8347_v19  ;;  %v733_v22 = vadd.f32 %v701_v20, %v9786_v54  ;;  %v8362_v38 = vadd.f32 %v9787_v27, %v808_v10  ;;  %v1628_v60 = vmul.f32 %v9778_v49, %v9734_v23  ;;  %2642 = vmatpush1.bf16.msra.mxu1 %v8336_v52  ;;  %v8377_v10 = vld [vmem:[#allocation2 + $0x1f0] ss:$8 sps:$4 sm:$0xff]  }
 0x156   : > { %v8368_v58 = vmul.f32 %v7462_v47, %v8163_v9  ;;  %v1188_v53 = vmul.f32 %v8269_v12, %v7342_v25  ;;  %v1377_v2 = vmul.f32 %v8359_v35, %v7360_v32  ;;  %v1378_v20 = vmul.f32 %v8359_v35, %v7363_v34  ;;  %2475 = vmatpush1.bf16.msra.mxu0 %v8186_v33 }
 0x157   : > { %9788 = vst [vmem:[#allocation40_spill] sm:$0xff] %v8362_v38  ;;  %v8381_v49 = vmul.f32 %v7465_v3, %v8163_v9  ;;  %v962_v8 = vadd.f32 %v9789_v11, %v734_v55  ;;  %2643 = vmatprep.subr.bf16.mxu1 %v8342_v46  ;;  %v8386_v4 = vadd.f32 %v1628_v60, %v1468_v7  ;;  %v9791_v9 = vld [vmem:[#allocation66_spill] sm:$0xff]  ;;  %v9792_v11 = vld [vmem:[#allocation47_spill] sm:$0xff] }
 0x158   : > { %v1217_v54 = vadd.f32 %v1185_v13, %v7376_v39  ;;  %v1218_v27 = vadd.f32 %v1186_v28, %v7380_v40  ;;  %2476 = vmatprep.subr.bf16.mxu0 %v8197_v17  ;;  %v8392_v38 = vadd.f32 %v8237_v29, %v581_v16  ;;  %v582_v5 = vadd.f32 %v9791_v9, %v7473_v51 }
 0x159   : > { %9790 = vst [vmem:[#allocation74_spill] sm:$0xff] %v8386_v4  ;;  %v731_v19 = vadd.f32 %v699_v41, %v502_v14  ;;  %v732_v55 = vadd.f32 %v700_v1, %v503_v6  ;;  %v1219_v33 = vadd.f32 %v1187_v18, %v7376_v39  ;;  %v961_v34 = vadd.f32 %v9792_v11, %v733_v22  ;;  %v8399_v4 = vpop.permute.xlu1 %862 }
 0x15a   : > { %v1220_v7 = vadd.f32 %v1188_v53, %v7380_v40  ;;  %v1409_v60 = vadd.f32 %v1377_v2, %v1217_v54  ;;  %v1410_v13 = vadd.f32 %v1378_v20, %v1218_v27  ;;  %2644 = vmatpush1.bf16.msra.mxu1 %v8377_v10  ;;  %v8403_v17 = vadd.f32 %v8247_v45, %v582_v5  ;;  %v9793_v20 = vld [vmem:[#allocation69_spill] sm:$0xff] }
 0x15b   : > { %v927_v28 = vmul.f32 %v7385_v42, %v8399_v4  ;;  %v928_v6 = vmul.f32 %v7390_v44, %v8399_v4  ;;  %v1076_v1 = vmax.f32 %v962_v8, 0.0  ;;  %2477 = vmatpush1.bf16.msra.mxu0 %v8241_v26  ;;  %v583_v14 = vadd.f32 %v8211_v36, %v7469_v48 }
 0x15c   : > { %2478 = vmatprep.subr.bf16.mxu0 %v8253_v56  ;;  %v1007_v41 = vmul.f32 %v7502_v15, %v8107_v50  ;;  %v584_v29 = vadd.f32 %v8219_v61, %v7473_v51  ;;  %v1008_v45 = vmul.f32 %v9734_v23, %v8107_v50  ;;  %v1277_v5 = vadd.f32 %v8223_v21, %v7469_v48 }
 0x15d   : > { %v960_v18 = vadd.f32 %v928_v6, %v732_v55  ;;  %v959_v16 = vadd.f32 %v927_v28, %v731_v19  ;;  %v1075_v26 = vmax.f32 %v961_v34, 0.0  ;;  %v811_v22 = vadd.f32 %v8267_v63, %v583_v14  ;;  %v8422_v36 = vpop.permute.xlu1 %1522  ;;  %v9795_v6 = vld [vmem:[#allocation72_spill] sm:$0xff] }
 0x15e   : > { %v812_v56 = vadd.f32 %v8274_v37, %v584_v29  ;;  %v1469_v53 = vadd.f32 %v8259_v59, %v1277_v5  ;;  %v1629_v61 = vmul.f32 %v8128_v43, %v7502_v15  ;;  %v1278_v50 = vadd.f32 %v8233_v57, %v7473_v51  ;;  %v9802_v5 = vld [vmem:[#allocation29_spill] sm:$0xff] }
 0x15f   : > { %v1569_v21 = vmul.f32 %v8422_v36, %v7385_v42  ;;  %v1570_v34 = vmul.f32 %v8422_v36, %v7390_v44  ;;  %v1074_v19 = vmax.f32 %v960_v18, 0.0  ;;  %v1073_v63 = vmax.f32 %v959_v16, 0.0  ;;  %2479 = vmatpush1.bf16.msra.mxu0 %v8291_v30 }
 0x160   : > { %2480 = vmatprep.subr.bf16.mxu0 %v8305_v31  ;;  %v8436_v37 = vadd.f32 %v1007_v41, %v811_v22  ;;  %v8438_v59 = vadd.f32 %v1008_v45, %v812_v56  ;;  %v8440_v2 = vadd.f32 %v1629_v61, %v1469_v53  ;;  %v1470_v57 = vadd.f32 %v8263_v62, %v1278_v50  ;;  %v9794_v31 = vld [vmem:[#allocation71_spill] sm:$0xff] }
 0x161   : > { %v1411_v8 = vadd.f32 %v9793_v20, %v1219_v33  ;;  %v1754_v54 = vpack.c.bf16 %v1076_v1, %v1074_v19  ;;  %v1753_v27 = vpack.c.bf16 %v1075_v26, %v1073_v63  ;;  %v1602_v9 = vadd.f32 %v1570_v34, %v1410_v13  ;;  %v8444_v55 = vpop.permute.xlu1 %1526  ;;  %v9796_v41 = vld [vmem:[#allocation63_spill] sm:$0xff]  ;;  %v9799_v1 = vld [vmem:[#allocation78_spill] sm:$0xff]  ;;  %v9803_v34 = vld [vmem:[#allocation60_spill] sm:$0xff] }
 0x162   : > { %v1601_v11 = vadd.f32 %v1569_v21, %v1409_v60  ;;  %v1630_v30 = vmul.f32 %v8128_v43, %v9734_v23  ;;  %v1279_v28 = vadd.f32 %v9794_v31, %v7469_v48  ;;  %v1280_v14 = vadd.f32 %v9795_v6, %v7473_v51  ;;  %v9798_v60 = vld [vmem:[#allocation65_spill] sm:$0xff] }
 0x163   : > { %v1412_v29 = vadd.f32 %v9796_v41, %v1220_v7  ;;  %v1571_v62 = vmul.f32 %v8444_v55, %v7385_v42  ;;  %v1572_v33 = vmul.f32 %v8444_v55, %v7390_v44  ;;  %2001 = vmatprep.mubr.bf16.mxu0 %v1754_v54  ;;  %2481 = vmatpush1.bf16.msra.mxu0 %v8336_v52  ;;  %v9801_v7 = vld [vmem:[#allocation79_spill] sm:$0xff]  ;;  %v1698_v52 = vmax.f32 %v1602_v9, 0.0  ;;  %v9806_v54 = vld [vmem:[#allocation28_spill] sm:$0xff]  ;;  %v647_v9 = vpop.permute.xlu0 %646  ;;  %v9809_v41 = vld [vmem:[#allocation37_spill] sm:$0xff] }
 0x164   : > { %2002 = vmatmul.mubr.bf16.gmra.mrb[16].mxu0 %v1753_v27  ;;  %2482 = vmatprep.subr.bf16.mxu0 %v8342_v46  ;;  %v8459_v43 = vadd.f32 %v1630_v30, %v1470_v57  ;;  %v8462_v13 = vadd.f32 %v9798_v60, %v1279_v28  ;;  %v8465_v45 = vadd.f32 %v9799_v1, %v1280_v14  ;;  %v1697_v56 = vmax.f32 %v1601_v11, 0.0 }
 0x165   : > { %v782_v18 = vmul.f32 %v9802_v5, %v9801_v7  ;;  %v1604_v16 = vadd.f32 %v1572_v33, %v1412_v29  ;;  %v1603_v26 = vadd.f32 %v1571_v62, %v1411_v8  ;;  %v585_v22 = vadd.f32 %v8368_v58, %v7469_v48  ;;  %v413_v61 = vpop.permute.xlu1 %412  ;;  %v9804_v58 = vld [vmem:[#allocation53_spill] sm:$0xff]  ;;  %v9811_v7 = vld [vmem:[#allocation50_spill] sm:$0xff] }
 0x166   : > { %9797 = vst [vmem:[#allocation13_spill] sm:$0xff] %v8459_v43  ;;  %9800 = vst [vmem:[#allocation34_spill] sm:$0xff] %v8465_v45  ;;  %v1009_v46 = vmul.f32 %v7502_v15, %v8399_v4  ;;  %v586_v53 = vadd.f32 %v8381_v49, %v7473_v51  ;;  %v1010_v63 = vmul.f32 %v9734_v23, %v8399_v4  ;;  %v9805_v8 = vld [vmem:[#allocation73_spill] sm:$0xff]  ;;  %v9808_v4 = vld [vmem:[#allocation76_spill] sm:$0xff] }
 0x167   : > { %v1700_v50 = vmax.f32 %v1604_v16, 0.0  ;;  %v1699_v21 = vmax.f32 %v1603_v26, 0.0  ;;  %2483 = vmatpush1.bf16.msra.mxu0 %v8377_v10  ;;  %v813_v19 = vadd.f32 %v9803_v34, %v585_v22  ;;  %v8481_v57 = vadd.f32 %v9804_v58, %v7376_v39 }
 0x168   : > { %v1249_v20 = vmul.f32 %v8213_v0, %v7462_v47  ;;  %v783_v49 = vmul.f32 %v9806_v54, %v9805_v8  ;;  %v784_v27 = vmul.f32 %v9802_v5, %v9805_v8  ;;  %v814_v31 = vadd.f32 %v782_v18, %v586_v53 }
 0x169   : > { %v2083_v10 = vpack.c.bf16 %v1700_v50, %v1698_v52  ;;  %v2082_v11 = vpack.c.bf16 %v1699_v21, %v1697_v56  ;;  %v8489_v30 = vadd.f32 %v1009_v46, %v813_v19  ;;  %v1443_v28 = vmul.f32 %v9808_v4, %v9806_v54  ;;  %v1142_v60 = vpop.permute.xlu1 %1141  ;;  %v9812_v56 = vld [vmem:[#allocation19_spill] sm:$0xff] }
 0x16a   : > { %v1444_v6 = vmul.f32 %v9808_v4, %v9802_v5  ;;  %v1441_v14 = vmul.f32 %v8359_v35, %v9806_v54  ;;  %v587_v29 = vadd.f32 %v9809_v41, %v7469_v48  ;;  %v1250_v62 = vmul.f32 %v8213_v0, %v7465_v3 }
 0x16b   : > { %9807 = vst [vmem:[#allocation75_spill] sm:$0xff] %v8489_v30  ;;  %v476_v33 = vmul.f32 %v7339_v24, %v413_v61  ;;  %2162 = vmatprep.mubr.bf16.mxu1 %v2083_v10  ;;  %v8502_v1 = vadd.f32 %v1010_v63, %v814_v31  ;;  %v588_v18 = vadd.f32 %v9811_v7, %v7473_v51 }
 0x16c   : > { %v1251_v16 = vmul.f32 %v8269_v12, %v7462_v47  ;;  %v1252_v26 = vmul.f32 %v8269_v12, %v7465_v3  ;;  %v705_v22 = vmul.f32 %v7360_v32, %v647_v9  ;;  %2163 = vmatmul.mubr.bf16.gmra.mrb[16].mxu1 %v2082_v11  ;;  %v1281_v0 = vadd.f32 %v1249_v20, %v7469_v48 }
 0x16d   : > { %9810 = vst [vmem:[#allocation42_spill] sm:$0xff] %v8502_v1  ;;  %v477_v52 = vmul.f32 %v7342_v25, %v413_v61  ;;  %v706_v46 = vmul.f32 %v9812_v56, %v647_v9  ;;  %v8514_v53 = vadd.f32 %v783_v49, %v587_v29  ;;  %v8516_v50 = vadd.f32 %v784_v27, %v588_v18  ;;  %v643_v49 = vpop.permute.xlu1 %642 }
 0x16e   : > { %v1442_v21 = vmul.f32 %v8359_v35, %v9802_v5  ;;  %v559_v34 = vmul.f32 %v7462_v47, %v413_v61  ;;  %v1473_v19 = vadd.f32 %v1441_v14, %v1281_v0  ;;  %v1633_v12 = vmul.f32 %v8422_v36, %v7502_v15 }
 0x16f   : > { %9813 = vst [vmem:[#allocation48_spill] sm:$0xff] %v8514_v53  ;;  %9814 = vst [vmem:[#allocation66_spill] sm:$0xff] %v8516_v50  ;;  %v508_v63 = vadd.f32 %v476_v33, %v7376_v39  ;;  %v560_v58 = vmul.f32 %v7465_v3, %v413_v61  ;;  %v1282_v20 = vadd.f32 %v1250_v62, %v7473_v51 }
 0x170   : > { %v1634_v8 = vmul.f32 %v8422_v36, %v9734_v23  ;;  %v8528_v27 = vadd.f32 %v1633_v12, %v1473_v19  ;;  %v1283_v35 = vadd.f32 %v1251_v16, %v7469_v48  ;;  %v1635_v10 = vmul.f32 %v8444_v55, %v7502_v15  ;;  %v9816_v16 = vld [vmem:[#allocation44_spill] sm:$0xff] }
 0x171   : > { %v1284_v11 = vadd.f32 %v1252_v26, %v7473_v51  ;;  %v509_v31 = vadd.f32 %v477_v52, %v7380_v40  ;;  %v1189_v4 = vmul.f32 %v1142_v60, %v7339_v24  ;;  %v785_v61 = vmul.f32 %v9806_v54, %v643_v49  ;;  %v1339_v0 = vpop.permute.xlu1 %1338 }
 0x172   : > { %9815 = vst [vmem:[#allocation47_spill] sm:$0xff] %v8528_v27  ;;  %v786_v14 = vmul.f32 %v9802_v5, %v643_v49  ;;  %v1474_v41 = vadd.f32 %v1442_v21, %v1282_v20  ;;  %v1475_v36 = vadd.f32 %v1443_v28, %v1283_v35  ;;  %v1636_v62 = vmul.f32 %v8444_v55, %v9734_v23  ;;  %v9820_v28 = vld [vmem:[#allocation43_spill] sm:$0xff]  ;;  %v9821_v55 = vld [vmem:[#allocation58_spill] sm:$0xff] }
 0x173   : > { %v1476_v29 = vadd.f32 %v1444_v6, %v1284_v11  ;;  %v1190_v33 = vmul.f32 %v1142_v60, %v7342_v25  ;;  %v703_v7 = vmul.f32 %v7360_v32, %v643_v49  ;;  %v704_v18 = vmul.f32 %v9812_v56, %v643_v49 }
 0x174   : > { %v589_v26 = vadd.f32 %v9816_v16, %v7469_v48  ;;  %v8545_v52 = vadd.f32 %v1634_v8, %v1474_v41  ;;  %v8547_v19 = vadd.f32 %v1635_v10, %v1475_v36  ;;  %v590_v6 = vadd.f32 %v9820_v28, %v7473_v51  ;;  %v9825_v28 = vld [vmem:[#allocation45_spill] sm:$0xff] }
 0x175   : > { %v8549_v21 = vadd.f32 %v1636_v62, %v1476_v29  ;;  %v1224_v12 = vadd.f32 %v9821_v55, %v7380_v40  ;;  %v737_v20 = vadd.f32 %v705_v22, %v508_v63  ;;  %v787_v35 = vmul.f32 %v9806_v54, %v647_v9  ;;  %v9824_v22 = vld [vmem:[#allocation46_spill] sm:$0xff] }
 0x176   : > { %9817 = vst [vmem:[#allocation69_spill] sm:$0xff] %v8545_v52  ;;  %9818 = vst [vmem:[#allocation71_spill] sm:$0xff] %v8547_v19  ;;  %v788_v49 = vmul.f32 %v9802_v5, %v647_v9  ;;  %v738_v11 = vadd.f32 %v706_v46, %v509_v31  ;;  %v1253_v16 = vmul.f32 %v1142_v60, %v7462_v47  ;;  %v1343_v46 = vpop.permute.xlu1 %1342  ;;  %v9828_v19 = vld [vmem:[#allocation49_spill] sm:$0xff] }
 0x177   : > { %9819 = vst [vmem:[#allocation72_spill] sm:$0xff] %v8549_v21  ;;  %v8558_v8 = vadd.f32 %v785_v61, %v589_v26  ;;  %v8560_v10 = vadd.f32 %v786_v14, %v590_v6  ;;  %v1221_v41 = vadd.f32 %v1189_v4, %v7376_v39  ;;  %v1222_v36 = vadd.f32 %v1190_v33, %v7380_v40 }
 0x178   : > { %v1254_v29 = vmul.f32 %v1142_v60, %v7465_v3  ;;  %v591_v62 = vadd.f32 %v559_v34, %v7469_v48  ;;  %v735_v63 = vadd.f32 %v703_v7, %v9824_v22  ;;  %v736_v55 = vadd.f32 %v704_v18, %v9825_v28  ;;  %v9826_v22 = vld [vmem:[#allocation56_spill] sm:$0xff] }
 0x179   : > { %9822 = vst [vmem:[#allocation63_spill] sm:$0xff] %v8558_v8  ;;  %9823 = vst [vmem:[#allocation65_spill] sm:$0xff] %v8560_v10  ;;  %v1445_v9 = vmul.f32 %v1339_v0, %v9806_v54  ;;  %v592_v31 = vadd.f32 %v560_v58, %v7473_v51  ;;  %v1446_v61 = vmul.f32 %v1339_v0, %v9802_v5  ;;  %v9827_v8 = vld [vmem:[#allocation51_spill] sm:$0xff] }
 0x17a   : > { %v1383_v14 = vmul.f32 %v1343_v46, %v7360_v32  ;;  %v1384_v4 = vmul.f32 %v1343_v46, %v9812_v56  ;;  %v1447_v33 = vmul.f32 %v1343_v46, %v9806_v54  ;;  %v1381_v60 = vmul.f32 %v1339_v0, %v7360_v32 }
 0x17b   : > { %v819_v34 = vadd.f32 %v787_v35, %v591_v62  ;;  %v820_v26 = vadd.f32 %v788_v49, %v592_v31  ;;  %v1285_v7 = vadd.f32 %v1253_v16, %v7469_v48  ;;  %v1382_v18 = vmul.f32 %v1339_v0, %v9812_v56  ;;  %v875_v49 = vpop.permute.xlu1 %874  ;;  %v9830_v0 = vld [vmem:[#allocation57_spill] sm:$0xff] }
 0x17c   : > { %v1448_v6 = vmul.f32 %v1343_v46, %v9802_v5  ;;  %v1286_v58 = vadd.f32 %v1254_v29, %v7473_v51  ;;  %v1287_v28 = vadd.f32 %v9826_v22, %v7469_v48  ;;  %v1415_v10 = vadd.f32 %v1383_v14, %v8481_v57  ;;  %v8596_v14 = vpop.permute.xlu0 %650 }
 0x17d   : > { %v964_v21 = vadd.f32 %v9827_v8, %v736_v55  ;;  %v963_v52 = vadd.f32 %v9828_v19, %v735_v63  ;;  %v1477_v27 = vadd.f32 %v1445_v9, %v1285_v7  ;;  %v1416_v35 = vadd.f32 %v1384_v4, %v1224_v12  ;;  %v9831_v8 = vld [vmem:[#allocation27_spill] sm:$0xff] }
 0x17e   : > { %v1478_v62 = vadd.f32 %v1446_v61, %v1286_v58  ;;  %v8584_v16 = vadd.f32 %v1447_v33, %v1287_v28  ;;  %v1288_v46 = vadd.f32 %v9830_v0, %v7473_v51  ;;  %v933_v29 = vmul.f32 %v7385_v42, %v875_v49 }
 0x17f   : > { %v934_v31 = vmul.f32 %v7390_v44, %v875_v49  ;;  %v1015_v22 = vmul.f32 %v7502_v15, %v875_v49  ;;  %v1016_v57 = vmul.f32 %v9734_v23, %v875_v49  ;;  %v1576_v19 = vmul.f32 %v9831_v8, %v7390_v44  ;;  %v1531_v7 = vpop.permute.xlu1 %1530  ;;  %v9835_v49 = vld [vmem:[#allocation52_spill] sm:$0xff] }
 0x180   : > { %9829 = vst [vmem:[#allocation78_spill] sm:$0xff] %v8584_v16  ;;  %v1413_v63 = vadd.f32 %v1381_v60, %v1221_v41  ;;  %v1414_v12 = vadd.f32 %v1382_v18, %v1222_v36  ;;  %v8594_v55 = vadd.f32 %v1448_v6, %v1288_v46  ;;  %v965_v61 = vadd.f32 %v933_v29, %v737_v20 }
 0x181   : > { %v966_v9 = vadd.f32 %v934_v31, %v738_v11  ;;  %v8598_v4 = vadd.f32 %v1015_v22, %v819_v34  ;;  %v8600_v33 = vadd.f32 %v1016_v57, %v820_v26  ;;  %v1078_v58 = vmax.f32 %v964_v21, 0.0  ;;  %v8611_v22 = vpop.permute.xlu0 %1350 }
 0x182   : > { %9832 = vst [vmem:[#allocation79_spill] sm:$0xff] %v8594_v55  ;;  %v1077_v28 = vmax.f32 %v963_v52, 0.0  ;;  %v1608_v0 = vadd.f32 %v1576_v19, %v1416_v35  ;;  %v1607_v16 = vadd.f32 %v9835_v49, %v1415_v10  ;;  %v1573_v8 = vmul.f32 %v1531_v7, %v7385_v42 }
 0x183   : > { %9833 = vst [vmem:[#allocation29_spill] sm:$0xff] %v8598_v4  ;;  %9834 = vst [vmem:[#allocation60_spill] sm:$0xff] %v8600_v33  ;;  %v1574_v41 = vmul.f32 %v1531_v7, %v7390_v44  ;;  %v1080_v36 = vmax.f32 %v966_v9, 0.0  ;;  %v1079_v60 = vmax.f32 %v965_v61, 0.0  ;;  %v1637_v20 = vmul.f32 %v1531_v7, %v7502_v15  ;;  %v418_v21 = vpop.permute.xlu1 %417 }
 0x184   : > { %v1638_v11 = vmul.f32 %v1531_v7, %v9734_v23  ;;  %v1605_v6 = vadd.f32 %v1573_v8, %v1413_v63  ;;  %v1704_v35 = vmax.f32 %v1608_v0, 0.0  ;;  %v1703_v31 = vmax.f32 %v1607_v16, 0.0 }
 0x185   : > { %v1756_v34 = vpack.c.bf16 %v1080_v36, %v1078_v58  ;;  %v1755_v18 = vpack.c.bf16 %v1079_v60, %v1077_v28  ;;  %v1606_v26 = vadd.f32 %v1574_v41, %v1414_v12  ;;  %v8607_v46 = vadd.f32 %v1637_v20, %v1477_v27  ;;  %v8621_v61 = vpop.permute.xlu0 %662  ;;  %v9838_v28 = vld [vmem:[#allocation64_spill] sm:$0xff] }
 0x186   : > { %v8609_v52 = vadd.f32 %v1638_v11, %v1478_v62  ;;  %v1701_v29 = vmax.f32 %v1605_v6, 0.0  ;;  %v561_v57 = vmul.f32 %v7462_v47, %v418_v21  ;;  %v562_v19 = vmul.f32 %v7465_v3, %v418_v21 }
 0x187   : > { %9836 = vst [vmem:[#allocation53_spill] sm:$0xff] %v8607_v46  ;;  %2011 = vmatprep.mubr.bf16.mxu0 %v1756_v34  ;;  %v1702_v10 = vmax.f32 %v1606_v26, 0.0  ;;  %v789_v8 = vmul.f32 %v9806_v54, %v8596_v14  ;;  %v790_v27 = vmul.f32 %v9802_v5, %v8596_v14  ;;  %v1152_v16 = vpop.permute.xlu1 %1151  ;;  %v480_v0 = vmul.f32 %v7339_v24, %v9838_v28 }
 0x188   : > { %9837 = vst [vmem:[#allocation73_spill] sm:$0xff] %v8609_v52  ;;  %2012 = vmatmul.mubr.bf16.gmra.mrb[20].mxu0 %v1755_v18  ;;  %v2084_v63 = vpack.c.bf16 %v1703_v31, %v1701_v29  ;;  %v593_v12 = vadd.f32 %v561_v57, %v7469_v48  ;;  %v594_v9 = vadd.f32 %v562_v19, %v7473_v51 }
 0x189   : > { %v2085_v62 = vpack.c.bf16 %v1704_v35, %v1702_v10  ;;  %v481_v49 = vmul.f32 %v7342_v25, %v9838_v28  ;;  %v563_v41 = vmul.f32 %v7462_v47, %v9838_v28  ;;  %v564_v36 = vmul.f32 %v7465_v3, %v9838_v28  ;;  %v883_v57 = vpop.permute.xlu0 %882 }
 0x18a   : > { %v8623_v7 = vadd.f32 %v789_v8, %v593_v12  ;;  %v8625_v58 = vadd.f32 %v790_v27, %v594_v9  ;;  %v1451_v20 = vmul.f32 %v8611_v22, %v9806_v54  ;;  %v1452_v11 = vmul.f32 %v8611_v22, %v9802_v5 }
 0x18b   : > { %2172 = vmatprep.mubr.bf16.mxu1 %v2085_v62  ;;  %v1157_v60 = vpop.permute.xlu1 %1156  ;;  %v512_v26 = vadd.f32 %v480_v0, %v7376_v39  ;;  %v513_v6 = vadd.f32 %v481_v49, %v7380_v40  ;;  %v478_v29 = vmul.f32 %v7339_v24, %v418_v21  ;;  %v479_v31 = vmul.f32 %v7342_v25, %v418_v21 }
 0x18c   : > { %2173 = vmatmul.mubr.bf16.gmra.mrb[20].mxu1 %v2084_v63  ;;  %v1259_v34 = vmul.f32 %v1157_v60, %v7462_v47  ;;  %v1260_v18 = vmul.f32 %v1157_v60, %v7465_v3  ;;  %v595_v19 = vadd.f32 %v563_v41, %v7469_v48  ;;  %v596_v8 = vadd.f32 %v564_v36, %v7473_v51 }
 0x18d   : > { %v1257_v27 = vmul.f32 %v1152_v16, %v7462_v47  ;;  %v1258_v62 = vmul.f32 %v1152_v16, %v7465_v3  ;;  %v707_v41 = vmul.f32 %v7360_v32, %v8596_v14  ;;  %v708_v36 = vmul.f32 %v9812_v56, %v8596_v14 }
 0x18e   : > { %v1291_v10 = vadd.f32 %v1259_v34, %v7469_v48  ;;  %v1292_v35 = vadd.f32 %v1260_v18, %v7473_v51  ;;  %v1019_v34 = vmul.f32 %v7502_v15, %v883_v57  ;;  %v938_v18 = vmul.f32 %v7390_v44, %v883_v57 }
 0x18f   : > { %v655_v63 = vpop.permute.xlu1 %654  ;;  %v510_v55 = vadd.f32 %v478_v29, %v7376_v39  ;;  %v1289_v46 = vadd.f32 %v1257_v27, %v7469_v48  ;;  %v1290_v33 = vadd.f32 %v1258_v62, %v7473_v51  ;;  %v1194_v29 = vmul.f32 %v1152_v16, %v7342_v25 }
 0x190   : > { %v8651_v12 = vadd.f32 %v1451_v20, %v1291_v10  ;;  %v8653_v9 = vadd.f32 %v1452_v11, %v1292_v35  ;;  %v709_v28 = vmul.f32 %v7360_v32, %v655_v63  ;;  %v710_v0 = vmul.f32 %v9812_v56, %v655_v63 }
 0x191   : > { %v791_v21 = vmul.f32 %v9806_v54, %v655_v63  ;;  %v792_v49 = vmul.f32 %v9802_v5, %v655_v63  ;;  %v1020_v20 = vmul.f32 %v9734_v23, %v883_v57  ;;  %v937_v11 = vmul.f32 %v7385_v42, %v883_v57 }
 0x192   : > { %v511_v63 = vadd.f32 %v479_v31, %v7380_v40  ;;  %v741_v14 = vadd.f32 %v709_v28, %v512_v26  ;;  %v742_v4 = vadd.f32 %v710_v0, %v513_v6  ;;  %v1387_v26 = vmul.f32 %v8611_v22, %v7360_v32 }
 0x193   : > { %v823_v10 = vadd.f32 %v791_v21, %v595_v19  ;;  %v824_v35 = vadd.f32 %v792_v49, %v596_v8  ;;  %v1347_v52 = vpop.permute.xlu1 %1346  ;;  %v1193_v19 = vmul.f32 %v1152_v16, %v7339_v24  ;;  %v739_v21 = vadd.f32 %v707_v41, %v510_v55 }
 0x194   : > { %v1449_v50 = vmul.f32 %v1347_v52, %v9806_v54  ;;  %v1450_v1 = vmul.f32 %v1347_v52, %v9802_v5  ;;  %v740_v27 = vadd.f32 %v708_v36, %v511_v63  ;;  %v1388_v6 = vmul.f32 %v8611_v22, %v9812_v56 }
 0x195   : > { %v8673_v53 = vadd.f32 %v1019_v34, %v823_v10  ;;  %v8675_v57 = vadd.f32 %v1020_v20, %v824_v35  ;;  %v1195_v62 = vmul.f32 %v1157_v60, %v7339_v24  ;;  %v1196_v28 = vmul.f32 %v1157_v60, %v7342_v25 }
 0x196   : > { %v1481_v31 = vadd.f32 %v1449_v50, %v1289_v46  ;;  %v1482_v8 = vadd.f32 %v1450_v1, %v1290_v33  ;;  %v970_v49 = vadd.f32 %v938_v18, %v742_v4  ;;  %v969_v34 = vadd.f32 %v937_v11, %v741_v14 }
 0x197   : > { %9839 = vst [vmem:[#allocation28_spill] sm:$0xff] %v8673_v53  ;;  %9840 = vst [vmem:[#allocation76_spill] sm:$0xff] %v8675_v57  ;;  %v879_v0 = vpop.permute.xlu1 %878  ;;  %v1225_v33 = vadd.f32 %v1193_v19, %v7376_v39  ;;  %v1226_v46 = vadd.f32 %v1194_v29, %v7380_v40  ;;  %v1385_v22 = vmul.f32 %v1347_v52, %v7360_v32 }
 0x198   : > { %v935_v20 = vmul.f32 %v7385_v42, %v879_v0  ;;  %v936_v50 = vmul.f32 %v7390_v44, %v879_v0  ;;  %v1017_v1 = vmul.f32 %v7502_v15, %v879_v0  ;;  %v1018_v55 = vmul.f32 %v9734_v23, %v879_v0 }
 0x199   : > { %v1386_v16 = vmul.f32 %v1347_v52, %v9812_v56  ;;  %v1227_v11 = vadd.f32 %v1195_v62, %v7376_v39  ;;  %v1228_v18 = vadd.f32 %v1196_v28, %v7380_v40  ;;  %v1084_v35 = vmax.f32 %v970_v49, 0.0 }
 0x19a   : > { %v968_v60 = vadd.f32 %v936_v50, %v740_v27  ;;  %v967_v41 = vadd.f32 %v935_v20, %v739_v21  ;;  %v8694_v4 = vadd.f32 %v1017_v1, %v8623_v7  ;;  %v8697_v36 = vadd.f32 %v1018_v55, %v8625_v58 }
 0x19b   : > { %v1539_v10 = vpop.permute.xlu1 %1538  ;;  %v1083_v63 = vmax.f32 %v969_v34, 0.0  ;;  %v1417_v27 = vadd.f32 %v1385_v22, %v1225_v33  ;;  %v1418_v58 = vadd.f32 %v1386_v16, %v1226_v46  ;;  %v1420_v50 = vadd.f32 %v1388_v6, %v1228_v18 }
 0x19c   : > { %9841 = vst [vmem:[#allocation37_spill] sm:$0xff] %v8694_v4  ;;  %9842 = vst [vmem:[#allocation50_spill] sm:$0xff] %v8697_v36  ;;  %v1577_v14 = vmul.f32 %v1539_v10, %v7385_v42  ;;  %v1578_v19 = vmul.f32 %v1539_v10, %v7390_v44  ;;  %v1082_v52 = vmax.f32 %v968_v60, 0.0  ;;  %v1081_v29 = vmax.f32 %v967_v41, 0.0 }
 0x19d   : > { %v1641_v21 = vmul.f32 %v1539_v10, %v7502_v15  ;;  %v1642_v7 = vmul.f32 %v1539_v10, %v9734_v23  ;;  %v1419_v28 = vadd.f32 %v1387_v26, %v1227_v11 }
 0x19e   : > { %v1758_v0 = vpack.c.bf16 %v1084_v35, %v1082_v52  ;;  %v1757_v20 = vpack.c.bf16 %v1083_v63, %v1081_v29  ;;  %v1610_v60 = vadd.f32 %v1578_v19, %v1418_v58  ;;  %v1609_v41 = vadd.f32 %v1577_v14, %v1417_v27  ;;  %v9847_v14 = vld [vmem:[#allocation41_spill] sm:$0xff] }
 0x19f   : > { %v8705_v1 = vadd.f32 %v1641_v21, %v1481_v31  ;;  %v8707_v49 = vadd.f32 %v1642_v7, %v1482_v8  ;;  %v482_v19 = vmul.f32 %v7339_v24, %v9847_v14  ;;  %v483_v52 = vmul.f32 %v7342_v25, %v9847_v14 }
 0x1a0   : > { %v1543_v62 = vpop.permute.xlu1 %1542  ;;  %2021 = vmatprep.mubr.bf16.mxu0 %v1758_v0  ;;  %v1706_v6 = vmax.f32 %v1610_v60, 0.0  ;;  %v1705_v18 = vmax.f32 %v1609_v41, 0.0  ;;  %v795_v0 = vmul.f32 %v9806_v54, %v8621_v61  ;;  %v887_v60 = vpop.permute.xlu0 %886 }
 0x1a1   : > { %9843 = vst [vmem:[#allocation19_spill] sm:$0xff] %v8705_v1  ;;  %9844 = vst [vmem:[#allocation44_spill] sm:$0xff] %v8707_v49  ;;  %v1579_v34 = vmul.f32 %v1543_v62, %v7385_v42  ;;  %v1580_v55 = vmul.f32 %v1543_v62, %v7390_v44  ;;  %2022 = vmatmul.mubr.bf16.gmra.mrb[24].mxu0 %v1757_v20  ;;  %v1643_v33 = vmul.f32 %v1543_v62, %v7502_v15 }
 0x1a2   : > { %v1644_v46 = vmul.f32 %v1543_v62, %v9734_v23  ;;  %v796_v20 = vmul.f32 %v9802_v5, %v8621_v61 }
 0x1a3   : > { %v1612_v22 = vadd.f32 %v1580_v55, %v1420_v50  ;;  %v1611_v16 = vadd.f32 %v1579_v34, %v1419_v28  ;;  %v8714_v26 = vadd.f32 %v1643_v33, %v8651_v12  ;;  %v565_v50 = vmul.f32 %v7462_v47, %v9847_v14 }
 0x1a4   : > { %v8717_v31 = vadd.f32 %v1644_v46, %v8653_v9  ;;  %v9848_v9 = vld [vmem:[#allocation68_spill] sm:$0xff]  ;;  %v566_v28 = vmul.f32 %v7465_v3, %v9847_v14  ;;  %v514_v34 = vadd.f32 %v482_v19, %v7376_v39  ;;  %v515_v55 = vadd.f32 %v483_v52, %v7380_v40  ;;  %v8771_v14 = vld [vmem:[%s9556_s3 + $0x8] sm:$0xff] }
 0x1a5   : > { %9845 = vst [vmem:[#allocation43_spill] sm:$0xff] %v8714_v26  ;;  %v433_v8 = vpop.permute.xlu1 %432  ;;  %v1708_v11 = vmax.f32 %v1612_v22, 0.0  ;;  %v1707_v10 = vmax.f32 %v1611_v16, 0.0  ;;  %v1199_v21 = vmul.f32 %v9848_v9, %v7339_v24  ;;  %v1200_v7 = vmul.f32 %v9848_v9, %v7342_v25 }
 0x1a6   : > { %9846 = vst [vmem:[#allocation58_spill] sm:$0xff] %v8717_v31  ;;  %v567_v35 = vmul.f32 %v7462_v47, %v433_v8  ;;  %v568_v63 = vmul.f32 %v7465_v3, %v433_v8  ;;  %v1263_v16 = vmul.f32 %v9848_v9, %v7462_v47  ;;  %v485_v52 = vmul.f32 %v7342_v25, %v433_v8 }
 0x1a7   : > { %v2087_v12 = vpack.c.bf16 %v1708_v11, %v1706_v6  ;;  %v2086_v29 = vpack.c.bf16 %v1707_v10, %v1705_v18  ;;  %v8746_v46 = vadd.f32 %v1199_v21, %v7376_v39  ;;  %v8749_v22 = vadd.f32 %v1200_v7, %v7380_v40  ;;  %v8762_v10 = vld [vmem:[%s9556_s3] sm:$0xff] }
 0x1a8   : > { %v599_v27 = vadd.f32 %v567_v35, %v7469_v48  ;;  %v600_v58 = vadd.f32 %v568_v63, %v7473_v51  ;;  %v1264_v6 = vmul.f32 %v9848_v9, %v7465_v3  ;;  %v713_v11 = vmul.f32 %v7360_v32, %v8621_v61  ;;  %v9849_v35 = vld [vmem:[#allocation15_spill] sm:$0xff] }
 0x1a9   : > { %v1162_v62 = vpop.permute.xlu1 %1161  ;;  %2182 = vmatprep.mubr.bf16.mxu1 %v2087_v12  ;;  %v714_v18 = vmul.f32 %v9812_v56, %v8621_v61  ;;  %v8766_v63 = vrot.slane %v8762_v10, %v9849_v35  ;;  %v8775_v19 = vrot.slane %v8771_v14, %v9849_v35  ;;  %v484_v61 = vmul.f32 %v7339_v24, %v433_v8 }
 0x1aa   : > { %2183 = vmatmul.mubr.bf16.gmra.mrb[24].mxu1 %v2086_v29  ;;  %v8741_v41 = vadd.f32 %v795_v0, %v599_v27  ;;  %v8743_v33 = vadd.f32 %v796_v20, %v600_v58  ;;  %v597_v29 = vadd.f32 %v565_v50, %v7469_v48  ;;  %v1021_v9 = vmul.f32 %v7502_v15, %v887_v60  ;;  %v1551_v27 = vpop.permute.xlu0 %1550 }
 0x1ab   : > { %v598_v58 = vadd.f32 %v566_v28, %v7473_v51  ;;  %v1022_v0 = vmul.f32 %v9734_v23, %v887_v60  ;;  %v1261_v20 = vmul.f32 %v1162_v62, %v7462_v47  ;;  %v1262_v35 = vmul.f32 %v1162_v62, %v7465_v3 }
 0x1ac   : > { %v939_v8 = vmul.f32 %v7385_v42, %v887_v60  ;;  %v940_v31 = vmul.f32 %v7390_v44, %v887_v60  ;;  %v516_v57 = vadd.f32 %v484_v61, %v7376_v39  ;;  %v517_v28 = vadd.f32 %v485_v52, %v7380_v40 }
 0x1ad   : > { %v1583_v53 = vmul.f32 %v1551_v27, %v7385_v42  ;;  %v1584_v36 = vmul.f32 %v1551_v27, %v7390_v44  ;;  %v1197_v4 = vmul.f32 %v1162_v62, %v7339_v24  ;;  %v1198_v30 = vmul.f32 %v1162_v62, %v7342_v25 }
 0x1ae   : > { %v1293_v61 = vadd.f32 %v1261_v20, %v7469_v48  ;;  %v1294_v52 = vadd.f32 %v1262_v35, %v7473_v51  ;;  %v1648_v24 = vmul.f32 %v1551_v27, %v9734_v23  ;;  %v745_v35 = vadd.f32 %v713_v11, %v516_v57 }
 0x1af   : > { %v659_v12 = vpop.permute.xlu1 %658 }
 0x1b0   : > { %v793_v21 = vmul.f32 %v9806_v54, %v659_v12  ;;  %v794_v7 = vmul.f32 %v9802_v5, %v659_v12  ;;  %v711_v50 = vmul.f32 %v7360_v32, %v659_v12  ;;  %v712_v26 = vmul.f32 %v9812_v56, %v659_v12 }
 0x1b2   : > { %v825_v49 = vadd.f32 %v793_v21, %v597_v29  ;;  %v826_v1 = vadd.f32 %v794_v7, %v598_v58  ;;  %v743_v21 = vadd.f32 %v711_v50, %v514_v34  ;;  %v744_v7 = vadd.f32 %v712_v26, %v515_v55 }
 0x1b3   : > { %v1355_v45 = vpop.permute.xlu1 %1354  ;;  %v1647_v58 = vmul.f32 %v1551_v27, %v7502_v15  ;;  %v2124_v20 = vpop.f32.mrb[0].mxu1 }
 0x1b4   : > { %v8797_v60 = vadd.f32 %v1021_v9, %v825_v49  ;;  %v8799_v43 = vadd.f32 %v1022_v0, %v826_v1  ;;  %v1453_v12 = vmul.f32 %v1355_v45, %v9806_v54  ;;  %v1454_v29 = vmul.f32 %v1355_v45, %v9802_v5  ;;  %v2126_v50 = vpop.f32.mrb[1].mxu1 }
 0x1b5   : > { %v1295_v49 = vadd.f32 %v1263_v16, %v7469_v48  ;;  %v1296_v1 = vadd.f32 %v1264_v6, %v7473_v51  ;;  %v1229_v9 = vadd.f32 %v1197_v4, %v7376_v39  ;;  %v1230_v0 = vadd.f32 %v1198_v30, %v7380_v40  ;;  %v2128_v39 = vpop.f32.mrb[2].mxu1 }
 0x1b6   : > { %9850 = vst [vmem:[#allocation46_spill] sm:$0xff] %v8797_v60  ;;  %9851 = vst [vmem:[#allocation45_spill] sm:$0xff] %v8799_v43  ;;  %v1485_v25 = vadd.f32 %v1453_v12, %v1293_v61  ;;  %v1486_v62 = vadd.f32 %v1454_v29, %v1294_v52  ;;  %v746_v60 = vadd.f32 %v714_v18, %v517_v28  ;;  %v2130_v18 = vpop.f32.mrb[3].mxu1 }
 0x1b7   : > { %v2125_v16 = vadd.f32 %v2124_v20, %v8766_v63  ;;  %v2127_v6 = vadd.f32 %v2126_v50, %v8775_v19  ;;  %v972_v4 = vadd.f32 %v940_v31, %v744_v7  ;;  %v971_v40 = vadd.f32 %v939_v8, %v743_v21 }
 0x1b8   : > { %v1359_v43 = vpop.permute.xlu1 %1358  ;;  %v1389_v30 = vmul.f32 %v1355_v45, %v7360_v32  ;;  %v1390_v57 = vmul.f32 %v1355_v45, %v9812_v56  ;;  %v2129_v11 = vadd.f32 %v2128_v39, %v8766_v63  ;;  %v2131_v29 = vadd.f32 %v2130_v18, %v8775_v19 }
 0x1b9   : > { %v1391_v26 = vmul.f32 %v1359_v43, %v7360_v32  ;;  %v1392_v34 = vmul.f32 %v1359_v43, %v9812_v56  ;;  %v1455_v55 = vmul.f32 %v1359_v43, %v9806_v54  ;;  %v1456_v27 = vmul.f32 %v1359_v43, %v9802_v5 }
 0x1ba   : > { %v2203_v52 = vmax.f32 %v2125_v16, 0.0  ;;  %v2204_v20 = vmax.f32 %v2127_v6, 0.0  ;;  %v2205_v50 = vmax.f32 %v2129_v11, 0.0  ;;  %v2206_v32 = vmax.f32 %v2131_v29, 0.0 }
 0x1bb   : > { %v1487_v28 = vadd.f32 %v1455_v55, %v1295_v49  ;;  %v1423_v12 = vadd.f32 %v1391_v26, %v8746_v46  ;;  %v1424_v43 = vadd.f32 %v1392_v34, %v8749_v22  ;;  %v1488_v61 = vadd.f32 %v1456_v27, %v1296_v1 }
 0x1bc   : > { %v2597_v7 = vpack.c.bf16 %v2205_v50, %v2203_v52  ;;  %v1421_v46 = vadd.f32 %v1389_v30, %v1229_v9  ;;  %v1422_v49 = vadd.f32 %v1390_v57, %v1230_v0  ;;  %v2598_v26 = vpack.c.bf16 %v2206_v32, %v2204_v20 }
 0x1bd   : > { %v891_v31 = vpop.permute.xlu1 %890  ;;  %v8823_v8 = vadd.f32 %v1647_v58, %v1487_v28  ;;  %v1615_v58 = vadd.f32 %v1583_v53, %v1423_v12  ;;  %v1616_v27 = vadd.f32 %v1584_v36, %v1424_v43  ;;  %v8835_v39 = vadd.f32 %v1648_v24, %v1488_v61 }
 0x1be   : > { %v941_v45 = vmul.f32 %v7385_v42, %v891_v31  ;;  %v942_v56 = vmul.f32 %v7390_v44, %v891_v31  ;;  %v1023_v21 = vmul.f32 %v7502_v15, %v891_v31  ;;  %v1024_v22 = vmul.f32 %v9734_v23, %v891_v31 }
 0x1c0   : > { %v974_v1 = vadd.f32 %v942_v56, %v746_v60  ;;  %v973_v34 = vadd.f32 %v941_v45, %v745_v35  ;;  %v8830_v55 = vadd.f32 %v1023_v21, %v8741_v41  ;;  %v8833_v6 = vadd.f32 %v1024_v22, %v8743_v33 }
 0x1c1   : > { %v1547_v16 = vpop.permute.xlu1 %1546  ;;  %v1086_v35 = vmax.f32 %v972_v4, 0.0  ;;  %v1085_v41 = vmax.f32 %v971_v40, 0.0 }
 0x1c2   : > { %v1581_v11 = vmul.f32 %v1547_v16, %v7385_v42  ;;  %v1582_v9 = vmul.f32 %v1547_v16, %v7390_v44  ;;  %v1645_v0 = vmul.f32 %v1547_v16, %v7502_v15  ;;  %v1646_v60 = vmul.f32 %v1547_v16, %v9734_v23 }
 0x1c3   : > { %v1088_v30 = vmax.f32 %v974_v1, 0.0  ;;  %v1087_v57 = vmax.f32 %v973_v34, 0.0  ;;  %v1712_v42 = vmax.f32 %v1616_v27, 0.0  ;;  %v1711_v44 = vmax.f32 %v1615_v58, 0.0 }
 0x1c4   : > { %v1613_v53 = vadd.f32 %v1581_v11, %v1421_v46  ;;  %v1614_v36 = vadd.f32 %v1582_v9, %v1422_v49  ;;  %v8841_v18 = vadd.f32 %v1645_v0, %v1485_v25  ;;  %v8843_v33 = vadd.f32 %v1646_v60, %v1486_v62  ;;  %v6667_v11 = vld [vmem:[#allocation2 + $0x200] ss:$8 sps:$4 sm:$0xff]   ;;  %v6669_v9 = vld [vmem:[#allocation2 + $0x204] ss:$8 sps:$4 sm:$0xff]  }
 0x1c5   : > { %v1760_v24 = vpack.c.bf16 %v1088_v30, %v1086_v35  ;;  %v1759_v28 = vpack.c.bf16 %v1087_v57, %v1085_v41  ;;  %v6672_v35 = vld [vmem:[#allocation2 + $0x214] ss:$8 sps:$4 sm:$0xff]   ;;  %3136 = vmatprep.subr.bf16.mxu1 %v6669_v9  ;;  %2975 = vmatprep.subr.bf16.mxu0 %v6669_v9 }
 0x1c6   : > { %v1710_v12 = vmax.f32 %v1614_v36, 0.0  ;;  %v1709_v43 = vmax.f32 %v1613_v53, 0.0  ;;  %v6670_v36 = vld [vmem:[#allocation2 + $0x210] ss:$8 sps:$4 sm:$0xff]  }
 0x1c7   : > { %2031 = vmatprep.mubr.bf16.mxu0 %v1760_v24  ;;  %v6673_v24 = vld [vmem:[#allocation2 + $0x220] ss:$8 sps:$4 sm:$0xff]  }
 0x1c8   : > { %2032 = vmatmul.mubr.bf16.gmra.mrb[28].mxu0 %v1759_v28  ;;  %v2089_v29 = vpack.c.bf16 %v1712_v42, %v1710_v12  ;;  %v2088_v61 = vpack.c.bf16 %v1711_v44, %v1709_v43  ;;  %v6675_v28 = vld [vmem:[#allocation2 + $0x224] ss:$8 sps:$4 sm:$0xff]   ;;  %v6678_v12 = vld [vmem:[#allocation2 + $0x234] ss:$8 sps:$4 sm:$0xff]   ;;  %v6676_v42 = vld [vmem:[#allocation2 + $0x230] ss:$8 sps:$4 sm:$0xff]  }
 0x1c9   : > { %v6679_v43 = vld [vmem:[#allocation2 + $0x240] ss:$8 sps:$4 sm:$0xff]   ;;  %v6681_v44 = vld [vmem:[#allocation2 + $0x244] ss:$8 sps:$4 sm:$0xff]  }
 0x1ca   : > { %2192 = vmatprep.mubr.bf16.mxu1 %v2089_v29  ;;  %v6684_v29 = vld [vmem:[#allocation2 + $0x254] ss:$8 sps:$4 sm:$0xff]  }
 0x1cb   : > { %2193 = vmatmul.mubr.bf16.gmra.mrb[28].mxu1 %v2088_v61 }
 0x1cc   : > { %2645 = vmatprep.mubr.bf16.mxu1 %v2598_v26 }
 0x1d0   : > { %v1963_v4 = vpop.f32.mrb[0].mxu0 }
 0x1d1   : > { %v1964_v25 = vadd.f32 %v1963_v4, %v8766_v63  ;;  %v1965_v40 = vpop.f32.mrb[1].mxu0 }
 0x1d2   : > { %v1966_v62 = vadd.f32 %v1965_v40, %v8775_v19  ;;  %v1967_v52 = vpop.f32.mrb[2].mxu0  ;;  %v6682_v40 = vld [vmem:[#allocation2 + $0x250] ss:$8 sps:$4 sm:$0xff]  }
 0x1d3   : > { %2646 = vmatmul.mubr.bf16.vlgmr.msra.gmra.mrb[32].mxu1 %v2597_v7  ;;  %v1968_v20 = vadd.f32 %v1967_v52, %v8766_v63  ;;  %v1969_v50 = vpop.f32.mrb[3].mxu0  ;;  %v2042_v32 = vmax.f32 %v1964_v25, 0.0 }
 0x1d4   : > { %v1970_v31 = vadd.f32 %v1969_v50, %v8775_v19  ;;  %v2043_v56 = vmax.f32 %v1966_v62, 0.0  ;;  %3137 = vmatpush1.bf16.msra.mxu1 %v6667_v11 }
 0x1d5   : > { %v2044_v45 = vmax.f32 %v1968_v20, 0.0  ;;  %3138 = vmatprep.subr.bf16.mxu1 %v6672_v35  ;;  %v6687_v20 = vld [vmem:[#allocation2 + $0x264] ss:$8 sps:$4 sm:$0xff]  }
 0x1d6   : > { %v2045_v21 = vmax.f32 %v1970_v31, 0.0 }
 0x1d7   : > { %v2268_v46 = vpack.c.bf16 %v2044_v45, %v2042_v32 }
 0x1d8   : > { %v2269_v49 = vpack.c.bf16 %v2045_v21, %v2043_v56  ;;  %3139 = vmatpush1.bf16.msra.mxu1 %v6670_v36  ;;  %v6685_v21 = vld [vmem:[#allocation2 + $0x260] ss:$8 sps:$4 sm:$0xff]  }
 0x1d9   : > { %3140 = vmatprep.subr.bf16.mxu1 %v6675_v28 }
 0x1da   : > { %2484 = vmatprep.mubr.bf16.mxu0 %v2269_v49 }
 0x1db   : > { %2485 = vmatmul.mubr.bf16.vlgmr.msra.gmra.mrb[32].mxu0 %v2268_v46 }
 0x1dc   : > { %2976 = vmatpush1.bf16.msra.mxu0 %v6667_v11  ;;  %3141 = vmatpush1.bf16.msra.mxu1 %v6673_v24 }
 0x1dd   : > { %2977 = vmatprep.subr.bf16.mxu0 %v6672_v35  ;;  %3142 = vmatprep.subr.bf16.mxu1 %v6678_v12 }
 0x1df   : > { %v2134_v7 = vpop.f32.mrb[4].mxu1 }
 0x1e0   : > { %v2135_v22 = vadd.f32 %v2134_v7, %v8766_v63  ;;  %v2136_v26 = vpop.f32.mrb[5].mxu1  ;;  %2978 = vmatpush1.bf16.msra.mxu0 %v6670_v36  ;;  %3143 = vmatpush1.bf16.msra.mxu1 %v6676_v42  ;;  %v6690_v7 = vld [vmem:[#allocation2 + $0x274] ss:$8 sps:$4 sm:$0xff]  }
 0x1e1   : > { %v2137_v1 = vadd.f32 %v2136_v26, %v8775_v19  ;;  %v2138_v34 = vpop.f32.mrb[6].mxu1  ;;  %2979 = vmatprep.subr.bf16.mxu0 %v6675_v28  ;;  %3144 = vmatprep.subr.bf16.mxu1 %v6681_v44 }
 0x1e2   : > { %v2139_v58 = vadd.f32 %v2138_v34, %v8766_v63  ;;  %v2140_v27 = vpop.f32.mrb[7].mxu1  ;;  %v2207_v0 = vmax.f32 %v2135_v22, 0.0 }
 0x1e3   : > { %v2141_v16 = vadd.f32 %v2140_v27, %v8775_v19  ;;  %v2208_v30 = vmax.f32 %v2137_v1, 0.0 }
 0x1e4   : > { %v2209_v60 = vmax.f32 %v2139_v58, 0.0  ;;  %2980 = vmatpush1.bf16.msra.mxu0 %v6673_v24  ;;  %3145 = vmatpush1.bf16.msra.mxu1 %v6679_v43 }
 0x1e5   : > { %v2210_v41 = vmax.f32 %v2141_v16, 0.0  ;;  %2981 = vmatprep.subr.bf16.mxu0 %v6678_v12  ;;  %3146 = vmatprep.subr.bf16.mxu1 %v6684_v29 }
 0x1e6   : > { %v2599_v57 = vpack.c.bf16 %v2209_v60, %v2207_v0  ;;  %v6688_v60 = vld [vmem:[#allocation2 + $0x270] ss:$8 sps:$4 sm:$0xff]  }
 0x1e7   : > { %v2600_v53 = vpack.c.bf16 %v2210_v41, %v2208_v30 }
 0x1e8   : > { %2982 = vmatpush1.bf16.msra.mxu0 %v6676_v42  ;;  %3147 = vmatpush1.bf16.msra.mxu1 %v6682_v40 }
 0x1e9   : > { %2655 = vmatprep.mubr.bf16.mxu1 %v2600_v53  ;;  %2983 = vmatprep.subr.bf16.mxu0 %v6681_v44  ;;  %v6693_v53 = vld [vmem:[#allocation2 + $0x284] ss:$8 sps:$4 sm:$0xff]  }
 0x1ea   : > { %2656 = vmatmul.mubr.bf16.gmra.mrb[36].mxu1 %v2599_v57  ;;  %3148 = vmatprep.subr.bf16.mxu1 %v6687_v20 }
 0x1ec   : > { %2984 = vmatpush1.bf16.msra.mxu0 %v6679_v43  ;;  %3149 = vmatpush1.bf16.msra.mxu1 %v6685_v21 }
 0x1ed   : > { %2985 = vmatprep.subr.bf16.mxu0 %v6684_v29  ;;  %3150 = vmatprep.subr.bf16.mxu1 %v6690_v7 }
 0x1f0   : > { %2986 = vmatpush1.bf16.msra.mxu0 %v6682_v40  ;;  %3151 = vmatpush1.bf16.msra.mxu1 %v6688_v60 }
 0x1f1   : > { %2987 = vmatprep.subr.bf16.mxu0 %v6687_v20  ;;  %3152 = vmatprep.subr.bf16.mxu1 %v6693_v53 }
 0x1f4   : > { %2988 = vmatpush1.bf16.msra.mxu0 %v6685_v21 }
 0x1f5   : > { %2989 = vmatprep.subr.bf16.mxu0 %v6690_v7 }
 0x1f8   : > { %2990 = vmatpush1.bf16.msra.mxu0 %v6688_v60 }
 0x1f9   : > { %2991 = vmatprep.subr.bf16.mxu0 %v6693_v53 }
 0x209   : > { %v1973_v61 = vpop.f32.mrb[4].mxu0 }
 0x20a   : > { %v1974_v4 = vadd.f32 %v1973_v61, %v8766_v63  ;;  %v1975_v25 = vpop.f32.mrb[5].mxu0 }
 0x20b   : > { %v1976_v62 = vadd.f32 %v1975_v25, %v8775_v19  ;;  %v1977_v52 = vpop.f32.mrb[6].mxu0  ;;  %v6691_v25 = vld [vmem:[#allocation2 + $0x280] ss:$8 sps:$4 sm:$0xff]  }
 0x20c   : > { %v1978_v50 = vadd.f32 %v1977_v52, %v8766_v63  ;;  %v1979_v31 = vpop.f32.mrb[7].mxu0  ;;  %v2046_v45 = vmax.f32 %v1974_v4, 0.0  ;;  %3153 = vmatpush1.bf16.msra.mxu1 %v6691_v25  ;;  %2992 = vmatpush1.bf16.msra.mxu0 %v6691_v25  ;;  %v6700_v25 = vld [vmem:[#allocation2 + $0x2b0] ss:$8 sps:$4 sm:$0xff]  }
 0x20d   : > { %v1980_v32 = vadd.f32 %v1979_v31, %v8775_v19  ;;  %v2047_v46 = vmax.f32 %v1976_v62, 0.0  ;;  %v6696_v31 = vld [vmem:[#allocation2 + $0x294] ss:$8 sps:$4 sm:$0xff]  }
 0x20e   : > { %v2048_v56 = vmax.f32 %v1978_v50, 0.0  ;;  %3154 = vmatprep.subr.bf16.mxu1 %v6696_v31  ;;  %2993 = vmatprep.subr.bf16.mxu0 %v6696_v31  ;;  %v6709_v31 = vld [vmem:[#allocation2 + $0x2e0] ss:$8 sps:$4 sm:$0xff]  }
 0x20f   : > { %v2049_v49 = vmax.f32 %v1980_v32, 0.0  ;;  %v2144_v26 = vpop.f32.mrb[8].mxu1 }
 0x210   : > { %v2270_v22 = vpack.c.bf16 %v2048_v56, %v2046_v45  ;;  %v2145_v58 = vadd.f32 %v2144_v26, %v8766_v63  ;;  %v2146_v27 = vpop.f32.mrb[9].mxu1  ;;  %v6699_v26 = vld [vmem:[#allocation2 + $0x2a4] ss:$8 sps:$4 sm:$0xff]  }
 0x211   : > { %v2271_v1 = vpack.c.bf16 %v2049_v49, %v2047_v46  ;;  %v1983_v34 = vpop.f32.mrb[8].mxu0  ;;  %v2147_v9 = vadd.f32 %v2146_v27, %v8775_v19  ;;  %v2148_v0 = vpop.f32.mrb[10].mxu1  ;;  %v6694_v46 = vld [vmem:[#allocation2 + $0x290] ss:$8 sps:$4 sm:$0xff]  }
 0x212   : > { %v1984_v16 = vadd.f32 %v1983_v34, %v8766_v63  ;;  %v1985_v11 = vpop.f32.mrb[9].mxu0  ;;  %v2149_v41 = vadd.f32 %v2148_v0, %v8766_v63  ;;  %v2150_v57 = vpop.f32.mrb[11].mxu1  ;;  %v2211_v12 = vmax.f32 %v2145_v58, 0.0  ;;  %3155 = vmatpush1.bf16.msra.mxu1 %v6694_v46  ;;  %2994 = vmatpush1.bf16.msra.mxu0 %v6694_v46 }
 0x213   : > { %v1986_v35 = vadd.f32 %v1985_v11, %v8775_v19  ;;  %v1987_v30 = vpop.f32.mrb[10].mxu0  ;;  %2494 = vmatprep.mubr.bf16.mxu0 %v2271_v1  ;;  %v2151_v28 = vadd.f32 %v2150_v57, %v8775_v19  ;;  %v2212_v29 = vmax.f32 %v2147_v9, 0.0  ;;  %3156 = vmatprep.subr.bf16.mxu1 %v6699_v26 }
 0x214   : > { %v1988_v36 = vadd.f32 %v1987_v30, %v8766_v63  ;;  %v1989_v24 = vpop.f32.mrb[11].mxu0  ;;  %2495 = vmatmul.mubr.bf16.gmra.mrb[36].mxu0 %v2270_v22  ;;  %v2213_v42 = vmax.f32 %v2149_v41, 0.0  ;;  %v2050_v44 = vmax.f32 %v1984_v16, 0.0  ;;  %v6697_v41 = vld [vmem:[#allocation2 + $0x2a0] ss:$8 sps:$4 sm:$0xff]   ;;  %2995 = vmatprep.subr.bf16.mxu0 %v6699_v26 }
 0x215   : > { %v1990_v43 = vadd.f32 %v1989_v24, %v8775_v19  ;;  %v2214_v4 = vmax.f32 %v2151_v28, 0.0  ;;  %v2051_v40 = vmax.f32 %v1986_v35, 0.0 }
 0x216   : > { %v2052_v61 = vmax.f32 %v1988_v36, 0.0  ;;  %v2601_v62 = vpack.c.bf16 %v2213_v42, %v2211_v12  ;;  %3157 = vmatpush1.bf16.msra.mxu1 %v6697_v41  ;;  %2996 = vmatpush1.bf16.msra.mxu0 %v6697_v41 }
 0x217   : > { %v2053_v52 = vmax.f32 %v1990_v43, 0.0  ;;  %v2602_v50 = vpack.c.bf16 %v2214_v4, %v2212_v29  ;;  %v6702_v4 = vld [vmem:[#allocation2 + $0x2b4] ss:$8 sps:$4 sm:$0xff]  }
 0x218   : > { %v2272_v20 = vpack.c.bf16 %v2052_v61, %v2050_v44  ;;  %3158 = vmatprep.subr.bf16.mxu1 %v6702_v4  ;;  %2997 = vmatprep.subr.bf16.mxu0 %v6702_v4 }
 0x219   : > { %v2273_v32 = vpack.c.bf16 %v2053_v52, %v2051_v40  ;;  %v1993_v45 = vpop.f32.mrb[12].mxu0  ;;  %2665 = vmatprep.mubr.bf16.mxu1 %v2602_v50  ;;  %v6705_v40 = vld [vmem:[#allocation2 + $0x2c4] ss:$8 sps:$4 sm:$0xff]   ;;  %v6708_v52 = vld [vmem:[#allocation2 + $0x2d4] ss:$8 sps:$4 sm:$0xff]  }
 0x21a   : > { %v1994_v56 = vadd.f32 %v1993_v45, %v8766_v63  ;;  %v1995_v21 = vpop.f32.mrb[13].mxu0  ;;  %2666 = vmatmul.mubr.bf16.gmra.mrb[40].mxu1 %v2601_v62  ;;  %v2154_v22 = vpop.f32.mrb[12].mxu1  ;;  %v6703_v62 = vld [vmem:[#allocation2 + $0x2c0] ss:$8 sps:$4 sm:$0xff]   ;;  %2998 = vmatpush1.bf16.msra.mxu0 %v6700_v25  ;;  %v6711_v50 = vld [vmem:[#allocation2 + $0x2e4] ss:$8 sps:$4 sm:$0xff]  }
 0x21b   : > { %2504 = vmatprep.mubr.bf16.mxu0 %v2273_v32  ;;  %v1996_v49 = vadd.f32 %v1995_v21, %v8775_v19  ;;  %v1997_v7 = vpop.f32.mrb[14].mxu0  ;;  %v2155_v58 = vadd.f32 %v2154_v22, %v8766_v63  ;;  %v2156_v27 = vpop.f32.mrb[13].mxu1  ;;  %3159 = vmatpush1.bf16.msra.mxu1 %v6700_v25  ;;  %v6714_v32 = vld [vmem:[#allocation2 + $0x2f4] ss:$8 sps:$4 sm:$0xff]   ;;  %v6712_v45 = vld [vmem:[#allocation2 + $0x2f0] ss:$8 sps:$4 sm:$0xff]  }
 0x21c   : > { %2505 = vmatmul.mubr.bf16.gmra.mrb[40].mxu0 %v2272_v20  ;;  %v1998_v1 = vadd.f32 %v1997_v7, %v8766_v63  ;;  %v1999_v34 = vpop.f32.mrb[15].mxu0  ;;  %v2157_v11 = vadd.f32 %v2156_v27, %v8775_v19  ;;  %v2158_v9 = vpop.f32.mrb[14].mxu1  ;;  %v2054_v0 = vmax.f32 %v1994_v56, 0.0  ;;  %3160 = vmatprep.subr.bf16.mxu1 %v6705_v40  ;;  %v6706_v20 = vld [vmem:[#allocation2 + $0x2d0] ss:$8 sps:$4 sm:$0xff]  }
 0x21d   : > { %v2000_v16 = vadd.f32 %v1999_v34, %v8775_v19  ;;  %v2159_v35 = vadd.f32 %v2158_v9, %v8766_v63  ;;  %v2160_v30 = vpop.f32.mrb[15].mxu1  ;;  %v2055_v57 = vmax.f32 %v1996_v49, 0.0  ;;  %v2215_v28 = vmax.f32 %v2155_v58, 0.0  ;;  %2999 = vmatprep.subr.bf16.mxu0 %v6705_v40 }
 0x21e   : > { %v2056_v60 = vmax.f32 %v1998_v1, 0.0  ;;  %v2161_v36 = vadd.f32 %v2160_v30, %v8775_v19  ;;  %v2216_v43 = vmax.f32 %v2157_v11, 0.0  ;;  %3000 = vmatpush1.bf16.msra.mxu0 %v6703_v62 }
 0x21f   : > { %v2057_v53 = vmax.f32 %v2000_v16, 0.0  ;;  %v2217_v12 = vmax.f32 %v2159_v35, 0.0  ;;  %3161 = vmatpush1.bf16.msra.mxu1 %v6703_v62  ;;  %3001 = vmatprep.subr.bf16.mxu0 %v6708_v52 }
 0x220   : > { %v2274_v24 = vpack.c.bf16 %v2056_v60, %v2054_v0  ;;  %v2218_v44 = vmax.f32 %v2161_v36, 0.0  ;;  %3162 = vmatprep.subr.bf16.mxu1 %v6708_v52 }
 0x221   : > { %v2275_v42 = vpack.c.bf16 %v2057_v53, %v2055_v57  ;;  %v2603_v29 = vpack.c.bf16 %v2217_v12, %v2215_v28 }
 0x222   : > { %v2604_v61 = vpack.c.bf16 %v2218_v44, %v2216_v43  ;;  %3002 = vmatpush1.bf16.msra.mxu0 %v6706_v20 }
 0x223   : > { %2514 = vmatprep.mubr.bf16.mxu0 %v2275_v42  ;;  %3163 = vmatpush1.bf16.msra.mxu1 %v6706_v20 }
 0x224   : > { %2515 = vmatmul.mubr.bf16.gmra.mrb[44].mxu0 %v2274_v24  ;;  %2675 = vmatprep.mubr.bf16.mxu1 %v2604_v61 }
 0x225   : > { %2676 = vmatmul.mubr.bf16.gmra.mrb[44].mxu1 %v2603_v29  ;;  %3164 = vmatprep.subr.bf16.mxu1 %v6711_v50 }
 0x226   : > { %3003 = vmatprep.subr.bf16.mxu0 %v6711_v50 }
 0x227   : > { %3165 = vmatpush1.bf16.msra.mxu1 %v6709_v31  ;;  %3004 = vmatpush1.bf16.msra.mxu0 %v6709_v31 }
 0x228   : > { %3166 = vmatprep.subr.bf16.mxu1 %v6714_v32  ;;  %3005 = vmatprep.subr.bf16.mxu0 %v6714_v32 }
 0x22b   : > { %3167 = vmatpush1.bf16.msra.mxu1 %v6712_v45  ;;  %3006 = vmatpush1.bf16.msra.mxu0 %v6712_v45 }
 0x237   : > { %v2003_v56 = vpop.f32.mrb[16].mxu0 }
 0x238   : > { %v2004_v21 = vadd.f32 %v2003_v56, %v8766_v63  ;;  %v2005_v46 = vpop.f32.mrb[17].mxu0 }
 0x239   : > { %v2006_v49 = vadd.f32 %v2005_v46, %v8775_v19  ;;  %v2007_v7 = vpop.f32.mrb[18].mxu0 }
 0x23a   : > { %v2008_v22 = vadd.f32 %v2007_v7, %v8766_v63  ;;  %v2009_v26 = vpop.f32.mrb[19].mxu0  ;;  %v2058_v34 = vmax.f32 %v2004_v21, 0.0 }
 0x23b   : > { %v2010_v1 = vadd.f32 %v2009_v26, %v8775_v19  ;;  %v2059_v27 = vmax.f32 %v2006_v49, 0.0 }
 0x23c   : > { %v2060_v58 = vmax.f32 %v2008_v22, 0.0 }
 0x23d   : > { %v2061_v16 = vmax.f32 %v2010_v1, 0.0 }
 0x23e   : > { %v2276_v11 = vpack.c.bf16 %v2060_v58, %v2058_v34 }
 0x23f   : > { %v2277_v9 = vpack.c.bf16 %v2061_v16, %v2059_v27  ;;  %v2164_v0 = vpop.f32.mrb[16].mxu1 }
 0x240   : > { %v2165_v60 = vadd.f32 %v2164_v0, %v8766_v63  ;;  %v2166_v35 = vpop.f32.mrb[17].mxu1 }
 0x241   : > { %v2167_v30 = vadd.f32 %v2166_v35, %v8775_v19  ;;  %v2168_v41 = vpop.f32.mrb[18].mxu1  ;;  %2524 = vmatprep.mubr.bf16.mxu0 %v2277_v9 }
 0x242   : > { %v2169_v57 = vadd.f32 %v2168_v41, %v8766_v63  ;;  %v2170_v53 = vpop.f32.mrb[19].mxu1  ;;  %2525 = vmatmul.mubr.bf16.gmra.mrb[48].mxu0 %v2276_v11  ;;  %v2219_v24 = vmax.f32 %v2165_v60, 0.0 }
 0x243   : > { %v2171_v36 = vadd.f32 %v2170_v53, %v8775_v19  ;;  %v2220_v12 = vmax.f32 %v2167_v30, 0.0 }
 0x244   : > { %v2221_v28 = vmax.f32 %v2169_v57, 0.0 }
 0x245   : > { %v2222_v42 = vmax.f32 %v2171_v36, 0.0 }
 0x246   : > { %v2605_v43 = vpack.c.bf16 %v2221_v28, %v2219_v24 }
 0x247   : > { %v2606_v44 = vpack.c.bf16 %v2222_v42, %v2220_v12 }
 0x249   : > { %2685 = vmatprep.mubr.bf16.mxu1 %v2606_v44 }
 0x24a   : > { %2686 = vmatmul.mubr.bf16.gmra.mrb[48].mxu1 %v2605_v43 }
 0x25b   : > { %v2013_v29 = vpop.f32.mrb[20].mxu0 }
 0x25c   : > { %v2014_v61 = vadd.f32 %v2013_v29, %v8766_v63  ;;  %v2015_v4 = vpop.f32.mrb[21].mxu0 }
 0x25d   : > { %v2016_v25 = vadd.f32 %v2015_v4, %v8775_v19  ;;  %v2017_v40 = vpop.f32.mrb[22].mxu0 }
 0x25e   : > { %v2018_v62 = vadd.f32 %v2017_v40, %v8766_v63  ;;  %v2019_v52 = vpop.f32.mrb[23].mxu0  ;;  %v2062_v31 = vmax.f32 %v2014_v61, 0.0 }
 0x25f   : > { %v2020_v20 = vadd.f32 %v2019_v52, %v8775_v19  ;;  %v2174_v50 = vpop.f32.mrb[20].mxu1  ;;  %v2063_v21 = vmax.f32 %v2016_v25, 0.0 }
 0x260   : > { %v2064_v32 = vmax.f32 %v2018_v62, 0.0  ;;  %v2175_v45 = vadd.f32 %v2174_v50, %v8766_v63  ;;  %v2176_v56 = vpop.f32.mrb[21].mxu1 }
 0x261   : > { %v2065_v46 = vmax.f32 %v2020_v20, 0.0  ;;  %v2177_v49 = vadd.f32 %v2176_v56, %v8775_v19  ;;  %v2178_v7 = vpop.f32.mrb[22].mxu1 }
 0x262   : > { %v2278_v22 = vpack.c.bf16 %v2064_v32, %v2062_v31  ;;  %v2179_v26 = vadd.f32 %v2178_v7, %v8766_v63  ;;  %v2180_v1 = vpop.f32.mrb[23].mxu1  ;;  %v2223_v27 = vmax.f32 %v2175_v45, 0.0 }
 0x263   : > { %v2279_v34 = vpack.c.bf16 %v2065_v46, %v2063_v21  ;;  %v2181_v58 = vadd.f32 %v2180_v1, %v8775_v19  ;;  %v2224_v11 = vmax.f32 %v2177_v49, 0.0 }
 0x264   : > { %v2225_v16 = vmax.f32 %v2179_v26, 0.0 }
 0x265   : > { %v2226_v9 = vmax.f32 %v2181_v58, 0.0  ;;  %2534 = vmatprep.mubr.bf16.mxu0 %v2279_v34 }
 0x266   : > { %v2607_v0 = vpack.c.bf16 %v2225_v16, %v2223_v27  ;;  %2535 = vmatmul.mubr.bf16.gmra.mrb[52].mxu0 %v2278_v22 }
 0x267   : > { %v2608_v60 = vpack.c.bf16 %v2226_v9, %v2224_v11 }
 0x269   : > { %2695 = vmatprep.mubr.bf16.mxu1 %v2608_v60 }
 0x26a   : > { %2696 = vmatmul.mubr.bf16.gmra.mrb[52].mxu1 %v2607_v0 }
 0x274   : > { %v2023_v35 = vpop.f32.mrb[24].mxu0 }
 0x275   : > { %v2024_v30 = vadd.f32 %v2023_v35, %v8766_v63  ;;  %v2025_v41 = vpop.f32.mrb[25].mxu0 }
 0x276   : > { %v2026_v57 = vadd.f32 %v2025_v41, %v8775_v19  ;;  %v2027_v53 = vpop.f32.mrb[26].mxu0 }
 0x277   : > { %v2028_v36 = vadd.f32 %v2027_v53, %v8766_v63  ;;  %v2029_v24 = vpop.f32.mrb[27].mxu0  ;;  %v2066_v12 = vmax.f32 %v2024_v30, 0.0 }
 0x278   : > { %v2030_v28 = vadd.f32 %v2029_v24, %v8775_v19  ;;  %v2067_v43 = vmax.f32 %v2026_v57, 0.0 }
 0x279   : > { %v2068_v42 = vmax.f32 %v2028_v36, 0.0 }
 0x27a   : > { %v2069_v44 = vmax.f32 %v2030_v28, 0.0 }
 0x27b   : > { %v2280_v29 = vpack.c.bf16 %v2068_v42, %v2066_v12 }
 0x27c   : > { %v2281_v61 = vpack.c.bf16 %v2069_v44, %v2067_v43 }
 0x27d   : > { %v2184_v4 = vpop.f32.mrb[24].mxu1 }
 0x27e   : > { %v2185_v25 = vadd.f32 %v2184_v4, %v8766_v63  ;;  %v2186_v40 = vpop.f32.mrb[25].mxu1  ;;  %2544 = vmatprep.mubr.bf16.mxu0 %v2281_v61 }
 0x27f   : > { %v2187_v62 = vadd.f32 %v2186_v40, %v8775_v19  ;;  %v2188_v52 = vpop.f32.mrb[26].mxu1  ;;  %2545 = vmatmul.mubr.bf16.gmra.mrb[56].mxu0 %v2280_v29  ;;  %v9852_v29 = vld [vmem:[#allocation16_spill] sm:$0xff] }
 0x280   : > { %v2189_v20 = vadd.f32 %v2188_v52, %v8766_v63  ;;  %v2190_v50 = vpop.f32.mrb[27].mxu1  ;;  %v2227_v32 = vmax.f32 %v2185_v25, 0.0  ;;  %v8907_v61 = vrot.slane %v8762_v10, %v9852_v29  ;;  %v8911_v40 = vrot.slane %v8771_v14, %v9852_v29  ;;  %v6717_v29 = vld [vmem:[#allocation2 + $0x304] ss:$8 sps:$4 sm:$0xff]  }
 0x281   : > { %v2191_v31 = vadd.f32 %v2190_v50, %v8775_v19  ;;  %v2228_v56 = vmax.f32 %v2187_v62, 0.0  ;;  %3659 = vmatprep.subr.bf16.mxu1 %v6717_v29  ;;  %3498 = vmatprep.subr.bf16.mxu0 %v6717_v29  ;;  %v6736_v29 = vld [vmem:[#allocation2 + $0x370] ss:$8 sps:$4 sm:$0xff]  }
 0x282   : > { %v2229_v45 = vmax.f32 %v2189_v20, 0.0 }
 0x283   : > { %v2230_v21 = vmax.f32 %v2191_v31, 0.0 }
 0x284   : > { %v2609_v46 = vpack.c.bf16 %v2229_v45, %v2227_v32 }
 0x285   : > { %v2610_v49 = vpack.c.bf16 %v2230_v21, %v2228_v56 }
 0x287   : > { %2705 = vmatprep.mubr.bf16.mxu1 %v2610_v49 }
 0x288   : > { %2706 = vmatmul.mubr.bf16.gmra.mrb[56].mxu1 %v2609_v46 }
 0x29b   : > { %v2033_v7 = vpop.f32.mrb[28].mxu0 }
 0x29c   : > { %v2034_v22 = vadd.f32 %v2033_v7, %v8766_v63  ;;  %v2035_v26 = vpop.f32.mrb[29].mxu0 }
 0x29d   : > { %v2036_v1 = vadd.f32 %v2035_v26, %v8775_v19  ;;  %v2037_v34 = vpop.f32.mrb[30].mxu0 }
 0x29e   : > { %v2038_v58 = vadd.f32 %v2037_v34, %v8766_v63  ;;  %v2039_v27 = vpop.f32.mrb[31].mxu0  ;;  %v2194_v16 = vpop.f32.mrb[28].mxu1  ;;  %v2070_v60 = vmax.f32 %v2034_v22, 0.0 }
 0x29f   : > { %v2040_v11 = vadd.f32 %v2039_v27, %v8775_v19  ;;  %v2195_v9 = vadd.f32 %v2194_v16, %v8766_v63  ;;  %v2196_v0 = vpop.f32.mrb[29].mxu1  ;;  %v2071_v57 = vmax.f32 %v2036_v1, 0.0 }
 0x2a0   : > { %v2072_v35 = vmax.f32 %v2038_v58, 0.0  ;;  %v2197_v30 = vadd.f32 %v2196_v0, %v8775_v19  ;;  %v2198_v41 = vpop.f32.mrb[30].mxu1 }
 0x2a1   : > { %v2073_v53 = vmax.f32 %v2040_v11, 0.0  ;;  %v2199_v36 = vadd.f32 %v2198_v41, %v8766_v63  ;;  %v2200_v24 = vpop.f32.mrb[31].mxu1  ;;  %v2231_v43 = vmax.f32 %v2195_v9, 0.0 }
 0x2a2   : > { %v2282_v28 = vpack.c.bf16 %v2072_v35, %v2070_v60  ;;  %v2201_v12 = vadd.f32 %v2200_v24, %v8775_v19  ;;  %v2232_v4 = vmax.f32 %v2197_v30, 0.0 }
 0x2a3   : > { %v2283_v42 = vpack.c.bf16 %v2073_v53, %v2071_v57  ;;  %v2233_v44 = vmax.f32 %v2199_v36, 0.0 }
 0x2a4   : > { %v2234_v25 = vmax.f32 %v2201_v12, 0.0 }
 0x2a5   : > { %v2611_v62 = vpack.c.bf16 %v2233_v44, %v2231_v43  ;;  %2554 = vmatprep.mubr.bf16.mxu0 %v2283_v42  ;;  %v6715_v44 = vld [vmem:[#allocation2 + $0x300] ss:$8 sps:$4 sm:$0xff]  }
 0x2a6   : > { %v2612_v63 = vpack.c.bf16 %v2234_v25, %v2232_v4  ;;  %2555 = vmatmul.mubr.bf16.gmra.mrb[60].mxu0 %v2282_v28  ;;  %v2647_v52 = vpop.f32.mrb[32].mxu1 }
 0x2a7   : > { %v2648_v19 = vadd.f32 %v2647_v52, %v8907_v61  ;;  %v2649_v20 = vpop.f32.mrb[33].mxu1 }
 0x2a8   : > { %v2650_v50 = vadd.f32 %v2649_v20, %v8911_v40  ;;  %v2651_v31 = vpop.f32.mrb[34].mxu1  ;;  %2715 = vmatprep.mubr.bf16.mxu1 %v2612_v63 }
 0x2a9   : > { %v2652_v10 = vadd.f32 %v2651_v31, %v8907_v61  ;;  %v2653_v32 = vpop.f32.mrb[35].mxu1  ;;  %2716 = vmatmul.mubr.bf16.gmra.mrb[60].mxu1 %v2611_v62  ;;  %v2726_v14 = vmax.f32 %v2648_v19, 0.0  ;;  %v6720_v62 = vld [vmem:[#allocation2 + $0x314] ss:$8 sps:$4 sm:$0xff]   ;;  %v6721_v31 = vld [vmem:[#allocation2 + $0x320] ss:$8 sps:$4 sm:$0xff]  }
 0x2aa   : > { %v2654_v45 = vadd.f32 %v2653_v32, %v8911_v40  ;;  %v2727_v21 = vmax.f32 %v2650_v50, 0.0  ;;  %v6718_v50 = vld [vmem:[#allocation2 + $0x310] ss:$8 sps:$4 sm:$0xff]   ;;  %v6726_v32 = vld [vmem:[#allocation2 + $0x334] ss:$8 sps:$4 sm:$0xff]  }
 0x2ab   : > { %v2728_v56 = vmax.f32 %v2652_v10, 0.0  ;;  %v6723_v10 = vld [vmem:[#allocation2 + $0x324] ss:$8 sps:$4 sm:$0xff]  }
 0x2ac   : > { %v2729_v46 = vmax.f32 %v2654_v45, 0.0  ;;  %v6724_v45 = vld [vmem:[#allocation2 + $0x330] ss:$8 sps:$4 sm:$0xff]  }
 0x2ad   : > { %v3120_v49 = vpack.c.bf16 %v2728_v56, %v2726_v14  ;;  %v6727_v14 = vld [vmem:[#allocation2 + $0x340] ss:$8 sps:$4 sm:$0xff]   ;;  %v6729_v56 = vld [vmem:[#allocation2 + $0x344] ss:$8 sps:$4 sm:$0xff]  }
 0x2ae   : > { %v3121_v7 = vpack.c.bf16 %v2729_v46, %v2727_v21  ;;  %v2486_v22 = vpop.f32.mrb[32].mxu0  ;;  %v6732_v21 = vld [vmem:[#allocation2 + $0x354] ss:$8 sps:$4 sm:$0xff]  }
 0x2af   : > { %v2487_v26 = vadd.f32 %v2486_v22, %v8907_v61  ;;  %v2488_v1 = vpop.f32.mrb[33].mxu0  ;;  %v6730_v22 = vld [vmem:[#allocation2 + $0x350] ss:$8 sps:$4 sm:$0xff]  }
 0x2b0   : > { %3168 = vmatprep.mubr.bf16.mxu1 %v3121_v7  ;;  %v2489_v34 = vadd.f32 %v2488_v1, %v8911_v40  ;;  %v2490_v58 = vpop.f32.mrb[34].mxu0 }
 0x2b1   : > { %3169 = vmatmul.mubr.bf16.vlgmr.msra.gmra.mrb[64].mxu1 %v3120_v49  ;;  %v2491_v27 = vadd.f32 %v2490_v58, %v8907_v61  ;;  %v2492_v16 = vpop.f32.mrb[35].mxu0  ;;  %v2565_v9 = vmax.f32 %v2487_v26, 0.0 }
 0x2b2   : > { %v2493_v11 = vadd.f32 %v2492_v16, %v8911_v40  ;;  %v2566_v60 = vmax.f32 %v2489_v34, 0.0  ;;  %3660 = vmatpush1.bf16.msra.mxu1 %v6715_v44  ;;  %v6735_v34 = vld [vmem:[#allocation2 + $0x364] ss:$8 sps:$4 sm:$0xff]  }
 0x2b3   : > { %v2567_v0 = vmax.f32 %v2491_v27, 0.0  ;;  %3661 = vmatprep.subr.bf16.mxu1 %v6720_v62 }
 0x2b4   : > { %v2568_v35 = vmax.f32 %v2493_v11, 0.0 }
 0x2b5   : > { %v2791_v30 = vpack.c.bf16 %v2567_v0, %v2565_v9  ;;  %v6733_v0 = vld [vmem:[#allocation2 + $0x360] ss:$8 sps:$4 sm:$0xff]  }
 0x2b6   : > { %v2792_v41 = vpack.c.bf16 %v2568_v35, %v2566_v60  ;;  %3662 = vmatpush1.bf16.msra.mxu1 %v6718_v50 }
 0x2b7   : > { %3663 = vmatprep.subr.bf16.mxu1 %v6723_v10 }
 0x2b8   : > { %3007 = vmatprep.mubr.bf16.mxu0 %v2792_v41 }
 0x2b9   : > { %3008 = vmatmul.mubr.bf16.vlgmr.msra.gmra.mrb[64].mxu0 %v2791_v30  ;;  %v6738_v30 = vld [vmem:[#allocation2 + $0x374] ss:$8 sps:$4 sm:$0xff]  }
 0x2ba   : > { %3499 = vmatpush1.bf16.msra.mxu0 %v6715_v44  ;;  %3664 = vmatpush1.bf16.msra.mxu1 %v6721_v31 }
 0x2bb   : > { %3500 = vmatprep.subr.bf16.mxu0 %v6720_v62  ;;  %3665 = vmatprep.subr.bf16.mxu1 %v6726_v32 }
 0x2bd   : > { %v2657_v57 = vpop.f32.mrb[36].mxu1 }
 0x2be   : > { %v2658_v53 = vadd.f32 %v2657_v57, %v8907_v61  ;;  %v2659_v36 = vpop.f32.mrb[37].mxu1  ;;  %3501 = vmatpush1.bf16.msra.mxu0 %v6718_v50  ;;  %3666 = vmatpush1.bf16.msra.mxu1 %v6724_v45 }
 0x2bf   : > { %v2660_v24 = vadd.f32 %v2659_v36, %v8911_v40  ;;  %v2661_v28 = vpop.f32.mrb[38].mxu1  ;;  %3502 = vmatprep.subr.bf16.mxu0 %v6723_v10  ;;  %3667 = vmatprep.subr.bf16.mxu1 %v6729_v56 }
 0x2c0   : > { %v2662_v12 = vadd.f32 %v2661_v28, %v8907_v61  ;;  %v2663_v42 = vpop.f32.mrb[39].mxu1  ;;  %v2730_v4 = vmax.f32 %v2658_v53, 0.0 }
 0x2c1   : > { %v2664_v43 = vadd.f32 %v2663_v42, %v8911_v40  ;;  %v2731_v63 = vmax.f32 %v2660_v24, 0.0 }
 0x2c2   : > { %v2732_v25 = vmax.f32 %v2662_v12, 0.0  ;;  %3503 = vmatpush1.bf16.msra.mxu0 %v6721_v31  ;;  %3668 = vmatpush1.bf16.msra.mxu1 %v6727_v14 }
 0x2c3   : > { %v2733_v52 = vmax.f32 %v2664_v43, 0.0  ;;  %3504 = vmatprep.subr.bf16.mxu0 %v6726_v32  ;;  %3669 = vmatprep.subr.bf16.mxu1 %v6732_v21 }
 0x2c4   : > { %v3122_v19 = vpack.c.bf16 %v2732_v25, %v2730_v4 }
 0x2c5   : > { %v3123_v20 = vpack.c.bf16 %v2733_v52, %v2731_v63  ;;  %v6741_v52 = vld [vmem:[#allocation2 + $0x384] ss:$8 sps:$4 sm:$0xff]  }
 0x2c6   : > { %3505 = vmatpush1.bf16.msra.mxu0 %v6724_v45  ;;  %3670 = vmatpush1.bf16.msra.mxu1 %v6730_v22 }
 0x2c7   : > { %3178 = vmatprep.mubr.bf16.mxu1 %v3123_v20  ;;  %3506 = vmatprep.subr.bf16.mxu0 %v6729_v56 }
 0x2c8   : > { %3179 = vmatmul.mubr.bf16.gmra.mrb[68].mxu1 %v3122_v19  ;;  %3671 = vmatprep.subr.bf16.mxu1 %v6735_v34 }
 0x2ca   : > { %3507 = vmatpush1.bf16.msra.mxu0 %v6727_v14  ;;  %3672 = vmatpush1.bf16.msra.mxu1 %v6733_v0 }
 0x2cb   : > { %3508 = vmatprep.subr.bf16.mxu0 %v6732_v21  ;;  %3673 = vmatprep.subr.bf16.mxu1 %v6738_v30 }
 0x2ce   : > { %3509 = vmatpush1.bf16.msra.mxu0 %v6730_v22  ;;  %3674 = vmatpush1.bf16.msra.mxu1 %v6736_v29 }
 0x2cf   : > { %3510 = vmatprep.subr.bf16.mxu0 %v6735_v34  ;;  %3675 = vmatprep.subr.bf16.mxu1 %v6741_v52  ;;  %v6744_v34 = vld [vmem:[#allocation2 + $0x394] ss:$8 sps:$4 sm:$0xff]  }
 0x2d2   : > { %3511 = vmatpush1.bf16.msra.mxu0 %v6733_v0 }
 0x2d3   : > { %3512 = vmatprep.subr.bf16.mxu0 %v6738_v30  ;;  %v6747_v30 = vld [vmem:[#allocation2 + $0x3a4] ss:$8 sps:$4 sm:$0xff]  }
 0x2d6   : > { %3513 = vmatpush1.bf16.msra.mxu0 %v6736_v29 }
 0x2d7   : > { %3514 = vmatprep.subr.bf16.mxu0 %v6741_v52 }
 0x2e7   : > { %v2496_v46 = vpop.f32.mrb[36].mxu0 }
 0x2e8   : > { %v2497_v49 = vadd.f32 %v2496_v46, %v8907_v61  ;;  %v2498_v7 = vpop.f32.mrb[37].mxu0  ;;  %v6739_v46 = vld [vmem:[#allocation2 + $0x380] ss:$8 sps:$4 sm:$0xff]  }
 0x2e9   : > { %v2499_v26 = vadd.f32 %v2498_v7, %v8911_v40  ;;  %v2500_v1 = vpop.f32.mrb[38].mxu0  ;;  %3676 = vmatpush1.bf16.msra.mxu1 %v6739_v46  ;;  %3515 = vmatpush1.bf16.msra.mxu0 %v6739_v46  ;;  %v6751_v46 = vld [vmem:[#allocation2 + $0x3c0] ss:$8 sps:$4 sm:$0xff]  }
 0x2ea   : > { %v2501_v58 = vadd.f32 %v2500_v1, %v8907_v61  ;;  %v2502_v27 = vpop.f32.mrb[39].mxu0  ;;  %v2569_v11 = vmax.f32 %v2497_v49, 0.0  ;;  %3677 = vmatprep.subr.bf16.mxu1 %v6744_v34  ;;  %3516 = vmatprep.subr.bf16.mxu0 %v6744_v34  ;;  %v6760_v34 = vld [vmem:[#allocation2 + $0x3f0] ss:$8 sps:$4 sm:$0xff]  }
 0x2eb   : > { %v2503_v16 = vadd.f32 %v2502_v27, %v8911_v40  ;;  %v2570_v60 = vmax.f32 %v2499_v26, 0.0 }
 0x2ec   : > { %v2571_v9 = vmax.f32 %v2501_v58, 0.0 }
 0x2ed   : > { %v2572_v35 = vmax.f32 %v2503_v16, 0.0  ;;  %v2667_v57 = vpop.f32.mrb[40].mxu1 }
 0x2ee   : > { %v2793_v41 = vpack.c.bf16 %v2571_v9, %v2569_v11  ;;  %v2668_v24 = vadd.f32 %v2667_v57, %v8907_v61  ;;  %v2669_v28 = vpop.f32.mrb[41].mxu1  ;;  %v6742_v9 = vld [vmem:[#allocation2 + $0x390] ss:$8 sps:$4 sm:$0xff]  }
 0x2ef   : > { %v2794_v53 = vpack.c.bf16 %v2572_v35, %v2570_v60  ;;  %v2506_v36 = vpop.f32.mrb[40].mxu0  ;;  %v2670_v43 = vadd.f32 %v2669_v28, %v8911_v40  ;;  %v2671_v44 = vpop.f32.mrb[42].mxu1  ;;  %3678 = vmatpush1.bf16.msra.mxu1 %v6742_v9  ;;  %3517 = vmatpush1.bf16.msra.mxu0 %v6742_v9 }
 0x2f0   : > { %v2507_v12 = vadd.f32 %v2506_v36, %v8907_v61  ;;  %v2508_v42 = vpop.f32.mrb[41].mxu0  ;;  %v2672_v62 = vadd.f32 %v2671_v44, %v8907_v61  ;;  %v2673_v63 = vpop.f32.mrb[43].mxu1  ;;  %v2734_v31 = vmax.f32 %v2668_v24, 0.0  ;;  %3679 = vmatprep.subr.bf16.mxu1 %v6747_v30  ;;  %3518 = vmatprep.subr.bf16.mxu0 %v6747_v30 }
 0x2f1   : > { %v2509_v4 = vadd.f32 %v2508_v42, %v8911_v40  ;;  %v2510_v25 = vpop.f32.mrb[42].mxu0  ;;  %3017 = vmatprep.mubr.bf16.mxu0 %v2794_v53  ;;  %v2674_v50 = vadd.f32 %v2673_v63, %v8911_v40  ;;  %v2735_v14 = vmax.f32 %v2670_v43, 0.0 }
 0x2f2   : > { %v2511_v19 = vadd.f32 %v2510_v25, %v8907_v61  ;;  %v2512_v20 = vpop.f32.mrb[43].mxu0  ;;  %3018 = vmatmul.mubr.bf16.gmra.mrb[68].mxu0 %v2793_v41  ;;  %v2736_v10 = vmax.f32 %v2672_v62, 0.0  ;;  %v2573_v45 = vmax.f32 %v2507_v12, 0.0 }
 0x2f3   : > { %v2513_v32 = vadd.f32 %v2512_v20, %v8911_v40  ;;  %v2737_v21 = vmax.f32 %v2674_v50, 0.0  ;;  %v2574_v49 = vmax.f32 %v2509_v4, 0.0  ;;  %v6745_v4 = vld [vmem:[#allocation2 + $0x3a0] ss:$8 sps:$4 sm:$0xff]  }
 0x2f4   : > { %v2575_v56 = vmax.f32 %v2511_v19, 0.0  ;;  %v3124_v7 = vpack.c.bf16 %v2736_v10, %v2734_v31  ;;  %3680 = vmatpush1.bf16.msra.mxu1 %v6745_v4  ;;  %3519 = vmatpush1.bf16.msra.mxu0 %v6745_v4 }
 0x2f5   : > { %v2576_v22 = vmax.f32 %v2513_v32, 0.0  ;;  %v3125_v1 = vpack.c.bf16 %v2737_v21, %v2735_v14  ;;  %v6750_v14 = vld [vmem:[#allocation2 + $0x3b4] ss:$8 sps:$4 sm:$0xff]   ;;  %v6753_v21 = vld [vmem:[#allocation2 + $0x3c4] ss:$8 sps:$4 sm:$0xff]  }
 0x2f6   : > { %v2795_v26 = vpack.c.bf16 %v2575_v56, %v2573_v45  ;;  %v6748_v56 = vld [vmem:[#allocation2 + $0x3b0] ss:$8 sps:$4 sm:$0xff]   ;;  %3681 = vmatprep.subr.bf16.mxu1 %v6750_v14  ;;  %3520 = vmatprep.subr.bf16.mxu0 %v6750_v14 }
 0x2f7   : > { %v2796_v58 = vpack.c.bf16 %v2576_v22, %v2574_v49  ;;  %v2516_v27 = vpop.f32.mrb[44].mxu0  ;;  %3188 = vmatprep.mubr.bf16.mxu1 %v3125_v1  ;;  %v6756_v49 = vld [vmem:[#allocation2 + $0x3d4] ss:$8 sps:$4 sm:$0xff]   ;;  %v6759_v22 = vld [vmem:[#allocation2 + $0x3e4] ss:$8 sps:$4 sm:$0xff]  }
 0x2f8   : > { %v2517_v16 = vadd.f32 %v2516_v27, %v8907_v61  ;;  %v2518_v11 = vpop.f32.mrb[45].mxu0  ;;  %3189 = vmatmul.mubr.bf16.gmra.mrb[72].mxu1 %v3124_v7  ;;  %v2677_v35 = vpop.f32.mrb[44].mxu1  ;;  %3521 = vmatpush1.bf16.msra.mxu0 %v6748_v56  ;;  %v6754_v7 = vld [vmem:[#allocation2 + $0x3d0] ss:$8 sps:$4 sm:$0xff]   ;;  %v6762_v1 = vld [vmem:[#allocation2 + $0x3f4] ss:$8 sps:$4 sm:$0xff]  }
 0x2f9   : > { %3027 = vmatprep.mubr.bf16.mxu0 %v2796_v58  ;;  %v2519_v0 = vadd.f32 %v2518_v11, %v8911_v40  ;;  %v2520_v60 = vpop.f32.mrb[46].mxu0  ;;  %v2678_v53 = vadd.f32 %v2677_v35, %v8907_v61  ;;  %v2679_v36 = vpop.f32.mrb[45].mxu1  ;;  %3682 = vmatpush1.bf16.msra.mxu1 %v6748_v56 }
 0x2fa   : > { %3028 = vmatmul.mubr.bf16.gmra.mrb[72].mxu0 %v2795_v26  ;;  %v2521_v41 = vadd.f32 %v2520_v60, %v8907_v61  ;;  %v2522_v57 = vpop.f32.mrb[47].mxu0  ;;  %v2680_v28 = vadd.f32 %v2679_v36, %v8911_v40  ;;  %v2681_v12 = vpop.f32.mrb[46].mxu1  ;;  %v2577_v42 = vmax.f32 %v2517_v16, 0.0  ;;  %3683 = vmatprep.subr.bf16.mxu1 %v6753_v21  ;;  %v6757_v26 = vld [vmem:[#allocation2 + $0x3e0] ss:$8 sps:$4 sm:$0xff]  }
 0x2fb   : > { %v2523_v24 = vadd.f32 %v2522_v57, %v8911_v40  ;;  %v2682_v44 = vadd.f32 %v2681_v12, %v8907_v61  ;;  %v2683_v29 = vpop.f32.mrb[47].mxu1  ;;  %v2578_v25 = vmax.f32 %v2519_v0, 0.0  ;;  %v2738_v19 = vmax.f32 %v2678_v53, 0.0  ;;  %3522 = vmatprep.subr.bf16.mxu0 %v6753_v21 }
 0x2fc   : > { %v2579_v43 = vmax.f32 %v2521_v41, 0.0  ;;  %v2684_v63 = vadd.f32 %v2683_v29, %v8911_v40  ;;  %v2739_v31 = vmax.f32 %v2680_v28, 0.0  ;;  %3523 = vmatpush1.bf16.msra.mxu0 %v6751_v46 }
 0x2fd   : > { %v2580_v62 = vmax.f32 %v2523_v24, 0.0  ;;  %v2740_v20 = vmax.f32 %v2682_v44, 0.0  ;;  %3684 = vmatpush1.bf16.msra.mxu1 %v6751_v46  ;;  %3524 = vmatprep.subr.bf16.mxu0 %v6756_v49 }
 0x2fe   : > { %v2797_v52 = vpack.c.bf16 %v2579_v43, %v2577_v42  ;;  %v2741_v10 = vmax.f32 %v2684_v63, 0.0  ;;  %3685 = vmatprep.subr.bf16.mxu1 %v6756_v49 }
 0x2ff   : > { %v2798_v50 = vpack.c.bf16 %v2580_v62, %v2578_v25  ;;  %v3126_v32 = vpack.c.bf16 %v2740_v20, %v2738_v19 }
 0x300   : > { %v3127_v45 = vpack.c.bf16 %v2741_v10, %v2739_v31  ;;  %3525 = vmatpush1.bf16.msra.mxu0 %v6754_v7 }
 0x301   : > { %3037 = vmatprep.mubr.bf16.mxu0 %v2798_v50  ;;  %3686 = vmatpush1.bf16.msra.mxu1 %v6754_v7 }
 0x302   : > { %3038 = vmatmul.mubr.bf16.gmra.mrb[76].mxu0 %v2797_v52  ;;  %3198 = vmatprep.mubr.bf16.mxu1 %v3127_v45 }
 0x303   : > { %3199 = vmatmul.mubr.bf16.gmra.mrb[76].mxu1 %v3126_v32  ;;  %3687 = vmatprep.subr.bf16.mxu1 %v6759_v22 }
 0x304   : > { %3526 = vmatprep.subr.bf16.mxu0 %v6759_v22 }
 0x305   : > { %3688 = vmatpush1.bf16.msra.mxu1 %v6757_v26  ;;  %3527 = vmatpush1.bf16.msra.mxu0 %v6757_v26 }
 0x306   : > { %3689 = vmatprep.subr.bf16.mxu1 %v6762_v1  ;;  %3528 = vmatprep.subr.bf16.mxu0 %v6762_v1 }
 0x309   : > { %3690 = vmatpush1.bf16.msra.mxu1 %v6760_v34  ;;  %3529 = vmatpush1.bf16.msra.mxu0 %v6760_v34 }
 0x315   : > { %v2526_v58 = vpop.f32.mrb[48].mxu0 }
 0x316   : > { %v2527_v27 = vadd.f32 %v2526_v58, %v8907_v61  ;;  %v2528_v16 = vpop.f32.mrb[49].mxu0 }
 0x317   : > { %v2529_v11 = vadd.f32 %v2528_v16, %v8911_v40  ;;  %v2530_v9 = vpop.f32.mrb[50].mxu0 }
 0x318   : > { %v2531_v0 = vadd.f32 %v2530_v9, %v8907_v61  ;;  %v2532_v60 = vpop.f32.mrb[51].mxu0  ;;  %v2581_v30 = vmax.f32 %v2527_v27, 0.0 }
 0x319   : > { %v2533_v35 = vadd.f32 %v2532_v60, %v8911_v40  ;;  %v2582_v57 = vmax.f32 %v2529_v11, 0.0 }
 0x31a   : > { %v2583_v41 = vmax.f32 %v2531_v0, 0.0 }
 0x31b   : > { %v2584_v53 = vmax.f32 %v2533_v35, 0.0 }
 0x31c   : > { %v2799_v36 = vpack.c.bf16 %v2583_v41, %v2581_v30 }
 0x31d   : > { %v2800_v24 = vpack.c.bf16 %v2584_v53, %v2582_v57  ;;  %v2687_v28 = vpop.f32.mrb[48].mxu1 }
 0x31e   : > { %v2688_v12 = vadd.f32 %v2687_v28, %v8907_v61  ;;  %v2689_v42 = vpop.f32.mrb[49].mxu1 }
 0x31f   : > { %v2690_v43 = vadd.f32 %v2689_v42, %v8911_v40  ;;  %v2691_v44 = vpop.f32.mrb[50].mxu1  ;;  %3047 = vmatprep.mubr.bf16.mxu0 %v2800_v24 }
 0x320   : > { %v2692_v29 = vadd.f32 %v2691_v44, %v8907_v61  ;;  %v2693_v4 = vpop.f32.mrb[51].mxu1  ;;  %3048 = vmatmul.mubr.bf16.gmra.mrb[80].mxu0 %v2799_v36  ;;  %v2742_v62 = vmax.f32 %v2688_v12, 0.0 }
 0x321   : > { %v2694_v25 = vadd.f32 %v2693_v4, %v8911_v40  ;;  %v2743_v52 = vmax.f32 %v2690_v43, 0.0 }
 0x322   : > { %v2744_v63 = vmax.f32 %v2692_v29, 0.0 }
 0x323   : > { %v2745_v19 = vmax.f32 %v2694_v25, 0.0 }
 0x324   : > { %v3128_v20 = vpack.c.bf16 %v2744_v63, %v2742_v62 }
 0x325   : > { %v3129_v50 = vpack.c.bf16 %v2745_v19, %v2743_v52 }
 0x327   : > { %3208 = vmatprep.mubr.bf16.mxu1 %v3129_v50 }
 0x328   : > { %3209 = vmatmul.mubr.bf16.gmra.mrb[80].mxu1 %v3128_v20 }
 0x339   : > { %v2536_v31 = vpop.f32.mrb[52].mxu0 }
 0x33a   : > { %v2537_v10 = vadd.f32 %v2536_v31, %v8907_v61  ;;  %v2538_v32 = vpop.f32.mrb[53].mxu0 }
 0x33b   : > { %v2539_v45 = vadd.f32 %v2538_v32, %v8911_v40  ;;  %v2540_v14 = vpop.f32.mrb[54].mxu0 }
 0x33c   : > { %v2541_v56 = vadd.f32 %v2540_v14, %v8907_v61  ;;  %v2542_v21 = vpop.f32.mrb[55].mxu0  ;;  %v2585_v7 = vmax.f32 %v2537_v10, 0.0 }
 0x33d   : > { %v2543_v46 = vadd.f32 %v2542_v21, %v8911_v40  ;;  %v2697_v49 = vpop.f32.mrb[52].mxu1  ;;  %v2586_v34 = vmax.f32 %v2539_v45, 0.0 }
 0x33e   : > { %v2587_v22 = vmax.f32 %v2541_v56, 0.0  ;;  %v2698_v26 = vadd.f32 %v2697_v49, %v8907_v61  ;;  %v2699_v1 = vpop.f32.mrb[53].mxu1 }
 0x33f   : > { %v2588_v58 = vmax.f32 %v2543_v46, 0.0  ;;  %v2700_v27 = vadd.f32 %v2699_v1, %v8911_v40  ;;  %v2701_v16 = vpop.f32.mrb[54].mxu1 }
 0x340   : > { %v2801_v11 = vpack.c.bf16 %v2587_v22, %v2585_v7  ;;  %v2702_v9 = vadd.f32 %v2701_v16, %v8907_v61  ;;  %v2703_v0 = vpop.f32.mrb[55].mxu1  ;;  %v2746_v30 = vmax.f32 %v2698_v26, 0.0 }
 0x341   : > { %v2802_v60 = vpack.c.bf16 %v2588_v58, %v2586_v34  ;;  %v2704_v35 = vadd.f32 %v2703_v0, %v8911_v40  ;;  %v2747_v57 = vmax.f32 %v2700_v27, 0.0 }
 0x342   : > { %v2748_v41 = vmax.f32 %v2702_v9, 0.0 }
 0x343   : > { %v2749_v53 = vmax.f32 %v2704_v35, 0.0  ;;  %3057 = vmatprep.mubr.bf16.mxu0 %v2802_v60 }
 0x344   : > { %v3130_v36 = vpack.c.bf16 %v2748_v41, %v2746_v30  ;;  %3058 = vmatmul.mubr.bf16.gmra.mrb[84].mxu0 %v2801_v11 }
 0x345   : > { %v3131_v24 = vpack.c.bf16 %v2749_v53, %v2747_v57  ;;  %v9853_v53 = vld [vmem:[#allocation10_spill] sm:$0xff] }
 0x347   : > { %3218 = vmatprep.mubr.bf16.mxu1 %v3131_v24 }
 0x348   : > { %3219 = vmatmul.mubr.bf16.gmra.mrb[84].mxu1 %v3130_v36  ;;  %v2809_v36 = vsub.s32 3, %v9853_v53 }
 0x352   : > { %v2546_v28 = vpop.f32.mrb[56].mxu0 }
 0x353   : > { %v2547_v12 = vadd.f32 %v2546_v28, %v8907_v61  ;;  %v2548_v42 = vpop.f32.mrb[57].mxu0 }
 0x354   : > { %v2549_v43 = vadd.f32 %v2548_v42, %v8911_v40  ;;  %v2550_v44 = vpop.f32.mrb[58].mxu0 }
 0x355   : > { %v2551_v29 = vadd.f32 %v2550_v44, %v8907_v61  ;;  %v2552_v4 = vpop.f32.mrb[59].mxu0  ;;  %v2589_v62 = vmax.f32 %v2547_v12, 0.0 }
 0x356   : > { %v2553_v25 = vadd.f32 %v2552_v4, %v8911_v40  ;;  %v2590_v52 = vmax.f32 %v2549_v43, 0.0 }
 0x357   : > { %v2591_v63 = vmax.f32 %v2551_v29, 0.0 }
 0x358   : > { %v2592_v19 = vmax.f32 %v2553_v25, 0.0 }
 0x359   : > { %v2803_v20 = vpack.c.bf16 %v2591_v63, %v2589_v62 }
 0x35a   : > { %v2804_v50 = vpack.c.bf16 %v2592_v19, %v2590_v52 }
 0x35b   : > { %v2707_v31 = vpop.f32.mrb[56].mxu1 }
 0x35c   : > { %v2708_v10 = vadd.f32 %v2707_v31, %v8907_v61  ;;  %v2709_v32 = vpop.f32.mrb[57].mxu1  ;;  %3067 = vmatprep.mubr.bf16.mxu0 %v2804_v50 }
 0x35d   : > { %v2710_v45 = vadd.f32 %v2709_v32, %v8911_v40  ;;  %v2711_v14 = vpop.f32.mrb[58].mxu1  ;;  %3068 = vmatmul.mubr.bf16.gmra.mrb[88].mxu0 %v2803_v20  ;;  %v8981_v20 = vld [vmem:[%s9556_s3] sm:$0xff] }
 0x35e   : > { %v2712_v56 = vadd.f32 %v2711_v14, %v8907_v61  ;;  %v2713_v21 = vpop.f32.mrb[59].mxu1  ;;  %v2750_v49 = vmax.f32 %v2708_v10, 0.0  ;;  %v8984_v50 = vrot.slane %v8981_v20, %v2809_v36 }
 0x35f   : > { %v2714_v46 = vadd.f32 %v2713_v21, %v8911_v40  ;;  %v2751_v22 = vmax.f32 %v2710_v45, 0.0 }
 0x360   : > { %v2752_v7 = vmax.f32 %v2712_v56, 0.0 }
 0x361   : > { %v2753_v26 = vmax.f32 %v2714_v46, 0.0 }
 0x362   : > { %v3132_v1 = vpack.c.bf16 %v2752_v7, %v2750_v49 }
 0x363   : > { %v3133_v34 = vpack.c.bf16 %v2753_v26, %v2751_v22 }
 0x365   : > { %3228 = vmatprep.mubr.bf16.mxu1 %v3133_v34 }
 0x366   : > { %3229 = vmatmul.mubr.bf16.gmra.mrb[88].mxu1 %v3132_v1 }
 0x379   : > { %v2556_v58 = vpop.f32.mrb[60].mxu0 }
 0x37a   : > { %v2557_v27 = vadd.f32 %v2556_v58, %v8907_v61  ;;  %v2558_v16 = vpop.f32.mrb[61].mxu0 }
 0x37b   : > { %v2559_v11 = vadd.f32 %v2558_v16, %v8911_v40  ;;  %v2560_v9 = vpop.f32.mrb[62].mxu0 }
 0x37c   : > { %v2561_v0 = vadd.f32 %v2560_v9, %v8907_v61  ;;  %v2562_v60 = vpop.f32.mrb[63].mxu0  ;;  %v2717_v35 = vpop.f32.mrb[60].mxu1  ;;  %v2593_v24 = vmax.f32 %v2557_v27, 0.0 }
 0x37d   : > { %v2563_v30 = vadd.f32 %v2562_v60, %v8911_v40  ;;  %v2718_v41 = vadd.f32 %v2717_v35, %v8907_v61  ;;  %v2719_v57 = vpop.f32.mrb[61].mxu1  ;;  %v2594_v43 = vmax.f32 %v2559_v11, 0.0 }
 0x37e   : > { %v2595_v28 = vmax.f32 %v2561_v0, 0.0  ;;  %v2720_v12 = vadd.f32 %v2719_v57, %v8911_v40  ;;  %v2721_v42 = vpop.f32.mrb[62].mxu1 }
 0x37f   : > { %v2596_v44 = vmax.f32 %v2563_v30, 0.0  ;;  %v2722_v29 = vadd.f32 %v2721_v42, %v8907_v61  ;;  %v2723_v4 = vpop.f32.mrb[63].mxu1  ;;  %v2754_v52 = vmax.f32 %v2718_v41, 0.0  ;;  %v8989_v61 = vld [vmem:[%s9556_s3 + $0x8] sm:$0xff] }
 0x380   : > { %v2805_v25 = vpack.c.bf16 %v2595_v28, %v2593_v24  ;;  %v2724_v62 = vadd.f32 %v2723_v4, %v8911_v40  ;;  %v2755_v31 = vmax.f32 %v2720_v12, 0.0  ;;  %v8992_v40 = vrot.slane %v8989_v61, %v2809_v36 }
 0x381   : > { %v2806_v63 = vpack.c.bf16 %v2596_v44, %v2594_v43  ;;  %v2756_v19 = vmax.f32 %v2722_v29, 0.0 }
 0x382   : > { %v2757_v10 = vmax.f32 %v2724_v62, 0.0 }
 0x383   : > { %v3134_v32 = vpack.c.bf16 %v2756_v19, %v2754_v52  ;;  %3077 = vmatprep.mubr.bf16.mxu0 %v2806_v63 }
 0x384   : > { %v3135_v45 = vpack.c.bf16 %v2757_v10, %v2755_v31  ;;  %3078 = vmatmul.mubr.bf16.gmra.mrb[92].mxu0 %v2805_v25  ;;  %v3170_v14 = vpop.f32.mrb[64].mxu1  ;;  %v6763_v10 = vld [vmem:[#allocation2 + $0x400] ss:$8 sps:$4 sm:$0xff]  }
 0x385   : > { %v3171_v56 = vadd.f32 %v3170_v14, %v8984_v50  ;;  %v3172_v21 = vpop.f32.mrb[65].mxu1 }
 0x386   : > { %v3173_v46 = vadd.f32 %v3172_v21, %v8992_v40  ;;  %v3174_v49 = vpop.f32.mrb[66].mxu1  ;;  %3238 = vmatprep.mubr.bf16.mxu1 %v3135_v45 }
 0x387   : > { %v3175_v7 = vadd.f32 %v3174_v49, %v8984_v50  ;;  %v3176_v22 = vpop.f32.mrb[67].mxu1  ;;  %3239 = vmatmul.mubr.bf16.gmra.mrb[92].mxu1 %v3134_v32  ;;  %v3249_v1 = vmax.f32 %v3171_v56, 0.0  ;;  %v6765_v32 = vld [vmem:[#allocation2 + $0x404] ss:$8 sps:$4 sm:$0xff]   ;;  %v6768_v56 = vld [vmem:[#allocation2 + $0x414] ss:$8 sps:$4 sm:$0xff]  }
 0x388   : > { %v3177_v26 = vadd.f32 %v3176_v22, %v8992_v40  ;;  %v3250_v58 = vmax.f32 %v3173_v46, 0.0  ;;  %4174 = vmatprep.subr.bf16.mxu1 %v6765_v32  ;;  %4013 = vmatprep.subr.bf16.mxu0 %v6765_v32  ;;  %v6766_v22 = vld [vmem:[#allocation2 + $0x410] ss:$8 sps:$4 sm:$0xff]  }
 0x389   : > { %v3251_v34 = vmax.f32 %v3175_v7, 0.0 }
 0x38a   : > { %v3252_v27 = vmax.f32 %v3177_v26, 0.0  ;;  %v6769_v26 = vld [vmem:[#allocation2 + $0x420] ss:$8 sps:$4 sm:$0xff]  }
 0x38b   : > { %v3643_v16 = vpack.c.bf16 %v3251_v34, %v3249_v1  ;;  %v6771_v1 = vld [vmem:[#allocation2 + $0x424] ss:$8 sps:$4 sm:$0xff]   ;;  %v6774_v34 = vld [vmem:[#allocation2 + $0x434] ss:$8 sps:$4 sm:$0xff]  }
 0x38c   : > { %v3644_v11 = vpack.c.bf16 %v3252_v27, %v3250_v58  ;;  %v3009_v9 = vpop.f32.mrb[64].mxu0  ;;  %v6772_v58 = vld [vmem:[#allocation2 + $0x430] ss:$8 sps:$4 sm:$0xff]   ;;  %v6775_v27 = vld [vmem:[#allocation2 + $0x440] ss:$8 sps:$4 sm:$0xff]  }
 0x38d   : > { %v3010_v0 = vadd.f32 %v3009_v9, %v8984_v50  ;;  %v3011_v60 = vpop.f32.mrb[65].mxu0 }
 0x38e   : > { %3691 = vmatprep.mubr.bf16.mxu1 %v3644_v11  ;;  %v3012_v35 = vadd.f32 %v3011_v60, %v8992_v40  ;;  %v3013_v30 = vpop.f32.mrb[66].mxu0  ;;  %v6780_v11 = vld [vmem:[#allocation2 + $0x454] ss:$8 sps:$4 sm:$0xff]  }
 0x38f   : > { %3692 = vmatmul.mubr.bf16.vlgmr.msra.gmra.mrb[96].mxu1 %v3643_v16  ;;  %v3014_v41 = vadd.f32 %v3013_v30, %v8984_v50  ;;  %v3015_v57 = vpop.f32.mrb[67].mxu0  ;;  %v3088_v24 = vmax.f32 %v3010_v0, 0.0  ;;  %v6777_v16 = vld [vmem:[#allocation2 + $0x444] ss:$8 sps:$4 sm:$0xff]  }
 0x390   : > { %v3016_v36 = vadd.f32 %v3015_v57, %v8992_v40  ;;  %v3089_v12 = vmax.f32 %v3012_v35, 0.0  ;;  %4175 = vmatpush1.bf16.msra.mxu1 %v6763_v10  ;;  %v6778_v35 = vld [vmem:[#allocation2 + $0x450] ss:$8 sps:$4 sm:$0xff]   ;;  %v6783_v57 = vld [vmem:[#allocation2 + $0x464] ss:$8 sps:$4 sm:$0xff]  }
 0x391   : > { %v3090_v28 = vmax.f32 %v3014_v41, 0.0  ;;  %4176 = vmatprep.subr.bf16.mxu1 %v6768_v56 }
 0x392   : > { %v3091_v42 = vmax.f32 %v3016_v36, 0.0 }
 0x393   : > { %v3314_v43 = vpack.c.bf16 %v3090_v28, %v3088_v24 }
 0x394   : > { %v3315_v44 = vpack.c.bf16 %v3091_v42, %v3089_v12  ;;  %4177 = vmatpush1.bf16.msra.mxu1 %v6766_v22 }
 0x395   : > { %4178 = vmatprep.subr.bf16.mxu1 %v6771_v1 }
 0x396   : > { %3530 = vmatprep.mubr.bf16.mxu0 %v3315_v44 }
 0x397   : > { %3531 = vmatmul.mubr.bf16.vlgmr.msra.gmra.mrb[96].mxu0 %v3314_v43  ;;  %v6781_v43 = vld [vmem:[#allocation2 + $0x460] ss:$8 sps:$4 sm:$0xff]  }
 0x398   : > { %4014 = vmatpush1.bf16.msra.mxu0 %v6763_v10  ;;  %4179 = vmatpush1.bf16.msra.mxu1 %v6769_v26 }
 0x399   : > { %4015 = vmatprep.subr.bf16.mxu0 %v6768_v56  ;;  %4180 = vmatprep.subr.bf16.mxu1 %v6774_v34  ;;  %v6784_v56 = vld [vmem:[#allocation2 + $0x470] ss:$8 sps:$4 sm:$0xff]  }
 0x39b   : > { %v3180_v29 = vpop.f32.mrb[68].mxu1 }
 0x39c   : > { %v3181_v4 = vadd.f32 %v3180_v29, %v8984_v50  ;;  %v3182_v25 = vpop.f32.mrb[69].mxu1  ;;  %4016 = vmatpush1.bf16.msra.mxu0 %v6766_v22  ;;  %4181 = vmatpush1.bf16.msra.mxu1 %v6772_v58  ;;  %v6789_v22 = vld [vmem:[#allocation2 + $0x484] ss:$8 sps:$4 sm:$0xff]  }
 0x39d   : > { %v3183_v62 = vadd.f32 %v3182_v25, %v8992_v40  ;;  %v3184_v63 = vpop.f32.mrb[70].mxu1  ;;  %4017 = vmatprep.subr.bf16.mxu0 %v6771_v1  ;;  %4182 = vmatprep.subr.bf16.mxu1 %v6777_v16 }
 0x39e   : > { %v3185_v52 = vadd.f32 %v3184_v63, %v8984_v50  ;;  %v3186_v19 = vpop.f32.mrb[71].mxu1  ;;  %v3253_v45 = vmax.f32 %v3181_v4, 0.0  ;;  %v6786_v4 = vld [vmem:[#allocation2 + $0x474] ss:$8 sps:$4 sm:$0xff]  }
 0x39f   : > { %v3187_v31 = vadd.f32 %v3186_v19, %v8992_v40  ;;  %v3254_v21 = vmax.f32 %v3183_v62, 0.0 }
 0x3a0   : > { %v3255_v14 = vmax.f32 %v3185_v52, 0.0  ;;  %4018 = vmatpush1.bf16.msra.mxu0 %v6769_v26  ;;  %4183 = vmatpush1.bf16.msra.mxu1 %v6775_v27 }
 0x3a1   : > { %v3256_v46 = vmax.f32 %v3187_v31, 0.0  ;;  %4019 = vmatprep.subr.bf16.mxu0 %v6774_v34  ;;  %4184 = vmatprep.subr.bf16.mxu1 %v6780_v11 }
 0x3a2   : > { %v3645_v49 = vpack.c.bf16 %v3255_v14, %v3253_v45 }
 0x3a3   : > { %v3646_v7 = vpack.c.bf16 %v3256_v46, %v3254_v21 }
 0x3a4   : > { %4020 = vmatpush1.bf16.msra.mxu0 %v6772_v58  ;;  %4185 = vmatpush1.bf16.msra.mxu1 %v6778_v35 }
 0x3a5   : > { %3701 = vmatprep.mubr.bf16.mxu1 %v3646_v7  ;;  %4021 = vmatprep.subr.bf16.mxu0 %v6777_v16 }
 0x3a6   : > { %3702 = vmatmul.mubr.bf16.gmra.mrb[100].mxu1 %v3645_v49  ;;  %4186 = vmatprep.subr.bf16.mxu1 %v6783_v57 }
 0x3a8   : > { %4022 = vmatpush1.bf16.msra.mxu0 %v6775_v27  ;;  %4187 = vmatpush1.bf16.msra.mxu1 %v6781_v43 }
 0x3a9   : > { %4023 = vmatprep.subr.bf16.mxu0 %v6780_v11  ;;  %4188 = vmatprep.subr.bf16.mxu1 %v6786_v4 }
 0x3ac   : > { %4024 = vmatpush1.bf16.msra.mxu0 %v6778_v35  ;;  %4189 = vmatpush1.bf16.msra.mxu1 %v6784_v56  ;;  %v6787_v35 = vld [vmem:[#allocation2 + $0x480] ss:$8 sps:$4 sm:$0xff]  }
 0x3ad   : > { %4025 = vmatprep.subr.bf16.mxu0 %v6783_v57  ;;  %4190 = vmatprep.subr.bf16.mxu1 %v6789_v22 }
 0x3b0   : > { %4026 = vmatpush1.bf16.msra.mxu0 %v6781_v43  ;;  %4191 = vmatpush1.bf16.msra.mxu1 %v6787_v35 }
 0x3b1   : > { %4027 = vmatprep.subr.bf16.mxu0 %v6786_v4 }
 0x3b4   : > { %4028 = vmatpush1.bf16.msra.mxu0 %v6784_v56 }
 0x3b5   : > { %4029 = vmatprep.subr.bf16.mxu0 %v6789_v22 }
 0x3b8   : > { %4030 = vmatpush1.bf16.msra.mxu0 %v6787_v35  ;;  %v6798_v35 = vld [vmem:[#allocation2 + $0x4b4] ss:$8 sps:$4 sm:$0xff]  }
 0x3c5   : > { %v3019_v9 = vpop.f32.mrb[68].mxu0 }
 0x3c6   : > { %v3020_v0 = vadd.f32 %v3019_v9, %v8984_v50  ;;  %v3021_v60 = vpop.f32.mrb[69].mxu0 }
 0x3c7   : > { %v3022_v30 = vadd.f32 %v3021_v60, %v8992_v40  ;;  %v3023_v41 = vpop.f32.mrb[70].mxu0 }
 0x3c8   : > { %v3024_v36 = vadd.f32 %v3023_v41, %v8984_v50  ;;  %v3025_v24 = vpop.f32.mrb[71].mxu0  ;;  %v3092_v12 = vmax.f32 %v3020_v0, 0.0 }
 0x3c9   : > { %v3026_v28 = vadd.f32 %v3025_v24, %v8992_v40  ;;  %v3093_v44 = vmax.f32 %v3022_v30, 0.0 }
 0x3ca   : > { %v3094_v42 = vmax.f32 %v3024_v36, 0.0 }
 0x3cb   : > { %v3095_v29 = vmax.f32 %v3026_v28, 0.0  ;;  %v3190_v62 = vpop.f32.mrb[72].mxu1  ;;  %v6792_v28 = vld [vmem:[#allocation2 + $0x494] ss:$8 sps:$4 sm:$0xff]  }
 0x3cc   : > { %v3316_v25 = vpack.c.bf16 %v3094_v42, %v3092_v12  ;;  %v3191_v19 = vadd.f32 %v3190_v62, %v8984_v50  ;;  %v3192_v31 = vpop.f32.mrb[73].mxu1  ;;  %4192 = vmatprep.subr.bf16.mxu1 %v6792_v28  ;;  %4031 = vmatprep.subr.bf16.mxu0 %v6792_v28  ;;  %v6807_v28 = vld [vmem:[#allocation2 + $0x4e4] ss:$8 sps:$4 sm:$0xff]  }
 0x3cd   : > { %v3317_v63 = vpack.c.bf16 %v3095_v29, %v3093_v44  ;;  %v3029_v52 = vpop.f32.mrb[72].mxu0  ;;  %v3193_v45 = vadd.f32 %v3192_v31, %v8992_v40  ;;  %v3194_v14 = vpop.f32.mrb[74].mxu1  ;;  %v6790_v29 = vld [vmem:[#allocation2 + $0x490] ss:$8 sps:$4 sm:$0xff]  }
 0x3ce   : > { %v3030_v10 = vadd.f32 %v3029_v52, %v8984_v50  ;;  %v3031_v32 = vpop.f32.mrb[73].mxu0  ;;  %v3195_v49 = vadd.f32 %v3194_v14, %v8984_v50  ;;  %v3196_v7 = vpop.f32.mrb[75].mxu1  ;;  %v3257_v58 = vmax.f32 %v3191_v19, 0.0  ;;  %4193 = vmatpush1.bf16.msra.mxu1 %v6790_v29  ;;  %4032 = vmatpush1.bf16.msra.mxu0 %v6790_v29 }
 0x3cf   : > { %v3032_v21 = vadd.f32 %v3031_v32, %v8992_v40  ;;  %v3033_v46 = vpop.f32.mrb[74].mxu0  ;;  %3540 = vmatprep.mubr.bf16.mxu0 %v3317_v63  ;;  %v3197_v34 = vadd.f32 %v3196_v7, %v8992_v40  ;;  %v3258_v9 = vmax.f32 %v3193_v45, 0.0  ;;  %v6795_v63 = vld [vmem:[#allocation2 + $0x4a4] ss:$8 sps:$4 sm:$0xff]   ;;  %v6793_v7 = vld [vmem:[#allocation2 + $0x4a0] ss:$8 sps:$4 sm:$0xff]  }
 0x3d0   : > { %v3034_v26 = vadd.f32 %v3033_v46, %v8984_v50  ;;  %v3035_v1 = vpop.f32.mrb[75].mxu0  ;;  %3541 = vmatmul.mubr.bf16.gmra.mrb[100].mxu0 %v3316_v25  ;;  %v3259_v27 = vmax.f32 %v3195_v49, 0.0  ;;  %v3096_v11 = vmax.f32 %v3030_v10, 0.0  ;;  %4194 = vmatprep.subr.bf16.mxu1 %v6795_v63 }
 0x3d1   : > { %v3036_v16 = vadd.f32 %v3035_v1, %v8992_v40  ;;  %v3260_v60 = vmax.f32 %v3197_v34, 0.0  ;;  %v3097_v30 = vmax.f32 %v3032_v21, 0.0  ;;  %4033 = vmatprep.subr.bf16.mxu0 %v6795_v63 }
 0x3d2   : > { %v3098_v0 = vmax.f32 %v3034_v26, 0.0  ;;  %v3647_v41 = vpack.c.bf16 %v3259_v27, %v3257_v58  ;;  %4195 = vmatpush1.bf16.msra.mxu1 %v6793_v7  ;;  %4034 = vmatpush1.bf16.msra.mxu0 %v6793_v7 }
 0x3d3   : > { %v3099_v57 = vmax.f32 %v3036_v16, 0.0  ;;  %v3648_v24 = vpack.c.bf16 %v3260_v60, %v3258_v9  ;;  %4196 = vmatprep.subr.bf16.mxu1 %v6798_v35  ;;  %4035 = vmatprep.subr.bf16.mxu0 %v6798_v35 }
 0x3d4   : > { %v3318_v36 = vpack.c.bf16 %v3098_v0, %v3096_v11 }
 0x3d5   : > { %v3319_v12 = vpack.c.bf16 %v3099_v57, %v3097_v30  ;;  %v3039_v42 = vpop.f32.mrb[76].mxu0  ;;  %3711 = vmatprep.mubr.bf16.mxu1 %v3648_v24  ;;  %v6796_v30 = vld [vmem:[#allocation2 + $0x4b0] ss:$8 sps:$4 sm:$0xff]   ;;  %v6799_v57 = vld [vmem:[#allocation2 + $0x4c0] ss:$8 sps:$4 sm:$0xff]  }
 0x3d6   : > { %v3040_v43 = vadd.f32 %v3039_v42, %v8984_v50  ;;  %v3041_v44 = vpop.f32.mrb[77].mxu0  ;;  %3712 = vmatmul.mubr.bf16.gmra.mrb[104].mxu1 %v3647_v41  ;;  %v3200_v62 = vpop.f32.mrb[76].mxu1  ;;  %v6801_v41 = vld [vmem:[#allocation2 + $0x4c4] ss:$8 sps:$4 sm:$0xff]   ;;  %4036 = vmatpush1.bf16.msra.mxu0 %v6796_v30  ;;  %v6802_v24 = vld [vmem:[#allocation2 + $0x4d0] ss:$8 sps:$4 sm:$0xff]  }
 0x3d7   : > { %3550 = vmatprep.mubr.bf16.mxu0 %v3319_v12  ;;  %v3042_v4 = vadd.f32 %v3041_v44, %v8992_v40  ;;  %v3043_v25 = vpop.f32.mrb[78].mxu0  ;;  %v3201_v31 = vadd.f32 %v3200_v62, %v8984_v50  ;;  %v3202_v10 = vpop.f32.mrb[77].mxu1  ;;  %4197 = vmatpush1.bf16.msra.mxu1 %v6796_v30  ;;  %v6805_v12 = vld [vmem:[#allocation2 + $0x4e0] ss:$8 sps:$4 sm:$0xff]   ;;  %v6810_v42 = vld [vmem:[#allocation2 + $0x4f4] ss:$8 sps:$4 sm:$0xff]  }
 0x3d8   : > { %3551 = vmatmul.mubr.bf16.gmra.mrb[104].mxu0 %v3318_v36  ;;  %v3044_v52 = vadd.f32 %v3043_v25, %v8984_v50  ;;  %v3045_v19 = vpop.f32.mrb[79].mxu0  ;;  %v3203_v45 = vadd.f32 %v3202_v10, %v8992_v40  ;;  %v3204_v14 = vpop.f32.mrb[78].mxu1  ;;  %v3100_v56 = vmax.f32 %v3040_v43, 0.0  ;;  %v6804_v36 = vld [vmem:[#allocation2 + $0x4d4] ss:$8 sps:$4 sm:$0xff]   ;;  %4198 = vmatprep.subr.bf16.mxu1 %v6801_v41 }
 0x3d9   : > { %v3046_v32 = vadd.f32 %v3045_v19, %v8992_v40  ;;  %v3205_v46 = vadd.f32 %v3204_v14, %v8984_v50  ;;  %v3206_v49 = vpop.f32.mrb[79].mxu1  ;;  %v3101_v22 = vmax.f32 %v3042_v4, 0.0  ;;  %v3261_v58 = vmax.f32 %v3201_v31, 0.0  ;;  %4037 = vmatprep.subr.bf16.mxu0 %v6801_v41  ;;  %v6808_v43 = vld [vmem:[#allocation2 + $0x4f0] ss:$8 sps:$4 sm:$0xff]  }
 0x3da   : > { %v3102_v21 = vmax.f32 %v3044_v52, 0.0  ;;  %v3207_v1 = vadd.f32 %v3206_v49, %v8992_v40  ;;  %v3262_v11 = vmax.f32 %v3203_v45, 0.0  ;;  %4038 = vmatpush1.bf16.msra.mxu0 %v6799_v57 }
 0x3db   : > { %v3103_v26 = vmax.f32 %v3046_v32, 0.0  ;;  %v3263_v27 = vmax.f32 %v3205_v46, 0.0  ;;  %4199 = vmatpush1.bf16.msra.mxu1 %v6799_v57  ;;  %4039 = vmatprep.subr.bf16.mxu0 %v6804_v36 }
 0x3dc   : > { %v3320_v34 = vpack.c.bf16 %v3102_v21, %v3100_v56  ;;  %v3264_v9 = vmax.f32 %v3207_v1, 0.0  ;;  %4200 = vmatprep.subr.bf16.mxu1 %v6804_v36 }
 0x3dd   : > { %v3321_v16 = vpack.c.bf16 %v3103_v26, %v3101_v22  ;;  %v3649_v0 = vpack.c.bf16 %v3263_v27, %v3261_v58 }
 0x3de   : > { %v3650_v60 = vpack.c.bf16 %v3264_v9, %v3262_v11  ;;  %4040 = vmatpush1.bf16.msra.mxu0 %v6802_v24 }
 0x3df   : > { %3560 = vmatprep.mubr.bf16.mxu0 %v3321_v16  ;;  %4201 = vmatpush1.bf16.msra.mxu1 %v6802_v24 }
 0x3e0   : > { %3561 = vmatmul.mubr.bf16.gmra.mrb[108].mxu0 %v3320_v34  ;;  %3721 = vmatprep.mubr.bf16.mxu1 %v3650_v60 }
 0x3e1   : > { %3722 = vmatmul.mubr.bf16.gmra.mrb[108].mxu1 %v3649_v0  ;;  %4202 = vmatprep.subr.bf16.mxu1 %v6807_v28 }
 0x3e2   : > { %4041 = vmatprep.subr.bf16.mxu0 %v6807_v28 }
 0x3e3   : > { %4203 = vmatpush1.bf16.msra.mxu1 %v6805_v12  ;;  %4042 = vmatpush1.bf16.msra.mxu0 %v6805_v12 }
 0x3e4   : > { %4204 = vmatprep.subr.bf16.mxu1 %v6810_v42  ;;  %4043 = vmatprep.subr.bf16.mxu0 %v6810_v42 }
 0x3e7   : > { %4205 = vmatpush1.bf16.msra.mxu1 %v6808_v43  ;;  %4044 = vmatpush1.bf16.msra.mxu0 %v6808_v43 }
 0x3f3   : > { %v3049_v44 = vpop.f32.mrb[80].mxu0 }
 0x3f4   : > { %v3050_v29 = vadd.f32 %v3049_v44, %v8984_v50  ;;  %v3051_v4 = vpop.f32.mrb[81].mxu0 }
 0x3f5   : > { %v3052_v25 = vadd.f32 %v3051_v4, %v8992_v40  ;;  %v3053_v62 = vpop.f32.mrb[82].mxu0 }
 0x3f6   : > { %v3054_v63 = vadd.f32 %v3053_v62, %v8984_v50  ;;  %v3055_v52 = vpop.f32.mrb[83].mxu0  ;;  %v3104_v31 = vmax.f32 %v3050_v29, 0.0 }
 0x3f7   : > { %v3056_v19 = vadd.f32 %v3055_v52, %v8992_v40  ;;  %v3105_v32 = vmax.f32 %v3052_v25, 0.0 }
 0x3f8   : > { %v3106_v10 = vmax.f32 %v3054_v63, 0.0 }
 0x3f9   : > { %v3107_v45 = vmax.f32 %v3056_v19, 0.0 }
 0x3fa   : > { %v3322_v14 = vpack.c.bf16 %v3106_v10, %v3104_v31 }
 0x3fb   : > { %v3323_v56 = vpack.c.bf16 %v3107_v45, %v3105_v32  ;;  %v3210_v21 = vpop.f32.mrb[80].mxu1 }
 0x3fc   : > { %v3211_v46 = vadd.f32 %v3210_v21, %v8984_v50  ;;  %v3212_v49 = vpop.f32.mrb[81].mxu1 }
 0x3fd   : > { %v3213_v7 = vadd.f32 %v3212_v49, %v8992_v40  ;;  %v3214_v22 = vpop.f32.mrb[82].mxu1  ;;  %3570 = vmatprep.mubr.bf16.mxu0 %v3323_v56 }
 0x3fe   : > { %v3215_v26 = vadd.f32 %v3214_v22, %v8984_v50  ;;  %v3216_v1 = vpop.f32.mrb[83].mxu1  ;;  %3571 = vmatmul.mubr.bf16.gmra.mrb[112].mxu0 %v3322_v14  ;;  %v3265_v58 = vmax.f32 %v3211_v46, 0.0 }
 0x3ff   : > { %v3217_v34 = vadd.f32 %v3216_v1, %v8992_v40  ;;  %v3266_v16 = vmax.f32 %v3213_v7, 0.0 }
 0x400   : > { %v3267_v27 = vmax.f32 %v3215_v26, 0.0 }
 0x401   : > { %v3268_v11 = vmax.f32 %v3217_v34, 0.0 }
 0x402   : > { %v3651_v9 = vpack.c.bf16 %v3267_v27, %v3265_v58 }
 0x403   : > { %v3652_v0 = vpack.c.bf16 %v3268_v11, %v3266_v16 }
 0x405   : > { %3731 = vmatprep.mubr.bf16.mxu1 %v3652_v0 }
 0x406   : > { %3732 = vmatmul.mubr.bf16.gmra.mrb[112].mxu1 %v3651_v9 }
 0x417   : > { %v3059_v60 = vpop.f32.mrb[84].mxu0 }
 0x418   : > { %v3060_v35 = vadd.f32 %v3059_v60, %v8984_v50  ;;  %v3061_v30 = vpop.f32.mrb[85].mxu0 }
 0x419   : > { %v3062_v41 = vadd.f32 %v3061_v30, %v8992_v40  ;;  %v3063_v57 = vpop.f32.mrb[86].mxu0 }
 0x41a   : > { %v3064_v36 = vadd.f32 %v3063_v57, %v8984_v50  ;;  %v3065_v24 = vpop.f32.mrb[87].mxu0  ;;  %v3108_v42 = vmax.f32 %v3060_v35, 0.0 }
 0x41b   : > { %v3066_v28 = vadd.f32 %v3065_v24, %v8992_v40  ;;  %v3220_v12 = vpop.f32.mrb[84].mxu1  ;;  %v3109_v4 = vmax.f32 %v3062_v41, 0.0 }
 0x41c   : > { %v3110_v43 = vmax.f32 %v3064_v36, 0.0  ;;  %v3221_v44 = vadd.f32 %v3220_v12, %v8984_v50  ;;  %v3222_v29 = vpop.f32.mrb[85].mxu1 }
 0x41d   : > { %v3111_v25 = vmax.f32 %v3066_v28, 0.0  ;;  %v3223_v62 = vadd.f32 %v3222_v29, %v8992_v40  ;;  %v3224_v63 = vpop.f32.mrb[86].mxu1 }
 0x41e   : > { %v3324_v52 = vpack.c.bf16 %v3110_v43, %v3108_v42  ;;  %v3225_v19 = vadd.f32 %v3224_v63, %v8984_v50  ;;  %v3226_v31 = vpop.f32.mrb[87].mxu1  ;;  %v3269_v45 = vmax.f32 %v3221_v44, 0.0 }
 0x41f   : > { %v3325_v10 = vpack.c.bf16 %v3111_v25, %v3109_v4  ;;  %v3227_v32 = vadd.f32 %v3226_v31, %v8992_v40  ;;  %v3270_v56 = vmax.f32 %v3223_v62, 0.0 }
 0x420   : > { %v3271_v14 = vmax.f32 %v3225_v19, 0.0 }
 0x421   : > { %v3272_v21 = vmax.f32 %v3227_v32, 0.0  ;;  %3580 = vmatprep.mubr.bf16.mxu0 %v3325_v10 }
 0x422   : > { %v3653_v46 = vpack.c.bf16 %v3271_v14, %v3269_v45  ;;  %3581 = vmatmul.mubr.bf16.gmra.mrb[116].mxu0 %v3324_v52 }
 0x423   : > { %v3654_v49 = vpack.c.bf16 %v3272_v21, %v3270_v56 }
 0x425   : > { %3741 = vmatprep.mubr.bf16.mxu1 %v3654_v49 }
 0x426   : > { %3742 = vmatmul.mubr.bf16.gmra.mrb[116].mxu1 %v3653_v46 }
 0x430   : > { %v3069_v7 = vpop.f32.mrb[88].mxu0 }
 0x431   : > { %v3070_v22 = vadd.f32 %v3069_v7, %v8984_v50  ;;  %v3071_v26 = vpop.f32.mrb[89].mxu0 }
 0x432   : > { %v3072_v1 = vadd.f32 %v3071_v26, %v8992_v40  ;;  %v3073_v34 = vpop.f32.mrb[90].mxu0 }
 0x433   : > { %v3074_v58 = vadd.f32 %v3073_v34, %v8984_v50  ;;  %v3075_v27 = vpop.f32.mrb[91].mxu0  ;;  %v3112_v11 = vmax.f32 %v3070_v22, 0.0 }
 0x434   : > { %v3076_v16 = vadd.f32 %v3075_v27, %v8992_v40  ;;  %v3113_v0 = vmax.f32 %v3072_v1, 0.0 }
 0x435   : > { %v3114_v9 = vmax.f32 %v3074_v58, 0.0 }
 0x436   : > { %v3115_v60 = vmax.f32 %v3076_v16, 0.0 }
 0x437   : > { %v3326_v35 = vpack.c.bf16 %v3114_v9, %v3112_v11 }
 0x438   : > { %v3327_v30 = vpack.c.bf16 %v3115_v60, %v3113_v0 }
 0x439   : > { %v3230_v41 = vpop.f32.mrb[88].mxu1 }
 0x43a   : > { %v3231_v57 = vadd.f32 %v3230_v41, %v8984_v50  ;;  %v3232_v36 = vpop.f32.mrb[89].mxu1  ;;  %3590 = vmatprep.mubr.bf16.mxu0 %v3327_v30  ;;  %v9854_v30 = vld [vmem:[#allocation14_spill] sm:$0xff] }
 0x43b   : > { %v3233_v24 = vadd.f32 %v3232_v36, %v8992_v40  ;;  %v3234_v28 = vpop.f32.mrb[90].mxu1  ;;  %3591 = vmatmul.mubr.bf16.gmra.mrb[120].mxu0 %v3326_v35  ;;  %v9060_v41 = vrot.slane %v8981_v20, %v9854_v30 }
 0x43c   : > { %v3235_v12 = vadd.f32 %v3234_v28, %v8984_v50  ;;  %v3236_v42 = vpop.f32.mrb[91].mxu1  ;;  %v3273_v44 = vmax.f32 %v3231_v57, 0.0 }
 0x43d   : > { %v3237_v43 = vadd.f32 %v3236_v42, %v8992_v40  ;;  %v3274_v4 = vmax.f32 %v3233_v24, 0.0  ;;  %v9064_v24 = vrot.slane %v8989_v61, %v9854_v30  ;;  %v6811_v30 = vld [vmem:[#allocation2 + $0x500] ss:$8 sps:$4 sm:$0xff]  }
 0x43e   : > { %v3275_v29 = vmax.f32 %v3235_v12, 0.0 }
 0x43f   : > { %v3276_v25 = vmax.f32 %v3237_v43, 0.0 }
 0x440   : > { %v3655_v62 = vpack.c.bf16 %v3275_v29, %v3273_v44 }
 0x441   : > { %v3656_v63 = vpack.c.bf16 %v3276_v25, %v3274_v4 }
 0x443   : > { %3751 = vmatprep.mubr.bf16.mxu1 %v3656_v63 }
 0x444   : > { %3752 = vmatmul.mubr.bf16.gmra.mrb[120].mxu1 %v3655_v62 }
 0x457   : > { %v3079_v52 = vpop.f32.mrb[92].mxu0 }
 0x458   : > { %v3080_v19 = vadd.f32 %v3079_v52, %v8984_v50  ;;  %v3081_v31 = vpop.f32.mrb[93].mxu0 }
 0x459   : > { %v3082_v10 = vadd.f32 %v3081_v31, %v8992_v40  ;;  %v3083_v32 = vpop.f32.mrb[94].mxu0 }
 0x45a   : > { %v3084_v45 = vadd.f32 %v3083_v32, %v8984_v50  ;;  %v3085_v14 = vpop.f32.mrb[95].mxu0  ;;  %v3240_v56 = vpop.f32.mrb[92].mxu1  ;;  %v3116_v7 = vmax.f32 %v3080_v19, 0.0 }
 0x45b   : > { %v3086_v21 = vadd.f32 %v3085_v14, %v8992_v40  ;;  %v3241_v46 = vadd.f32 %v3240_v56, %v8984_v50  ;;  %v3242_v49 = vpop.f32.mrb[93].mxu1  ;;  %v3117_v34 = vmax.f32 %v3082_v10, 0.0 }
 0x45c   : > { %v3118_v22 = vmax.f32 %v3084_v45, 0.0  ;;  %v3243_v26 = vadd.f32 %v3242_v49, %v8992_v40  ;;  %v3244_v1 = vpop.f32.mrb[94].mxu1 }
 0x45d   : > { %v3119_v58 = vmax.f32 %v3086_v21, 0.0  ;;  %v3245_v27 = vadd.f32 %v3244_v1, %v8984_v50  ;;  %v3246_v16 = vpop.f32.mrb[95].mxu1  ;;  %v3277_v60 = vmax.f32 %v3241_v46, 0.0 }
 0x45e   : > { %v3328_v11 = vpack.c.bf16 %v3118_v22, %v3116_v7  ;;  %v3247_v9 = vadd.f32 %v3246_v16, %v8992_v40  ;;  %v3278_v57 = vmax.f32 %v3243_v26, 0.0 }
 0x45f   : > { %v3329_v0 = vpack.c.bf16 %v3119_v58, %v3117_v34  ;;  %v3279_v35 = vmax.f32 %v3245_v27, 0.0 }
 0x460   : > { %v3280_v36 = vmax.f32 %v3247_v9, 0.0 }
 0x461   : > { %v3657_v28 = vpack.c.bf16 %v3279_v35, %v3277_v60  ;;  %3600 = vmatprep.mubr.bf16.mxu0 %v3329_v0 }
 0x462   : > { %v3658_v50 = vpack.c.bf16 %v3280_v36, %v3278_v57  ;;  %3601 = vmatmul.mubr.bf16.gmra.mrb[124].mxu0 %v3328_v11  ;;  %v3693_v12 = vpop.f32.mrb[96].mxu1  ;;  %v6813_v57 = vld [vmem:[#allocation2 + $0x504] ss:$8 sps:$4 sm:$0xff]  }
 0x463   : > { %v3694_v40 = vadd.f32 %v3693_v12, %v9060_v41  ;;  %v3695_v42 = vpop.f32.mrb[97].mxu1  ;;  %4697 = vmatprep.subr.bf16.mxu1 %v6813_v57  ;;  %4536 = vmatprep.subr.bf16.mxu0 %v6813_v57 }
 0x464   : > { %v3696_v43 = vadd.f32 %v3695_v42, %v9064_v24  ;;  %v3697_v44 = vpop.f32.mrb[98].mxu1  ;;  %3761 = vmatprep.mubr.bf16.mxu1 %v3658_v50  ;;  %v6816_v50 = vld [vmem:[#allocation2 + $0x514] ss:$8 sps:$4 sm:$0xff]  }
 0x465   : > { %v3698_v20 = vadd.f32 %v3697_v44, %v9060_v41  ;;  %v3699_v29 = vpop.f32.mrb[99].mxu1  ;;  %3762 = vmatmul.mubr.bf16.gmra.mrb[124].mxu1 %v3657_v28  ;;  %v3772_v61 = vmax.f32 %v3694_v40, 0.0  ;;  %v6814_v44 = vld [vmem:[#allocation2 + $0x510] ss:$8 sps:$4 sm:$0xff]  }
 0x466   : > { %v3700_v4 = vadd.f32 %v3699_v29, %v9064_v24  ;;  %v3773_v62 = vmax.f32 %v3696_v43, 0.0  ;;  %v6819_v29 = vld [vmem:[#allocation2 + $0x524] ss:$8 sps:$4 sm:$0xff]  }
 0x467   : > { %v3774_v25 = vmax.f32 %v3698_v20, 0.0  ;;  %v6817_v20 = vld [vmem:[#allocation2 + $0x520] ss:$8 sps:$4 sm:$0xff]  }
 0x468   : > { %v3775_v63 = vmax.f32 %v3700_v4, 0.0  ;;  %v6822_v4 = vld [vmem:[#allocation2 + $0x534] ss:$8 sps:$4 sm:$0xff]  }
 0x469   : > { %v4158_v52 = vpack.c.bf16 %v3774_v25, %v3772_v61  ;;  %v6820_v61 = vld [vmem:[#allocation2 + $0x530] ss:$8 sps:$4 sm:$0xff]   ;;  %v6823_v25 = vld [vmem:[#allocation2 + $0x540] ss:$8 sps:$4 sm:$0xff]  }
 0x46a   : > { %v4159_v19 = vpack.c.bf16 %v3775_v63, %v3773_v62  ;;  %v3532_v31 = vpop.f32.mrb[96].mxu0  ;;  %v6825_v62 = vld [vmem:[#allocation2 + $0x544] ss:$8 sps:$4 sm:$0xff]   ;;  %v6828_v63 = vld [vmem:[#allocation2 + $0x554] ss:$8 sps:$4 sm:$0xff]  }
 0x46b   : > { %v3533_v10 = vadd.f32 %v3532_v31, %v9060_v41  ;;  %v3534_v32 = vpop.f32.mrb[97].mxu0 }
 0x46c   : > { %4206 = vmatprep.mubr.bf16.mxu1 %v4159_v19  ;;  %v3535_v45 = vadd.f32 %v3534_v32, %v9064_v24  ;;  %v3536_v14 = vpop.f32.mrb[98].mxu0 }
 0x46d   : > { %4207 = vmatmul.mubr.bf16.vlgmr.msra.gmra.mrb[128].mxu1 %v4158_v52  ;;  %v3537_v56 = vadd.f32 %v3536_v14, %v9060_v41  ;;  %v3538_v21 = vpop.f32.mrb[99].mxu0  ;;  %v3611_v49 = vmax.f32 %v3533_v10, 0.0  ;;  %v6826_v10 = vld [vmem:[#allocation2 + $0x550] ss:$8 sps:$4 sm:$0xff]   ;;  %v6831_v14 = vld [vmem:[#allocation2 + $0x564] ss:$8 sps:$4 sm:$0xff]  }
 0x46e   : > { %v3539_v46 = vadd.f32 %v3538_v21, %v9064_v24  ;;  %v3612_v22 = vmax.f32 %v3535_v45, 0.0  ;;  %4698 = vmatpush1.bf16.msra.mxu1 %v6811_v30 }
 0x46f   : > { %v3613_v7 = vmax.f32 %v3537_v56, 0.0  ;;  %4699 = vmatprep.subr.bf16.mxu1 %v6816_v50 }
 0x470   : > { %v3614_v26 = vmax.f32 %v3539_v46, 0.0 }
 0x471   : > { %v3837_v1 = vpack.c.bf16 %v3613_v7, %v3611_v49 }
 0x472   : > { %v3838_v34 = vpack.c.bf16 %v3614_v26, %v3612_v22  ;;  %4700 = vmatpush1.bf16.msra.mxu1 %v6814_v44  ;;  %v6829_v22 = vld [vmem:[#allocation2 + $0x560] ss:$8 sps:$4 sm:$0xff]  }
 0x473   : > { %4701 = vmatprep.subr.bf16.mxu1 %v6819_v29 }
 0x474   : > { %4045 = vmatprep.mubr.bf16.mxu0 %v3838_v34  ;;  %v6834_v34 = vld [vmem:[#allocation2 + $0x574] ss:$8 sps:$4 sm:$0xff]  }
 0x475   : > { %4046 = vmatmul.mubr.bf16.vlgmr.msra.gmra.mrb[128].mxu0 %v3837_v1 }
 0x476   : > { %4537 = vmatpush1.bf16.msra.mxu0 %v6811_v30  ;;  %4702 = vmatpush1.bf16.msra.mxu1 %v6817_v20 }
 0x477   : > { %4538 = vmatprep.subr.bf16.mxu0 %v6816_v50  ;;  %4703 = vmatprep.subr.bf16.mxu1 %v6822_v4 }
 0x479   : > { %v3703_v58 = vpop.f32.mrb[100].mxu1 }
 0x47a   : > { %v3704_v27 = vadd.f32 %v3703_v58, %v9060_v41  ;;  %v3705_v16 = vpop.f32.mrb[101].mxu1  ;;  %4539 = vmatpush1.bf16.msra.mxu0 %v6814_v44  ;;  %4704 = vmatpush1.bf16.msra.mxu1 %v6820_v61 }
 0x47b   : > { %v3706_v11 = vadd.f32 %v3705_v16, %v9064_v24  ;;  %v3707_v9 = vpop.f32.mrb[102].mxu1  ;;  %4540 = vmatprep.subr.bf16.mxu0 %v6819_v29  ;;  %4705 = vmatprep.subr.bf16.mxu1 %v6825_v62 }
 0x47c   : > { %v3708_v0 = vadd.f32 %v3707_v9, %v9060_v41  ;;  %v3709_v60 = vpop.f32.mrb[103].mxu1  ;;  %v3776_v36 = vmax.f32 %v3704_v27, 0.0 }
 0x47d   : > { %v3710_v35 = vadd.f32 %v3709_v60, %v9064_v24  ;;  %v3777_v12 = vmax.f32 %v3706_v11, 0.0 }
 0x47e   : > { %v3778_v28 = vmax.f32 %v3708_v0, 0.0  ;;  %4541 = vmatpush1.bf16.msra.mxu0 %v6817_v20  ;;  %4706 = vmatpush1.bf16.msra.mxu1 %v6823_v25 }
 0x47f   : > { %v3779_v40 = vmax.f32 %v3710_v35, 0.0  ;;  %4542 = vmatprep.subr.bf16.mxu0 %v6822_v4  ;;  %4707 = vmatprep.subr.bf16.mxu1 %v6828_v63 }
 0x480   : > { %v4160_v42 = vpack.c.bf16 %v3778_v28, %v3776_v36  ;;  %v6832_v36 = vld [vmem:[#allocation2 + $0x570] ss:$8 sps:$4 sm:$0xff]  }
 0x481   : > { %v4161_v43 = vpack.c.bf16 %v3779_v40, %v3777_v12 }
 0x482   : > { %4543 = vmatpush1.bf16.msra.mxu0 %v6820_v61  ;;  %4708 = vmatpush1.bf16.msra.mxu1 %v6826_v10 }
 0x483   : > { %4216 = vmatprep.mubr.bf16.mxu1 %v4161_v43  ;;  %4544 = vmatprep.subr.bf16.mxu0 %v6825_v62 }
 0x484   : > { %4217 = vmatmul.mubr.bf16.gmra.mrb[132].mxu1 %v4160_v42  ;;  %4709 = vmatprep.subr.bf16.mxu1 %v6831_v14  ;;  %v6837_v42 = vld [vmem:[#allocation2 + $0x584] ss:$8 sps:$4 sm:$0xff]  }
 0x486   : > { %4545 = vmatpush1.bf16.msra.mxu0 %v6823_v25  ;;  %4710 = vmatpush1.bf16.msra.mxu1 %v6829_v22 }
 0x487   : > { %4546 = vmatprep.subr.bf16.mxu0 %v6828_v63  ;;  %4711 = vmatprep.subr.bf16.mxu1 %v6834_v34 }
 0x48a   : > { %4547 = vmatpush1.bf16.msra.mxu0 %v6826_v10  ;;  %4712 = vmatpush1.bf16.msra.mxu1 %v6832_v36 }
 0x48b   : > { %4548 = vmatprep.subr.bf16.mxu0 %v6831_v14  ;;  %4713 = vmatprep.subr.bf16.mxu1 %v6837_v42 }
 0x48e   : > { %4549 = vmatpush1.bf16.msra.mxu0 %v6829_v22  ;;  %v6838_v22 = vld [vmem:[#allocation2 + $0x590] ss:$8 sps:$4 sm:$0xff]  }
 0x48f   : > { %4550 = vmatprep.subr.bf16.mxu0 %v6834_v34 }
 0x492   : > { %4551 = vmatpush1.bf16.msra.mxu0 %v6832_v36 }
 0x493   : > { %4552 = vmatprep.subr.bf16.mxu0 %v6837_v42 }
 0x4a3   : > { %v3542_v52 = vpop.f32.mrb[100].mxu0 }
 0x4a4   : > { %v3543_v19 = vadd.f32 %v3542_v52, %v9060_v41  ;;  %v3544_v31 = vpop.f32.mrb[101].mxu0 }
 0x4a5   : > { %v3545_v32 = vadd.f32 %v3544_v31, %v9064_v24  ;;  %v3546_v45 = vpop.f32.mrb[102].mxu0 }
 0x4a6   : > { %v3547_v56 = vadd.f32 %v3546_v45, %v9060_v41  ;;  %v3548_v21 = vpop.f32.mrb[103].mxu0  ;;  %v3615_v49 = vmax.f32 %v3543_v19, 0.0  ;;  %v6835_v19 = vld [vmem:[#allocation2 + $0x580] ss:$8 sps:$4 sm:$0xff]  }
 0x4a7   : > { %v3549_v46 = vadd.f32 %v3548_v21, %v9064_v24  ;;  %v3616_v26 = vmax.f32 %v3545_v32, 0.0  ;;  %4714 = vmatpush1.bf16.msra.mxu1 %v6835_v19  ;;  %4553 = vmatpush1.bf16.msra.mxu0 %v6835_v19  ;;  %v6849_v19 = vld [vmem:[#allocation2 + $0x5c4] ss:$8 sps:$4 sm:$0xff]  }
 0x4a8   : > { %v3617_v7 = vmax.f32 %v3547_v56, 0.0  ;;  %v6840_v56 = vld [vmem:[#allocation2 + $0x594] ss:$8 sps:$4 sm:$0xff]  }
 0x4a9   : > { %v3618_v1 = vmax.f32 %v3549_v46, 0.0  ;;  %v3713_v27 = vpop.f32.mrb[104].mxu1  ;;  %4715 = vmatprep.subr.bf16.mxu1 %v6840_v56  ;;  %4554 = vmatprep.subr.bf16.mxu0 %v6840_v56  ;;  %v6858_v56 = vld [vmem:[#allocation2 + $0x5f4] ss:$8 sps:$4 sm:$0xff]  }
 0x4aa   : > { %v3839_v58 = vpack.c.bf16 %v3617_v7, %v3615_v49  ;;  %v3714_v9 = vadd.f32 %v3713_v27, %v9060_v41  ;;  %v3715_v0 = vpop.f32.mrb[105].mxu1 }
 0x4ab   : > { %v3840_v16 = vpack.c.bf16 %v3618_v1, %v3616_v26  ;;  %v3552_v11 = vpop.f32.mrb[104].mxu0  ;;  %v3716_v30 = vadd.f32 %v3715_v0, %v9064_v24  ;;  %v3717_v57 = vpop.f32.mrb[106].mxu1  ;;  %4716 = vmatpush1.bf16.msra.mxu1 %v6838_v22  ;;  %4555 = vmatpush1.bf16.msra.mxu0 %v6838_v22 }
 0x4ac   : > { %v3553_v60 = vadd.f32 %v3552_v11, %v9060_v41  ;;  %v3554_v35 = vpop.f32.mrb[105].mxu0  ;;  %v3718_v12 = vadd.f32 %v3717_v57, %v9060_v41  ;;  %v3719_v40 = vpop.f32.mrb[107].mxu1  ;;  %v3780_v29 = vmax.f32 %v3714_v9, 0.0 }
 0x4ad   : > { %v3555_v28 = vadd.f32 %v3554_v35, %v9064_v24  ;;  %v3556_v50 = vpop.f32.mrb[106].mxu0  ;;  %4055 = vmatprep.mubr.bf16.mxu0 %v3840_v16  ;;  %v3720_v20 = vadd.f32 %v3719_v40, %v9064_v24  ;;  %v3781_v62 = vmax.f32 %v3716_v30, 0.0 }
 0x4ae   : > { %v3557_v43 = vadd.f32 %v3556_v50, %v9060_v41  ;;  %v3558_v44 = vpop.f32.mrb[107].mxu0  ;;  %4056 = vmatmul.mubr.bf16.gmra.mrb[132].mxu0 %v3839_v58  ;;  %v3782_v4 = vmax.f32 %v3718_v12, 0.0  ;;  %v3619_v25 = vmax.f32 %v3553_v60, 0.0  ;;  %v6843_v58 = vld [vmem:[#allocation2 + $0x5a4] ss:$8 sps:$4 sm:$0xff]  }
 0x4af   : > { %v3559_v61 = vadd.f32 %v3558_v44, %v9064_v24  ;;  %v3783_v52 = vmax.f32 %v3720_v20, 0.0  ;;  %v3620_v31 = vmax.f32 %v3555_v28, 0.0  ;;  %v6841_v50 = vld [vmem:[#allocation2 + $0x5a0] ss:$8 sps:$4 sm:$0xff]   ;;  %4717 = vmatprep.subr.bf16.mxu1 %v6843_v58  ;;  %4556 = vmatprep.subr.bf16.mxu0 %v6843_v58 }
 0x4b0   : > { %v3621_v63 = vmax.f32 %v3557_v43, 0.0  ;;  %v4162_v10 = vpack.c.bf16 %v3782_v4, %v3780_v29  ;;  %4718 = vmatpush1.bf16.msra.mxu1 %v6841_v50  ;;  %4557 = vmatpush1.bf16.msra.mxu0 %v6841_v50 }
 0x4b1   : > { %v3622_v32 = vmax.f32 %v3559_v61, 0.0  ;;  %v4163_v14 = vpack.c.bf16 %v3783_v52, %v3781_v62  ;;  %v6844_v52 = vld [vmem:[#allocation2 + $0x5b0] ss:$8 sps:$4 sm:$0xff]  }
 0x4b2   : > { %v3841_v45 = vpack.c.bf16 %v3621_v63, %v3619_v25  ;;  %v6846_v63 = vld [vmem:[#allocation2 + $0x5b4] ss:$8 sps:$4 sm:$0xff]  }
 0x4b3   : > { %v3842_v21 = vpack.c.bf16 %v3622_v32, %v3620_v31  ;;  %v3562_v46 = vpop.f32.mrb[108].mxu0  ;;  %4226 = vmatprep.mubr.bf16.mxu1 %v4163_v14  ;;  %4719 = vmatprep.subr.bf16.mxu1 %v6846_v63  ;;  %v6847_v31 = vld [vmem:[#allocation2 + $0x5c0] ss:$8 sps:$4 sm:$0xff]   ;;  %v6850_v32 = vld [vmem:[#allocation2 + $0x5d0] ss:$8 sps:$4 sm:$0xff]  }
 0x4b4   : > { %v3563_v49 = vadd.f32 %v3562_v46, %v9060_v41  ;;  %v3564_v7 = vpop.f32.mrb[109].mxu0  ;;  %4227 = vmatmul.mubr.bf16.gmra.mrb[136].mxu1 %v4162_v10  ;;  %v3723_v34 = vpop.f32.mrb[108].mxu1  ;;  %4558 = vmatprep.subr.bf16.mxu0 %v6846_v63  ;;  %v6852_v10 = vld [vmem:[#allocation2 + $0x5d4] ss:$8 sps:$4 sm:$0xff]   ;;  %v6853_v14 = vld [vmem:[#allocation2 + $0x5e0] ss:$8 sps:$4 sm:$0xff]  }
 0x4b5   : > { %4065 = vmatprep.mubr.bf16.mxu0 %v3842_v21  ;;  %v3565_v26 = vadd.f32 %v3564_v7, %v9064_v24  ;;  %v3566_v1 = vpop.f32.mrb[110].mxu0  ;;  %v3724_v11 = vadd.f32 %v3723_v34, %v9060_v41  ;;  %v3725_v9 = vpop.f32.mrb[109].mxu1  ;;  %4720 = vmatpush1.bf16.msra.mxu1 %v6844_v52  ;;  %v6856_v21 = vld [vmem:[#allocation2 + $0x5f0] ss:$8 sps:$4 sm:$0xff]  }
 0x4b6   : > { %4066 = vmatmul.mubr.bf16.gmra.mrb[136].mxu0 %v3841_v45  ;;  %v3567_v27 = vadd.f32 %v3566_v1, %v9060_v41  ;;  %v3568_v16 = vpop.f32.mrb[111].mxu0  ;;  %v3726_v60 = vadd.f32 %v3725_v9, %v9064_v24  ;;  %v3727_v35 = vpop.f32.mrb[110].mxu1  ;;  %v3623_v30 = vmax.f32 %v3563_v49, 0.0  ;;  %4721 = vmatprep.subr.bf16.mxu1 %v6849_v19  ;;  %v6855_v45 = vld [vmem:[#allocation2 + $0x5e4] ss:$8 sps:$4 sm:$0xff]  }
 0x4b7   : > { %v3569_v0 = vadd.f32 %v3568_v16, %v9064_v24  ;;  %v3728_v36 = vadd.f32 %v3727_v35, %v9060_v41  ;;  %v3729_v28 = vpop.f32.mrb[111].mxu1  ;;  %v3624_v12 = vmax.f32 %v3565_v26, 0.0  ;;  %v3784_v44 = vmax.f32 %v3724_v11, 0.0  ;;  %4559 = vmatpush1.bf16.msra.mxu0 %v6844_v52 }
 0x4b8   : > { %v3625_v57 = vmax.f32 %v3567_v27, 0.0  ;;  %v3730_v42 = vadd.f32 %v3729_v28, %v9064_v24  ;;  %v3785_v4 = vmax.f32 %v3726_v60, 0.0  ;;  %4560 = vmatprep.subr.bf16.mxu0 %v6849_v19 }
 0x4b9   : > { %v3626_v40 = vmax.f32 %v3569_v0, 0.0  ;;  %v3786_v20 = vmax.f32 %v3728_v36, 0.0  ;;  %4722 = vmatpush1.bf16.msra.mxu1 %v6847_v31 }
 0x4ba   : > { %v3843_v43 = vpack.c.bf16 %v3625_v57, %v3623_v30  ;;  %v3787_v61 = vmax.f32 %v3730_v42, 0.0  ;;  %4723 = vmatprep.subr.bf16.mxu1 %v6852_v10 }
 0x4bb   : > { %v3844_v29 = vpack.c.bf16 %v3626_v40, %v3624_v12  ;;  %v4164_v25 = vpack.c.bf16 %v3786_v20, %v3784_v44  ;;  %4561 = vmatpush1.bf16.msra.mxu0 %v6847_v31 }
 0x4bc   : > { %v4165_v62 = vpack.c.bf16 %v3787_v61, %v3785_v4  ;;  %4562 = vmatprep.subr.bf16.mxu0 %v6852_v10 }
 0x4bd   : > { %4075 = vmatprep.mubr.bf16.mxu0 %v3844_v29  ;;  %4724 = vmatpush1.bf16.msra.mxu1 %v6850_v32 }
 0x4be   : > { %4076 = vmatmul.mubr.bf16.gmra.mrb[140].mxu0 %v3843_v43  ;;  %4236 = vmatprep.mubr.bf16.mxu1 %v4165_v62 }
 0x4bf   : > { %4237 = vmatmul.mubr.bf16.gmra.mrb[140].mxu1 %v4164_v25  ;;  %4725 = vmatprep.subr.bf16.mxu1 %v6855_v45 }
 0x4c0   : > { %4563 = vmatpush1.bf16.msra.mxu0 %v6850_v32 }
 0x4c1   : > { %4726 = vmatpush1.bf16.msra.mxu1 %v6853_v14  ;;  %4564 = vmatprep.subr.bf16.mxu0 %v6855_v45 }
 0x4c2   : > { %4727 = vmatprep.subr.bf16.mxu1 %v6858_v56 }
 0x4c4   : > { %4565 = vmatpush1.bf16.msra.mxu0 %v6853_v14 }
 0x4c5   : > { %4728 = vmatpush1.bf16.msra.mxu1 %v6856_v21  ;;  %4566 = vmatprep.subr.bf16.mxu0 %v6858_v56 }
 0x4c8   : > { %4567 = vmatpush1.bf16.msra.mxu0 %v6856_v21 }
 0x4d1   : > { %v3572_v46 = vpop.f32.mrb[112].mxu0 }
 0x4d2   : > { %v3573_v49 = vadd.f32 %v3572_v46, %v9060_v41  ;;  %v3574_v7 = vpop.f32.mrb[113].mxu0 }
 0x4d3   : > { %v3575_v22 = vadd.f32 %v3574_v7, %v9064_v24  ;;  %v3576_v26 = vpop.f32.mrb[114].mxu0 }
 0x4d4   : > { %v3577_v1 = vadd.f32 %v3576_v26, %v9060_v41  ;;  %v3578_v34 = vpop.f32.mrb[115].mxu0  ;;  %v3627_v27 = vmax.f32 %v3573_v49, 0.0 }
 0x4d5   : > { %v3579_v58 = vadd.f32 %v3578_v34, %v9064_v24  ;;  %v3628_v11 = vmax.f32 %v3575_v22, 0.0 }
 0x4d6   : > { %v3629_v16 = vmax.f32 %v3577_v1, 0.0 }
 0x4d7   : > { %v3630_v9 = vmax.f32 %v3579_v58, 0.0 }
 0x4d8   : > { %v3845_v0 = vpack.c.bf16 %v3629_v16, %v3627_v27 }
 0x4d9   : > { %v3846_v60 = vpack.c.bf16 %v3630_v9, %v3628_v11  ;;  %v3733_v35 = vpop.f32.mrb[112].mxu1 }
 0x4da   : > { %v3734_v30 = vadd.f32 %v3733_v35, %v9060_v41  ;;  %v3735_v57 = vpop.f32.mrb[113].mxu1 }
 0x4db   : > { %v3736_v36 = vadd.f32 %v3735_v57, %v9064_v24  ;;  %v3737_v28 = vpop.f32.mrb[114].mxu1  ;;  %4085 = vmatprep.mubr.bf16.mxu0 %v3846_v60 }
 0x4dc   : > { %v3738_v50 = vadd.f32 %v3737_v28, %v9060_v41  ;;  %v3739_v12 = vpop.f32.mrb[115].mxu1  ;;  %4086 = vmatmul.mubr.bf16.gmra.mrb[144].mxu0 %v3845_v0  ;;  %v3788_v42 = vmax.f32 %v3734_v30, 0.0 }
 0x4dd   : > { %v3740_v40 = vadd.f32 %v3739_v12, %v9064_v24  ;;  %v3789_v44 = vmax.f32 %v3736_v36, 0.0 }
 0x4de   : > { %v3790_v43 = vmax.f32 %v3738_v50, 0.0 }
 0x4df   : > { %v3791_v20 = vmax.f32 %v3740_v40, 0.0 }
 0x4e0   : > { %v4166_v29 = vpack.c.bf16 %v3790_v43, %v3788_v42 }
 0x4e1   : > { %v4167_v4 = vpack.c.bf16 %v3791_v20, %v3789_v44 }
 0x4e3   : > { %4246 = vmatprep.mubr.bf16.mxu1 %v4167_v4 }
 0x4e4   : > { %4247 = vmatmul.mubr.bf16.gmra.mrb[144].mxu1 %v4166_v29 }
 0x4f5   : > { %v3582_v61 = vpop.f32.mrb[116].mxu0 }
 0x4f6   : > { %v3583_v25 = vadd.f32 %v3582_v61, %v9060_v41  ;;  %v3584_v62 = vpop.f32.mrb[117].mxu0 }
 0x4f7   : > { %v3585_v63 = vadd.f32 %v3584_v62, %v9064_v24  ;;  %v3586_v52 = vpop.f32.mrb[118].mxu0 }
 0x4f8   : > { %v3587_v19 = vadd.f32 %v3586_v52, %v9060_v41  ;;  %v3588_v31 = vpop.f32.mrb[119].mxu0  ;;  %v3631_v45 = vmax.f32 %v3583_v25, 0.0 }
 0x4f9   : > { %v3589_v10 = vadd.f32 %v3588_v31, %v9064_v24  ;;  %v3743_v32 = vpop.f32.mrb[116].mxu1  ;;  %v3632_v46 = vmax.f32 %v3585_v63, 0.0 }
 0x4fa   : > { %v3633_v14 = vmax.f32 %v3587_v19, 0.0  ;;  %v3744_v56 = vadd.f32 %v3743_v32, %v9060_v41  ;;  %v3745_v21 = vpop.f32.mrb[117].mxu1 }
 0x4fb   : > { %v3634_v49 = vmax.f32 %v3589_v10, 0.0  ;;  %v3746_v7 = vadd.f32 %v3745_v21, %v9064_v24  ;;  %v3747_v22 = vpop.f32.mrb[118].mxu1 }
 0x4fc   : > { %v3847_v26 = vpack.c.bf16 %v3633_v14, %v3631_v45  ;;  %v3748_v1 = vadd.f32 %v3747_v22, %v9060_v41  ;;  %v3749_v34 = vpop.f32.mrb[119].mxu1  ;;  %v3792_v16 = vmax.f32 %v3744_v56, 0.0 }
 0x4fd   : > { %v3848_v58 = vpack.c.bf16 %v3634_v49, %v3632_v46  ;;  %v3750_v27 = vadd.f32 %v3749_v34, %v9064_v24  ;;  %v3793_v9 = vmax.f32 %v3746_v7, 0.0  ;;  %v9855_v7 = vld [vmem:[#allocation9_spill] sm:$0xff]  ;;  %v9856_v34 = vld [vmem:[#allocation11_spill] sm:$0xff] }
 0x4fe   : > { %v3794_v11 = vmax.f32 %v3748_v1, 0.0  ;;  %v1233_v22 = vmul.f32 %v9855_v7, %v7462_v47 }
 0x4ff   : > { %v3795_v0 = vmax.f32 %v3750_v27, 0.0  ;;  %4095 = vmatprep.mubr.bf16.mxu0 %v3848_v58  ;;  %v1235_v58 = vmul.f32 %v9856_v34, %v7462_v47  ;;  %v1236_v27 = vmul.f32 %v9856_v34, %v7465_v3 }
 0x500   : > { %v4168_v60 = vpack.c.bf16 %v3794_v11, %v3792_v16  ;;  %4096 = vmatmul.mubr.bf16.gmra.mrb[148].mxu0 %v3847_v26  ;;  %v1234_v26 = vmul.f32 %v9855_v7, %v7465_v3 }
 0x501   : > { %v4169_v35 = vpack.c.bf16 %v3795_v0, %v3793_v9 }
 0x503   : > { %4256 = vmatprep.mubr.bf16.mxu1 %v4169_v35  ;;  %v1266_v35 = vadd.f32 %v1234_v26, %v7473_v51 }
 0x504   : > { %4257 = vmatmul.mubr.bf16.gmra.mrb[148].mxu1 %v4168_v60  ;;  %v1265_v60 = vadd.f32 %v1233_v22, %v7469_v48 }
 0x50e   : > { %v3592_v30 = vpop.f32.mrb[120].mxu0 }
 0x50f   : > { %v3593_v57 = vadd.f32 %v3592_v30, %v9060_v41  ;;  %v3594_v36 = vpop.f32.mrb[121].mxu0  ;;  %v9857_v30 = vld [vmem:[#allocation12_spill] sm:$0xff] }
 0x510   : > { %v3595_v28 = vadd.f32 %v3594_v36, %v9064_v24  ;;  %v3596_v50 = vpop.f32.mrb[122].mxu0  ;;  %v1428_v36 = vmul.f32 %v9857_v30, %v9802_v5 }
 0x511   : > { %v3597_v12 = vadd.f32 %v3596_v50, %v9060_v41  ;;  %v3598_v40 = vpop.f32.mrb[123].mxu0  ;;  %v3635_v43 = vmax.f32 %v3593_v57, 0.0  ;;  %v1427_v57 = vmul.f32 %v9857_v30, %v9806_v54  ;;  %v9858_v50 = vld [vmem:[#allocation17_spill] sm:$0xff] }
 0x512   : > { %v3599_v42 = vadd.f32 %v3598_v40, %v9064_v24  ;;  %v3636_v20 = vmax.f32 %v3595_v28, 0.0 }
 0x513   : > { %v3637_v44 = vmax.f32 %v3597_v12, 0.0  ;;  %v1425_v12 = vmul.f32 %v9858_v50, %v9806_v54 }
 0x514   : > { %v3638_v29 = vmax.f32 %v3599_v42, 0.0 }
 0x515   : > { %v3849_v4 = vpack.c.bf16 %v3637_v44, %v3635_v43  ;;  %v1267_v44 = vadd.f32 %v1235_v58, %v7469_v48 }
 0x516   : > { %v3850_v61 = vpack.c.bf16 %v3638_v29, %v3636_v20  ;;  %v1268_v20 = vadd.f32 %v1236_v27, %v7473_v51  ;;  %v1457_v51 = vadd.f32 %v1425_v12, %v1265_v60 }
 0x517   : > { %v3753_v25 = vpop.f32.mrb[120].mxu1 }
 0x518   : > { %v3754_v62 = vadd.f32 %v3753_v25, %v9060_v41  ;;  %v3755_v63 = vpop.f32.mrb[121].mxu1  ;;  %4105 = vmatprep.mubr.bf16.mxu0 %v3850_v61 }
 0x519   : > { %v3756_v52 = vadd.f32 %v3755_v63, %v9064_v24  ;;  %v3757_v19 = vpop.f32.mrb[122].mxu1  ;;  %4106 = vmatmul.mubr.bf16.gmra.mrb[152].mxu0 %v3849_v4 }
 0x51a   : > { %v3758_v31 = vadd.f32 %v3757_v19, %v9060_v41  ;;  %v3759_v10 = vpop.f32.mrb[123].mxu1  ;;  %v3796_v45 = vmax.f32 %v3754_v62, 0.0  ;;  %v1426_v62 = vmul.f32 %v9858_v50, %v9802_v5  ;;  %v9860_v5 = vld [vmem:[#allocation23_spill] sm:$0xff] }
 0x51b   : > { %v3760_v32 = vadd.f32 %v3759_v10, %v9064_v24  ;;  %v3797_v56 = vmax.f32 %v3756_v52, 0.0  ;;  %v1620_v22 = vmul.f32 %v9860_v5, %v9734_v23 }
 0x51c   : > { %v3798_v14 = vmax.f32 %v3758_v31, 0.0  ;;  %v9859_v31 = vld [vmem:[#allocation21_spill] sm:$0xff] }
 0x51d   : > { %v3799_v21 = vmax.f32 %v3760_v32, 0.0  ;;  %v1617_v10 = vmul.f32 %v9859_v31, %v7502_v15 }
 0x51e   : > { %v4170_v46 = vpack.c.bf16 %v3798_v14, %v3796_v45  ;;  %v1618_v45 = vmul.f32 %v9859_v31, %v9734_v23  ;;  %v9864_v31 = vld [vmem:[#allocation54_spill] sm:$0xff] }
 0x51f   : > { %v4171_v49 = vpack.c.bf16 %v3799_v21, %v3797_v56 }
 0x521   : > { %4266 = vmatprep.mubr.bf16.mxu1 %v4171_v49 }
 0x522   : > { %4267 = vmatmul.mubr.bf16.gmra.mrb[152].mxu1 %v4170_v46  ;;  %v1619_v46 = vmul.f32 %v9860_v5, %v7502_v15 }
 0x535   : > { %v3602_v1 = vpop.f32.mrb[124].mxu0 }
 0x536   : > { %v3603_v16 = vadd.f32 %v3602_v1, %v9060_v41  ;;  %v3604_v11 = vpop.f32.mrb[125].mxu0  ;;  %v1649_v1 = vadd.f32 %v1617_v10, %v1457_v51 }
 0x537   : > { %v3605_v9 = vadd.f32 %v3604_v11, %v9064_v24  ;;  %v3606_v0 = vpop.f32.mrb[126].mxu0 }
 0x538   : > { %v3607_v47 = vadd.f32 %v3606_v0, %v9060_v41  ;;  %v3608_v28 = vpop.f32.mrb[127].mxu0  ;;  %v3763_v3 = vpop.f32.mrb[124].mxu1  ;;  %v3639_v29 = vmax.f32 %v3603_v16, 0.0  ;;  %v1460_v16 = vadd.f32 %v1428_v36, %v1268_v20 }
 0x539   : > { %v3609_v40 = vadd.f32 %v3608_v28, %v9064_v24  ;;  %v3764_v42 = vadd.f32 %v3763_v3, %v9060_v41  ;;  %v3765_v43 = vpop.f32.mrb[125].mxu1  ;;  %v3640_v63 = vmax.f32 %v3605_v9, 0.0 }
 0x53a   : > { %v3641_v4 = vmax.f32 %v3607_v47, 0.0  ;;  %v3766_v61 = vadd.f32 %v3765_v43, %v9064_v24  ;;  %v3767_v25 = vpop.f32.mrb[126].mxu1  ;;  %v1652_v47 = vadd.f32 %v1620_v22, %v1460_v16  ;;  %v9869_v16 = vld [vmem:[#allocation33_spill] sm:$0xff] }
 0x53b   : > { %v3642_v52 = vmax.f32 %v3609_v40, 0.0  ;;  %v3768_v54 = vadd.f32 %v3767_v25, %v9060_v41  ;;  %v3769_v19 = vpop.f32.mrb[127].mxu1  ;;  %v3800_v56 = vmax.f32 %v3764_v42, 0.0  ;;  %v1458_v41 = vadd.f32 %v1426_v62, %v1266_v35  ;;  %v9863_v25 = vld [vmem:[#allocation31_spill] sm:$0xff] }
 0x53c   : > { %v3851_v32 = vpack.c.bf16 %v3641_v4, %v3639_v29  ;;  %v3770_v48 = vadd.f32 %v3769_v19, %v9064_v24  ;;  %v3801_v49 = vmax.f32 %v3766_v61, 0.0  ;;  %v1459_v24 = vadd.f32 %v1427_v57, %v1267_v44  ;;  %v9861_v44 = vld [vmem:[#allocation20_spill] sm:$0xff]  ;;  %v9862_v29 = vld [vmem:[#allocation30_spill] sm:$0xff] }
 0x53d   : > { %v3852_v14 = vpack.c.bf16 %v3642_v52, %v3640_v63  ;;  %v3802_v21 = vmax.f32 %v3768_v54, 0.0  ;;  %v1650_v27 = vadd.f32 %v1618_v45, %v1458_v41  ;;  %v993_v36 = vmul.f32 %v7502_v15, %v9861_v44 }
 0x53e   : > { %v3803_v7 = vmax.f32 %v3770_v48, 0.0  ;;  %v1651_v0 = vadd.f32 %v1619_v46, %v1459_v24  ;;  %v994_v20 = vmul.f32 %v9734_v23, %v9861_v44  ;;  %v9865_v48 = vld [vmem:[#allocation55_spill] sm:$0xff]  ;;  %v6871_v44 = vld [vmem:[#allocation2 + $0x640] ss:$8 sps:$4 sm:$0xff]  }
 0x53f   : > { %v4172_v26 = vpack.c.bf16 %v3802_v21, %v3800_v56  ;;  %4115 = vmatprep.mubr.bf16.mxu0 %v3852_v14  ;;  %v1025_v4 = vadd.f32 %v993_v36, %v9862_v29  ;;  %v6873_v36 = vld [vmem:[#allocation2 + $0x644] ss:$8 sps:$4 sm:$0xff]  }
 0x540   : > { %v4173_v34 = vpack.c.bf16 %v3803_v7, %v3801_v49  ;;  %4116 = vmatmul.mubr.bf16.gmra.mrb[156].mxu0 %v3851_v32  ;;  %v4208_v58 = vpop.f32.mrb[128].mxu1  ;;  %v1026_v62 = vadd.f32 %v994_v20, %v9863_v25  ;;  %v9866_v7 = vld [vmem:[#allocation61_spill] sm:$0xff]  ;;  %v6876_v20 = vld [vmem:[#allocation2 + $0x654] ss:$8 sps:$4 sm:$0xff]  }
 0x541   : > { %v4209_v11 = vadd.f32 %v4208_v58, %v1649_v1  ;;  %v4210_v9 = vpop.f32.mrb[129].mxu1 }
 0x542   : > { %v4211_v60 = vadd.f32 %v4210_v9, %v1650_v27  ;;  %v4212_v30 = vpop.f32.mrb[130].mxu1  ;;  %4276 = vmatprep.mubr.bf16.mxu1 %v4173_v34  ;;  %v9868_v34 = vld [vmem:[#allocation8_spill] sm:$0xff] }
 0x543   : > { %v4213_v35 = vadd.f32 %v4212_v30, %v1651_v0  ;;  %v4214_v28 = vpop.f32.mrb[131].mxu1  ;;  %4277 = vmatmul.mubr.bf16.gmra.mrb[156].mxu1 %v4172_v26  ;;  %v4287_v50 = vmax.f32 %v4209_v11, 0.0  ;;  %v9867_v26 = vld [vmem:[#allocation62_spill] sm:$0xff]  ;;  %v6859_v9 = vld [vmem:[#allocation2 + $0x600] ss:$8 sps:$4 sm:$0xff]  }
 0x544   : > { %v4215_v3 = vadd.f32 %v4214_v28, %v1652_v47  ;;  %v4288_v40 = vmax.f32 %v4211_v60, 0.0  ;;  %v6861_v0 = vld [vmem:[#allocation2 + $0x604] ss:$8 sps:$4 sm:$0xff]   ;;  %v6864_v47 = vld [vmem:[#allocation2 + $0x614] ss:$8 sps:$4 sm:$0xff]  }
 0x545   : > { %v4289_v12 = vmax.f32 %v4213_v35, 0.0  ;;  %5220 = vmatprep.subr.bf16.mxu1 %v6861_v0  ;;  %5059 = vmatprep.subr.bf16.mxu0 %v6861_v0  ;;  %v6880_v0 = vld [vmem:[#allocation2 + $0x670] ss:$8 sps:$4 sm:$0xff]  }
 0x546   : > { %v4290_v57 = vmax.f32 %v4215_v3, 0.0 }
 0x547   : > { %v4681_v42 = vpack.c.bf16 %v4289_v12, %v4287_v50  ;;  %v6862_v12 = vld [vmem:[#allocation2 + $0x610] ss:$8 sps:$4 sm:$0xff]  }
 0x548   : > { %v4682_v43 = vpack.c.bf16 %v4290_v57, %v4288_v40  ;;  %v4047_v61 = vpop.f32.mrb[128].mxu0  ;;  %v6865_v40 = vld [vmem:[#allocation2 + $0x620] ss:$8 sps:$4 sm:$0xff]   ;;  %v6867_v57 = vld [vmem:[#allocation2 + $0x624] ss:$8 sps:$4 sm:$0xff]  }
 0x549   : > { %v4048_v63 = vadd.f32 %v4047_v61, %v1025_v4  ;;  %v4049_v52 = vpop.f32.mrb[129].mxu0  ;;  %v9870_v4 = vld [vmem:[#allocation36_spill] sm:$0xff] }
 0x54a   : > { %4729 = vmatprep.mubr.bf16.mxu1 %v4682_v43  ;;  %v4050_v54 = vadd.f32 %v4049_v52, %v1026_v62  ;;  %v4051_v19 = vpop.f32.mrb[130].mxu0  ;;  %v6868_v43 = vld [vmem:[#allocation2 + $0x630] ss:$8 sps:$4 sm:$0xff]  }
 0x54b   : > { %4730 = vmatmul.mubr.bf16.vlgmr.msra.gmra.mrb[160].mxu1 %v4681_v42  ;;  %v4052_v10 = vadd.f32 %v4051_v19, %v9864_v31  ;;  %v4053_v32 = vpop.f32.mrb[131].mxu0  ;;  %v4126_v45 = vmax.f32 %v4048_v63, 0.0  ;;  %v6870_v42 = vld [vmem:[#allocation2 + $0x634] ss:$8 sps:$4 sm:$0xff]   ;;  %v6874_v62 = vld [vmem:[#allocation2 + $0x650] ss:$8 sps:$4 sm:$0xff]  }
 0x54c   : > { %v4054_v51 = vadd.f32 %v4053_v32, %v9865_v48  ;;  %v4127_v56 = vmax.f32 %v4050_v54, 0.0  ;;  %5221 = vmatpush1.bf16.msra.mxu1 %v6859_v9  ;;  %v9871_v63 = vld [vmem:[#allocation35_spill] sm:$0xff]  ;;  %v6879_v19 = vld [vmem:[#allocation2 + $0x664] ss:$8 sps:$4 sm:$0xff]  }
 0x54d   : > { %v4128_v14 = vmax.f32 %v4052_v10, 0.0  ;;  %5222 = vmatprep.subr.bf16.mxu1 %v6864_v47  ;;  %v9872_v31 = vld [vmem:[#allocation77_spill] sm:$0xff]  ;;  %v9873_v48 = vld [vmem:[#allocation32_spill] sm:$0xff] }
 0x54e   : > { %v4129_v21 = vmax.f32 %v4054_v51, 0.0 }
 0x54f   : > { %v4352_v5 = vpack.c.bf16 %v4128_v14, %v4126_v45 }
 0x550   : > { %v4353_v46 = vpack.c.bf16 %v4129_v21, %v4127_v56  ;;  %5223 = vmatpush1.bf16.msra.mxu1 %v6862_v12  ;;  %v6877_v56 = vld [vmem:[#allocation2 + $0x660] ss:$8 sps:$4 sm:$0xff]  }
 0x551   : > { %5224 = vmatprep.subr.bf16.mxu1 %v6867_v57 }
 0x552   : > { %4568 = vmatprep.mubr.bf16.mxu0 %v4353_v46  ;;  %v6882_v46 = vld [vmem:[#allocation2 + $0x674] ss:$8 sps:$4 sm:$0xff]  }
 0x553   : > { %4569 = vmatmul.mubr.bf16.vlgmr.msra.gmra.mrb[160].mxu0 %v4352_v5 }
 0x554   : > { %5060 = vmatpush1.bf16.msra.mxu0 %v6859_v9  ;;  %5225 = vmatpush1.bf16.msra.mxu1 %v6865_v40 }
 0x555   : > { %5061 = vmatprep.subr.bf16.mxu0 %v6864_v47  ;;  %5226 = vmatprep.subr.bf16.mxu1 %v6870_v42 }
 0x557   : > { %v4218_v49 = vpop.f32.mrb[132].mxu1 }
 0x558   : > { %v4219_v41 = vadd.f32 %v4218_v49, %v9866_v7  ;;  %v4220_v22 = vpop.f32.mrb[133].mxu1  ;;  %5062 = vmatpush1.bf16.msra.mxu0 %v6862_v12  ;;  %5227 = vmatpush1.bf16.msra.mxu1 %v6868_v43  ;;  %v9879_v12 = vld [vmem:[#allocation67_spill] sm:$0xff] }
 0x559   : > { %v4221_v1 = vadd.f32 %v4220_v22, %v9867_v26  ;;  %v4222_v24 = vpop.f32.mrb[134].mxu1  ;;  %5063 = vmatprep.subr.bf16.mxu0 %v6867_v57  ;;  %5228 = vmatprep.subr.bf16.mxu1 %v6873_v36  ;;  %v9874_v26 = vld [vmem:[#allocation39_spill] sm:$0xff] }
 0x55a   : > { %v4223_v58 = vadd.f32 %v4222_v24, %v9868_v34  ;;  %v4224_v27 = vpop.f32.mrb[135].mxu1  ;;  %v4291_v60 = vmax.f32 %v4219_v41, 0.0  ;;  %v9875_v34 = vld [vmem:[#allocation59_spill] sm:$0xff] }
 0x55b   : > { %v4225_v11 = vadd.f32 %v4224_v27, %v9869_v16  ;;  %v4292_v35 = vmax.f32 %v4221_v1, 0.0  ;;  %v9876_v16 = vld [vmem:[#allocation80_spill] sm:$0xff] }
 0x55c   : > { %v4293_v30 = vmax.f32 %v4223_v58, 0.0  ;;  %5064 = vmatpush1.bf16.msra.mxu0 %v6865_v40  ;;  %5229 = vmatpush1.bf16.msra.mxu1 %v6871_v44 }
 0x55d   : > { %v4294_v28 = vmax.f32 %v4225_v11, 0.0  ;;  %5065 = vmatprep.subr.bf16.mxu0 %v6870_v42  ;;  %5230 = vmatprep.subr.bf16.mxu1 %v6876_v20  ;;  %v9880_v42 = vld [vmem:[#allocation74_spill] sm:$0xff] }
 0x55e   : > { %v4683_v3 = vpack.c.bf16 %v4293_v30, %v4291_v60  ;;  %v9877_v60 = vld [vmem:[#allocation38_spill] sm:$0xff] }
 0x55f   : > { %v4684_v50 = vpack.c.bf16 %v4294_v28, %v4292_v35  ;;  %v9878_v35 = vld [vmem:[#allocation70_spill] sm:$0xff] }
 0x560   : > { %5066 = vmatpush1.bf16.msra.mxu0 %v6868_v43  ;;  %5231 = vmatpush1.bf16.msra.mxu1 %v6874_v62 }
 0x561   : > { %4739 = vmatprep.mubr.bf16.mxu1 %v4684_v50  ;;  %5067 = vmatprep.subr.bf16.mxu0 %v6873_v36  ;;  %v6885_v50 = vld [vmem:[#allocation2 + $0x684] ss:$8 sps:$4 sm:$0xff]  }
 0x562   : > { %4740 = vmatmul.mubr.bf16.gmra.mrb[164].mxu1 %v4683_v3  ;;  %5232 = vmatprep.subr.bf16.mxu1 %v6879_v19 }
 0x564   : > { %5068 = vmatpush1.bf16.msra.mxu0 %v6871_v44  ;;  %5233 = vmatpush1.bf16.msra.mxu1 %v6877_v56  ;;  %v9881_v44 = vld [vmem:[#allocation22_spill] sm:$0xff] }
 0x565   : > { %5069 = vmatprep.subr.bf16.mxu0 %v6876_v20  ;;  %5234 = vmatprep.subr.bf16.mxu1 %v6882_v46  ;;  %v1005_v36 = vmul.f32 %v7502_v15, %v9881_v44 }
 0x568   : > { %5070 = vmatpush1.bf16.msra.mxu0 %v6874_v62  ;;  %5235 = vmatpush1.bf16.msra.mxu1 %v6880_v0 }
 0x569   : > { %5071 = vmatprep.subr.bf16.mxu0 %v6879_v19  ;;  %v6883_v19 = vld [vmem:[#allocation2 + $0x680] ss:$8 sps:$4 sm:$0xff]   ;;  %5236 = vmatprep.subr.bf16.mxu1 %v6885_v50 }
 0x56c   : > { %5072 = vmatpush1.bf16.msra.mxu0 %v6877_v56  ;;  %5237 = vmatpush1.bf16.msra.mxu1 %v6883_v19 }
 0x56d   : > { %5073 = vmatprep.subr.bf16.mxu0 %v6882_v46 }
 0x570   : > { %5074 = vmatpush1.bf16.msra.mxu0 %v6880_v0  ;;  %v9884_v0 = vld [vmem:[#allocation13_spill] sm:$0xff] }
 0x571   : > { %5075 = vmatprep.subr.bf16.mxu0 %v6885_v50 }
 0x574   : > { %5076 = vmatpush1.bf16.msra.mxu0 %v6883_v19  ;;  %v6903_v19 = vld [vmem:[#allocation2 + $0x6e4] ss:$8 sps:$4 sm:$0xff]  }
 0x581   : > { %v4057_v29 = vpop.f32.mrb[132].mxu0 }
 0x582   : > { %v4058_v61 = vadd.f32 %v4057_v29, %v9870_v4  ;;  %v4059_v25 = vpop.f32.mrb[133].mxu0  ;;  %v9882_v4 = vld [vmem:[#allocation40_spill] sm:$0xff] }
 0x583   : > { %v4060_v52 = vadd.f32 %v4059_v25, %v9871_v63  ;;  %v4061_v54 = vpop.f32.mrb[134].mxu0  ;;  %v1006_v25 = vmul.f32 %v9734_v23, %v9881_v44 }
 0x584   : > { %v4062_v10 = vadd.f32 %v4061_v54, %v9872_v31  ;;  %v4063_v32 = vpop.f32.mrb[135].mxu0  ;;  %v4130_v45 = vmax.f32 %v4058_v61, 0.0 }
 0x585   : > { %v4064_v51 = vadd.f32 %v4063_v32, %v9873_v48  ;;  %v4131_v21 = vmax.f32 %v4060_v52, 0.0 }
 0x586   : > { %v4132_v14 = vmax.f32 %v4062_v10, 0.0 }
 0x587   : > { %v4133_v5 = vmax.f32 %v4064_v51, 0.0  ;;  %v4228_v7 = vpop.f32.mrb[136].mxu1 }
 0x588   : > { %v4354_v49 = vpack.c.bf16 %v4132_v14, %v4130_v45  ;;  %v4229_v1 = vadd.f32 %v4228_v7, %v9874_v26  ;;  %v4230_v24 = vpop.f32.mrb[137].mxu1  ;;  %v1037_v45 = vadd.f32 %v1005_v36, %v8392_v38  ;;  %v9883_v14 = vld [vmem:[#allocation24_spill] sm:$0xff]  ;;  %v6886_v26 = vld [vmem:[#allocation2 + $0x690] ss:$8 sps:$4 sm:$0xff]  }
 0x589   : > { %v4355_v41 = vpack.c.bf16 %v4133_v5, %v4131_v21  ;;  %v4067_v22 = vpop.f32.mrb[136].mxu0  ;;  %v4231_v11 = vadd.f32 %v4230_v24, %v9876_v16  ;;  %v4232_v9 = vpop.f32.mrb[138].mxu1  ;;  %v1631_v56 = vmul.f32 %v9883_v14, %v7502_v15  ;;  %v6888_v21 = vld [vmem:[#allocation2 + $0x694] ss:$8 sps:$4 sm:$0xff]   ;;  %v1632_v7 = vmul.f32 %v9883_v14, %v9734_v23 }
 0x58a   : > { %v4068_v58 = vadd.f32 %v4067_v22, %v9875_v34  ;;  %v4069_v27 = vpop.f32.mrb[137].mxu0  ;;  %v4233_v28 = vadd.f32 %v4232_v9, %v9878_v35  ;;  %v4234_v3 = vpop.f32.mrb[139].mxu1  ;;  %v4295_v20 = vmax.f32 %v4229_v1, 0.0  ;;  %v6891_v34 = vld [vmem:[#allocation2 + $0x6a4] ss:$8 sps:$4 sm:$0xff]   ;;  %5238 = vmatprep.subr.bf16.mxu1 %v6888_v21  ;;  %5077 = vmatprep.subr.bf16.mxu0 %v6888_v21  ;;  %v9887_v14 = vld [vmem:[#allocation75_spill] sm:$0xff] }
 0x58b   : > { %v4070_v30 = vadd.f32 %v4069_v27, %v9877_v60  ;;  %v4071_v47 = vpop.f32.mrb[138].mxu0  ;;  %4578 = vmatprep.mubr.bf16.mxu0 %v4355_v41  ;;  %v4235_v43 = vadd.f32 %v4234_v3, %v9880_v42  ;;  %v4296_v63 = vmax.f32 %v4231_v11, 0.0  ;;  %v1663_v11 = vadd.f32 %v1631_v56, %v8462_v13  ;;  %5239 = vmatpush1.bf16.msra.mxu1 %v6886_v26 }
 0x58c   : > { %v4072_v40 = vadd.f32 %v4071_v47, %v9879_v12  ;;  %v4073_v57 = vpop.f32.mrb[139].mxu0  ;;  %4579 = vmatmul.mubr.bf16.gmra.mrb[164].mxu0 %v4354_v49  ;;  %v4297_v29 = vmax.f32 %v4233_v28, 0.0  ;;  %v4134_v62 = vmax.f32 %v4068_v58, 0.0  ;;  %v1038_v49 = vadd.f32 %v1006_v25, %v8403_v17  ;;  %v9885_v47 = vld [vmem:[#allocation34_spill] sm:$0xff]  ;;  %5240 = vmatprep.subr.bf16.mxu1 %v6891_v34  ;;  %v6895_v25 = vld [vmem:[#allocation2 + $0x6c0] ss:$8 sps:$4 sm:$0xff]  }
 0x58d   : > { %v4074_v61 = vadd.f32 %v4073_v57, %v9882_v4  ;;  %v4298_v54 = vmax.f32 %v4235_v43, 0.0  ;;  %v4135_v31 = vmax.f32 %v4070_v30, 0.0  ;;  %v1664_v35 = vadd.f32 %v1632_v7, %v9885_v47  ;;  %5078 = vmatpush1.bf16.msra.mxu0 %v6886_v26  ;;  %v6892_v4 = vld [vmem:[#allocation2 + $0x6b0] ss:$8 sps:$4 sm:$0xff]   ;;  %v9892_v47 = vld [vmem:[#allocation69_spill] sm:$0xff] }
 0x58e   : > { %v4136_v52 = vmax.f32 %v4072_v40, 0.0  ;;  %v4685_v10 = vpack.c.bf16 %v4297_v29, %v4295_v20  ;;  %5079 = vmatprep.subr.bf16.mxu0 %v6891_v34 }
 0x58f   : > { %v4137_v32 = vmax.f32 %v4074_v61, 0.0  ;;  %v4686_v51 = vpack.c.bf16 %v4298_v54, %v4296_v63  ;;  %v6894_v61 = vld [vmem:[#allocation2 + $0x6b4] ss:$8 sps:$4 sm:$0xff]   ;;  %v6901_v54 = vld [vmem:[#allocation2 + $0x6e0] ss:$8 sps:$4 sm:$0xff]  }
 0x590   : > { %v4356_v48 = vpack.c.bf16 %v4136_v52, %v4134_v62  ;;  %v6897_v62 = vld [vmem:[#allocation2 + $0x6c4] ss:$8 sps:$4 sm:$0xff]   ;;  %v6900_v63 = vld [vmem:[#allocation2 + $0x6d4] ss:$8 sps:$4 sm:$0xff]   ;;  %v6898_v52 = vld [vmem:[#allocation2 + $0x6d0] ss:$8 sps:$4 sm:$0xff]  }
 0x591   : > { %v4357_v5 = vpack.c.bf16 %v4137_v32, %v4135_v31  ;;  %v4077_v46 = vpop.f32.mrb[140].mxu0  ;;  %4749 = vmatprep.mubr.bf16.mxu1 %v4686_v51  ;;  %v6906_v31 = vld [vmem:[#allocation2 + $0x6f4] ss:$8 sps:$4 sm:$0xff]   ;;  %v9886_v32 = vld [vmem:[#allocation25_spill] sm:$0xff] }
 0x592   : > { %v4078_v41 = vadd.f32 %v4077_v46, %v1037_v45  ;;  %v4079_v22 = vpop.f32.mrb[141].mxu0  ;;  %4750 = vmatmul.mubr.bf16.gmra.mrb[168].mxu1 %v4685_v10  ;;  %v4238_v24 = vpop.f32.mrb[140].mxu1  ;;  %v6904_v10 = vld [vmem:[#allocation2 + $0x6f0] ss:$8 sps:$4 sm:$0xff]   ;;  %v1012_v45 = vmul.f32 %v9734_v23, %v9886_v32 }
 0x593   : > { %4588 = vmatprep.mubr.bf16.mxu0 %v4357_v5  ;;  %v4080_v1 = vadd.f32 %v4079_v22, %v1038_v49  ;;  %v4081_v38 = vpop.f32.mrb[142].mxu0  ;;  %v4239_v17 = vadd.f32 %v4238_v24, %v8440_v2  ;;  %v4240_v16 = vpop.f32.mrb[141].mxu1  ;;  %v9888_v5 = vld [vmem:[#allocation48_spill] sm:$0xff]  ;;  %v9889_v49 = vld [vmem:[#allocation42_spill] sm:$0xff] }
 0x594   : > { %4589 = vmatmul.mubr.bf16.gmra.mrb[168].mxu0 %v4356_v48  ;;  %v4082_v58 = vadd.f32 %v4081_v38, %v8436_v37  ;;  %v4083_v27 = vpop.f32.mrb[143].mxu0  ;;  %v4241_v60 = vadd.f32 %v4240_v16, %v9884_v0  ;;  %v4242_v30 = vpop.f32.mrb[142].mxu1  ;;  %v4138_v28 = vmax.f32 %v4078_v41, 0.0  ;;  %v6889_v37 = vld [vmem:[#allocation2 + $0x6a0] ss:$8 sps:$4 sm:$0xff]   ;;  %v1011_v48 = vmul.f32 %v7502_v15, %v9886_v32  ;;  %v9890_v22 = vld [vmem:[#allocation66_spill] sm:$0xff] }
 0x595   : > { %v4084_v9 = vadd.f32 %v4083_v27, %v8438_v59  ;;  %v4243_v50 = vadd.f32 %v4242_v30, %v1663_v11  ;;  %v4244_v12 = vpop.f32.mrb[143].mxu1  ;;  %v4139_v2 = vmax.f32 %v4080_v1, 0.0  ;;  %v4299_v42 = vmax.f32 %v4239_v17, 0.0  ;;  %5241 = vmatpush1.bf16.msra.mxu1 %v6889_v37  ;;  %5080 = vmatpush1.bf16.msra.mxu0 %v6889_v37  ;;  %v9891_v0 = vld [vmem:[#allocation47_spill] sm:$0xff]  ;;  %v9894_v37 = vld [vmem:[#allocation72_spill] sm:$0xff] }
 0x596   : > { %v4140_v3 = vmax.f32 %v4082_v58, 0.0  ;;  %v4245_v57 = vadd.f32 %v4244_v12, %v1664_v35  ;;  %v4300_v44 = vmax.f32 %v4241_v60, 0.0  ;;  %5242 = vmatprep.subr.bf16.mxu1 %v6894_v61  ;;  %5081 = vmatprep.subr.bf16.mxu0 %v6894_v61  ;;  %v1043_v46 = vadd.f32 %v1011_v48, %v9888_v5  ;;  %v9899_v48 = vld [vmem:[#allocation27_spill] sm:$0xff] }
 0x597   : > { %v4141_v40 = vmax.f32 %v4084_v9, 0.0  ;;  %v4301_v59 = vmax.f32 %v4243_v50, 0.0  ;;  %v1044_v26 = vadd.f32 %v1012_v45, %v9890_v22  ;;  %v9900_v45 = vld [vmem:[#allocation60_spill] sm:$0xff]  ;;  %v9902_v22 = vld [vmem:[#allocation78_spill] sm:$0xff] }
 0x598   : > { %v4358_v13 = vpack.c.bf16 %v4140_v3, %v4138_v28  ;;  %v4302_v36 = vmax.f32 %v4245_v57, 0.0  ;;  %v9893_v3 = vld [vmem:[#allocation71_spill] sm:$0xff] }
 0x599   : > { %v4359_v43 = vpack.c.bf16 %v4141_v40, %v4139_v2  ;;  %v4687_v20 = vpack.c.bf16 %v4301_v59, %v4299_v42  ;;  %5243 = vmatpush1.bf16.msra.mxu1 %v6892_v4  ;;  %5082 = vmatpush1.bf16.msra.mxu0 %v6892_v4 }
 0x59a   : > { %v4688_v29 = vpack.c.bf16 %v4302_v36, %v4300_v44  ;;  %5244 = vmatprep.subr.bf16.mxu1 %v6897_v62  ;;  %5083 = vmatprep.subr.bf16.mxu0 %v6897_v62  ;;  %v9895_v44 = vld [vmem:[#allocation26_spill] sm:$0xff] }
 0x59b   : > { %4598 = vmatprep.mubr.bf16.mxu0 %v4359_v43  ;;  %v1013_v36 = vmul.f32 %v7502_v15, %v9895_v44 }
 0x59c   : > { %4599 = vmatmul.mubr.bf16.gmra.mrb[172].mxu0 %v4358_v13  ;;  %4759 = vmatprep.mubr.bf16.mxu1 %v4688_v29  ;;  %v9896_v29 = vld [vmem:[#allocation63_spill] sm:$0xff] }
 0x59d   : > { %4760 = vmatmul.mubr.bf16.gmra.mrb[172].mxu1 %v4687_v20  ;;  %5084 = vmatpush1.bf16.msra.mxu0 %v6895_v25  ;;  %v1014_v20 = vmul.f32 %v9734_v23, %v9895_v44  ;;  %v1045_v4 = vadd.f32 %v1013_v36, %v9896_v29 }
 0x59e   : > { %5245 = vmatpush1.bf16.msra.mxu1 %v6895_v25  ;;  %5085 = vmatprep.subr.bf16.mxu0 %v6900_v63  ;;  %v9897_v25 = vld [vmem:[#allocation65_spill] sm:$0xff] }
 0x59f   : > { %5246 = vmatprep.subr.bf16.mxu1 %v6900_v63  ;;  %v1046_v62 = vadd.f32 %v1014_v20, %v9897_v25 }
 0x5a1   : > { %5086 = vmatpush1.bf16.msra.mxu0 %v6898_v52 }
 0x5a2   : > { %5247 = vmatpush1.bf16.msra.mxu1 %v6898_v52  ;;  %5087 = vmatprep.subr.bf16.mxu0 %v6903_v19 }
 0x5a3   : > { %5248 = vmatprep.subr.bf16.mxu1 %v6903_v19 }
 0x5a5   : > { %5088 = vmatpush1.bf16.msra.mxu0 %v6901_v54 }
 0x5a6   : > { %5249 = vmatpush1.bf16.msra.mxu1 %v6901_v54  ;;  %5089 = vmatprep.subr.bf16.mxu0 %v6906_v31 }
 0x5a7   : > { %5250 = vmatprep.subr.bf16.mxu1 %v6906_v31  ;;  %v9898_v31 = vld [vmem:[#allocation29_spill] sm:$0xff] }
 0x5a9   : > { %5090 = vmatpush1.bf16.msra.mxu0 %v6904_v10 }
 0x5aa   : > { %5251 = vmatpush1.bf16.msra.mxu1 %v6904_v10 }
 0x5af   : > { %v4087_v51 = vpop.f32.mrb[144].mxu0 }
 0x5b0   : > { %v4088_v56 = vadd.f32 %v4087_v51, %v9887_v14  ;;  %v4089_v21 = vpop.f32.mrb[145].mxu0  ;;  %v1639_v51 = vmul.f32 %v9899_v48, %v7502_v15 }
 0x5b1   : > { %v4090_v7 = vadd.f32 %v4089_v21, %v9889_v49  ;;  %v4091_v41 = vpop.f32.mrb[146].mxu0  ;;  %v1640_v21 = vmul.f32 %v9899_v48, %v9734_v23  ;;  %v9901_v49 = vld [vmem:[#allocation53_spill] sm:$0xff] }
 0x5b2   : > { %v4092_v1 = vadd.f32 %v4091_v41, %v1043_v46  ;;  %v4093_v38 = vpop.f32.mrb[147].mxu0  ;;  %v4142_v34 = vmax.f32 %v4088_v56, 0.0 }
 0x5b3   : > { %v4094_v24 = vadd.f32 %v4093_v38, %v1044_v26  ;;  %v4143_v27 = vmax.f32 %v4090_v7, 0.0  ;;  %v1671_v26 = vadd.f32 %v1639_v51, %v9902_v22  ;;  %v9913_v22 = vld [vmem:[#allocation46_spill] sm:$0xff] }
 0x5b4   : > { %v4144_v58 = vmax.f32 %v4092_v1, 0.0 }
 0x5b5   : > { %v4145_v17 = vmax.f32 %v4094_v24, 0.0  ;;  %v9903_v24 = vld [vmem:[#allocation73_spill] sm:$0xff] }
 0x5b6   : > { %v4360_v16 = vpack.c.bf16 %v4144_v58, %v4142_v34 }
 0x5b7   : > { %v4361_v11 = vpack.c.bf16 %v4145_v17, %v4143_v27  ;;  %v4248_v9 = vpop.f32.mrb[144].mxu1  ;;  %v9904_v27 = vld [vmem:[#allocation79_spill] sm:$0xff] }
 0x5b8   : > { %v4249_v60 = vadd.f32 %v4248_v9, %v9891_v0  ;;  %v4250_v30 = vpop.f32.mrb[145].mxu1  ;;  %v1672_v15 = vadd.f32 %v1640_v21, %v9904_v27 }
 0x5b9   : > { %v4251_v35 = vadd.f32 %v4250_v30, %v9892_v47  ;;  %v4252_v28 = vpop.f32.mrb[146].mxu1  ;;  %4608 = vmatprep.mubr.bf16.mxu0 %v4361_v11 }
 0x5ba   : > { %v4253_v50 = vadd.f32 %v4252_v28, %v9893_v3  ;;  %v4254_v12 = vpop.f32.mrb[147].mxu1  ;;  %4609 = vmatmul.mubr.bf16.gmra.mrb[176].mxu0 %v4360_v16  ;;  %v4303_v40 = vmax.f32 %v4249_v60, 0.0 }
 0x5bb   : > { %v4255_v2 = vadd.f32 %v4254_v12, %v9894_v37  ;;  %v4304_v13 = vmax.f32 %v4251_v35, 0.0 }
 0x5bc   : > { %v4305_v57 = vmax.f32 %v4253_v50, 0.0  ;;  %v9905_v50 = vld [vmem:[#allocation37_spill] sm:$0xff] }
 0x5bd   : > { %v4306_v42 = vmax.f32 %v4255_v2, 0.0  ;;  %v9906_v2 = vld [vmem:[#allocation50_spill] sm:$0xff] }
 0x5be   : > { %v4689_v59 = vpack.c.bf16 %v4305_v57, %v4303_v40 }
 0x5bf   : > { %v4690_v43 = vpack.c.bf16 %v4306_v42, %v4304_v13  ;;  %v9907_v13 = vld [vmem:[#allocation28_spill] sm:$0xff] }
 0x5c1   : > { %4769 = vmatprep.mubr.bf16.mxu1 %v4690_v43  ;;  %v9908_v43 = vld [vmem:[#allocation76_spill] sm:$0xff] }
 0x5c2   : > { %4770 = vmatmul.mubr.bf16.gmra.mrb[176].mxu1 %v4689_v59 }
 0x5d3   : > { %v4097_v61 = vpop.f32.mrb[148].mxu0 }
 0x5d4   : > { %v4098_v63 = vadd.f32 %v4097_v61, %v1045_v4  ;;  %v4099_v52 = vpop.f32.mrb[149].mxu0 }
 0x5d5   : > { %v4100_v54 = vadd.f32 %v4099_v52, %v1046_v62  ;;  %v4101_v19 = vpop.f32.mrb[150].mxu0 }
 0x5d6   : > { %v4102_v10 = vadd.f32 %v4101_v19, %v9898_v31  ;;  %v4103_v32 = vpop.f32.mrb[151].mxu0  ;;  %v4146_v5 = vmax.f32 %v4098_v63, 0.0  ;;  %v9909_v63 = vld [vmem:[#allocation19_spill] sm:$0xff]  ;;  %v9910_v19 = vld [vmem:[#allocation44_spill] sm:$0xff] }
 0x5d7   : > { %v4104_v14 = vadd.f32 %v4103_v32, %v9900_v45  ;;  %v4258_v56 = vpop.f32.mrb[148].mxu1  ;;  %v4147_v1 = vmax.f32 %v4100_v54, 0.0  ;;  %v9911_v32 = vld [vmem:[#allocation43_spill] sm:$0xff]  ;;  %v9912_v45 = vld [vmem:[#allocation58_spill] sm:$0xff] }
 0x5d8   : > { %v4148_v46 = vmax.f32 %v4102_v10, 0.0  ;;  %v4259_v7 = vadd.f32 %v4258_v56, %v9901_v49  ;;  %v4260_v41 = vpop.f32.mrb[149].mxu1 }
 0x5d9   : > { %v4149_v38 = vmax.f32 %v4104_v14, 0.0  ;;  %v4261_v34 = vadd.f32 %v4260_v41, %v9903_v24  ;;  %v4262_v58 = vpop.f32.mrb[150].mxu1 }
 0x5da   : > { %v4362_v17 = vpack.c.bf16 %v4148_v46, %v4146_v5  ;;  %v4263_v16 = vadd.f32 %v4262_v58, %v1671_v26  ;;  %v4264_v11 = vpop.f32.mrb[151].mxu1  ;;  %v4307_v23 = vmax.f32 %v4259_v7, 0.0 }
 0x5db   : > { %v4363_v9 = vpack.c.bf16 %v4149_v38, %v4147_v1  ;;  %v4265_v0 = vadd.f32 %v4264_v11, %v1672_v15  ;;  %v4308_v30 = vmax.f32 %v4261_v34, 0.0  ;;  %v9914_v38 = vld [vmem:[#allocation45_spill] sm:$0xff] }
 0x5dc   : > { %v4309_v60 = vmax.f32 %v4263_v16, 0.0 }
 0x5dd   : > { %v4310_v47 = vmax.f32 %v4265_v0, 0.0  ;;  %4618 = vmatprep.mubr.bf16.mxu0 %v4363_v9 }
 0x5de   : > { %v4691_v35 = vpack.c.bf16 %v4309_v60, %v4307_v23  ;;  %4619 = vmatmul.mubr.bf16.gmra.mrb[180].mxu0 %v4362_v17 }
 0x5df   : > { %v4692_v28 = vpack.c.bf16 %v4310_v47, %v4308_v30 }
 0x5e1   : > { %4779 = vmatprep.mubr.bf16.mxu1 %v4692_v28 }
 0x5e2   : > { %4780 = vmatmul.mubr.bf16.gmra.mrb[180].mxu1 %v4691_v35 }
 0x5ec   : > { %v4107_v3 = vpop.f32.mrb[152].mxu0 }
 0x5ed   : > { %v4108_v12 = vadd.f32 %v4107_v3, %v9905_v50  ;;  %v4109_v37 = vpop.f32.mrb[153].mxu0 }
 0x5ee   : > { %v4110_v40 = vadd.f32 %v4109_v37, %v9906_v2  ;;  %v4111_v57 = vpop.f32.mrb[154].mxu0 }
 0x5ef   : > { %v4112_v42 = vadd.f32 %v4111_v57, %v9907_v13  ;;  %v4113_v59 = vpop.f32.mrb[155].mxu0  ;;  %v4150_v36 = vmax.f32 %v4108_v12, 0.0 }
 0x5f0   : > { %v4114_v44 = vadd.f32 %v4113_v59, %v9908_v43  ;;  %v4151_v29 = vmax.f32 %v4110_v40, 0.0 }
 0x5f1   : > { %v4152_v20 = vmax.f32 %v4112_v42, 0.0 }
 0x5f2   : > { %v4153_v4 = vmax.f32 %v4114_v44, 0.0 }
 0x5f3   : > { %v4364_v61 = vpack.c.bf16 %v4152_v20, %v4150_v36 }
 0x5f4   : > { %v4365_v25 = vpack.c.bf16 %v4153_v4, %v4151_v29 }
 0x5f5   : > { %v4268_v62 = vpop.f32.mrb[152].mxu1 }
 0x5f6   : > { %v4269_v52 = vadd.f32 %v4268_v62, %v9909_v63  ;;  %v4270_v54 = vpop.f32.mrb[153].mxu1  ;;  %4628 = vmatprep.mubr.bf16.mxu0 %v4365_v25 }
 0x5f7   : > { %v4271_v31 = vadd.f32 %v4270_v54, %v9910_v19  ;;  %v4272_v10 = vpop.f32.mrb[154].mxu1  ;;  %4629 = vmatmul.mubr.bf16.gmra.mrb[184].mxu0 %v4364_v61 }
 0x5f8   : > { %v4273_v48 = vadd.f32 %v4272_v10, %v9911_v32  ;;  %v4274_v51 = vpop.f32.mrb[155].mxu1  ;;  %v4311_v56 = vmax.f32 %v4269_v52, 0.0 }
 0x5f9   : > { %v4275_v14 = vadd.f32 %v4274_v51, %v9912_v45  ;;  %v4312_v5 = vmax.f32 %v4271_v31, 0.0 }
 0x5fa   : > { %v4313_v21 = vmax.f32 %v4273_v48, 0.0 }
 0x5fb   : > { %v4314_v46 = vmax.f32 %v4275_v14, 0.0 }
 0x5fc   : > { %v4693_v49 = vpack.c.bf16 %v4313_v21, %v4311_v56 }
 0x5fd   : > { %v4694_v7 = vpack.c.bf16 %v4314_v46, %v4312_v5 }
 0x5ff   : > { %4789 = vmatprep.mubr.bf16.mxu1 %v4694_v7 }
 0x600   : > { %4790 = vmatmul.mubr.bf16.gmra.mrb[184].mxu1 %v4693_v49 }
 0x613   : > { %v4117_v41 = vpop.f32.mrb[156].mxu0 }
 0x614   : > { %v4118_v26 = vadd.f32 %v4117_v41, %v9913_v22  ;;  %v4119_v1 = vpop.f32.mrb[157].mxu0 }
 0x615   : > { %v4120_v24 = vadd.f32 %v4119_v1, %v9914_v38  ;;  %v4121_v34 = vpop.f32.mrb[158].mxu0 }
 0x616   : > { %v4122_v58 = vadd.f32 %v4121_v34, %v8830_v55  ;;  %v4123_v27 = vpop.f32.mrb[159].mxu0  ;;  %v4278_v15 = vpop.f32.mrb[156].mxu1  ;;  %v4154_v9 = vmax.f32 %v4118_v26, 0.0 }
 0x617   : > { %v4124_v17 = vadd.f32 %v4123_v27, %v8833_v6  ;;  %v4279_v16 = vadd.f32 %v4278_v15, %v8841_v18  ;;  %v4280_v11 = vpop.f32.mrb[157].mxu1  ;;  %v4155_v30 = vmax.f32 %v4120_v24, 0.0  ;;  %v9245_v6 = vld [vmem:[%s9556_s3] sm:$0xff]  ;;  %v9915_v18 = vld [vmem:[#allocation18_spill] sm:$0xff] }
 0x618   : > { %v4156_v0 = vmax.f32 %v4122_v58, 0.0  ;;  %v4281_v23 = vadd.f32 %v4280_v11, %v8843_v33  ;;  %v4282_v60 = vpop.f32.mrb[158].mxu1  ;;  %v9249_v33 = vrot.slane %v9245_v6, %v9915_v18 }
 0x619   : > { %v4157_v47 = vmax.f32 %v4124_v17, 0.0  ;;  %v4283_v35 = vadd.f32 %v4282_v60, %v8823_v8  ;;  %v4284_v28 = vpop.f32.mrb[159].mxu1  ;;  %v4315_v12 = vmax.f32 %v4279_v16, 0.0  ;;  %v9254_v8 = vld [vmem:[%s9556_s3 + $0x8] sm:$0xff] }
 0x61a   : > { %v4366_v3 = vpack.c.bf16 %v4156_v0, %v4154_v9  ;;  %v4285_v55 = vadd.f32 %v4284_v28, %v8835_v39  ;;  %v4316_v2 = vmax.f32 %v4281_v23, 0.0  ;;  %v9258_v39 = vrot.slane %v9254_v8, %v9915_v18  ;;  %v6908_v28 = vld [vmem:[%s9557_s4] sm:$0xff]  }
 0x61b   : > { %v4367_v50 = vpack.c.bf16 %v4157_v47, %v4155_v30  ;;  %v4317_v37 = vmax.f32 %v4283_v35, 0.0  ;;  %v6907_v35 = vld [vmem:[%s9557_s4 + $0x40] sm:$0xff]  }
 0x61c   : > { %v4318_v40 = vmax.f32 %v4285_v55, 0.0  ;;  %6421 = vmatprep.subr.bf16.mxu1 %v6907_v35  ;;  %6357 = vmatprep.subr.bf16.mxu0 %v6907_v35 }
 0x61d   : > { %v4695_v57 = vpack.c.bf16 %v4317_v37, %v4315_v12  ;;  %4638 = vmatprep.mubr.bf16.mxu0 %v4367_v50 }
 0x61e   : > { %v4696_v13 = vpack.c.bf16 %v4318_v40, %v4316_v2  ;;  %4639 = vmatmul.mubr.bf16.gmra.mrb[188].mxu0 %v4366_v3  ;;  %v4731_v42 = vpop.f32.mrb[160].mxu1  ;;  %v6909_v3 = vld [vmem:[%s9557_s4 + $0x48] sm:$0xff]  }
 0x61f   : > { %v4732_v59 = vadd.f32 %v4731_v42, %v9249_v33  ;;  %v4733_v43 = vpop.f32.mrb[161].mxu1  ;;  %v6910_v2 = vld [vmem:[%s9557_s4 + $0x8] sm:$0xff]  }
 0x620   : > { %v4734_v44 = vadd.f32 %v4733_v43, %v9258_v39  ;;  %v4735_v36 = vpop.f32.mrb[162].mxu1  ;;  %4799 = vmatprep.mubr.bf16.mxu1 %v4696_v13  ;;  %v6911_v13 = vld [vmem:[%s9557_s4 + $0x50] sm:$0xff]  }
 0x621   : > { %v4736_v20 = vadd.f32 %v4735_v36, %v9249_v33  ;;  %v4737_v29 = vpop.f32.mrb[163].mxu1  ;;  %4800 = vmatmul.mubr.bf16.gmra.mrb[188].mxu1 %v4695_v57  ;;  %v4810_v61 = vmax.f32 %v4732_v59, 0.0 }
 0x622   : > { %v4738_v4 = vadd.f32 %v4737_v29, %v9258_v39  ;;  %v4811_v62 = vmax.f32 %v4734_v44, 0.0 }
 0x623   : > { %v4812_v25 = vmax.f32 %v4736_v20, 0.0 }
 0x624   : > { %v4813_v63 = vmax.f32 %v4738_v4, 0.0 }
 0x625   : > { %v5204_v52 = vpack.c.bf16 %v4812_v25, %v4810_v61 }
 0x626   : > { %v5205_v54 = vpack.c.bf16 %v4813_v63, %v4811_v62  ;;  %v4570_v19 = vpop.f32.mrb[160].mxu0 }
 0x627   : > { %v4571_v31 = vadd.f32 %v4570_v19, %v9249_v33  ;;  %v4572_v10 = vpop.f32.mrb[161].mxu0 }
 0x628   : > { %5252 = vmatprep.mubr.bf16.mxu1 %v5205_v54  ;;  %v4573_v32 = vadd.f32 %v4572_v10, %v9258_v39  ;;  %v4574_v48 = vpop.f32.mrb[162].mxu0 }
 0x629   : > { %5253 = vmatmul.mubr.bf16.vlgmr.msra.gmra.mrb[192].mxu1 %v5204_v52  ;;  %v4575_v51 = vadd.f32 %v4574_v48, %v9249_v33  ;;  %v4576_v45 = vpop.f32.mrb[163].mxu0  ;;  %v4649_v56 = vmax.f32 %v4571_v31, 0.0 }
 0x62a   : > { %v4577_v14 = vadd.f32 %v4576_v45, %v9258_v39  ;;  %v4650_v5 = vmax.f32 %v4573_v32, 0.0  ;;  %6422 = vmatpush3.bf16.msra.mxu1 %v6908_v28 }
 0x62b   : > { %v4651_v21 = vmax.f32 %v4575_v51, 0.0  ;;  %6423 = vmatprep.subr.bf16.mxu1 %v6909_v3 }
 0x62c   : > { %v4652_v46 = vmax.f32 %v4577_v14, 0.0 }
 0x62d   : > { %v4875_v49 = vpack.c.bf16 %v4651_v21, %v4649_v56 }
 0x62e   : > { %v4876_v7 = vpack.c.bf16 %v4652_v46, %v4650_v5  ;;  %6424 = vmatpush3.bf16.msra.mxu1 %v6910_v2 }
 0x62f   : > { %6425 = vmatprep.subr.bf16.mxu1 %v6911_v13 }
 0x630   : > { %5091 = vmatprep.mubr.bf16.mxu0 %v4876_v7 }
 0x631   : > { %5092 = vmatmul.mubr.bf16.vlgmr.msra.gmra.mrb[192].mxu0 %v4875_v49 }
 0x632   : > { %6358 = vmatpush3.bf16.msra.mxu0 %v6908_v28 }
 0x633   : > { %6359 = vmatprep.subr.bf16.mxu0 %v6909_v3 }
 0x635   : > { %v4741_v41 = vpop.f32.mrb[164].mxu1 }
 0x636   : > { %v4742_v22 = vadd.f32 %v4741_v41, %v9249_v33  ;;  %v4743_v26 = vpop.f32.mrb[165].mxu1  ;;  %6360 = vmatpush3.bf16.msra.mxu0 %v6910_v2 }
 0x637   : > { %v4744_v1 = vadd.f32 %v4743_v26, %v9258_v39  ;;  %v4745_v38 = vpop.f32.mrb[166].mxu1  ;;  %6361 = vmatprep.subr.bf16.mxu0 %v6911_v13 }
 0x638   : > { %v4746_v24 = vadd.f32 %v4745_v38, %v9249_v33  ;;  %v4747_v34 = vpop.f32.mrb[167].mxu1  ;;  %v4814_v27 = vmax.f32 %v4742_v22, 0.0 }
 0x639   : > { %v4748_v58 = vadd.f32 %v4747_v34, %v9258_v39  ;;  %v4815_v17 = vmax.f32 %v4744_v1, 0.0 }
 0x63a   : > { %v4816_v15 = vmax.f32 %v4746_v24, 0.0 }
 0x63b   : > { %v4817_v16 = vmax.f32 %v4748_v58, 0.0 }
 0x63c   : > { %v5206_v11 = vpack.c.bf16 %v4816_v15, %v4814_v27 }
 0x63d   : > { %v5207_v9 = vpack.c.bf16 %v4817_v16, %v4815_v17 }
 0x63f   : > { %5262 = vmatprep.mubr.bf16.mxu1 %v5207_v9 }
 0x640   : > { %5263 = vmatmul.mubr.bf16.gmra.mrb[196].mxu1 %v5206_v11 }
 0x65f   : > { %v4580_v0 = vpop.f32.mrb[164].mxu0 }
 0x660   : > { %v4581_v23 = vadd.f32 %v4580_v0, %v9249_v33  ;;  %v4582_v60 = vpop.f32.mrb[165].mxu0 }
 0x661   : > { %v4583_v30 = vadd.f32 %v4582_v60, %v9258_v39  ;;  %v4584_v47 = vpop.f32.mrb[166].mxu0 }
 0x662   : > { %v4585_v55 = vadd.f32 %v4584_v47, %v9249_v33  ;;  %v4586_v50 = vpop.f32.mrb[167].mxu0  ;;  %v4653_v37 = vmax.f32 %v4581_v23, 0.0 }
 0x663   : > { %v4587_v12 = vadd.f32 %v4586_v50, %v9258_v39  ;;  %v4654_v40 = vmax.f32 %v4583_v30, 0.0 }
 0x664   : > { %v4655_v18 = vmax.f32 %v4585_v55, 0.0 }
 0x665   : > { %v4656_v57 = vmax.f32 %v4587_v12, 0.0  ;;  %v4751_v59 = vpop.f32.mrb[168].mxu1 }
 0x666   : > { %v4877_v42 = vpack.c.bf16 %v4655_v18, %v4653_v37  ;;  %v4752_v36 = vadd.f32 %v4751_v59, %v9249_v33  ;;  %v4753_v20 = vpop.f32.mrb[169].mxu1  ;;  %v6912_v37 = vld [vmem:[%s9557_s4 + $0x10] sm:$0xff]   ;;  %v6914_v59 = vld [vmem:[%s9557_s4 + $0x18] sm:$0xff]  }
 0x667   : > { %v4878_v43 = vpack.c.bf16 %v4656_v57, %v4654_v40  ;;  %v4590_v44 = vpop.f32.mrb[168].mxu0  ;;  %v4754_v61 = vadd.f32 %v4753_v20, %v9258_v39  ;;  %v4755_v25 = vpop.f32.mrb[170].mxu1  ;;  %6426 = vmatpush3.bf16.msra.mxu1 %v6912_v37  ;;  %6362 = vmatpush3.bf16.msra.mxu0 %v6912_v37  ;;  %v6918_v20 = vld [vmem:[%s9557_s4 + $0x28] sm:$0xff]  }
 0x668   : > { %v4591_v29 = vadd.f32 %v4590_v44, %v9249_v33  ;;  %v4592_v4 = vpop.f32.mrb[169].mxu0  ;;  %v4756_v52 = vadd.f32 %v4755_v25, %v9249_v33  ;;  %v4757_v54 = vpop.f32.mrb[171].mxu1  ;;  %v4818_v32 = vmax.f32 %v4752_v36, 0.0  ;;  %v6916_v44 = vld [vmem:[%s9557_s4 + $0x20] sm:$0xff]   ;;  %v6917_v36 = vld [vmem:[%s9557_s4 + $0x68] sm:$0xff]   ;;  %v6922_v25 = vld [vmem:[%s9557_s4 + $0x38] sm:$0xff]  }
 0x669   : > { %v4593_v62 = vadd.f32 %v4592_v4, %v9258_v39  ;;  %v4594_v63 = vpop.f32.mrb[170].mxu0  ;;  %5101 = vmatprep.mubr.bf16.mxu0 %v4878_v43  ;;  %v4758_v10 = vadd.f32 %v4757_v54, %v9258_v39  ;;  %v4819_v14 = vmax.f32 %v4754_v61, 0.0  ;;  %v6915_v43 = vld [vmem:[%s9557_s4 + $0x60] sm:$0xff]   ;;  %v6920_v4 = vld [vmem:[%s9557_s4 + $0x30] sm:$0xff]   ;;  %v6921_v61 = vld [vmem:[%s9557_s4 + $0x78] sm:$0xff]  }
 0x66a   : > { %v4595_v19 = vadd.f32 %v4594_v63, %v9249_v33  ;;  %v4596_v31 = vpop.f32.mrb[171].mxu0  ;;  %5102 = vmatmul.mubr.bf16.gmra.mrb[196].mxu0 %v4877_v42  ;;  %v4820_v48 = vmax.f32 %v4756_v52, 0.0  ;;  %v4657_v45 = vmax.f32 %v4591_v29, 0.0  ;;  %v6913_v42 = vld [vmem:[%s9557_s4 + $0x58] sm:$0xff]   ;;  %v6919_v29 = vld [vmem:[%s9557_s4 + $0x70] sm:$0xff]  }
 0x66b   : > { %v4597_v51 = vadd.f32 %v4596_v31, %v9258_v39  ;;  %v4821_v21 = vmax.f32 %v4758_v10, 0.0  ;;  %v4658_v5 = vmax.f32 %v4593_v62, 0.0  ;;  %6427 = vmatprep.subr.bf16.mxu1 %v6913_v42  ;;  %6363 = vmatprep.subr.bf16.mxu0 %v6913_v42 }
 0x66c   : > { %v4659_v56 = vmax.f32 %v4595_v19, 0.0  ;;  %v5208_v46 = vpack.c.bf16 %v4820_v48, %v4818_v32  ;;  %6428 = vmatpush3.bf16.msra.mxu1 %v6914_v59  ;;  %6364 = vmatpush3.bf16.msra.mxu0 %v6914_v59 }
 0x66d   : > { %v4660_v49 = vmax.f32 %v4597_v51, 0.0  ;;  %v5209_v41 = vpack.c.bf16 %v4821_v21, %v4819_v14  ;;  %6429 = vmatprep.subr.bf16.mxu1 %v6915_v43  ;;  %6365 = vmatprep.subr.bf16.mxu0 %v6915_v43 }
 0x66e   : > { %v4879_v7 = vpack.c.bf16 %v4659_v56, %v4657_v45 }
 0x66f   : > { %v4880_v22 = vpack.c.bf16 %v4660_v49, %v4658_v5  ;;  %v4600_v26 = vpop.f32.mrb[172].mxu0  ;;  %5272 = vmatprep.mubr.bf16.mxu1 %v5209_v41 }
 0x670   : > { %v4601_v1 = vadd.f32 %v4600_v26, %v9249_v33  ;;  %v4602_v38 = vpop.f32.mrb[173].mxu0  ;;  %5273 = vmatmul.mubr.bf16.gmra.mrb[200].mxu1 %v5208_v46  ;;  %v4761_v58 = vpop.f32.mrb[172].mxu1  ;;  %6366 = vmatpush3.bf16.msra.mxu0 %v6916_v44 }
 0x671   : > { %5111 = vmatprep.mubr.bf16.mxu0 %v4880_v22  ;;  %v4603_v24 = vadd.f32 %v4602_v38, %v9258_v39  ;;  %v4604_v34 = vpop.f32.mrb[174].mxu0  ;;  %v4762_v17 = vadd.f32 %v4761_v58, %v9249_v33  ;;  %v4763_v16 = vpop.f32.mrb[173].mxu1  ;;  %6430 = vmatpush3.bf16.msra.mxu1 %v6916_v44 }
 0x672   : > { %5112 = vmatmul.mubr.bf16.gmra.mrb[200].mxu0 %v4879_v7  ;;  %v4605_v27 = vadd.f32 %v4604_v34, %v9249_v33  ;;  %v4606_v15 = vpop.f32.mrb[175].mxu0  ;;  %v4764_v9 = vadd.f32 %v4763_v16, %v9258_v39  ;;  %v4765_v0 = vpop.f32.mrb[174].mxu1  ;;  %v4661_v23 = vmax.f32 %v4601_v1, 0.0  ;;  %6431 = vmatprep.subr.bf16.mxu1 %v6917_v36 }
 0x673   : > { %v4607_v11 = vadd.f32 %v4606_v15, %v9258_v39  ;;  %v4766_v30 = vadd.f32 %v4765_v0, %v9249_v33  ;;  %v4767_v47 = vpop.f32.mrb[175].mxu1  ;;  %v4662_v35 = vmax.f32 %v4603_v24, 0.0  ;;  %v4822_v50 = vmax.f32 %v4762_v17, 0.0  ;;  %6367 = vmatprep.subr.bf16.mxu0 %v6917_v36 }
 0x674   : > { %v4663_v60 = vmax.f32 %v4605_v27, 0.0  ;;  %v4768_v3 = vadd.f32 %v4767_v47, %v9258_v39  ;;  %v4823_v2 = vmax.f32 %v4764_v9, 0.0  ;;  %6368 = vmatpush3.bf16.msra.mxu0 %v6918_v20 }
 0x675   : > { %v4664_v28 = vmax.f32 %v4607_v11, 0.0  ;;  %v4824_v12 = vmax.f32 %v4766_v30, 0.0  ;;  %6432 = vmatpush3.bf16.msra.mxu1 %v6918_v20  ;;  %6369 = vmatprep.subr.bf16.mxu0 %v6919_v29 }
 0x676   : > { %v4881_v55 = vpack.c.bf16 %v4663_v60, %v4661_v23  ;;  %v4825_v40 = vmax.f32 %v4768_v3, 0.0  ;;  %6433 = vmatprep.subr.bf16.mxu1 %v6919_v29 }
 0x677   : > { %v4882_v18 = vpack.c.bf16 %v4664_v28, %v4662_v35  ;;  %v5210_v57 = vpack.c.bf16 %v4824_v12, %v4822_v50 }
 0x678   : > { %v5211_v13 = vpack.c.bf16 %v4825_v40, %v4823_v2  ;;  %6370 = vmatpush3.bf16.msra.mxu0 %v6920_v4 }
 0x679   : > { %5121 = vmatprep.mubr.bf16.mxu0 %v4882_v18  ;;  %6434 = vmatpush3.bf16.msra.mxu1 %v6920_v4 }
 0x67a   : > { %5122 = vmatmul.mubr.bf16.gmra.mrb[204].mxu0 %v4881_v55  ;;  %5282 = vmatprep.mubr.bf16.mxu1 %v5211_v13 }
 0x67b   : > { %5283 = vmatmul.mubr.bf16.gmra.mrb[204].mxu1 %v5210_v57  ;;  %6435 = vmatprep.subr.bf16.mxu1 %v6921_v61 }
 0x67c   : > { %6371 = vmatprep.subr.bf16.mxu0 %v6921_v61 }
 0x67d   : > { %6436 = vmatpush3.bf16.msra.mxu1 %v6922_v25  ;;  %6372 = vmatpush3.bf16.msra.mxu0 %v6922_v25 }
 0x68d   : > { %v4610_v62 = vpop.f32.mrb[176].mxu0 }
 0x68e   : > { %v4611_v63 = vadd.f32 %v4610_v62, %v9249_v33  ;;  %v4612_v52 = vpop.f32.mrb[177].mxu0 }
 0x68f   : > { %v4613_v54 = vadd.f32 %v4612_v52, %v9258_v39  ;;  %v4614_v19 = vpop.f32.mrb[178].mxu0 }
 0x690   : > { %v4615_v31 = vadd.f32 %v4614_v19, %v9249_v33  ;;  %v4616_v10 = vpop.f32.mrb[179].mxu0  ;;  %v4665_v48 = vmax.f32 %v4611_v63, 0.0 }
 0x691   : > { %v4617_v32 = vadd.f32 %v4616_v10, %v9258_v39  ;;  %v4666_v45 = vmax.f32 %v4613_v54, 0.0 }
 0x692   : > { %v4667_v51 = vmax.f32 %v4615_v31, 0.0 }
 0x693   : > { %v4668_v14 = vmax.f32 %v4617_v32, 0.0 }
 0x694   : > { %v4883_v56 = vpack.c.bf16 %v4667_v51, %v4665_v48 }
 0x695   : > { %v4884_v21 = vpack.c.bf16 %v4668_v14, %v4666_v45  ;;  %v4771_v5 = vpop.f32.mrb[176].mxu1 }
 0x696   : > { %v4772_v46 = vadd.f32 %v4771_v5, %v9249_v33  ;;  %v4773_v49 = vpop.f32.mrb[177].mxu1 }
 0x697   : > { %v4774_v7 = vadd.f32 %v4773_v49, %v9258_v39  ;;  %v4775_v41 = vpop.f32.mrb[178].mxu1  ;;  %5131 = vmatprep.mubr.bf16.mxu0 %v4884_v21 }
 0x698   : > { %v4776_v22 = vadd.f32 %v4775_v41, %v9249_v33  ;;  %v4777_v26 = vpop.f32.mrb[179].mxu1  ;;  %5132 = vmatmul.mubr.bf16.gmra.mrb[208].mxu0 %v4883_v56  ;;  %v4826_v38 = vmax.f32 %v4772_v46, 0.0 }
 0x699   : > { %v4778_v1 = vadd.f32 %v4777_v26, %v9258_v39  ;;  %v4827_v34 = vmax.f32 %v4774_v7, 0.0 }
 0x69a   : > { %v4828_v24 = vmax.f32 %v4776_v22, 0.0 }
 0x69b   : > { %v4829_v58 = vmax.f32 %v4778_v1, 0.0 }
 0x69c   : > { %v5212_v27 = vpack.c.bf16 %v4828_v24, %v4826_v38 }
 0x69d   : > { %v5213_v15 = vpack.c.bf16 %v4829_v58, %v4827_v34 }
 0x69f   : > { %5292 = vmatprep.mubr.bf16.mxu1 %v5213_v15 }
 0x6a0   : > { %5293 = vmatmul.mubr.bf16.gmra.mrb[208].mxu1 %v5212_v27 }
 0x6b1   : > { %v4620_v17 = vpop.f32.mrb[180].mxu0 }
 0x6b2   : > { %v4621_v16 = vadd.f32 %v4620_v17, %v9249_v33  ;;  %v4622_v11 = vpop.f32.mrb[181].mxu0 }
 0x6b3   : > { %v4623_v9 = vadd.f32 %v4622_v11, %v9258_v39  ;;  %v4624_v0 = vpop.f32.mrb[182].mxu0 }
 0x6b4   : > { %v4625_v23 = vadd.f32 %v4624_v0, %v9249_v33  ;;  %v4626_v60 = vpop.f32.mrb[183].mxu0  ;;  %v4669_v35 = vmax.f32 %v4621_v16, 0.0 }
 0x6b5   : > { %v4627_v30 = vadd.f32 %v4626_v60, %v9258_v39  ;;  %v4781_v47 = vpop.f32.mrb[180].mxu1  ;;  %v4670_v50 = vmax.f32 %v4623_v9, 0.0 }
 0x6b6   : > { %v4671_v28 = vmax.f32 %v4625_v23, 0.0  ;;  %v4782_v3 = vadd.f32 %v4781_v47, %v9249_v33  ;;  %v4783_v55 = vpop.f32.mrb[181].mxu1  ;;  %v4893_v47 = vsub.s32 7, %v9853_v53 }
 0x6b7   : > { %v4672_v12 = vmax.f32 %v4627_v30, 0.0  ;;  %v4784_v37 = vadd.f32 %v4783_v55, %v9258_v39  ;;  %v4785_v18 = vpop.f32.mrb[182].mxu1 }
 0x6b8   : > { %v4885_v2 = vpack.c.bf16 %v4671_v28, %v4669_v35  ;;  %v4786_v40 = vadd.f32 %v4785_v18, %v9249_v33  ;;  %v4787_v57 = vpop.f32.mrb[183].mxu1  ;;  %v4830_v59 = vmax.f32 %v4782_v3, 0.0 }
 0x6b9   : > { %v4886_v13 = vpack.c.bf16 %v4672_v12, %v4670_v50  ;;  %v4788_v42 = vadd.f32 %v4787_v57, %v9258_v39  ;;  %v4831_v44 = vmax.f32 %v4784_v37, 0.0 }
 0x6ba   : > { %v4832_v43 = vmax.f32 %v4786_v40, 0.0 }
 0x6bb   : > { %v4833_v36 = vmax.f32 %v4788_v42, 0.0  ;;  %5141 = vmatprep.mubr.bf16.mxu0 %v4886_v13 }
 0x6bc   : > { %v5214_v20 = vpack.c.bf16 %v4832_v43, %v4830_v59  ;;  %5142 = vmatmul.mubr.bf16.gmra.mrb[212].mxu0 %v4885_v2  ;;  %v9374_v59 = vrot.slane %v9245_v6, %v4893_v47 }
 0x6bd   : > { %v5215_v29 = vpack.c.bf16 %v4833_v36, %v4831_v44  ;;  %v9377_v44 = vrot.slane %v9254_v8, %v4893_v47 }
 0x6bf   : > { %5302 = vmatprep.mubr.bf16.mxu1 %v5215_v29 }
 0x6c0   : > { %5303 = vmatmul.mubr.bf16.gmra.mrb[212].mxu1 %v5214_v20 }
 0x6ca   : > { %v4630_v4 = vpop.f32.mrb[184].mxu0 }
 0x6cb   : > { %v4631_v61 = vadd.f32 %v4630_v4, %v9249_v33  ;;  %v4632_v25 = vpop.f32.mrb[185].mxu0 }
 0x6cc   : > { %v4633_v62 = vadd.f32 %v4632_v25, %v9258_v39  ;;  %v4634_v63 = vpop.f32.mrb[186].mxu0 }
 0x6cd   : > { %v4635_v52 = vadd.f32 %v4634_v63, %v9249_v33  ;;  %v4636_v54 = vpop.f32.mrb[187].mxu0  ;;  %v4673_v31 = vmax.f32 %v4631_v61, 0.0 }
 0x6ce   : > { %v4637_v19 = vadd.f32 %v4636_v54, %v9258_v39  ;;  %v4674_v32 = vmax.f32 %v4633_v62, 0.0 }
 0x6cf   : > { %v4675_v10 = vmax.f32 %v4635_v52, 0.0 }
 0x6d0   : > { %v4676_v48 = vmax.f32 %v4637_v19, 0.0 }
 0x6d1   : > { %v4887_v51 = vpack.c.bf16 %v4675_v10, %v4673_v31 }
 0x6d2   : > { %v4888_v45 = vpack.c.bf16 %v4676_v48, %v4674_v32 }
 0x6d3   : > { %v4791_v14 = vpop.f32.mrb[184].mxu1 }
 0x6d4   : > { %v4792_v56 = vadd.f32 %v4791_v14, %v9249_v33  ;;  %v4793_v21 = vpop.f32.mrb[185].mxu1  ;;  %5151 = vmatprep.mubr.bf16.mxu0 %v4888_v45 }
 0x6d5   : > { %v4794_v5 = vadd.f32 %v4793_v21, %v9258_v39  ;;  %v4795_v46 = vpop.f32.mrb[186].mxu1  ;;  %5152 = vmatmul.mubr.bf16.gmra.mrb[216].mxu0 %v4887_v51 }
 0x6d6   : > { %v4796_v49 = vadd.f32 %v4795_v46, %v9249_v33  ;;  %v4797_v7 = vpop.f32.mrb[187].mxu1  ;;  %v4834_v22 = vmax.f32 %v4792_v56, 0.0 }
 0x6d7   : > { %v4798_v41 = vadd.f32 %v4797_v7, %v9258_v39  ;;  %v4835_v1 = vmax.f32 %v4794_v5, 0.0 }
 0x6d8   : > { %v4836_v26 = vmax.f32 %v4796_v49, 0.0 }
 0x6d9   : > { %v4837_v38 = vmax.f32 %v4798_v41, 0.0 }
 0x6da   : > { %v5216_v24 = vpack.c.bf16 %v4836_v26, %v4834_v22 }
 0x6db   : > { %v5217_v34 = vpack.c.bf16 %v4837_v38, %v4835_v1 }
 0x6dd   : > { %5312 = vmatprep.mubr.bf16.mxu1 %v5217_v34 }
 0x6de   : > { %5313 = vmatmul.mubr.bf16.gmra.mrb[216].mxu1 %v5216_v24 }
 0x6f1   : > { %v4640_v58 = vpop.f32.mrb[188].mxu0 }
 0x6f2   : > { %v4641_v27 = vadd.f32 %v4640_v58, %v9249_v33  ;;  %v4642_v15 = vpop.f32.mrb[189].mxu0 }
 0x6f3   : > { %v4643_v17 = vadd.f32 %v4642_v15, %v9258_v39  ;;  %v4644_v16 = vpop.f32.mrb[190].mxu0 }
 0x6f4   : > { %v4645_v11 = vadd.f32 %v4644_v16, %v9249_v33  ;;  %v4646_v9 = vpop.f32.mrb[191].mxu0  ;;  %v4801_v0 = vpop.f32.mrb[188].mxu1  ;;  %v4677_v35 = vmax.f32 %v4641_v27, 0.0 }
 0x6f5   : > { %v4647_v23 = vadd.f32 %v4646_v9, %v9258_v39  ;;  %v4802_v60 = vadd.f32 %v4801_v0, %v9249_v33  ;;  %v4803_v30 = vpop.f32.mrb[189].mxu1  ;;  %v4678_v50 = vmax.f32 %v4643_v17, 0.0 }
 0x6f6   : > { %v4679_v28 = vmax.f32 %v4645_v11, 0.0  ;;  %v4804_v3 = vadd.f32 %v4803_v30, %v9258_v39  ;;  %v4805_v55 = vpop.f32.mrb[190].mxu1 }
 0x6f7   : > { %v4680_v12 = vmax.f32 %v4647_v23, 0.0  ;;  %v4806_v37 = vadd.f32 %v4805_v55, %v9249_v33  ;;  %v4807_v18 = vpop.f32.mrb[191].mxu1  ;;  %v4838_v13 = vmax.f32 %v4802_v60, 0.0 }
 0x6f8   : > { %v4889_v2 = vpack.c.bf16 %v4679_v28, %v4677_v35  ;;  %v4808_v40 = vadd.f32 %v4807_v18, %v9258_v39  ;;  %v4839_v53 = vmax.f32 %v4804_v3, 0.0 }
 0x6f9   : > { %v4890_v57 = vpack.c.bf16 %v4680_v12, %v4678_v50  ;;  %v4840_v42 = vmax.f32 %v4806_v37, 0.0 }
 0x6fa   : > { %v4841_v43 = vmax.f32 %v4808_v40, 0.0 }
 0x6fb   : > { %v5218_v36 = vpack.c.bf16 %v4840_v42, %v4838_v13  ;;  %5161 = vmatprep.mubr.bf16.mxu0 %v4890_v57 }
 0x6fc   : > { %v5219_v20 = vpack.c.bf16 %v4841_v43, %v4839_v53  ;;  %5162 = vmatmul.mubr.bf16.gmra.mrb[220].mxu0 %v4889_v2  ;;  %v5254_v33 = vpop.f32.mrb[192].mxu1 }
 0x6fd   : > { %v5255_v29 = vadd.f32 %v5254_v33, %v9374_v59  ;;  %v5256_v4 = vpop.f32.mrb[193].mxu1 }
 0x6fe   : > { %v5257_v39 = vadd.f32 %v5256_v4, %v9377_v44  ;;  %v5258_v61 = vpop.f32.mrb[194].mxu1  ;;  %5322 = vmatprep.mubr.bf16.mxu1 %v5219_v20 }
 0x6ff   : > { %v5259_v6 = vadd.f32 %v5258_v61, %v9374_v59  ;;  %v5260_v25 = vpop.f32.mrb[195].mxu1  ;;  %5323 = vmatmul.mubr.bf16.gmra.mrb[220].mxu1 %v5218_v36  ;;  %v5333_v8 = vmax.f32 %v5255_v29, 0.0 }
 0x700   : > { %v5261_v62 = vadd.f32 %v5260_v25, %v9377_v44  ;;  %v5334_v52 = vmax.f32 %v5257_v39, 0.0 }
 0x701   : > { %v5335_v63 = vmax.f32 %v5259_v6, 0.0 }
 0x702   : > { %v5336_v54 = vmax.f32 %v5261_v62, 0.0 }
 0x703   : > { %v5660_v19 = vpack.c.bf16 %v5335_v63, %v5333_v8 }
 0x704   : > { %v5661_v31 = vpack.c.bf16 %v5336_v54, %v5334_v52  ;;  %v5093_v10 = vpop.f32.mrb[192].mxu0 }
 0x705   : > { %v5094_v32 = vadd.f32 %v5093_v10, %v9374_v59  ;;  %v5095_v48 = vpop.f32.mrb[193].mxu0 }
 0x706   : > { %5708 = vmatprep.mubr.bf16.mxu1 %v5661_v31  ;;  %v5096_v51 = vadd.f32 %v5095_v48, %v9377_v44  ;;  %v5097_v45 = vpop.f32.mrb[194].mxu0 }
 0x707   : > { %5709 = vmatmul.mubr.bf16.vlgmr.msra.gmra.mrb[224].mxu1 %v5660_v19  ;;  %v5098_v14 = vadd.f32 %v5097_v45, %v9374_v59  ;;  %v5099_v56 = vpop.f32.mrb[195].mxu0  ;;  %v5172_v5 = vmax.f32 %v5094_v32, 0.0 }
 0x708   : > { %v5100_v21 = vadd.f32 %v5099_v56, %v9377_v44  ;;  %v5173_v49 = vmax.f32 %v5096_v51, 0.0 }
 0x709   : > { %v5174_v46 = vmax.f32 %v5098_v14, 0.0 }
 0x70a   : > { %v5175_v7 = vmax.f32 %v5100_v21, 0.0 }
 0x70b   : > { %v5365_v41 = vpack.c.bf16 %v5174_v46, %v5172_v5 }
 0x70c   : > { %v5366_v22 = vpack.c.bf16 %v5175_v7, %v5173_v49 }
 0x70e   : > { %5515 = vmatprep.mubr.bf16.mxu0 %v5366_v22 }
 0x70f   : > { %5516 = vmatmul.mubr.bf16.vlgmr.msra.gmra.mrb[224].mxu0 %v5365_v41 }
 0x713   : > { %v5264_v26 = vpop.f32.mrb[196].mxu1 }
 0x714   : > { %v5265_v1 = vadd.f32 %v5264_v26, %v9374_v59  ;;  %v5266_v38 = vpop.f32.mrb[197].mxu1 }
 0x715   : > { %v5267_v24 = vadd.f32 %v5266_v38, %v9377_v44  ;;  %v5268_v34 = vpop.f32.mrb[198].mxu1 }
 0x716   : > { %v5269_v58 = vadd.f32 %v5268_v34, %v9374_v59  ;;  %v5270_v27 = vpop.f32.mrb[199].mxu1  ;;  %v5337_v17 = vmax.f32 %v5265_v1, 0.0 }
 0x717   : > { %v5271_v15 = vadd.f32 %v5270_v27, %v9377_v44  ;;  %v5338_v11 = vmax.f32 %v5267_v24, 0.0 }
 0x718   : > { %v5339_v16 = vmax.f32 %v5269_v58, 0.0 }
 0x719   : > { %v5340_v9 = vmax.f32 %v5271_v15, 0.0 }
 0x71a   : > { %v5662_v0 = vpack.c.bf16 %v5339_v16, %v5337_v17 }
 0x71b   : > { %v5663_v23 = vpack.c.bf16 %v5340_v9, %v5338_v11 }
 0x71d   : > { %5716 = vmatprep.mubr.bf16.mxu1 %v5663_v23 }
 0x71e   : > { %5717 = vmatmul.mubr.bf16.gmra.mrb[228].mxu1 %v5662_v0 }
 0x73d   : > { %v5103_v60 = vpop.f32.mrb[196].mxu0 }
 0x73e   : > { %v5104_v30 = vadd.f32 %v5103_v60, %v9374_v59  ;;  %v5105_v47 = vpop.f32.mrb[197].mxu0 }
 0x73f   : > { %v5106_v35 = vadd.f32 %v5105_v47, %v9377_v44  ;;  %v5107_v28 = vpop.f32.mrb[198].mxu0 }
 0x740   : > { %v5108_v3 = vadd.f32 %v5107_v28, %v9374_v59  ;;  %v5109_v55 = vpop.f32.mrb[199].mxu0  ;;  %v5176_v12 = vmax.f32 %v5104_v30, 0.0 }
 0x741   : > { %v5110_v50 = vadd.f32 %v5109_v55, %v9377_v44  ;;  %v5177_v18 = vmax.f32 %v5106_v35, 0.0 }
 0x742   : > { %v5178_v37 = vmax.f32 %v5108_v3, 0.0 }
 0x743   : > { %v5179_v2 = vmax.f32 %v5110_v50, 0.0  ;;  %v5274_v57 = vpop.f32.mrb[200].mxu1 }
 0x744   : > { %v5367_v40 = vpack.c.bf16 %v5178_v37, %v5176_v12  ;;  %v5275_v53 = vadd.f32 %v5274_v57, %v9374_v59  ;;  %v5276_v43 = vpop.f32.mrb[201].mxu1 }
 0x745   : > { %v5368_v13 = vpack.c.bf16 %v5179_v2, %v5177_v18  ;;  %v5113_v42 = vpop.f32.mrb[200].mxu0  ;;  %v5277_v33 = vadd.f32 %v5276_v43, %v9377_v44  ;;  %v5278_v29 = vpop.f32.mrb[202].mxu1 }
 0x746   : > { %v5114_v36 = vadd.f32 %v5113_v42, %v9374_v59  ;;  %v5115_v20 = vpop.f32.mrb[201].mxu0  ;;  %v5279_v61 = vadd.f32 %v5278_v29, %v9374_v59  ;;  %v5280_v6 = vpop.f32.mrb[203].mxu1  ;;  %v5341_v63 = vmax.f32 %v5275_v53, 0.0 }
 0x747   : > { %v5116_v4 = vadd.f32 %v5115_v20, %v9377_v44  ;;  %v5117_v39 = vpop.f32.mrb[202].mxu0  ;;  %5523 = vmatprep.mubr.bf16.mxu0 %v5368_v13  ;;  %v5281_v8 = vadd.f32 %v5280_v6, %v9377_v44  ;;  %v5342_v31 = vmax.f32 %v5277_v33, 0.0 }
 0x748   : > { %v5118_v25 = vadd.f32 %v5117_v39, %v9374_v59  ;;  %v5119_v62 = vpop.f32.mrb[203].mxu0  ;;  %5524 = vmatmul.mubr.bf16.gmra.mrb[228].mxu0 %v5367_v40  ;;  %v5343_v52 = vmax.f32 %v5279_v61, 0.0  ;;  %v5180_v19 = vmax.f32 %v5114_v36, 0.0 }
 0x749   : > { %v5120_v54 = vadd.f32 %v5119_v62, %v9377_v44  ;;  %v5344_v32 = vmax.f32 %v5281_v8, 0.0  ;;  %v5181_v48 = vmax.f32 %v5116_v4, 0.0 }
 0x74a   : > { %v5182_v10 = vmax.f32 %v5118_v25, 0.0  ;;  %v5664_v51 = vpack.c.bf16 %v5343_v52, %v5341_v63 }
 0x74b   : > { %v5183_v45 = vmax.f32 %v5120_v54, 0.0  ;;  %v5665_v56 = vpack.c.bf16 %v5344_v32, %v5342_v31 }
 0x74c   : > { %v5369_v14 = vpack.c.bf16 %v5182_v10, %v5180_v19 }
 0x74d   : > { %v5370_v21 = vpack.c.bf16 %v5183_v45, %v5181_v48  ;;  %v5123_v5 = vpop.f32.mrb[204].mxu0  ;;  %5724 = vmatprep.mubr.bf16.mxu1 %v5665_v56 }
 0x74e   : > { %v5124_v46 = vadd.f32 %v5123_v5, %v9374_v59  ;;  %v5125_v49 = vpop.f32.mrb[205].mxu0  ;;  %5725 = vmatmul.mubr.bf16.gmra.mrb[232].mxu1 %v5664_v51  ;;  %v5284_v22 = vpop.f32.mrb[204].mxu1 }
 0x74f   : > { %5531 = vmatprep.mubr.bf16.mxu0 %v5370_v21  ;;  %v5126_v7 = vadd.f32 %v5125_v49, %v9377_v44  ;;  %v5127_v41 = vpop.f32.mrb[206].mxu0  ;;  %v5285_v38 = vadd.f32 %v5284_v22, %v9374_v59  ;;  %v5286_v24 = vpop.f32.mrb[205].mxu1 }
 0x750   : > { %5532 = vmatmul.mubr.bf16.gmra.mrb[232].mxu0 %v5369_v14  ;;  %v5128_v26 = vadd.f32 %v5127_v41, %v9374_v59  ;;  %v5129_v1 = vpop.f32.mrb[207].mxu0  ;;  %v5287_v58 = vadd.f32 %v5286_v24, %v9377_v44  ;;  %v5288_v27 = vpop.f32.mrb[206].mxu1  ;;  %v5184_v15 = vmax.f32 %v5124_v46, 0.0 }
 0x751   : > { %v5130_v34 = vadd.f32 %v5129_v1, %v9377_v44  ;;  %v5289_v16 = vadd.f32 %v5288_v27, %v9374_v59  ;;  %v5290_v11 = vpop.f32.mrb[207].mxu1  ;;  %v5185_v9 = vmax.f32 %v5126_v7, 0.0  ;;  %v5345_v30 = vmax.f32 %v5285_v38, 0.0 }
 0x752   : > { %v5186_v17 = vmax.f32 %v5128_v26, 0.0  ;;  %v5291_v23 = vadd.f32 %v5290_v11, %v9377_v44  ;;  %v5346_v28 = vmax.f32 %v5287_v58, 0.0 }
 0x753   : > { %v5187_v0 = vmax.f32 %v5130_v34, 0.0  ;;  %v5347_v47 = vmax.f32 %v5289_v16, 0.0 }
 0x754   : > { %v5371_v60 = vpack.c.bf16 %v5186_v17, %v5184_v15  ;;  %v5348_v3 = vmax.f32 %v5291_v23, 0.0 }
 0x755   : > { %v5372_v35 = vpack.c.bf16 %v5187_v0, %v5185_v9  ;;  %v5666_v55 = vpack.c.bf16 %v5347_v47, %v5345_v30 }
 0x756   : > { %v5667_v50 = vpack.c.bf16 %v5348_v3, %v5346_v28 }
 0x757   : > { %5539 = vmatprep.mubr.bf16.mxu0 %v5372_v35 }
 0x758   : > { %5540 = vmatmul.mubr.bf16.gmra.mrb[236].mxu0 %v5371_v60  ;;  %5732 = vmatprep.mubr.bf16.mxu1 %v5667_v50 }
 0x759   : > { %5733 = vmatmul.mubr.bf16.gmra.mrb[236].mxu1 %v5666_v55 }
 0x76b   : > { %v5133_v12 = vpop.f32.mrb[208].mxu0 }
 0x76c   : > { %v5134_v37 = vadd.f32 %v5133_v12, %v9374_v59  ;;  %v5135_v18 = vpop.f32.mrb[209].mxu0 }
 0x76d   : > { %v5136_v2 = vadd.f32 %v5135_v18, %v9377_v44  ;;  %v5137_v40 = vpop.f32.mrb[210].mxu0 }
 0x76e   : > { %v5138_v57 = vadd.f32 %v5137_v40, %v9374_v59  ;;  %v5139_v13 = vpop.f32.mrb[211].mxu0  ;;  %v5188_v53 = vmax.f32 %v5134_v37, 0.0 }
 0x76f   : > { %v5140_v42 = vadd.f32 %v5139_v13, %v9377_v44  ;;  %v5189_v36 = vmax.f32 %v5136_v2, 0.0 }
 0x770   : > { %v5190_v43 = vmax.f32 %v5138_v57, 0.0 }
 0x771   : > { %v5191_v20 = vmax.f32 %v5140_v42, 0.0 }
 0x772   : > { %v5373_v33 = vpack.c.bf16 %v5190_v43, %v5188_v53 }
 0x773   : > { %v5374_v29 = vpack.c.bf16 %v5191_v20, %v5189_v36  ;;  %v5294_v4 = vpop.f32.mrb[208].mxu1 }
 0x774   : > { %v5295_v39 = vadd.f32 %v5294_v4, %v9374_v59  ;;  %v5296_v61 = vpop.f32.mrb[209].mxu1 }
 0x775   : > { %v5297_v6 = vadd.f32 %v5296_v61, %v9377_v44  ;;  %v5298_v25 = vpop.f32.mrb[210].mxu1  ;;  %5547 = vmatprep.mubr.bf16.mxu0 %v5374_v29 }
 0x776   : > { %v5299_v62 = vadd.f32 %v5298_v25, %v9374_v59  ;;  %v5300_v8 = vpop.f32.mrb[211].mxu1  ;;  %5548 = vmatmul.mubr.bf16.gmra.mrb[240].mxu0 %v5373_v33  ;;  %v5349_v52 = vmax.f32 %v5295_v39, 0.0 }
 0x777   : > { %v5301_v63 = vadd.f32 %v5300_v8, %v9377_v44  ;;  %v5350_v19 = vmax.f32 %v5297_v6, 0.0 }
 0x778   : > { %v5351_v54 = vmax.f32 %v5299_v62, 0.0 }
 0x779   : > { %v5352_v31 = vmax.f32 %v5301_v63, 0.0 }
 0x77a   : > { %v5668_v10 = vpack.c.bf16 %v5351_v54, %v5349_v52 }
 0x77b   : > { %v5669_v32 = vpack.c.bf16 %v5352_v31, %v5350_v19 }
 0x77d   : > { %5740 = vmatprep.mubr.bf16.mxu1 %v5669_v32 }
 0x77e   : > { %5741 = vmatmul.mubr.bf16.gmra.mrb[240].mxu1 %v5668_v10 }
 0x78f   : > { %v5143_v48 = vpop.f32.mrb[212].mxu0 }
 0x790   : > { %v5144_v51 = vadd.f32 %v5143_v48, %v9374_v59  ;;  %v5145_v45 = vpop.f32.mrb[213].mxu0 }
 0x791   : > { %v5146_v14 = vadd.f32 %v5145_v45, %v9377_v44  ;;  %v5147_v56 = vpop.f32.mrb[214].mxu0 }
 0x792   : > { %v5148_v21 = vadd.f32 %v5147_v56, %v9374_v59  ;;  %v5149_v5 = vpop.f32.mrb[215].mxu0  ;;  %v5192_v7 = vmax.f32 %v5144_v51, 0.0 }
 0x793   : > { %v5150_v46 = vadd.f32 %v5149_v5, %v9377_v44  ;;  %v5304_v49 = vpop.f32.mrb[212].mxu1  ;;  %v5193_v1 = vmax.f32 %v5146_v14, 0.0 }
 0x794   : > { %v5194_v41 = vmax.f32 %v5148_v21, 0.0  ;;  %v5305_v22 = vadd.f32 %v5304_v49, %v9374_v59  ;;  %v5306_v26 = vpop.f32.mrb[213].mxu1 }
 0x795   : > { %v5195_v38 = vmax.f32 %v5150_v46, 0.0  ;;  %v5307_v24 = vadd.f32 %v5306_v26, %v9377_v44  ;;  %v5308_v34 = vpop.f32.mrb[214].mxu1 }
 0x796   : > { %v5375_v58 = vpack.c.bf16 %v5194_v41, %v5192_v7  ;;  %v5309_v27 = vadd.f32 %v5308_v34, %v9374_v59  ;;  %v5310_v15 = vpop.f32.mrb[215].mxu1  ;;  %v5353_v11 = vmax.f32 %v5305_v22, 0.0 }
 0x797   : > { %v5376_v17 = vpack.c.bf16 %v5195_v38, %v5193_v1  ;;  %v5311_v16 = vadd.f32 %v5310_v15, %v9377_v44  ;;  %v5354_v0 = vmax.f32 %v5307_v24, 0.0 }
 0x798   : > { %v5355_v9 = vmax.f32 %v5309_v27, 0.0 }
 0x799   : > { %v5356_v23 = vmax.f32 %v5311_v16, 0.0  ;;  %5555 = vmatprep.mubr.bf16.mxu0 %v5376_v17 }
 0x79a   : > { %v5670_v60 = vpack.c.bf16 %v5355_v9, %v5353_v11  ;;  %5556 = vmatmul.mubr.bf16.gmra.mrb[244].mxu0 %v5375_v58 }
 0x79b   : > { %v5671_v30 = vpack.c.bf16 %v5356_v23, %v5354_v0 }
 0x79d   : > { %5748 = vmatprep.mubr.bf16.mxu1 %v5671_v30 }
 0x79e   : > { %5749 = vmatmul.mubr.bf16.gmra.mrb[244].mxu1 %v5670_v60 }
 0x7a8   : > { %v5153_v47 = vpop.f32.mrb[216].mxu0 }
 0x7a9   : > { %v5154_v35 = vadd.f32 %v5153_v47, %v9374_v59  ;;  %v5155_v28 = vpop.f32.mrb[217].mxu0 }
 0x7aa   : > { %v5156_v3 = vadd.f32 %v5155_v28, %v9377_v44  ;;  %v5157_v55 = vpop.f32.mrb[218].mxu0 }
 0x7ab   : > { %v5158_v50 = vadd.f32 %v5157_v55, %v9374_v59  ;;  %v5159_v12 = vpop.f32.mrb[219].mxu0  ;;  %v5196_v18 = vmax.f32 %v5154_v35, 0.0 }
 0x7ac   : > { %v5160_v37 = vadd.f32 %v5159_v12, %v9377_v44  ;;  %v5197_v40 = vmax.f32 %v5156_v3, 0.0 }
 0x7ad   : > { %v5198_v2 = vmax.f32 %v5158_v50, 0.0 }
 0x7ae   : > { %v5199_v57 = vmax.f32 %v5160_v37, 0.0 }
 0x7af   : > { %v5377_v13 = vpack.c.bf16 %v5198_v2, %v5196_v18 }
 0x7b0   : > { %v5378_v42 = vpack.c.bf16 %v5199_v57, %v5197_v40 }
 0x7b1   : > { %v5314_v53 = vpop.f32.mrb[216].mxu1 }
 0x7b2   : > { %v5315_v43 = vadd.f32 %v5314_v53, %v9374_v59  ;;  %v5316_v36 = vpop.f32.mrb[217].mxu1  ;;  %5563 = vmatprep.mubr.bf16.mxu0 %v5378_v42 }
 0x7b3   : > { %v5317_v20 = vadd.f32 %v5316_v36, %v9377_v44  ;;  %v5318_v33 = vpop.f32.mrb[218].mxu1  ;;  %5564 = vmatmul.mubr.bf16.gmra.mrb[248].mxu0 %v5377_v13 }
 0x7b4   : > { %v5319_v29 = vadd.f32 %v5318_v33, %v9374_v59  ;;  %v5320_v4 = vpop.f32.mrb[219].mxu1  ;;  %v5357_v61 = vmax.f32 %v5315_v43, 0.0 }
 0x7b5   : > { %v5321_v39 = vadd.f32 %v5320_v4, %v9377_v44  ;;  %v5358_v25 = vmax.f32 %v5317_v20, 0.0 }
 0x7b6   : > { %v5359_v6 = vmax.f32 %v5319_v29, 0.0 }
 0x7b7   : > { %v5360_v62 = vmax.f32 %v5321_v39, 0.0 }
 0x7b8   : > { %v5672_v8 = vpack.c.bf16 %v5359_v6, %v5357_v61 }
 0x7b9   : > { %v5673_v63 = vpack.c.bf16 %v5360_v62, %v5358_v25 }
 0x7bb   : > { %5756 = vmatprep.mubr.bf16.mxu1 %v5673_v63 }
 0x7bc   : > { %5757 = vmatmul.mubr.bf16.gmra.mrb[248].mxu1 %v5672_v8 }
 0x7cf   : > { %v5163_v52 = vpop.f32.mrb[220].mxu0 }
 0x7d0   : > { %v5164_v54 = vadd.f32 %v5163_v52, %v9374_v59  ;;  %v5165_v19 = vpop.f32.mrb[221].mxu0 }
 0x7d1   : > { %v5166_v31 = vadd.f32 %v5165_v19, %v9377_v44  ;;  %v5167_v10 = vpop.f32.mrb[222].mxu0 }
 0x7d2   : > { %v5168_v32 = vadd.f32 %v5167_v10, %v9374_v59  ;;  %v5169_v48 = vpop.f32.mrb[223].mxu0  ;;  %v5324_v51 = vpop.f32.mrb[220].mxu1  ;;  %v5200_v21 = vmax.f32 %v5164_v54, 0.0 }
 0x7d3   : > { %v5170_v45 = vadd.f32 %v5169_v48, %v9377_v44  ;;  %v5325_v14 = vadd.f32 %v5324_v51, %v9374_v59  ;;  %v5326_v56 = vpop.f32.mrb[221].mxu1  ;;  %v5201_v7 = vmax.f32 %v5166_v31, 0.0 }
 0x7d4   : > { %v5202_v5 = vmax.f32 %v5168_v32, 0.0  ;;  %v5327_v46 = vadd.f32 %v5326_v56, %v9377_v44  ;;  %v5328_v49 = vpop.f32.mrb[222].mxu1 }
 0x7d5   : > { %v5203_v41 = vmax.f32 %v5170_v45, 0.0  ;;  %v5329_v22 = vadd.f32 %v5328_v49, %v9374_v59  ;;  %v5330_v26 = vpop.f32.mrb[223].mxu1  ;;  %v5361_v34 = vmax.f32 %v5325_v14, 0.0  ;;  %v9447_v59 = vld [vmem:[%s9558_s5] ss:$0 sm:$0xff] }
 0x7d6   : > { %v5379_v1 = vpack.c.bf16 %v5202_v5, %v5200_v21  ;;  %v5331_v38 = vadd.f32 %v5330_v26, %v9377_v44  ;;  %v5362_v27 = vmax.f32 %v5327_v46, 0.0 }
 0x7d7   : > { %v5380_v24 = vpack.c.bf16 %v5203_v41, %v5201_v7  ;;  %v5363_v58 = vmax.f32 %v5329_v22, 0.0 }
 0x7d8   : > { %v5364_v15 = vmax.f32 %v5331_v38, 0.0 }
 0x7d9   : > { %v5674_v17 = vpack.c.bf16 %v5363_v58, %v5361_v34  ;;  %5571 = vmatprep.mubr.bf16.mxu0 %v5380_v24 }
 0x7da   : > { %v5675_v16 = vpack.c.bf16 %v5364_v15, %v5362_v27  ;;  %5572 = vmatmul.mubr.bf16.gmra.mrb[252].mxu0 %v5379_v1  ;;  %v6437_v11 = vpop.f32.mrb[224].mxu1 }
 0x7db   : > { %v6438_v9 = vpop.f32.mrb[225].mxu1 }
 0x7dc   : > { %v6439_v0 = vadd.f32 %v6438_v9, %v6437_v11  ;;  %v6440_v23 = vpop.f32.mrb[226].mxu1  ;;  %5764 = vmatprep.mubr.bf16.mxu1 %v5675_v16 }
 0x7dd   : > { %v6441_v44 = vpop.f32.mrb[227].mxu1  ;;  %5765 = vmatmul.mubr.bf16.gmra.mrb[252].mxu1 %v5674_v17 }
 0x7de   : > { %v6442_v60 = vadd.f32 %v6441_v44, %v6440_v23  ;;  %v5711_v30 = vadd.f32 %v6439_v0, %v9447_v59 }
 0x7e0   : > { %v5714_v47 = vadd.f32 %v6442_v60, %v9447_v59 }
 0x7e2   : > { %v6305_v35 = vpack.c.bf16 %v5714_v47, %v5711_v30  ;;  %v6373_v28 = vpop.f32.mrb[224].mxu0 }
 0x7e3   : > { %v6374_v3 = vpop.f32.mrb[225].mxu0 }
 0x7e4   : > { %6349 = vst [vmem:[%s9453_s11 + $0x40] sm:$0xff] %v6305_v35   ;;  %v6375_v55 = vadd.f32 %v6374_v3, %v6373_v28  ;;  %v6376_v50 = vpop.f32.mrb[226].mxu0 }
 0x7e5   : > { %v6377_v12 = vpop.f32.mrb[227].mxu0 }
 0x7e6   : > { %v6378_v37 = vadd.f32 %v6377_v12, %v6376_v50  ;;  %v5518_v18 = vadd.f32 %v6375_v55, %v9447_v59 }
 0x7e8   : > { %v5521_v2 = vadd.f32 %v6378_v37, %v9447_v59 }
 0x7ea   : > { %v6265_v40 = vpack.c.bf16 %v5521_v2, %v5518_v18 }
 0x7ec   : > { %6266 = vst [vmem:[%s9453_s11] sm:$0xff] %v6265_v40  }
 0x7f1   : > { %v6443_v57 = vpop.f32.mrb[228].mxu1 }
 0x7f2   : > { %v6444_v13 = vpop.f32.mrb[229].mxu1 }
 0x7f3   : > { %v6445_v42 = vadd.f32 %v6444_v13, %v6443_v57  ;;  %v6446_v53 = vpop.f32.mrb[230].mxu1 }
 0x7f4   : > { %v6447_v43 = vpop.f32.mrb[231].mxu1 }
 0x7f5   : > { %v6448_v36 = vadd.f32 %v6447_v43, %v6446_v53  ;;  %v5719_v20 = vadd.f32 %v6445_v42, %v9447_v59 }
 0x7f7   : > { %v5722_v33 = vadd.f32 %v6448_v36, %v9447_v59 }
 0x7f9   : > { %v6310_v29 = vpack.c.bf16 %v5722_v33, %v5719_v20 }
 0x7fb   : > { %6350 = vst [vmem:[%s9453_s11 + $0x48] sm:$0xff] %v6310_v29  }
 0x81b   : > { %v6379_v4 = vpop.f32.mrb[228].mxu0 }
 0x81c   : > { %v6380_v39 = vpop.f32.mrb[229].mxu0 }
 0x81d   : > { %v6381_v61 = vadd.f32 %v6380_v39, %v6379_v4  ;;  %v6382_v6 = vpop.f32.mrb[230].mxu0 }
 0x81e   : > { %v6383_v25 = vpop.f32.mrb[231].mxu0 }
 0x81f   : > { %v6384_v62 = vadd.f32 %v6383_v25, %v6382_v6  ;;  %v5526_v8 = vadd.f32 %v6381_v61, %v9447_v59 }
 0x821   : > { %v5529_v63 = vadd.f32 %v6384_v62, %v9447_v59  ;;  %v6449_v52 = vpop.f32.mrb[232].mxu1 }
 0x822   : > { %v6450_v31 = vpop.f32.mrb[233].mxu1 }
 0x823   : > { %v6270_v54 = vpack.c.bf16 %v5529_v63, %v5526_v8  ;;  %v6385_v19 = vpop.f32.mrb[232].mxu0  ;;  %v6451_v32 = vadd.f32 %v6450_v31, %v6449_v52  ;;  %v6452_v48 = vpop.f32.mrb[234].mxu1 }
 0x824   : > { %v6386_v10 = vpop.f32.mrb[233].mxu0  ;;  %v6453_v14 = vpop.f32.mrb[235].mxu1 }
 0x825   : > { %6342 = vst [vmem:[%s9453_s11 + $0x8] sm:$0xff] %v6270_v54   ;;  %v6387_v51 = vadd.f32 %v6386_v10, %v6385_v19  ;;  %v6388_v45 = vpop.f32.mrb[234].mxu0  ;;  %v6454_v21 = vadd.f32 %v6453_v14, %v6452_v48  ;;  %v5727_v46 = vadd.f32 %v6451_v32, %v9447_v59 }
 0x826   : > { %v6389_v56 = vpop.f32.mrb[235].mxu0 }
 0x827   : > { %v6390_v5 = vadd.f32 %v6389_v56, %v6388_v45  ;;  %v5730_v49 = vadd.f32 %v6454_v21, %v9447_v59  ;;  %v5534_v7 = vadd.f32 %v6387_v51, %v9447_v59 }
 0x829   : > { %v5537_v41 = vadd.f32 %v6390_v5, %v9447_v59  ;;  %v6315_v22 = vpack.c.bf16 %v5730_v49, %v5727_v46 }
 0x82b   : > { %v6275_v26 = vpack.c.bf16 %v5537_v41, %v5534_v7  ;;  %v6391_v1 = vpop.f32.mrb[236].mxu0  ;;  %6351 = vst [vmem:[%s9453_s11 + $0x50] sm:$0xff] %v6315_v22  }
 0x82c   : > { %v6392_v38 = vpop.f32.mrb[237].mxu0  ;;  %v6455_v58 = vpop.f32.mrb[236].mxu1 }
 0x82d   : > { %6343 = vst [vmem:[%s9453_s11 + $0x10] sm:$0xff] %v6275_v26   ;;  %v6393_v24 = vadd.f32 %v6392_v38, %v6391_v1  ;;  %v6394_v34 = vpop.f32.mrb[238].mxu0  ;;  %v6456_v15 = vpop.f32.mrb[237].mxu1 }
 0x82e   : > { %v6395_v27 = vpop.f32.mrb[239].mxu0  ;;  %v6457_v16 = vadd.f32 %v6456_v15, %v6455_v58  ;;  %v6458_v11 = vpop.f32.mrb[238].mxu1 }
 0x82f   : > { %v6396_v17 = vadd.f32 %v6395_v27, %v6394_v34  ;;  %v6459_v9 = vpop.f32.mrb[239].mxu1  ;;  %v5542_v0 = vadd.f32 %v6393_v24, %v9447_v59 }
 0x830   : > { %v6460_v44 = vadd.f32 %v6459_v9, %v6458_v11  ;;  %v5735_v30 = vadd.f32 %v6457_v16, %v9447_v59 }
 0x831   : > { %v5545_v23 = vadd.f32 %v6396_v17, %v9447_v59 }
 0x832   : > { %v5738_v47 = vadd.f32 %v6460_v44, %v9447_v59 }
 0x833   : > { %v6280_v60 = vpack.c.bf16 %v5545_v23, %v5542_v0 }
 0x834   : > { %v6320_v35 = vpack.c.bf16 %v5738_v47, %v5735_v30 }
 0x835   : > { %6344 = vst [vmem:[%s9453_s11 + $0x18] sm:$0xff] %v6280_v60  }
 0x836   : > { %6352 = vst [vmem:[%s9453_s11 + $0x58] sm:$0xff] %v6320_v35  }
 0x849   : > { %v6397_v28 = vpop.f32.mrb[240].mxu0 }
 0x84a   : > { %v6398_v3 = vpop.f32.mrb[241].mxu0 }
 0x84b   : > { %v6399_v55 = vadd.f32 %v6398_v3, %v6397_v28  ;;  %v6400_v50 = vpop.f32.mrb[242].mxu0 }
 0x84c   : > { %v6401_v12 = vpop.f32.mrb[243].mxu0 }
 0x84d   : > { %v6402_v37 = vadd.f32 %v6401_v12, %v6400_v50  ;;  %v5550_v18 = vadd.f32 %v6399_v55, %v9447_v59 }
 0x84f   : > { %v5553_v2 = vadd.f32 %v6402_v37, %v9447_v59 }
 0x851   : > { %v6285_v40 = vpack.c.bf16 %v5553_v2, %v5550_v18  ;;  %v6461_v57 = vpop.f32.mrb[240].mxu1 }
 0x852   : > { %v6462_v13 = vpop.f32.mrb[241].mxu1 }
 0x853   : > { %6345 = vst [vmem:[%s9453_s11 + $0x20] sm:$0xff] %v6285_v40   ;;  %v6463_v42 = vadd.f32 %v6462_v13, %v6461_v57  ;;  %v6464_v53 = vpop.f32.mrb[242].mxu1 }
 0x854   : > { %v6465_v43 = vpop.f32.mrb[243].mxu1 }
 0x855   : > { %v6466_v36 = vadd.f32 %v6465_v43, %v6464_v53  ;;  %v5743_v20 = vadd.f32 %v6463_v42, %v9447_v59 }
 0x857   : > { %v5746_v33 = vadd.f32 %v6466_v36, %v9447_v59 }
 0x859   : > { %v6325_v29 = vpack.c.bf16 %v5746_v33, %v5743_v20 }
 0x85b   : > { %6353 = vst [vmem:[%s9453_s11 + $0x60] sm:$0xff] %v6325_v29  }
 0x86d   : > { %v6403_v4 = vpop.f32.mrb[244].mxu0 }
 0x86e   : > { %v6404_v39 = vpop.f32.mrb[245].mxu0 }
 0x86f   : > { %v6405_v61 = vadd.f32 %v6404_v39, %v6403_v4  ;;  %v6406_v6 = vpop.f32.mrb[246].mxu0 }
 0x870   : > { %v6407_v25 = vpop.f32.mrb[247].mxu0 }
 0x871   : > { %v6408_v62 = vadd.f32 %v6407_v25, %v6406_v6  ;;  %v6467_v8 = vpop.f32.mrb[244].mxu1  ;;  %v5558_v52 = vadd.f32 %v6405_v61, %v9447_v59 }
 0x872   : > { %v6468_v63 = vpop.f32.mrb[245].mxu1 }
 0x873   : > { %v5561_v54 = vadd.f32 %v6408_v62, %v9447_v59  ;;  %v6469_v19 = vadd.f32 %v6468_v63, %v6467_v8  ;;  %v6470_v31 = vpop.f32.mrb[246].mxu1 }
 0x874   : > { %v6471_v10 = vpop.f32.mrb[247].mxu1 }
 0x875   : > { %v6290_v32 = vpack.c.bf16 %v5561_v54, %v5558_v52  ;;  %v6472_v48 = vadd.f32 %v6471_v10, %v6470_v31  ;;  %v5751_v51 = vadd.f32 %v6469_v19, %v9447_v59 }
 0x877   : > { %6346 = vst [vmem:[%s9453_s11 + $0x28] sm:$0xff] %v6290_v32   ;;  %v5754_v45 = vadd.f32 %v6472_v48, %v9447_v59 }
 0x879   : > { %v6330_v14 = vpack.c.bf16 %v5754_v45, %v5751_v51 }
 0x87b   : > { %6354 = vst [vmem:[%s9453_s11 + $0x68] sm:$0xff] %v6330_v14  }
 0x886   : > { %v6409_v56 = vpop.f32.mrb[248].mxu0 }
 0x887   : > { %v6410_v21 = vpop.f32.mrb[249].mxu0 }
 0x888   : > { %v6411_v5 = vadd.f32 %v6410_v21, %v6409_v56  ;;  %v6412_v46 = vpop.f32.mrb[250].mxu0 }
 0x889   : > { %v6413_v49 = vpop.f32.mrb[251].mxu0 }
 0x88a   : > { %v6414_v7 = vadd.f32 %v6413_v49, %v6412_v46  ;;  %v5566_v41 = vadd.f32 %v6411_v5, %v9447_v59 }
 0x88c   : > { %v5569_v22 = vadd.f32 %v6414_v7, %v9447_v59 }
 0x88e   : > { %v6295_v26 = vpack.c.bf16 %v5569_v22, %v5566_v41 }
 0x88f   : > { %v6473_v1 = vpop.f32.mrb[248].mxu1 }
 0x890   : > { %v6474_v38 = vpop.f32.mrb[249].mxu1  ;;  %6347 = vst [vmem:[%s9453_s11 + $0x30] sm:$0xff] %v6295_v26  }
 0x891   : > { %v6475_v24 = vadd.f32 %v6474_v38, %v6473_v1  ;;  %v6476_v34 = vpop.f32.mrb[250].mxu1 }
 0x892   : > { %v6477_v58 = vpop.f32.mrb[251].mxu1 }
 0x893   : > { %v6478_v27 = vadd.f32 %v6477_v58, %v6476_v34  ;;  %v5759_v15 = vadd.f32 %v6475_v24, %v9447_v59 }
 0x895   : > { %v5762_v17 = vadd.f32 %v6478_v27, %v9447_v59 }
 0x897   : > { %v6335_v16 = vpack.c.bf16 %v5762_v17, %v5759_v15 }
 0x899   : > { %6355 = vst [vmem:[%s9453_s11 + $0x70] sm:$0xff] %v6335_v16  }
 0x8ad   : > { %v6415_v11 = vpop.f32.mrb[252].mxu0 }
 0x8ae   : > { %v6416_v9 = vpop.f32.mrb[253].mxu0 }
 0x8af   : > { %v6417_v0 = vadd.f32 %v6416_v9, %v6415_v11  ;;  %v6418_v23 = vpop.f32.mrb[254].mxu0 }
 0x8b0   : > { %v6419_v44 = vpop.f32.mrb[255].mxu0  ;;  %v6479_v60 = vpop.f32.mrb[252].mxu1 }
 0x8b1   : > { %v6420_v30 = vadd.f32 %v6419_v44, %v6418_v23  ;;  %v6480_v47 = vpop.f32.mrb[253].mxu1  ;;  %v5574_v3 = vadd.f32 %v6417_v0, %v9447_v59 }
 0x8b2   : > { %v6481_v35 = vadd.f32 %v6480_v47, %v6479_v60  ;;  %v6482_v28 = vpop.f32.mrb[254].mxu1 }
 0x8b3   : > { %v5577_v55 = vadd.f32 %v6420_v30, %v9447_v59  ;;  %v6483_v50 = vpop.f32.mrb[255].mxu1 }
 0x8b4   : > { %v6484_v12 = vadd.f32 %v6483_v50, %v6482_v28  ;;  %v5767_v18 = vadd.f32 %v6481_v35, %v9447_v59 }
 0x8b5   : > { %v6300_v37 = vpack.c.bf16 %v5577_v55, %v5574_v3 }
 0x8b6   : > { %v5770_v2 = vadd.f32 %v6484_v12, %v9447_v59 }
 0x8b7   : > { %6348 = vst [vmem:[%s9453_s11 + $0x38] sm:$0xff] %v6300_v37  }
 0x8b8   : > { %v6340_v40 = vpack.c.bf16 %v5770_v2, %v5767_v18 }
 0x8ba   : > { %6356 = vst [vmem:[%s9453_s11 + $0x78] sm:$0xff] %v6340_v40  }
 0x8bb   : > { %6973 = shalt.err (!%p6970_p7)
}
 0x8bc   : > { %s6974_s26 = scalar_lea.hbm %s9505_s16, 2048  ;;  %s6978_s10 = scalar_lea.hbm %s9559_s6, 8192 }
 0x8bd   : > { %p6975_p8 = scmp.ne.s32.totalorder %s9505_s16, %s6974_s26  ;;  %p6979_p1 = scmp.lt.u32.totalorder %s9505_s16, %s9559_s6 }
 0x8be   : > { %p6980_p0 = scmp.lt.u32.totalorder %s6978_s10, %s6974_s26  ;;  %p6982_p6 = scmp.lt.u32.totalorder %s6974_s26, %s9505_s16 }
 0x8bf   : > { %p6976_p11 = pnand %p6975_p8, %p9916_p9 }
 0x8c0   : > { %p6981_p5 = por %p6980_p0, %p6979_p1 }
 0x8c1   : > { %p6977_p13 = pneg %p6976_p11 }
 0x8c2   : > { %p6983_p10 = por %p6982_p6, %p6981_p5 }
 0x8c4   : > { %p6984_p12 = pnand %p6983_p10, %p6977_p13 }
 0x8c6   : > { %6987 = shalt.err (!%p6984_p12)
}
 0x8c7   : > { %s7035_s12 = smov 64   ;;  %s7036_s14 = smov 4  }
 0x8c8   : > { %6489 = dma.vmem_to_hbm [thread:$0]  (%p9916_p9), %s9507_s9, 2048, %s9505_s16, %s9512_s25, %s7035_s12, %s7035_s12, %s7036_s14  }
 0x8c9 PF: > { %p6501_p2 = scmp.ge.s32.totalorder %s7026_s24, 2  ;;  %s5882_s15 = sand.u32 1, %s7014_s21  }
 0x8ca   : > { %p9917_p3 = scmp.ne.s32.totalorder %s9633_s8, 0  ;;  %s5883_s17 = scalar_lea.sflag [#allocation4], %s5882_s15 }
 0x8cc   : > { %p6496_p4 = pnand %p6501_p2, %p9917_p3 }
 0x8ce   : > { %7009 = dma.done.wait (!%p6496_p4), %s5883_s17, 2048  }
 0x8cf   : > { %7011 = vsyncadd (!%p6496_p4), %s5883_s17, 4294965248  ;;  %p17_p7 = scmp.ge.s32.totalorder %s7097_s27, 6   ;;  %s9918_s21 = smov %s7018_s22 }
 0x8d0   : > { %s9919_s22 = smov %s7022_s23  ;;  %s9920_s23 = smov %s7108_s30 }
 0x8d1   : > { %s9921_s24 = smov %s7097_s27  ;;  %19 = sbr.rel (!%p17_p7) target bundleno = 4 (0x4), region = 91 }
 0x8d8   :  { %5888 = vsyncpa [#allocation3], 1 }
 0x8d9   :  { %5890 = vsyncpa [#allocation3 + $0x1], 1 }
 0x8da   :  { %5891 = vsyncpa [#allocation4], 1 }
 0x8db   :  { %5893 = vsyncpa [#allocation4 + $0x1], 1 }

</bundles_post_ra>
